<compile_context>
chip_gen: v5e
topology: v5e:2x2
jax: 0.10.0
libtpu: 0.0.40
codegen_flags: <defaults>
</compile_context>

<pallas_src>
import functools
import math

import jax
import jax.numpy as jnp
import numpy as np
from jax.experimental import pallas as pl
from jax.experimental.pallas import tpu as pltpu

EPS = 1e-5
LANE = 128

# Intermediate conv activations (c1, c2) kept in HBM.  Default f32 for tight
# parity with the f32 PyTorch module; set to jnp.bfloat16 on HBM-bound chips
# (v5e/v6e) to halve the intermediate round-trip traffic (review item).
_ACT_DTYPE = jnp.float32
_OP_DTYPE = jnp.bfloat16          # MXU operand dtype (f32 accumulation)


def _round_up(x, m):
    return (x + m - 1) // m * m


def _nbytes(shape, dtype):
    return math.prod(shape) * np.dtype(dtype).itemsize


def _vmem_limit(est_bytes):
    # Derived from the actual block/scratch footprint; clamped to a ceiling
    # portable across v5e/v6e (128 MiB) and v7x (64 MiB physical).
    return int(min(60 * 1024 * 1024, max(8 * 1024 * 1024, 2 * est_bytes)))


def _pick_rows(h):
    """Row-strip height R: matmul M = R*W, R must divide H."""
    for r in (8, 16, 4, 2, 1):
        if h % r == 0:
            return r
    return h


# ---------------------------------------------------------------------------
# Optional single-buffering of constant-index operands (pl.Buffered(1)).
# Probed once at import so the script degrades gracefully if unsupported.
# ---------------------------------------------------------------------------
def _probe_buffered1():
    try:
        def _k(x_ref, o_ref):
            o_ref[...] = x_ref[...] + 1.0

        fn = pl.pallas_call(
            _k,
            out_shape=jax.ShapeDtypeStruct((16, 128), jnp.float32),
            grid=(2,),
            in_specs=[pl.BlockSpec((8, 128), lambda i: (0, 0),
                                   pipeline_mode=pl.Buffered(1))],
            out_specs=pl.BlockSpec((8, 128), lambda i: (i, 0)))
        jax.jit(fn).lower(
            jax.ShapeDtypeStruct((8, 128), jnp.float32)).compile()
        return True
    except Exception:
        return False


_HAS_BUFFERED1 = _probe_buffered1()


def _const_spec(block_shape, index_map):
    """BlockSpec for operands whose block never changes across the grid."""
    if _HAS_BUFFERED1:
        return pl.BlockSpec(block_shape, index_map,
                            pipeline_mode=pl.Buffered(1))
    return pl.BlockSpec(block_shape, index_map)


# ---------------------------------------------------------------------------
# Kernel 1: conv1 (implicit im2col, one K=9*Cp matmul per row strip) +
#           one-pass BN1 stats accumulation.   Grid: (batch, row-strip).
# ---------------------------------------------------------------------------
def _conv1_stats_kernel(xp_ref, w_ref, c1_ref, stats_ref, patch_ref,
                        *, total_count, R, W, Cp):
    n = pl.program_id(0)
    s = pl.program_id(1)

    @pl.when(jnp.logical_and(n == 0, s == 0))
    def _init():
        stats_ref[...] = jnp.zeros_like(stats_ref)

    r0 = pl.multiple_of(s * R, R)
    # Build the (R*W, 9*Cp) im2col patch: 3 width-shifted slabs, 3 row
    # offsets each, written at lane-aligned column offsets of the scratch.
    for dx in range(3):
        slab = xp_ref[0, pl.ds(r0, R + 2), pl.ds(dx, W), :]       # (R+2, W, Cp)
        for dy in range(3):
            t = dy * 3 + dx
            patch_ref[:, t * Cp:(t + 1) * Cp] = slab[dy:dy + R].reshape(R * W, Cp)

    # Single MXU matmul, K = 9*Cp, bf16 operands, f32 accumulation.
    acc = jnp.dot(patch_ref[...], w_ref[...],
                  preferred_element_type=jnp.float32)              # (R*W, Cp)
    c1_ref[...] = acc.reshape(1, R, W, Cp).astype(c1_ref.dtype)

    stats_ref[0:1, :] += jnp.sum(acc, axis=0, keepdims=True)        # sum
    stats_ref[1:2, :] += jnp.sum(acc * acc, axis=0, keepdims=True)  # sumsq

    @pl.when(jnp.logical_and(n == pl.num_programs(0) - 1,
                             s == pl.num_programs(1) - 1))
    def _finalize():
        mean = stats_ref[0:1, :] / total_count
        var = stats_ref[1:2, :] / total_count - mean * mean
        stats_ref[0:1, :] = mean
        stats_ref[1:2, :] = jax.lax.rsqrt(var + EPS)


# ---------------------------------------------------------------------------
# Kernel 2: bn1 + relu (folded affine) -> spatially padded VMEM halo scratch
#           -> conv2 (implicit im2col, per-strip K=9*Cp matmuls) + BN2 stats.
#           Grid: (batch,)  (strip loop is in-kernel because conv2 needs the
#           bn1/relu'd halo rows of neighbouring strips).
# ---------------------------------------------------------------------------
def _bn1_relu_conv2_stats_kernel(c1_ref, s1_ref, g_ref, b_ref, w_ref,
                                 c2_ref, stats_ref, ypad_ref, patch_ref,
                                 *, total_count, H, W, R, Cp):
    n = pl.program_id(0)
    S = H // R

    @pl.when(n == 0)
    def _init():
        stats_ref[...] = jnp.zeros_like(stats_ref)
        # Zero the halo scratch once; the zero border persists across steps
        # (only the interior is rewritten every step).
        ypad_ref[...] = jnp.zeros_like(ypad_ref)

    inv = s1_ref[1:2, :]                                   # rsqrt(var+eps)
    scale = (g_ref[...] * inv).reshape(1, 1, Cp)
    shift = (b_ref[...] - s1_ref[0:1, :] * g_ref[...] * inv).reshape(1, 1, Cp)

    # Pass 1: bn1 + relu per strip -> padded VMEM scratch (bf16, stays on-chip).
    for s in range(S):
        r0 = s * R
        c1s = c1_ref[0, r0:r0 + R, :, :].astype(jnp.float32)        # (R, W, Cp)
        y = jnp.maximum(c1s * scale + shift, 0.0)
        ypad_ref[r0 + 1:r0 + 1 + R, 1:W + 1, :] = y.astype(ypad_ref.dtype)

    # Pass 2: conv2 per strip (im2col scratch -> single K=9*Cp matmul each).
    for s in range(S):
        r0 = s * R
        for dx in range(3):
            slab = ypad_ref[r0:r0 + R + 2, dx:dx + W, :]            # (R+2, W, Cp)
            for dy in range(3):
                t = dy * 3 + dx
                patch_ref[:, t * Cp:(t + 1) * Cp] = (
                    slab[dy:dy + R].reshape(R * W, Cp))
        acc = jnp.dot(patch_ref[...], w_ref[...],
                      preferred_element_type=jnp.float32)           # (R*W, Cp)
        c2_ref[0, r0:r0 + R, :, :] = acc.reshape(R, W, Cp).astype(c2_ref.dtype)
        stats_ref[0:1, :] += jnp.sum(acc, axis=0, keepdims=True)
        stats_ref[1:2, :] += jnp.sum(acc * acc, axis=0, keepdims=True)

    @pl.when(n == pl.num_programs(0) - 1)
    def _finalize():
        mean = stats_ref[0:1, :] / total_count
        var = stats_ref[1:2, :] / total_count - mean * mean
        stats_ref[0:1, :] = mean
        stats_ref[1:2, :] = jax.lax.rsqrt(var + EPS)


# ---------------------------------------------------------------------------
# Kernel 3: bn2 (folded affine) + identity add + relu.  Fully parallel grid,
#           un-haloed identity -> clean full-block (lane-dense) loads/stores.
# ---------------------------------------------------------------------------
def _bn2_add_relu_kernel(c2_ref, s_ref, g_ref, b_ref, xid_ref, o_ref):
    Cp = o_ref.shape[-1]
    inv = s_ref[1:2, :]
    scale = (g_ref[...] * inv).reshape(1, 1, 1, Cp)
    shift = (b_ref[...] - s_ref[0:1, :] * g_ref[...] * inv).reshape(1, 1, 1, Cp)
    o_ref[...] = jnp.maximum(
        c2_ref[...].astype(jnp.float32) * scale + shift
        + xid_ref[...].astype(jnp.float32), 0.0)


# ---------------------------------------------------------------------------
# pallas_call wrappers
# ---------------------------------------------------------------------------
def _conv1_stats(xp, w, total_count, R):
    N, Hp, Wp, Cp = xp.shape
    H, W = Hp - 2, Wp - 2
    S = H // R
    kernel = functools.partial(_conv1_stats_kernel, total_count=total_count,
                               R=R, W=W, Cp=Cp)
    est = (2 * _nbytes((1, Hp, Wp, Cp), xp.dtype)
           + 2 * _nbytes(w.shape, w.dtype)
           + 2 * _nbytes((1, R, W, Cp), _ACT_DTYPE)
           + _nbytes((R * W, 9 * Cp), _OP_DTYPE)
           + _nbytes((2, Cp), jnp.float32))
    return pl.pallas_call(
        kernel,
        out_shape=(jax.ShapeDtypeStruct((N, H, W, Cp), _ACT_DTYPE),
                   jax.ShapeDtypeStruct((2, Cp), jnp.float32)),
        grid=(N, S),
        in_specs=[pl.BlockSpec((1, Hp, Wp, Cp), lambda n, s: (n, 0, 0, 0)),
                  _const_spec((9 * Cp, Cp), lambda n, s: (0, 0))],
        out_specs=(pl.BlockSpec((1, R, W, Cp), lambda n, s: (n, s, 0, 0)),
                   pl.BlockSpec((2, Cp), lambda n, s: (0, 0))),
        scratch_shapes=[pltpu.VMEM((R * W, 9 * Cp), _OP_DTYPE)],
        compiler_params=pltpu.CompilerParams(
            dimension_semantics=("arbitrary", "arbitrary"),
            vmem_limit_bytes=_vmem_limit(est)),
    )(xp, w)


def _bn1_relu_conv2_stats(c1, s1, g, b, w, total_count, R):
    N, H, W, Cp = c1.shape
    kernel = functools.partial(_bn1_relu_conv2_stats_kernel,
                               total_count=total_count, H=H, W=W, R=R, Cp=Cp)
    est = (2 * _nbytes((1, H, W, Cp), c1.dtype)
           + 2 * _nbytes(w.shape, w.dtype)
           + 2 * _nbytes((1, H, W, Cp), _ACT_DTYPE)
           + _nbytes((H + 2, W + 2, Cp), _OP_DTYPE)
           + _nbytes((R * W, 9 * Cp), _OP_DTYPE)
           + 8 * Cp * 4)
    return pl.pallas_call(
        kernel,
        out_shape=(jax.ShapeDtypeStruct((N, H, W, Cp), _ACT_DTYPE),
                   jax.ShapeDtypeStruct((2, Cp), jnp.float32)),
        grid=(N,),
        in_specs=[pl.BlockSpec((1, H, W, Cp), lambda n: (n, 0, 0, 0)),
                  _const_spec((2, Cp), lambda n: (0, 0)),
                  _const_spec((1, Cp), lambda n: (0, 0)),
                  _const_spec((1, Cp), lambda n: (0, 0)),
                  _const_spec((9 * Cp, Cp), lambda n: (0, 0))],
        out_specs=(pl.BlockSpec((1, H, W, Cp), lambda n: (n, 0, 0, 0)),
                   pl.BlockSpec((2, Cp), lambda n: (0, 0))),
        scratch_shapes=[pltpu.VMEM((H + 2, W + 2, Cp), _OP_DTYPE),
                        pltpu.VMEM((R * W, 9 * Cp), _OP_DTYPE)],
        compiler_params=pltpu.CompilerParams(
            dimension_semantics=("arbitrary",),
            vmem_limit_bytes=_vmem_limit(est)),
    )(c1, s1, g, b, w)


def _bn2_add_relu(c2, s2, g, b, x_id, R):
    N, H, W, Cp = c2.shape
    S = H // R
    est = (2 * _nbytes((1, R, W, Cp), c2.dtype)
           + 2 * _nbytes((1, R, W, Cp), x_id.dtype)
           + 2 * _nbytes((1, R, W, Cp), jnp.float32)
           + 8 * Cp * 4)
    return pl.pallas_call(
        _bn2_add_relu_kernel,
        out_shape=jax.ShapeDtypeStruct((N, H, W, Cp), jnp.float32),
        grid=(N, S),
        in_specs=[pl.BlockSpec((1, R, W, Cp), lambda n, s: (n, s, 0, 0)),
                  _const_spec((2, Cp), lambda n, s: (0, 0)),
                  _const_spec((1, Cp), lambda n, s: (0, 0)),
                  _const_spec((1, Cp), lambda n, s: (0, 0)),
                  pl.BlockSpec((1, R, W, Cp), lambda n, s: (n, s, 0, 0))],
        out_specs=pl.BlockSpec((1, R, W, Cp), lambda n, s: (n, s, 0, 0)),
        compiler_params=pltpu.CompilerParams(
            dimension_semantics=("parallel", "parallel"),
            vmem_limit_bytes=_vmem_limit(est)),
    )(c2, s2, g, b, x_id)


# ---------------------------------------------------------------------------
# Layout glue (NCHW <-> lane-dense NHWC, weight packing)
# ---------------------------------------------------------------------------
def _pack_weight(w_oihw, cin_p, cout_p):
    """PyTorch conv weight [Cout, Cin, 3, 3] -> [9*Cin_p, Cout_p] bf16."""
    cout, cin = w_oihw.shape[0], w_oihw.shape[1]
    w = jnp.transpose(w_oihw, (2, 3, 1, 0))                # (3, 3, Cin, Cout)
    w = jnp.pad(w, ((0, 0), (0, 0), (0, cin_p - cin), (0, cout_p - cout)))
    return w.reshape(9 * cin_p, cout_p).astype(_OP_DTYPE)


def _pad_row(v, c_p):
    c = v.shape[-1]
    return jnp.pad(v.reshape(1, c), ((0, 0), (0, c_p - c)))


def init_params(key, in_channels, out_channels):
    k1, k2, k3, k4, k5, k6 = jax.random.split(key, 6)
    w1 = 0.1 * jax.random.normal(k1, (out_channels, in_channels, 3, 3), jnp.float32)
    w2 = 0.1 * jax.random.normal(k2, (out_channels, out_channels, 3, 3), jnp.float32)
    g1 = 1.0 + 0.1 * jax.random.normal(k3, (1, out_channels), jnp.float32)
    b1 = 0.1 * jax.random.normal(k4, (1, out_channels), jnp.float32)
    g2 = 1.0 + 0.1 * jax.random.normal(k5, (1, out_channels), jnp.float32)
    b2 = 0.1 * jax.random.normal(k6, (1, out_channels), jnp.float32)
    return dict(w1=w1, g1=g1, b1=b1, w2=w2, g2=g2, b2=b2)


@jax.jit
def resnet_block_forward(x_nchw, params):
    """ResNetBlock forward.  x: [N, C, H, W] f32 -> [N, C, H, W] f32."""
    N, C, H, W = x_nchw.shape
    Cp = _round_up(max(C, LANE), LANE)       # lane-dense channel padding
    R = _pick_rows(H)                        # row-strip height (matmul M = R*W)
    total = float(N * H * W)                 # BN reduction count

    x_nhwc = jnp.transpose(x_nchw, (0, 2, 3, 1))
    # Un-haloed identity (f32, channel-padded) for the residual add.
    x_id = jnp.pad(x_nhwc, ((0, 0), (0, 0), (0, 0), (0, Cp - C)))
    # Haloed bf16 conv1 input (spatial padding=1 + channel pad, zeros inert).
    xp = jnp.pad(x_id.astype(_OP_DTYPE), ((0, 0), (1, 1), (1, 1), (0, 0)))

    w1 = _pack_weight(params["w1"], Cp, Cp)
    w2 = _pack_weight(params["w2"], Cp, Cp)
    g1 = _pad_row(params["g1"], Cp)
    b1 = _pad_row(params["b1"], Cp)
    g2 = _pad_row(params["g2"], Cp)
    b2 = _pad_row(params["b2"], Cp)

    c1, s1 = _conv1_stats(xp, w1, total, R)                        # conv1 + stats1
    c2, s2 = _bn1_relu_conv2_stats(c1, s1, g1, b1, w2, total, R)   # bn1+relu+conv2+stats2
    out = _bn2_add_relu(c2, s2, g2, b2, x_id, R)                   # bn2 + skip + relu

    return jnp.transpose(out[..., :C], (0, 3, 1, 2))               # back to NCHW


# ---------------------------------------------------------------------------
# Pure-JAX reference for sanity checking
# ---------------------------------------------------------------------------
def _ref_forward(x_nchw, params):
    def conv(x, w):
        return jax.lax.conv_general_dilated(
            x, w, window_strides=(1, 1), padding=((1, 1), (1, 1)),
            dimension_numbers=("NCHW", "OIHW", "NCHW"))

    def bn(x, g, b):
        mean = jnp.mean(x, axis=(0, 2, 3), keepdims=True)
        var = jnp.mean((x - mean) ** 2, axis=(0, 2, 3), keepdims=True)
        xhat = (x - mean) * jax.lax.rsqrt(var + EPS)
        return xhat * g.reshape(1, -1, 1, 1) + b.reshape(1, -1, 1, 1)

    identity = x_nchw
    h = jnp.maximum(bn(conv(x_nchw, params["w1"]), params["g1"], params["b1"]), 0.0)
    h = bn(conv(h, params["w2"]), params["g2"], params["b2"])
    return jnp.maximum(h + identity, 0.0)


if __name__ == "__main__":
    key = jax.random.PRNGKey(0)
    kx, kp = jax.random.split(key)

    N, C, H, W = 2, 8, 16, 16           # in_channels == out_channels, stride=1
    x = jax.random.normal(kx, (N, C, H, W), jnp.float32)
    params = init_params(kp, C, C)

    out = jax.block_until_ready(resnet_block_forward(x, params))
    assert out.shape == (N, C, H, W)

    ref = _ref_forward(x, params)
    max_err = float(jnp.max(jnp.abs(out - ref)))
    # bf16 MXU operands (f32 accumulation) vs. the f32 reference: the two-conv
    # + two-BN chain stays comfortably below this bound at these shapes.
    assert max_err < 8e-2, f"max abs err {max_err} vs reference"

    print("KERNEL_OK")
</pallas_src>

<mosaic_0001>
module attributes {stable_mosaic.version = 11 : i64} {
  func.func @_bn2_add_relu_kernel(%arg0: i32, %arg1: i32, %arg2: memref<1x8x16x128xf32, #tpu.memory_space<vmem>>, %arg3: memref<2x128xf32, #tpu.memory_space<vmem>>, %arg4: memref<1x128xf32, #tpu.memory_space<vmem>>, %arg5: memref<1x128xf32, #tpu.memory_space<vmem>>, %arg6: memref<1x8x16x128xf32, #tpu.memory_space<vmem>>, %arg7: memref<1x8x16x128xf32, #tpu.memory_space<vmem>>) attributes {dimension_semantics = [#tpu.dimension_semantics<parallel>, #tpu.dimension_semantics<parallel>], iteration_bounds = array<i64: 2, 2>, scalar_prefetch = 0 : i64, scratch_operands = 0 : i64, tpu.core_type = #tpu.core_type<tc>, window_params = [{transform_indices = @transform_0, window_bounds = array<i64: 1, 8, 16, 128>}, {pipeline_mode = #tpu.pipeline_mode<synchronous>, transform_indices = @transform_1, window_bounds = array<i64: 2, 128>}, {pipeline_mode = #tpu.pipeline_mode<synchronous>, transform_indices = @transform_2, window_bounds = array<i64: 1, 128>}, {pipeline_mode = #tpu.pipeline_mode<synchronous>, transform_indices = @transform_3, window_bounds = array<i64: 1, 128>}, {transform_indices = @transform_4, window_bounds = array<i64: 1, 8, 16, 128>}, {transform_indices = @transform_5, window_bounds = array<i64: 1, 8, 16, 128>}]} {
    %c1 = arith.constant 1 : index
    %c0 = arith.constant 0 : index
    %0 = vector.load %arg3[%c1, %c0] : memref<2x128xf32, #tpu.memory_space<vmem>>, vector<1x128xf32>
    %c0_0 = arith.constant 0 : index
    %c0_1 = arith.constant 0 : index
    %1 = vector.load %arg4[%c0_0, %c0_1] : memref<1x128xf32, #tpu.memory_space<vmem>>, vector<1x128xf32>
    %2 = arith.mulf %1, %0 : vector<1x128xf32>
    %3 = vector.shape_cast %2 : vector<1x128xf32> to vector<1x1x1x128xf32>
    %c0_2 = arith.constant 0 : index
    %c0_3 = arith.constant 0 : index
    %4 = vector.load %arg5[%c0_2, %c0_3] : memref<1x128xf32, #tpu.memory_space<vmem>>, vector<1x128xf32>
    %c0_4 = arith.constant 0 : index
    %c0_5 = arith.constant 0 : index
    %5 = vector.load %arg3[%c0_4, %c0_5] : memref<2x128xf32, #tpu.memory_space<vmem>>, vector<1x128xf32>
    %c0_6 = arith.constant 0 : index
    %c0_7 = arith.constant 0 : index
    %6 = vector.load %arg4[%c0_6, %c0_7] : memref<1x128xf32, #tpu.memory_space<vmem>>, vector<1x128xf32>
    %7 = arith.mulf %5, %6 : vector<1x128xf32>
    %8 = arith.mulf %7, %0 : vector<1x128xf32>
    %9 = arith.subf %4, %8 : vector<1x128xf32>
    %10 = vector.shape_cast %9 : vector<1x128xf32> to vector<1x1x1x128xf32>
    %c0_8 = arith.constant 0 : index
    %c0_9 = arith.constant 0 : index
    %c0_10 = arith.constant 0 : index
    %c0_11 = arith.constant 0 : index
    %11 = vector.load %arg2[%c0_8, %c0_9, %c0_10, %c0_11] : memref<1x8x16x128xf32, #tpu.memory_space<vmem>>, vector<1x8x16x128xf32>
    %12 = vector.broadcast %3 : vector<1x1x1x128xf32> to vector<1x8x16x128xf32>
    %13 = arith.mulf %11, %12 : vector<1x8x16x128xf32>
    %14 = vector.broadcast %10 : vector<1x1x1x128xf32> to vector<1x8x16x128xf32>
    %15 = arith.addf %13, %14 : vector<1x8x16x128xf32>
    %c0_12 = arith.constant 0 : index
    %c0_13 = arith.constant 0 : index
    %c0_14 = arith.constant 0 : index
    %c0_15 = arith.constant 0 : index
    %16 = vector.load %arg6[%c0_12, %c0_13, %c0_14, %c0_15] : memref<1x8x16x128xf32, #tpu.memory_space<vmem>>, vector<1x8x16x128xf32>
    %17 = arith.addf %15, %16 : vector<1x8x16x128xf32>
    %cst = arith.constant 0.000000e+00 : f32
    %18 = vector.broadcast %cst : f32 to vector<1x8x16x128xf32>
    %19 = arith.maximumf %17, %18 : vector<1x8x16x128xf32>
    %c0_16 = arith.constant 0 : index
    %c0_17 = arith.constant 0 : index
    %c0_18 = arith.constant 0 : index
    %c0_19 = arith.constant 0 : index
    %20 = vector.load %arg7[%c0_16, %c0_17, %c0_18, %c0_19] : memref<1x8x16x128xf32, #tpu.memory_space<vmem>>, vector<1x8x16x128xf32>
    tpu.vector_store %arg7[%c0_16, %c0_17, %c0_18, %c0_19], %19 {strides = array<i32>} : memref<1x8x16x128xf32, #tpu.memory_space<vmem>>, vector<1x8x16x128xf32>,
    return
  }
  func.func @transform_0(%arg0: i32, %arg1: i32) -> (i32, i32, i32, i32) {
    %c0_i32 = arith.constant 0 : i32
    %c0_i32_0 = arith.constant 0 : i32
    %c0_i32_1 = arith.constant 0 : i32
    return %arg0, %arg1, %c0_i32, %c0_i32_0 : i32, i32, i32, i32
  }
  func.func @transform_1(%arg0: i32, %arg1: i32) -> (i32, i32) {
    %c0_i32 = arith.constant 0 : i32
    %c0_i32_0 = arith.constant 0 : i32
    %c0_i32_1 = arith.constant 0 : i32
    return %c0_i32, %c0_i32_0 : i32, i32
  }
  func.func @transform_2(%arg0: i32, %arg1: i32) -> (i32, i32) {
    %c0_i32 = arith.constant 0 : i32
    %c0_i32_0 = arith.constant 0 : i32
    %c0_i32_1 = arith.constant 0 : i32
    return %c0_i32, %c0_i32_0 : i32, i32
  }
  func.func @transform_3(%arg0: i32, %arg1: i32) -> (i32, i32) {
    %c0_i32 = arith.constant 0 : i32
    %c0_i32_0 = arith.constant 0 : i32
    %c0_i32_1 = arith.constant 0 : i32
    return %c0_i32, %c0_i32_0 : i32, i32
  }
  func.func @transform_4(%arg0: i32, %arg1: i32) -> (i32, i32, i32, i32) {
    %c0_i32 = arith.constant 0 : i32
    %c0_i32_0 = arith.constant 0 : i32
    %c0_i32_1 = arith.constant 0 : i32
    return %arg0, %arg1, %c0_i32, %c0_i32_0 : i32, i32, i32, i32
  }
  func.func @transform_5(%arg0: i32, %arg1: i32) -> (i32, i32, i32, i32) {
    %c0_i32 = arith.constant 0 : i32
    %c0_i32_0 = arith.constant 0 : i32
    %c0_i32_1 = arith.constant 0 : i32
    return %arg0, %arg1, %c0_i32, %c0_i32_0 : i32, i32, i32, i32
  }
}

module attributes {stable_mosaic.version = 11 : i64} {
  func.func @_conv1_stats_kernel(%arg0: i32, %arg1: i32, %arg2: memref<1x18x18x128xbf16, #tpu.memory_space<vmem>>, %arg3: memref<1152x128xbf16, #tpu.memory_space<vmem>>, %arg4: memref<1x8x16x128xf32, #tpu.memory_space<vmem>>, %arg5: memref<2x128xf32, #tpu.memory_space<vmem>>, %arg6: memref<128x1152xbf16, #tpu.memory_space<vmem>>) attributes {dimension_semantics = [#tpu.dimension_semantics<arbitrary>, #tpu.dimension_semantics<arbitrary>], iteration_bounds = array<i64: 2, 2>, scalar_prefetch = 0 : i64, scratch_operands = 1 : i64, tpu.core_type = #tpu.core_type<tc>, window_params = [{transform_indices = @transform_0, window_bounds = array<i64: 1, 18, 18, 128>}, {pipeline_mode = #tpu.pipeline_mode<synchronous>, transform_indices = @transform_1, window_bounds = array<i64: 1152, 128>}, {transform_indices = @transform_2, window_bounds = array<i64: 1, 8, 16, 128>}, {pipeline_mode = #tpu.pipeline_mode<synchronous>, transform_indices = @transform_3, window_bounds = array<i64: 2, 128>}]} {
    %c0_i32 = arith.constant 0 : i32
    %0 = arith.cmpi eq, %arg0, %c0_i32 : i32
    %c0_i32_0 = arith.constant 0 : i32
    %1 = arith.cmpi eq, %arg1, %c0_i32_0 : i32
    %2 = arith.andi %0, %1 : i1
    %3 = arith.extui %2 : i1 to i32
    %c0_i32_1 = arith.constant 0 : i32
    %4 = arith.cmpi ne, %3, %c0_i32_1 : i32
    scf.if %4 {
      %cst_38 = arith.constant 0.000000e+00 : f32
      %64 = vector.broadcast %cst_38 : f32 to vector<2x128xf32>
      %c0_39 = arith.constant 0 : index
      %c0_40 = arith.constant 0 : index
      %65 = vector.load %arg5[%c0_39, %c0_40] : memref<2x128xf32, #tpu.memory_space<vmem>>, vector<2x128xf32>
      tpu.vector_store %arg5[%c0_39, %c0_40], %64 {strides = array<i32>} : memref<2x128xf32, #tpu.memory_space<vmem>>, vector<2x128xf32>,
    } else {
    }
    %c8_i32 = arith.constant 8 : i32
    %5 = arith.muli %arg1, %c8_i32 : i32
    %6 = tpu.assume_multiple %5, 8 : i32
    %c0 = arith.constant 0 : index
    %7 = arith.index_cast %6 : i32 to index
    %c0_2 = arith.constant 0 : index
    %c0_3 = arith.constant 0 : index
    %8 = vector.load %arg2[%c0, %7, %c0_2, %c0_3] : memref<1x18x18x128xbf16, #tpu.memory_space<vmem>>, vector<1x10x16x128xbf16>
    %9 = vector.shape_cast %8 : vector<1x10x16x128xbf16> to vector<10x16x128xbf16>
    %10 = vector.extract_strided_slice %9 {offsets = [0, 0, 0], sizes = [8, 16, 128], strides = [1, 1, 1]} : vector<10x16x128xbf16> to vector<8x16x128xbf16>
    %11 = vector.shape_cast %10 : vector<8x16x128xbf16> to vector<128x128xbf16>
    %c0_4 = arith.constant 0 : index
    %c0_5 = arith.constant 0 : index
    %12 = vector.load %arg6[%c0_4, %c0_5] : memref<128x1152xbf16, #tpu.memory_space<vmem>>, vector<128x128xbf16>
    tpu.vector_store %arg6[%c0_4, %c0_5], %11 {strides = array<i32>} : memref<128x1152xbf16, #tpu.memory_space<vmem>>, vector<128x128xbf16>,
    %13 = vector.extract_strided_slice %9 {offsets = [1, 0, 0], sizes = [8, 16, 128], strides = [1, 1, 1]} : vector<10x16x128xbf16> to vector<8x16x128xbf16>
    %14 = vector.shape_cast %13 : vector<8x16x128xbf16> to vector<128x128xbf16>
    %c0_6 = arith.constant 0 : index
    %c384 = arith.constant 384 : index
    %15 = vector.load %arg6[%c0_6, %c384] : memref<128x1152xbf16, #tpu.memory_space<vmem>>, vector<128x128xbf16>
    tpu.vector_store %arg6[%c0_6, %c384], %14 {strides = array<i32>} : memref<128x1152xbf16, #tpu.memory_space<vmem>>, vector<128x128xbf16>,
    %16 = vector.extract_strided_slice %9 {offsets = [2, 0, 0], sizes = [8, 16, 128], strides = [1, 1, 1]} : vector<10x16x128xbf16> to vector<8x16x128xbf16>
    %17 = vector.shape_cast %16 : vector<8x16x128xbf16> to vector<128x128xbf16>
    %c0_7 = arith.constant 0 : index
    %c768 = arith.constant 768 : index
    %18 = vector.load %arg6[%c0_7, %c768] : memref<128x1152xbf16, #tpu.memory_space<vmem>>, vector<128x128xbf16>
    tpu.vector_store %arg6[%c0_7, %c768], %17 {strides = array<i32>} : memref<128x1152xbf16, #tpu.memory_space<vmem>>, vector<128x128xbf16>,
    %c0_8 = arith.constant 0 : index
    %19 = arith.index_cast %6 : i32 to index
    %c1 = arith.constant 1 : index
    %c0_9 = arith.constant 0 : index
    %20 = vector.load %arg2[%c0_8, %19, %c1, %c0_9] : memref<1x18x18x128xbf16, #tpu.memory_space<vmem>>, vector<1x10x16x128xbf16>
    %21 = vector.shape_cast %20 : vector<1x10x16x128xbf16> to vector<10x16x128xbf16>
    %22 = vector.extract_strided_slice %21 {offsets = [0, 0, 0], sizes = [8, 16, 128], strides = [1, 1, 1]} : vector<10x16x128xbf16> to vector<8x16x128xbf16>
    %23 = vector.shape_cast %22 : vector<8x16x128xbf16> to vector<128x128xbf16>
    %c0_10 = arith.constant 0 : index
    %c128 = arith.constant 128 : index
    %24 = vector.load %arg6[%c0_10, %c128] : memref<128x1152xbf16, #tpu.memory_space<vmem>>, vector<128x128xbf16>
    tpu.vector_store %arg6[%c0_10, %c128], %23 {strides = array<i32>} : memref<128x1152xbf16, #tpu.memory_space<vmem>>, vector<128x128xbf16>,
    %25 = vector.extract_strided_slice %21 {offsets = [1, 0, 0], sizes = [8, 16, 128], strides = [1, 1, 1]} : vector<10x16x128xbf16> to vector<8x16x128xbf16>
    %26 = vector.shape_cast %25 : vector<8x16x128xbf16> to vector<128x128xbf16>
    %c0_11 = arith.constant 0 : index
    %c512 = arith.constant 512 : index
    %27 = vector.load %arg6[%c0_11, %c512] : memref<128x1152xbf16, #tpu.memory_space<vmem>>, vector<128x128xbf16>
    tpu.vector_store %arg6[%c0_11, %c512], %26 {strides = array<i32>} : memref<128x1152xbf16, #tpu.memory_space<vmem>>, vector<128x128xbf16>,
    %28 = vector.extract_strided_slice %21 {offsets = [2, 0, 0], sizes = [8, 16, 128], strides = [1, 1, 1]} : vector<10x16x128xbf16> to vector<8x16x128xbf16>
    %29 = vector.shape_cast %28 : vector<8x16x128xbf16> to vector<128x128xbf16>
    %c0_12 = arith.constant 0 : index
    %c896 = arith.constant 896 : index
    %30 = vector.load %arg6[%c0_12, %c896] : memref<128x1152xbf16, #tpu.memory_space<vmem>>, vector<128x128xbf16>
    tpu.vector_store %arg6[%c0_12, %c896], %29 {strides = array<i32>} : memref<128x1152xbf16, #tpu.memory_space<vmem>>, vector<128x128xbf16>,
    %c0_13 = arith.constant 0 : index
    %31 = arith.index_cast %6 : i32 to index
    %c2 = arith.constant 2 : index
    %c0_14 = arith.constant 0 : index
    %32 = vector.load %arg2[%c0_13, %31, %c2, %c0_14] : memref<1x18x18x128xbf16, #tpu.memory_space<vmem>>, vector<1x10x16x128xbf16>
    %33 = vector.shape_cast %32 : vector<1x10x16x128xbf16> to vector<10x16x128xbf16>
    %34 = vector.extract_strided_slice %33 {offsets = [0, 0, 0], sizes = [8, 16, 128], strides = [1, 1, 1]} : vector<10x16x128xbf16> to vector<8x16x128xbf16>
    %35 = vector.shape_cast %34 : vector<8x16x128xbf16> to vector<128x128xbf16>
    %c0_15 = arith.constant 0 : index
    %c256 = arith.constant 256 : index
    %36 = vector.load %arg6[%c0_15, %c256] : memref<128x1152xbf16, #tpu.memory_space<vmem>>, vector<128x128xbf16>
    tpu.vector_store %arg6[%c0_15, %c256], %35 {strides = array<i32>} : memref<128x1152xbf16, #tpu.memory_space<vmem>>, vector<128x128xbf16>,
    %37 = vector.extract_strided_slice %33 {offsets = [1, 0, 0], sizes = [8, 16, 128], strides = [1, 1, 1]} : vector<10x16x128xbf16> to vector<8x16x128xbf16>
    %38 = vector.shape_cast %37 : vector<8x16x128xbf16> to vector<128x128xbf16>
    %c0_16 = arith.constant 0 : index
    %c640 = arith.constant 640 : index
    %39 = vector.load %arg6[%c0_16, %c640] : memref<128x1152xbf16, #tpu.memory_space<vmem>>, vector<128x128xbf16>
    tpu.vector_store %arg6[%c0_16, %c640], %38 {strides = array<i32>} : memref<128x1152xbf16, #tpu.memory_space<vmem>>, vector<128x128xbf16>,
    %40 = vector.extract_strided_slice %33 {offsets = [2, 0, 0], sizes = [8, 16, 128], strides = [1, 1, 1]} : vector<10x16x128xbf16> to vector<8x16x128xbf16>
    %41 = vector.shape_cast %40 : vector<8x16x128xbf16> to vector<128x128xbf16>
    %c0_17 = arith.constant 0 : index
    %c1024 = arith.constant 1024 : index
    %42 = vector.load %arg6[%c0_17, %c1024] : memref<128x1152xbf16, #tpu.memory_space<vmem>>, vector<128x128xbf16>
    tpu.vector_store %arg6[%c0_17, %c1024], %41 {strides = array<i32>} : memref<128x1152xbf16, #tpu.memory_space<vmem>>, vector<128x128xbf16>,
    %c0_18 = arith.constant 0 : index
    %c0_19 = arith.constant 0 : index
    %43 = vector.load %arg6[%c0_18, %c0_19] : memref<128x1152xbf16, #tpu.memory_space<vmem>>, vector<128x1152xbf16>
    %c0_20 = arith.constant 0 : index
    %c0_21 = arith.constant 0 : index
    %44 = vector.load %arg3[%c0_20, %c0_21] : memref<1152x128xbf16, #tpu.memory_space<vmem>>, vector<1152x128xbf16>
    %cst = arith.constant dense<0.000000e+00> : vector<128x128xf32>
    %45 = tpu.matmul %43, %44, %cst {dimension_numbers = #tpu.dot_dimension_numbers<[1], [0], [0], [1], [0, 0, 1, 1], [], []>} : vector<128x1152xbf16>, vector<1152x128xbf16>, vector<128x128xf32> -> vector<128x128xf32>
    %46 = vector.shape_cast %45 : vector<128x128xf32> to vector<1x8x16x128xf32>
    %c0_22 = arith.constant 0 : index
    %c0_23 = arith.constant 0 : index
    %c0_24 = arith.constant 0 : index
    %c0_25 = arith.constant 0 : index
    %47 = vector.load %arg4[%c0_22, %c0_23, %c0_24, %c0_25] : memref<1x8x16x128xf32, #tpu.memory_space<vmem>>, vector<1x8x16x128xf32>
    tpu.vector_store %arg4[%c0_22, %c0_23, %c0_24, %c0_25], %46 {strides = array<i32>} : memref<1x8x16x128xf32, #tpu.memory_space<vmem>>, vector<1x8x16x128xf32>,
    %c0_26 = arith.constant 0 : index
    %c0_27 = arith.constant 0 : index
    %48 = vector.load %arg5[%c0_26, %c0_27] : memref<2x128xf32, #tpu.memory_space<vmem>>, vector<1x128xf32>
    %cst_28 = arith.constant dense<0.000000e+00> : vector<128xf32>
    %49 = vector.multi_reduction <add>, %45, %cst_28 [0] : vector<128x128xf32> to vector<128xf32>
    %50 = vector.shape_cast %49 : vector<128xf32> to vector<1x128xf32>
    %51 = arith.addf %48, %50 : vector<1x128xf32>
    %c0_29 = arith.constant 0 : index
    %c0_30 = arith.constant 0 : index
    %52 = vector.load %arg5[%c0_29, %c0_30] : memref<2x128xf32, #tpu.memory_space<vmem>>, vector<1x128xf32>
    tpu.vector_store %arg5[%c0_29, %c0_30], %51 {strides = array<i32>} : memref<2x128xf32, #tpu.memory_space<vmem>>, vector<1x128xf32>,
    %c1_31 = arith.constant 1 : index
    %c0_32 = arith.constant 0 : index
    %53 = vector.load %arg5[%c1_31, %c0_32] : memref<2x128xf32, #tpu.memory_space<vmem>>, vector<1x128xf32>
    %54 = arith.mulf %45, %45 : vector<128x128xf32>
    %cst_33 = arith.constant dense<0.000000e+00> : vector<128xf32>
    %55 = vector.multi_reduction <add>, %54, %cst_33 [0] : vector<128x128xf32> to vector<128xf32>
    %56 = vector.shape_cast %55 : vector<128xf32> to vector<1x128xf32>
    %57 = arith.addf %53, %56 : vector<1x128xf32>
    %c1_34 = arith.constant 1 : index
    %c0_35 = arith.constant 0 : index
    %58 = vector.load %arg5[%c1_34, %c0_35] : memref<2x128xf32, #tpu.memory_space<vmem>>, vector<1x128xf32>
    tpu.vector_store %arg5[%c1_34, %c0_35], %57 {strides = array<i32>} : memref<2x128xf32, #tpu.memory_space<vmem>>, vector<1x128xf32>,
    %c1_i32 = arith.constant 1 : i32
    %59 = arith.cmpi eq, %arg0, %c1_i32 : i32
    %c1_i32_36 = arith.constant 1 : i32
    %60 = arith.cmpi eq, %arg1, %c1_i32_36 : i32
    %61 = arith.andi %59, %60 : i1
    %62 = arith.extui %61 : i1 to i32
    %c0_i32_37 = arith.constant 0 : i32
    %63 = arith.cmpi ne, %62, %c0_i32_37 : i32
    scf.if %63 {
      %c0_38 = arith.constant 0 : index
      %c0_39 = arith.constant 0 : index
      %64 = vector.load %arg5[%c0_38, %c0_39] : memref<2x128xf32, #tpu.memory_space<vmem>>, vector<1x128xf32>
      %cst_40 = arith.constant 5.120000e+02 : f32
      %65 = vector.broadcast %cst_40 : f32 to vector<1x128xf32>
      %66 = arith.divf %64, %65 : vector<1x128xf32>
      %c1_41 = arith.constant 1 : index
      %c0_42 = arith.constant 0 : index
      %67 = vector.load %arg5[%c1_41, %c0_42] : memref<2x128xf32, #tpu.memory_space<vmem>>, vector<1x128xf32>
      %cst_43 = arith.constant 5.120000e+02 : f32
      %68 = vector.broadcast %cst_43 : f32 to vector<1x128xf32>
      %69 = arith.divf %67, %68 : vector<1x128xf32>
      %70 = arith.mulf %66, %66 : vector<1x128xf32>
      %71 = arith.subf %69, %70 : vector<1x128xf32>
      %c0_44 = arith.constant 0 : index
      %c0_45 = arith.constant 0 : index
      %72 = vector.load %arg5[%c0_44, %c0_45] : memref<2x128xf32, #tpu.memory_space<vmem>>, vector<1x128xf32>
      tpu.vector_store %arg5[%c0_44, %c0_45], %66 {strides = array<i32>} : memref<2x128xf32, #tpu.memory_space<vmem>>, vector<1x128xf32>,
      %cst_46 = arith.constant 9.99999974E-6 : f32
      %73 = vector.broadcast %cst_46 : f32 to vector<1x128xf32>
      %74 = arith.addf %71, %73 : vector<1x128xf32>
      %75 = math.rsqrt %74 : vector<1x128xf32>
      %c1_47 = arith.constant 1 : index
      %c0_48 = arith.constant 0 : index
      %76 = vector.load %arg5[%c1_47, %c0_48] : memref<2x128xf32, #tpu.memory_space<vmem>>, vector<1x128xf32>
      tpu.vector_store %arg5[%c1_47, %c0_48], %75 {strides = array<i32>} : memref<2x128xf32, #tpu.memory_space<vmem>>, vector<1x128xf32>,
    } else {
    }
    return
  }
  func.func @transform_0(%arg0: i32, %arg1: i32) -> (i32, i32, i32, i32) {
    %c0_i32 = arith.constant 0 : i32
    %c0_i32_0 = arith.constant 0 : i32
    %c0_i32_1 = arith.constant 0 : i32
    %c0_i32_2 = arith.constant 0 : i32
    return %arg0, %c0_i32, %c0_i32_0, %c0_i32_1 : i32, i32, i32, i32
  }
  func.func @transform_1(%arg0: i32, %arg1: i32) -> (i32, i32) {
    %c0_i32 = arith.constant 0 : i32
    %c0_i32_0 = arith.constant 0 : i32
    %c0_i32_1 = arith.constant 0 : i32
    return %c0_i32, %c0_i32_0 : i32, i32
  }
  func.func @transform_2(%arg0: i32, %arg1: i32) -> (i32, i32, i32, i32) {
    %c0_i32 = arith.constant 0 : i32
    %c0_i32_0 = arith.constant 0 : i32
    %c0_i32_1 = arith.constant 0 : i32
    return %arg0, %arg1, %c0_i32, %c0_i32_0 : i32, i32, i32, i32
  }
  func.func @transform_3(%arg0: i32, %arg1: i32) -> (i32, i32) {
    %c0_i32 = arith.constant 0 : i32
    %c0_i32_0 = arith.constant 0 : i32
    %c0_i32_1 = arith.constant 0 : i32
    return %c0_i32, %c0_i32_0 : i32, i32
  }
}

module attributes {stable_mosaic.version = 11 : i64} {
  func.func @_bn1_relu_conv2_stats_kernel(%arg0: i32, %arg1: memref<1x16x16x128xf32, #tpu.memory_space<vmem>>, %arg2: memref<2x128xf32, #tpu.memory_space<vmem>>, %arg3: memref<1x128xf32, #tpu.memory_space<vmem>>, %arg4: memref<1x128xf32, #tpu.memory_space<vmem>>, %arg5: memref<1152x128xbf16, #tpu.memory_space<vmem>>, %arg6: memref<1x16x16x128xf32, #tpu.memory_space<vmem>>, %arg7: memref<2x128xf32, #tpu.memory_space<vmem>>, %arg8: memref<18x18x128xbf16, #tpu.memory_space<vmem>>, %arg9: memref<128x1152xbf16, #tpu.memory_space<vmem>>) attributes {dimension_semantics = [#tpu.dimension_semantics<arbitrary>], iteration_bounds = array<i64: 2>, scalar_prefetch = 0 : i64, scratch_operands = 2 : i64, tpu.core_type = #tpu.core_type<tc>, window_params = [{transform_indices = @transform_0, window_bounds = array<i64: 1, 16, 16, 128>}, {pipeline_mode = #tpu.pipeline_mode<synchronous>, transform_indices = @transform_1, window_bounds = array<i64: 2, 128>}, {pipeline_mode = #tpu.pipeline_mode<synchronous>, transform_indices = @transform_2, window_bounds = array<i64: 1, 128>}, {pipeline_mode = #tpu.pipeline_mode<synchronous>, transform_indices = @transform_3, window_bounds = array<i64: 1, 128>}, {pipeline_mode = #tpu.pipeline_mode<synchronous>, transform_indices = @transform_4, window_bounds = array<i64: 1152, 128>}, {transform_indices = @transform_5, window_bounds = array<i64: 1, 16, 16, 128>}, {pipeline_mode = #tpu.pipeline_mode<synchronous>, transform_indices = @transform_6, window_bounds = array<i64: 2, 128>}]} {
    %c0_i32 = arith.constant 0 : i32
    %0 = arith.cmpi eq, %arg0, %c0_i32 : i32
    %1 = arith.extui %0 : i1 to i32
    %c0_i32_0 = arith.constant 0 : i32
    %2 = arith.cmpi ne, %1, %c0_i32_0 : i32
    scf.if %2 {
      %cst_106 = arith.constant 0.000000e+00 : f32
      %133 = vector.broadcast %cst_106 : f32 to vector<2x128xf32>
      %c0_107 = arith.constant 0 : index
      %c0_108 = arith.constant 0 : index
      %134 = vector.load %arg7[%c0_107, %c0_108] : memref<2x128xf32, #tpu.memory_space<vmem>>, vector<2x128xf32>
      tpu.vector_store %arg7[%c0_107, %c0_108], %133 {strides = array<i32>} : memref<2x128xf32, #tpu.memory_space<vmem>>, vector<2x128xf32>,
      %cst_109 = arith.constant 0.000000e+00 : bf16
      %135 = vector.broadcast %cst_109 : bf16 to vector<18x18x128xbf16>
      %c0_110 = arith.constant 0 : index
      %c0_111 = arith.constant 0 : index
      %c0_112 = arith.constant 0 : index
      %136 = vector.load %arg8[%c0_110, %c0_111, %c0_112] : memref<18x18x128xbf16, #tpu.memory_space<vmem>>, vector<18x18x128xbf16>
      tpu.vector_store %arg8[%c0_110, %c0_111, %c0_112], %135 {strides = array<i32>} : memref<18x18x128xbf16, #tpu.memory_space<vmem>>, vector<18x18x128xbf16>,
    } else {
    }
    %c1 = arith.constant 1 : index
    %c0 = arith.constant 0 : index
    %3 = vector.load %arg2[%c1, %c0] : memref<2x128xf32, #tpu.memory_space<vmem>>, vector<1x128xf32>
    %c0_1 = arith.constant 0 : index
    %c0_2 = arith.constant 0 : index
    %4 = vector.load %arg3[%c0_1, %c0_2] : memref<1x128xf32, #tpu.memory_space<vmem>>, vector<1x128xf32>
    %5 = arith.mulf %4, %3 : vector<1x128xf32>
    %6 = vector.shape_cast %5 : vector<1x128xf32> to vector<1x1x128xf32>
    %c0_3 = arith.constant 0 : index
    %c0_4 = arith.constant 0 : index
    %7 = vector.load %arg4[%c0_3, %c0_4] : memref<1x128xf32, #tpu.memory_space<vmem>>, vector<1x128xf32>
    %c0_5 = arith.constant 0 : index
    %c0_6 = arith.constant 0 : index
    %8 = vector.load %arg2[%c0_5, %c0_6] : memref<2x128xf32, #tpu.memory_space<vmem>>, vector<1x128xf32>
    %c0_7 = arith.constant 0 : index
    %c0_8 = arith.constant 0 : index
    %9 = vector.load %arg3[%c0_7, %c0_8] : memref<1x128xf32, #tpu.memory_space<vmem>>, vector<1x128xf32>
    %10 = arith.mulf %8, %9 : vector<1x128xf32>
    %11 = arith.mulf %10, %3 : vector<1x128xf32>
    %12 = arith.subf %7, %11 : vector<1x128xf32>
    %13 = vector.shape_cast %12 : vector<1x128xf32> to vector<1x1x128xf32>
    %c0_9 = arith.constant 0 : index
    %c0_10 = arith.constant 0 : index
    %c0_11 = arith.constant 0 : index
    %c0_12 = arith.constant 0 : index
    %14 = vector.load %arg1[%c0_9, %c0_10, %c0_11, %c0_12] : memref<1x16x16x128xf32, #tpu.memory_space<vmem>>, vector<1x8x16x128xf32>
    %15 = vector.shape_cast %14 : vector<1x8x16x128xf32> to vector<8x16x128xf32>
    %16 = vector.broadcast %6 : vector<1x1x128xf32> to vector<8x16x128xf32>
    %17 = arith.mulf %15, %16 : vector<8x16x128xf32>
    %18 = vector.broadcast %13 : vector<1x1x128xf32> to vector<8x16x128xf32>
    %19 = arith.addf %17, %18 : vector<8x16x128xf32>
    %cst = arith.constant 0.000000e+00 : f32
    %20 = vector.broadcast %cst : f32 to vector<8x16x128xf32>
    %21 = arith.maximumf %19, %20 : vector<8x16x128xf32>
    %22 = arith.truncf %21 : vector<8x16x128xf32> to vector<8x16x128xbf16>
    %c1_13 = arith.constant 1 : index
    %c1_14 = arith.constant 1 : index
    %c0_15 = arith.constant 0 : index
    %23 = vector.load %arg8[%c1_13, %c1_14, %c0_15] : memref<18x18x128xbf16, #tpu.memory_space<vmem>>, vector<8x16x128xbf16>
    tpu.vector_store %arg8[%c1_13, %c1_14, %c0_15], %22 {strides = array<i32>} : memref<18x18x128xbf16, #tpu.memory_space<vmem>>, vector<8x16x128xbf16>,
    %c0_16 = arith.constant 0 : index
    %c8 = arith.constant 8 : index
    %c0_17 = arith.constant 0 : index
    %c0_18 = arith.constant 0 : index
    %24 = vector.load %arg1[%c0_16, %c8, %c0_17, %c0_18] : memref<1x16x16x128xf32, #tpu.memory_space<vmem>>, vector<1x8x16x128xf32>
    %25 = vector.shape_cast %24 : vector<1x8x16x128xf32> to vector<8x16x128xf32>
    %26 = vector.broadcast %6 : vector<1x1x128xf32> to vector<8x16x128xf32>
    %27 = arith.mulf %25, %26 : vector<8x16x128xf32>
    %28 = vector.broadcast %13 : vector<1x1x128xf32> to vector<8x16x128xf32>
    %29 = arith.addf %27, %28 : vector<8x16x128xf32>
    %cst_19 = arith.constant 0.000000e+00 : f32
    %30 = vector.broadcast %cst_19 : f32 to vector<8x16x128xf32>
    %31 = arith.maximumf %29, %30 : vector<8x16x128xf32>
    %32 = arith.truncf %31 : vector<8x16x128xf32> to vector<8x16x128xbf16>
    %c9 = arith.constant 9 : index
    %c1_20 = arith.constant 1 : index
    %c0_21 = arith.constant 0 : index
    %33 = vector.load %arg8[%c9, %c1_20, %c0_21] : memref<18x18x128xbf16, #tpu.memory_space<vmem>>, vector<8x16x128xbf16>
    tpu.vector_store %arg8[%c9, %c1_20, %c0_21], %32 {strides = array<i32>} : memref<18x18x128xbf16, #tpu.memory_space<vmem>>, vector<8x16x128xbf16>,
    %c0_22 = arith.constant 0 : index
    %c0_23 = arith.constant 0 : index
    %c0_24 = arith.constant 0 : index
    %34 = vector.load %arg8[%c0_22, %c0_23, %c0_24] : memref<18x18x128xbf16, #tpu.memory_space<vmem>>, vector<10x16x128xbf16>
    %35 = vector.extract_strided_slice %34 {offsets = [0, 0, 0], sizes = [8, 16, 128], strides = [1, 1, 1]} : vector<10x16x128xbf16> to vector<8x16x128xbf16>
    %36 = vector.shape_cast %35 : vector<8x16x128xbf16> to vector<128x128xbf16>
    %c0_25 = arith.constant 0 : index
    %c0_26 = arith.constant 0 : index
    %37 = vector.load %arg9[%c0_25, %c0_26] : memref<128x1152xbf16, #tpu.memory_space<vmem>>, vector<128x128xbf16>
    tpu.vector_store %arg9[%c0_25, %c0_26], %36 {strides = array<i32>} : memref<128x1152xbf16, #tpu.memory_space<vmem>>, vector<128x128xbf16>,
    %38 = vector.extract_strided_slice %34 {offsets = [1, 0, 0], sizes = [8, 16, 128], strides = [1, 1, 1]} : vector<10x16x128xbf16> to vector<8x16x128xbf16>
    %39 = vector.shape_cast %38 : vector<8x16x128xbf16> to vector<128x128xbf16>
    %c0_27 = arith.constant 0 : index
    %c384 = arith.constant 384 : index
    %40 = vector.load %arg9[%c0_27, %c384] : memref<128x1152xbf16, #tpu.memory_space<vmem>>, vector<128x128xbf16>
    tpu.vector_store %arg9[%c0_27, %c384], %39 {strides = array<i32>} : memref<128x1152xbf16, #tpu.memory_space<vmem>>, vector<128x128xbf16>,
    %41 = vector.extract_strided_slice %34 {offsets = [2, 0, 0], sizes = [8, 16, 128], strides = [1, 1, 1]} : vector<10x16x128xbf16> to vector<8x16x128xbf16>
    %42 = vector.shape_cast %41 : vector<8x16x128xbf16> to vector<128x128xbf16>
    %c0_28 = arith.constant 0 : index
    %c768 = arith.constant 768 : index
    %43 = vector.load %arg9[%c0_28, %c768] : memref<128x1152xbf16, #tpu.memory_space<vmem>>, vector<128x128xbf16>
    tpu.vector_store %arg9[%c0_28, %c768], %42 {strides = array<i32>} : memref<128x1152xbf16, #tpu.memory_space<vmem>>, vector<128x128xbf16>,
    %c0_29 = arith.constant 0 : index
    %c1_30 = arith.constant 1 : index
    %c0_31 = arith.constant 0 : index
    %44 = vector.load %arg8[%c0_29, %c1_30, %c0_31] : memref<18x18x128xbf16, #tpu.memory_space<vmem>>, vector<10x16x128xbf16>
    %45 = vector.extract_strided_slice %44 {offsets = [0, 0, 0], sizes = [8, 16, 128], strides = [1, 1, 1]} : vector<10x16x128xbf16> to vector<8x16x128xbf16>
    %46 = vector.shape_cast %45 : vector<8x16x128xbf16> to vector<128x128xbf16>
    %c0_32 = arith.constant 0 : index
    %c128 = arith.constant 128 : index
    %47 = vector.load %arg9[%c0_32, %c128] : memref<128x1152xbf16, #tpu.memory_space<vmem>>, vector<128x128xbf16>
    tpu.vector_store %arg9[%c0_32, %c128], %46 {strides = array<i32>} : memref<128x1152xbf16, #tpu.memory_space<vmem>>, vector<128x128xbf16>,
    %48 = vector.extract_strided_slice %44 {offsets = [1, 0, 0], sizes = [8, 16, 128], strides = [1, 1, 1]} : vector<10x16x128xbf16> to vector<8x16x128xbf16>
    %49 = vector.shape_cast %48 : vector<8x16x128xbf16> to vector<128x128xbf16>
    %c0_33 = arith.constant 0 : index
    %c512 = arith.constant 512 : index
    %50 = vector.load %arg9[%c0_33, %c512] : memref<128x1152xbf16, #tpu.memory_space<vmem>>, vector<128x128xbf16>
    tpu.vector_store %arg9[%c0_33, %c512], %49 {strides = array<i32>} : memref<128x1152xbf16, #tpu.memory_space<vmem>>, vector<128x128xbf16>,
    %51 = vector.extract_strided_slice %44 {offsets = [2, 0, 0], sizes = [8, 16, 128], strides = [1, 1, 1]} : vector<10x16x128xbf16> to vector<8x16x128xbf16>
    %52 = vector.shape_cast %51 : vector<8x16x128xbf16> to vector<128x128xbf16>
    %c0_34 = arith.constant 0 : index
    %c896 = arith.constant 896 : index
    %53 = vector.load %arg9[%c0_34, %c896] : memref<128x1152xbf16, #tpu.memory_space<vmem>>, vector<128x128xbf16>
    tpu.vector_store %arg9[%c0_34, %c896], %52 {strides = array<i32>} : memref<128x1152xbf16, #tpu.memory_space<vmem>>, vector<128x128xbf16>,
    %c0_35 = arith.constant 0 : index
    %c2 = arith.constant 2 : index
    %c0_36 = arith.constant 0 : index
    %54 = vector.load %arg8[%c0_35, %c2, %c0_36] : memref<18x18x128xbf16, #tpu.memory_space<vmem>>, vector<10x16x128xbf16>
    %55 = vector.extract_strided_slice %54 {offsets = [0, 0, 0], sizes = [8, 16, 128], strides = [1, 1, 1]} : vector<10x16x128xbf16> to vector<8x16x128xbf16>
    %56 = vector.shape_cast %55 : vector<8x16x128xbf16> to vector<128x128xbf16>
    %c0_37 = arith.constant 0 : index
    %c256 = arith.constant 256 : index
    %57 = vector.load %arg9[%c0_37, %c256] : memref<128x1152xbf16, #tpu.memory_space<vmem>>, vector<128x128xbf16>
    tpu.vector_store %arg9[%c0_37, %c256], %56 {strides = array<i32>} : memref<128x1152xbf16, #tpu.memory_space<vmem>>, vector<128x128xbf16>,
    %58 = vector.extract_strided_slice %54 {offsets = [1, 0, 0], sizes = [8, 16, 128], strides = [1, 1, 1]} : vector<10x16x128xbf16> to vector<8x16x128xbf16>
    %59 = vector.shape_cast %58 : vector<8x16x128xbf16> to vector<128x128xbf16>
    %c0_38 = arith.constant 0 : index
    %c640 = arith.constant 640 : index
    %60 = vector.load %arg9[%c0_38, %c640] : memref<128x1152xbf16, #tpu.memory_space<vmem>>, vector<128x128xbf16>
    tpu.vector_store %arg9[%c0_38, %c640], %59 {strides = array<i32>} : memref<128x1152xbf16, #tpu.memory_space<vmem>>, vector<128x128xbf16>,
    %61 = vector.extract_strided_slice %54 {offsets = [2, 0, 0], sizes = [8, 16, 128], strides = [1, 1, 1]} : vector<10x16x128xbf16> to vector<8x16x128xbf16>
    %62 = vector.shape_cast %61 : vector<8x16x128xbf16> to vector<128x128xbf16>
    %c0_39 = arith.constant 0 : index
    %c1024 = arith.constant 1024 : index
    %63 = vector.load %arg9[%c0_39, %c1024] : memref<128x1152xbf16, #tpu.memory_space<vmem>>, vector<128x128xbf16>
    tpu.vector_store %arg9[%c0_39, %c1024], %62 {strides = array<i32>} : memref<128x1152xbf16, #tpu.memory_space<vmem>>, vector<128x128xbf16>,
    %c0_40 = arith.constant 0 : index
    %c0_41 = arith.constant 0 : index
    %64 = vector.load %arg9[%c0_40, %c0_41] : memref<128x1152xbf16, #tpu.memory_space<vmem>>, vector<128x1152xbf16>
    %c0_42 = arith.constant 0 : index
    %c0_43 = arith.constant 0 : index
    %65 = vector.load %arg5[%c0_42, %c0_43] : memref<1152x128xbf16, #tpu.memory_space<vmem>>, vector<1152x128xbf16>
    %cst_44 = arith.constant dense<0.000000e+00> : vector<128x128xf32>
    %66 = tpu.matmul %64, %65, %cst_44 {dimension_numbers = #tpu.dot_dimension_numbers<[1], [0], [0], [1], [0, 0, 1, 1], [], []>} : vector<128x1152xbf16>, vector<1152x128xbf16>, vector<128x128xf32> -> vector<128x128xf32>
    %67 = vector.shape_cast %66 : vector<128x128xf32> to vector<8x16x128xf32>
    %c0_45 = arith.constant 0 : index
    %c0_46 = arith.constant 0 : index
    %c0_47 = arith.constant 0 : index
    %c0_48 = arith.constant 0 : index
    %68 = vector.load %arg6[%c0_45, %c0_46, %c0_47, %c0_48] : memref<1x16x16x128xf32, #tpu.memory_space<vmem>>, vector<1x8x16x128xf32>
    %69 = vector.shape_cast %68 : vector<1x8x16x128xf32> to vector<8x16x128xf32>
    %70 = vector.shape_cast %67 : vector<8x16x128xf32> to vector<1x8x16x128xf32>
    tpu.vector_store %arg6[%c0_45, %c0_46, %c0_47, %c0_48], %70 {strides = array<i32>} : memref<1x16x16x128xf32, #tpu.memory_space<vmem>>, vector<1x8x16x128xf32>,
    %c0_49 = arith.constant 0 : index
    %c0_50 = arith.constant 0 : index
    %71 = vector.load %arg7[%c0_49, %c0_50] : memref<2x128xf32, #tpu.memory_space<vmem>>, vector<1x128xf32>
    %cst_51 = arith.constant dense<0.000000e+00> : vector<128xf32>
    %72 = vector.multi_reduction <add>, %66, %cst_51 [0] : vector<128x128xf32> to vector<128xf32>
    %73 = vector.shape_cast %72 : vector<128xf32> to vector<1x128xf32>
    %74 = arith.addf %71, %73 : vector<1x128xf32>
    %c0_52 = arith.constant 0 : index
    %c0_53 = arith.constant 0 : index
    %75 = vector.load %arg7[%c0_52, %c0_53] : memref<2x128xf32, #tpu.memory_space<vmem>>, vector<1x128xf32>
    tpu.vector_store %arg7[%c0_52, %c0_53], %74 {strides = array<i32>} : memref<2x128xf32, #tpu.memory_space<vmem>>, vector<1x128xf32>,
    %c1_54 = arith.constant 1 : index
    %c0_55 = arith.constant 0 : index
    %76 = vector.load %arg7[%c1_54, %c0_55] : memref<2x128xf32, #tpu.memory_space<vmem>>, vector<1x128xf32>
    %77 = arith.mulf %66, %66 : vector<128x128xf32>
    %cst_56 = arith.constant dense<0.000000e+00> : vector<128xf32>
    %78 = vector.multi_reduction <add>, %77, %cst_56 [0] : vector<128x128xf32> to vector<128xf32>
    %79 = vector.shape_cast %78 : vector<128xf32> to vector<1x128xf32>
    %80 = arith.addf %76, %79 : vector<1x128xf32>
    %c1_57 = arith.constant 1 : index
    %c0_58 = arith.constant 0 : index
    %81 = vector.load %arg7[%c1_57, %c0_58] : memref<2x128xf32, #tpu.memory_space<vmem>>, vector<1x128xf32>
    tpu.vector_store %arg7[%c1_57, %c0_58], %80 {strides = array<i32>} : memref<2x128xf32, #tpu.memory_space<vmem>>, vector<1x128xf32>,
    %c8_59 = arith.constant 8 : index
    %c0_60 = arith.constant 0 : index
    %c0_61 = arith.constant 0 : index
    %82 = vector.load %arg8[%c8_59, %c0_60, %c0_61] : memref<18x18x128xbf16, #tpu.memory_space<vmem>>, vector<10x16x128xbf16>
    %83 = vector.extract_strided_slice %82 {offsets = [0, 0, 0], sizes = [8, 16, 128], strides = [1, 1, 1]} : vector<10x16x128xbf16> to vector<8x16x128xbf16>
    %84 = vector.shape_cast %83 : vector<8x16x128xbf16> to vector<128x128xbf16>
    %c0_62 = arith.constant 0 : index
    %c0_63 = arith.constant 0 : index
    %85 = vector.load %arg9[%c0_62, %c0_63] : memref<128x1152xbf16, #tpu.memory_space<vmem>>, vector<128x128xbf16>
    tpu.vector_store %arg9[%c0_62, %c0_63], %84 {strides = array<i32>} : memref<128x1152xbf16, #tpu.memory_space<vmem>>, vector<128x128xbf16>,
    %86 = vector.extract_strided_slice %82 {offsets = [1, 0, 0], sizes = [8, 16, 128], strides = [1, 1, 1]} : vector<10x16x128xbf16> to vector<8x16x128xbf16>
    %87 = vector.shape_cast %86 : vector<8x16x128xbf16> to vector<128x128xbf16>
    %c0_64 = arith.constant 0 : index
    %c384_65 = arith.constant 384 : index
    %88 = vector.load %arg9[%c0_64, %c384_65] : memref<128x1152xbf16, #tpu.memory_space<vmem>>, vector<128x128xbf16>
    tpu.vector_store %arg9[%c0_64, %c384_65], %87 {strides = array<i32>} : memref<128x1152xbf16, #tpu.memory_space<vmem>>, vector<128x128xbf16>,
    %89 = vector.extract_strided_slice %82 {offsets = [2, 0, 0], sizes = [8, 16, 128], strides = [1, 1, 1]} : vector<10x16x128xbf16> to vector<8x16x128xbf16>
    %90 = vector.shape_cast %89 : vector<8x16x128xbf16> to vector<128x128xbf16>
    %c0_66 = arith.constant 0 : index
    %c768_67 = arith.constant 768 : index
    %91 = vector.load %arg9[%c0_66, %c768_67] : memref<128x1152xbf16, #tpu.memory_space<vmem>>, vector<128x128xbf16>
    tpu.vector_store %arg9[%c0_66, %c768_67], %90 {strides = array<i32>} : memref<128x1152xbf16, #tpu.memory_space<vmem>>, vector<128x128xbf16>,
    %c8_68 = arith.constant 8 : index
    %c1_69 = arith.constant 1 : index
    %c0_70 = arith.constant 0 : index
    %92 = vector.load %arg8[%c8_68, %c1_69, %c0_70] : memref<18x18x128xbf16, #tpu.memory_space<vmem>>, vector<10x16x128xbf16>
    %93 = vector.extract_strided_slice %92 {offsets = [0, 0, 0], sizes = [8, 16, 128], strides = [1, 1, 1]} : vector<10x16x128xbf16> to vector<8x16x128xbf16>
    %94 = vector.shape_cast %93 : vector<8x16x128xbf16> to vector<128x128xbf16>
    %c0_71 = arith.constant 0 : index
    %c128_72 = arith.constant 128 : index
    %95 = vector.load %arg9[%c0_71, %c128_72] : memref<128x1152xbf16, #tpu.memory_space<vmem>>, vector<128x128xbf16>
    tpu.vector_store %arg9[%c0_71, %c128_72], %94 {strides = array<i32>} : memref<128x1152xbf16, #tpu.memory_space<vmem>>, vector<128x128xbf16>,
    %96 = vector.extract_strided_slice %92 {offsets = [1, 0, 0], sizes = [8, 16, 128], strides = [1, 1, 1]} : vector<10x16x128xbf16> to vector<8x16x128xbf16>
    %97 = vector.shape_cast %96 : vector<8x16x128xbf16> to vector<128x128xbf16>
    %c0_73 = arith.constant 0 : index
    %c512_74 = arith.constant 512 : index
    %98 = vector.load %arg9[%c0_73, %c512_74] : memref<128x1152xbf16, #tpu.memory_space<vmem>>, vector<128x128xbf16>
    tpu.vector_store %arg9[%c0_73, %c512_74], %97 {strides = array<i32>} : memref<128x1152xbf16, #tpu.memory_space<vmem>>, vector<128x128xbf16>,
    %99 = vector.extract_strided_slice %92 {offsets = [2, 0, 0], sizes = [8, 16, 128], strides = [1, 1, 1]} : vector<10x16x128xbf16> to vector<8x16x128xbf16>
    %100 = vector.shape_cast %99 : vector<8x16x128xbf16> to vector<128x128xbf16>
    %c0_75 = arith.constant 0 : index
    %c896_76 = arith.constant 896 : index
    %101 = vector.load %arg9[%c0_75, %c896_76] : memref<128x1152xbf16, #tpu.memory_space<vmem>>, vector<128x128xbf16>
    tpu.vector_store %arg9[%c0_75, %c896_76], %100 {strides = array<i32>} : memref<128x1152xbf16, #tpu.memory_space<vmem>>, vector<128x128xbf16>,
    %c8_77 = arith.constant 8 : index
    %c2_78 = arith.constant 2 : index
    %c0_79 = arith.constant 0 : index
    %102 = vector.load %arg8[%c8_77, %c2_78, %c0_79] : memref<18x18x128xbf16, #tpu.memory_space<vmem>>, vector<10x16x128xbf16>
    %103 = vector.extract_strided_slice %102 {offsets = [0, 0, 0], sizes = [8, 16, 128], strides = [1, 1, 1]} : vector<10x16x128xbf16> to vector<8x16x128xbf16>
    %104 = vector.shape_cast %103 : vector<8x16x128xbf16> to vector<128x128xbf16>
    %c0_80 = arith.constant 0 : index
    %c256_81 = arith.constant 256 : index
    %105 = vector.load %arg9[%c0_80, %c256_81] : memref<128x1152xbf16, #tpu.memory_space<vmem>>, vector<128x128xbf16>
    tpu.vector_store %arg9[%c0_80, %c256_81], %104 {strides = array<i32>} : memref<128x1152xbf16, #tpu.memory_space<vmem>>, vector<128x128xbf16>,
    %106 = vector.extract_strided_slice %102 {offsets = [1, 0, 0], sizes = [8, 16, 128], strides = [1, 1, 1]} : vector<10x16x128xbf16> to vector<8x16x128xbf16>
    %107 = vector.shape_cast %106 : vector<8x16x128xbf16> to vector<128x128xbf16>
    %c0_82 = arith.constant 0 : index
    %c640_83 = arith.constant 640 : index
    %108 = vector.load %arg9[%c0_82, %c640_83] : memref<128x1152xbf16, #tpu.memory_space<vmem>>, vector<128x128xbf16>
    tpu.vector_store %arg9[%c0_82, %c640_83], %107 {strides = array<i32>} : memref<128x1152xbf16, #tpu.memory_space<vmem>>, vector<128x128xbf16>,
    %109 = vector.extract_strided_slice %102 {offsets = [2, 0, 0], sizes = [8, 16, 128], strides = [1, 1, 1]} : vector<10x16x128xbf16> to vector<8x16x128xbf16>
    %110 = vector.shape_cast %109 : vector<8x16x128xbf16> to vector<128x128xbf16>
    %c0_84 = arith.constant 0 : index
    %c1024_85 = arith.constant 1024 : index
    %111 = vector.load %arg9[%c0_84, %c1024_85] : memref<128x1152xbf16, #tpu.memory_space<vmem>>, vector<128x128xbf16>
    tpu.vector_store %arg9[%c0_84, %c1024_85], %110 {strides = array<i32>} : memref<128x1152xbf16, #tpu.memory_space<vmem>>, vector<128x128xbf16>,
    %c0_86 = arith.constant 0 : index
    %c0_87 = arith.constant 0 : index
    %112 = vector.load %arg9[%c0_86, %c0_87] : memref<128x1152xbf16, #tpu.memory_space<vmem>>, vector<128x1152xbf16>
    %c0_88 = arith.constant 0 : index
    %c0_89 = arith.constant 0 : index
    %113 = vector.load %arg5[%c0_88, %c0_89] : memref<1152x128xbf16, #tpu.memory_space<vmem>>, vector<1152x128xbf16>
    %cst_90 = arith.constant dense<0.000000e+00> : vector<128x128xf32>
    %114 = tpu.matmul %112, %113, %cst_90 {dimension_numbers = #tpu.dot_dimension_numbers<[1], [0], [0], [1], [0, 0, 1, 1], [], []>} : vector<128x1152xbf16>, vector<1152x128xbf16>, vector<128x128xf32> -> vector<128x128xf32>
    %115 = vector.shape_cast %114 : vector<128x128xf32> to vector<8x16x128xf32>
    %c0_91 = arith.constant 0 : index
    %c8_92 = arith.constant 8 : index
    %c0_93 = arith.constant 0 : index
    %c0_94 = arith.constant 0 : index
    %116 = vector.load %arg6[%c0_91, %c8_92, %c0_93, %c0_94] : memref<1x16x16x128xf32, #tpu.memory_space<vmem>>, vector<1x8x16x128xf32>
    %117 = vector.shape_cast %116 : vector<1x8x16x128xf32> to vector<8x16x128xf32>
    %118 = vector.shape_cast %115 : vector<8x16x128xf32> to vector<1x8x16x128xf32>
    tpu.vector_store %arg6[%c0_91, %c8_92, %c0_93, %c0_94], %118 {strides = array<i32>} : memref<1x16x16x128xf32, #tpu.memory_space<vmem>>, vector<1x8x16x128xf32>,
    %c0_95 = arith.constant 0 : index
    %c0_96 = arith.constant 0 : index
    %119 = vector.load %arg7[%c0_95, %c0_96] : memref<2x128xf32, #tpu.memory_space<vmem>>, vector<1x128xf32>
    %cst_97 = arith.constant dense<0.000000e+00> : vector<128xf32>
    %120 = vector.multi_reduction <add>, %114, %cst_97 [0] : vector<128x128xf32> to vector<128xf32>
    %121 = vector.shape_cast %120 : vector<128xf32> to vector<1x128xf32>
    %122 = arith.addf %119, %121 : vector<1x128xf32>
    %c0_98 = arith.constant 0 : index
    %c0_99 = arith.constant 0 : index
    %123 = vector.load %arg7[%c0_98, %c0_99] : memref<2x128xf32, #tpu.memory_space<vmem>>, vector<1x128xf32>
    tpu.vector_store %arg7[%c0_98, %c0_99], %122 {strides = array<i32>} : memref<2x128xf32, #tpu.memory_space<vmem>>, vector<1x128xf32>,
    %c1_100 = arith.constant 1 : index
    %c0_101 = arith.constant 0 : index
    %124 = vector.load %arg7[%c1_100, %c0_101] : memref<2x128xf32, #tpu.memory_space<vmem>>, vector<1x128xf32>
    %125 = arith.mulf %114, %114 : vector<128x128xf32>
    %cst_102 = arith.constant dense<0.000000e+00> : vector<128xf32>
    %126 = vector.multi_reduction <add>, %125, %cst_102 [0] : vector<128x128xf32> to vector<128xf32>
    %127 = vector.shape_cast %126 : vector<128xf32> to vector<1x128xf32>
    %128 = arith.addf %124, %127 : vector<1x128xf32>
    %c1_103 = arith.constant 1 : index
    %c0_104 = arith.constant 0 : index
    %129 = vector.load %arg7[%c1_103, %c0_104] : memref<2x128xf32, #tpu.memory_space<vmem>>, vector<1x128xf32>
    tpu.vector_store %arg7[%c1_103, %c0_104], %128 {strides = array<i32>} : memref<2x128xf32, #tpu.memory_space<vmem>>, vector<1x128xf32>,
    %c1_i32 = arith.constant 1 : i32
    %130 = arith.cmpi eq, %arg0, %c1_i32 : i32
    %131 = arith.extui %130 : i1 to i32
    %c0_i32_105 = arith.constant 0 : i32
    %132 = arith.cmpi ne, %131, %c0_i32_105 : i32
    scf.if %132 {
      %c0_106 = arith.constant 0 : index
      %c0_107 = arith.constant 0 : index
      %133 = vector.load %arg7[%c0_106, %c0_107] : memref<2x128xf32, #tpu.memory_space<vmem>>, vector<1x128xf32>
      %cst_108 = arith.constant 5.120000e+02 : f32
      %134 = vector.broadcast %cst_108 : f32 to vector<1x128xf32>
      %135 = arith.divf %133, %134 : vector<1x128xf32>
      %c1_109 = arith.constant 1 : index
      %c0_110 = arith.constant 0 : index
      %136 = vector.load %arg7[%c1_109, %c0_110] : memref<2x128xf32, #tpu.memory_space<vmem>>, vector<1x128xf32>
      %cst_111 = arith.constant 5.120000e+02 : f32
      %137 = vector.broadcast %cst_111 : f32 to vector<1x128xf32>
      %138 = arith.divf %136, %137 : vector<1x128xf32>
      %139 = arith.mulf %135, %135 : vector<1x128xf32>
      %140 = arith.subf %138, %139 : vector<1x128xf32>
      %c0_112 = arith.constant 0 : index
      %c0_113 = arith.constant 0 : index
      %141 = vector.load %arg7[%c0_112, %c0_113] : memref<2x128xf32, #tpu.memory_space<vmem>>, vector<1x128xf32>
      tpu.vector_store %arg7[%c0_112, %c0_113], %135 {strides = array<i32>} : memref<2x128xf32, #tpu.memory_space<vmem>>, vector<1x128xf32>,
      %cst_114 = arith.constant 9.99999974E-6 : f32
      %142 = vector.broadcast %cst_114 : f32 to vector<1x128xf32>
      %143 = arith.addf %140, %142 : vector<1x128xf32>
      %144 = math.rsqrt %143 : vector<1x128xf32>
      %c1_115 = arith.constant 1 : index
      %c0_116 = arith.constant 0 : index
      %145 = vector.load %arg7[%c1_115, %c0_116] : memref<2x128xf32, #tpu.memory_space<vmem>>, vector<1x128xf32>
      tpu.vector_store %arg7[%c1_115, %c0_116], %144 {strides = array<i32>} : memref<2x128xf32, #tpu.memory_space<vmem>>, vector<1x128xf32>,
    } else {
    }
    return
  }
  func.func @transform_0(%arg0: i32) -> (i32, i32, i32, i32) {
    %c0_i32 = arith.constant 0 : i32
    %c0_i32_0 = arith.constant 0 : i32
    %c0_i32_1 = arith.constant 0 : i32
    %c0_i32_2 = arith.constant 0 : i32
    return %arg0, %c0_i32, %c0_i32_0, %c0_i32_1 : i32, i32, i32, i32
  }
  func.func @transform_1(%arg0: i32) -> (i32, i32) {
    %c0_i32 = arith.constant 0 : i32
    %c0_i32_0 = arith.constant 0 : i32
    %c0_i32_1 = arith.constant 0 : i32
    return %c0_i32, %c0_i32_0 : i32, i32
  }
  func.func @transform_2(%arg0: i32) -> (i32, i32) {
    %c0_i32 = arith.constant 0 : i32
    %c0_i32_0 = arith.constant 0 : i32
    %c0_i32_1 = arith.constant 0 : i32
    return %c0_i32, %c0_i32_0 : i32, i32
  }
  func.func @transform_3(%arg0: i32) -> (i32, i32) {
    %c0_i32 = arith.constant 0 : i32
    %c0_i32_0 = arith.constant 0 : i32
    %c0_i32_1 = arith.constant 0 : i32
    return %c0_i32, %c0_i32_0 : i32, i32
  }
  func.func @transform_4(%arg0: i32) -> (i32, i32) {
    %c0_i32 = arith.constant 0 : i32
    %c0_i32_0 = arith.constant 0 : i32
    %c0_i32_1 = arith.constant 0 : i32
    return %c0_i32, %c0_i32_0 : i32, i32
  }
  func.func @transform_5(%arg0: i32) -> (i32, i32, i32, i32) {
    %c0_i32 = arith.constant 0 : i32
    %c0_i32_0 = arith.constant 0 : i32
    %c0_i32_1 = arith.constant 0 : i32
    %c0_i32_2 = arith.constant 0 : i32
    return %arg0, %c0_i32, %c0_i32_0, %c0_i32_1 : i32, i32, i32, i32
  }
  func.func @transform_6(%arg0: i32) -> (i32, i32) {
    %c0_i32 = arith.constant 0 : i32
    %c0_i32_0 = arith.constant 0 : i32
    %c0_i32_1 = arith.constant 0 : i32
    return %c0_i32, %c0_i32_0 : i32, i32
  }
}

</mosaic_0001>

<bundles_post_ra>
// kernel: resnet_block_forward.5
= control target key start
LH: loop header
LB: loop body
LE: loop exit
PB: predicated region body
PF: predicated region fallthrough
CT: control target
= control target key end

     0   :  { %s683_s18 = smov 0   ;;  %s685_s19 = smov 0   ;;  %s844_s0 = inlined_call_operand.vmem [shape: f32[2,16,16,128], index: 0, kind: input, shape index: {}]   ;;  %s845_s1 = inlined_call_operand.vmem [shape: f32[2,128], index: 1, kind: input, shape index: {}]   ;;  %s846_s2 = inlined_call_operand.vmem [shape: f32[1,128], index: 2, kind: input, shape index: {}]   ;;  %s847_s3 = inlined_call_operand.vmem [shape: f32[1,128], index: 3, kind: input, shape index: {}]   ;;  %s848_s4 = inlined_call_operand.vmem [shape: f32[2,16,16,128], index: 4, kind: input, shape index: {}]   ;;  %s849_s5 = inlined_call_operand.vmem [shape: f32[2,16,16,128], index: 5, kind: output, shape index: {}]  }
   0x1   :  { %s687_s20 = smov 0   ;;  %s689_s21 = smov 0  }
   0x2   :  { %s691_s22 = smov 0  }
   0x3 LB: > { %s24_s23 = sadd.s32 1, %s643_s20  ;;  %s27_s24 = sadd.s32 1, %s647_s21  ;;  %s651_s22 = sphi %s691_s22, %s15_s22   ;;  %s647_s21 = sphi %s689_s21, %s853_s21   ;;  %s643_s20 = sphi %s687_s20, %s852_s20   ;;  %s639_s19 = sphi %s685_s19, %s851_s19   ;;  %s635_s18 = sphi %s683_s18, %s850_s18  }
   0x4   : > { %p25_p0 = scmp.ge.s32.totalorder %s24_s23, 2  ;;  %p558_p1 = scmp.ge.s32.totalorder %s651_s22, 1 }
   0x5   : > { %p227_p2 = scmp.lt.s32.totalorder %s651_s22, 5 }
   0x6   : > { %s855_s23 = smov (%p25_p0, %s24_s23), 0  ;;  %s857_s24 = smov (!%p25_p0, %s27_s24), %s647_s21 }
   0x7   : > { %p228_p3 = pnand %p558_p1, %p227_p2  ;;  %p29_p4 = scmp.ge.s32.totalorder %s857_s24, 2 }
   0x8   : > { %s559_s25 = sshll.u32 (!%p228_p3), %s635_s18, 3  ;;  %p276_p5 = scmp.lt.s32.totalorder (!%p228_p3), %s639_s19, 1 }
   0x9   : > { %s859_s24 = smov (%p29_p4, %s857_s24), 0  ;;  %231 = sbr.rel (%p228_p3) target bundleno = 46 (0x2e), region = 40 }
   0xa   : > { %p278_p6 = scmp.lt.s32.totalorder (!%p228_p3), %s559_s25, 15 }
   0xe   : > { %v308_v0 = vld [vmem:[%s845_s1 + $0x1] sm:$0x1]  ;;  %v309_v1 = vld [vmem:[%s846_s2] sm:$0x1]  ;;  %s861_s19 = smov (!%p276_p5, %s639_s19), 1  ;;  %s863_s25 = smov (!%p278_p6, %s559_s25), 15 }
   0xf   : > { %v312_v2 = vld [vmem:[%s845_s1] sm:$0x1]  ;;  %v310_v3 = vmul.f32 %v309_v1, %v308_v0  ;;  %s561_s9 = sshll.u32 %s861_s19, 5  ;;  %s560_s10 = sshll.u32 %s863_s25, 1 }
  0x10   : > { %v313_v4 = vmul.f32 %v312_v2, %v309_v1  ;;  %v311_v5 = vld [vmem:[%s847_s3] sm:$0x1]  ;;  %s282_s11 = sadd.s32 %s561_s9, %s560_s10 }
  0x11   : > { %v725_v8 = vperm.slane %v310_v3, 0  ;;  %s727_s12 = sshll.u32 %s282_s11, 3 }
  0x12   : > { %v314_v6 = vmul.f32 %v313_v4, %v308_v0  ;;  %s733_s15 = scalar_lea.vmem %s844_s0, %s727_s12  ;;  %s739_s18 = scalar_lea.vmem %s848_s4, %s727_s12 }
  0x13   : > { %v316_v10 = vld [vmem:[%s733_s15] sm:$0xff]  ;;  %v317_v11 = vld [vmem:[%s733_s15 + $0x8] sm:$0xff]  ;;  %v318_v15 = vld [vmem:[%s733_s15 + $0x10] sm:$0xff]  ;;  %s772_s26 = scalar_lea.vmem %s849_s5, %s727_s12 }
  0x14   : > { %v315_v7 = vsub.f32 %v311_v5, %v314_v6  ;;  %v335_v12 = vmul.f32 %v725_v8, %v316_v10  ;;  %v370_v13 = vld [vmem:[%s739_s18] sm:$0xff]  ;;  %v336_v14 = vmul.f32 %v725_v8, %v317_v11  ;;  %v371_v16 = vld [vmem:[%s739_s18 + $0x8] sm:$0xff]  ;;  %v337_v17 = vmul.f32 %v725_v8, %v318_v15  ;;  %v319_v18 = vld [vmem:[%s733_s15 + $0x18] sm:$0xff] }
  0x15   : > { %v320_v19 = vld [vmem:[%s733_s15 + $0x20] sm:$0xff]  ;;  %v372_v22 = vld [vmem:[%s739_s18 + $0x10] sm:$0xff]  ;;  %v338_v23 = vmul.f32 %v725_v8, %v319_v18  ;;  %v373_v24 = vld [vmem:[%s739_s18 + $0x18] sm:$0xff] }
  0x16   : > { %v741_v9 = vperm.slane %v315_v7, 0  ;;  %v339_v25 = vmul.f32 %v725_v8, %v320_v19  ;;  %v321_v26 = vld [vmem:[%s733_s15 + $0x28] sm:$0xff]  ;;  %v374_v28 = vld [vmem:[%s739_s18 + $0x20] sm:$0xff]  ;;  %v322_v30 = vld [vmem:[%s733_s15 + $0x30] sm:$0xff] }
  0x17   : > { %v340_v29 = vmul.f32 %v725_v8, %v321_v26  ;;  %v323_v31 = vld [vmem:[%s733_s15 + $0x38] sm:$0xff]  ;;  %v375_v36 = vld [vmem:[%s739_s18 + $0x28] sm:$0xff]  ;;  %v341_v39 = vmul.f32 %v725_v8, %v322_v30  ;;  %v324_v41 = vld [vmem:[%s733_s15 + $0x40] sm:$0xff] }
  0x18   : > { %v354_v20 = vadd.f32 %v741_v9, %v335_v12  ;;  %v355_v21 = vadd.f32 %v741_v9, %v336_v14  ;;  %v356_v27 = vadd.f32 %v741_v9, %v337_v17  ;;  %v357_v34 = vadd.f32 %v741_v9, %v338_v23  ;;  %v325_v42 = vld [vmem:[%s733_s15 + $0x48] sm:$0xff]  ;;  %v376_v47 = vld [vmem:[%s739_s18 + $0x30] sm:$0xff]  ;;  %v377_v48 = vld [vmem:[%s739_s18 + $0x38] sm:$0xff] }
  0x19   : > { %v358_v35 = vadd.f32 %v741_v9, %v339_v25  ;;  %v359_v38 = vadd.f32 %v741_v9, %v340_v29  ;;  %v342_v40 = vmul.f32 %v725_v8, %v323_v31  ;;  %v326_v49 = vld [vmem:[%s733_s15 + $0x50] sm:$0xff]  ;;  %v360_v52 = vadd.f32 %v741_v9, %v341_v39  ;;  %v327_v54 = vld [vmem:[%s733_s15 + $0x58] sm:$0xff]  ;;  %v328_v55 = vld [vmem:[%s733_s15 + $0x60] sm:$0xff] }
  0x1a   : > { %v386_v32 = vadd.f32 %v370_v13, %v354_v20  ;;  %v387_v33 = vadd.f32 %v371_v16, %v355_v21  ;;  %v388_v37 = vadd.f32 %v372_v22, %v356_v27  ;;  %v389_v45 = vadd.f32 %v373_v24, %v357_v34  ;;  %v329_v60 = vld [vmem:[%s733_s15 + $0x68] sm:$0xff]  ;;  %v378_v0 = vld [vmem:[%s739_s18 + $0x40] sm:$0xff]  ;;  %v380_v5 = vld [vmem:[%s739_s18 + $0x50] sm:$0xff] }
  0x1b   : > { %v390_v46 = vadd.f32 %v374_v28, %v358_v35  ;;  %v391_v51 = vadd.f32 %v375_v36, %v359_v38  ;;  %v361_v53 = vadd.f32 %v741_v9, %v342_v40  ;;  %v343_v58 = vmul.f32 %v725_v8, %v324_v41  ;;  %v379_v1 = vld [vmem:[%s739_s18 + $0x48] sm:$0xff]  ;;  %v330_v10 = vld [vmem:[%s733_s15 + $0x70] sm:$0xff]  ;;  %v331_v11 = vld [vmem:[%s733_s15 + $0x78] sm:$0xff] }
  0x1c   : > { %v402_v43 = vmax.f32 %v386_v32, 0.0  ;;  %v403_v44 = vmax.f32 %v387_v33, 0.0  ;;  %v404_v50 = vmax.f32 %v388_v37, 0.0  ;;  %v405_v56 = vmax.f32 %v389_v45, 0.0  ;;  %v381_v15 = vld [vmem:[%s739_s18 + $0x58] sm:$0xff]  ;;  %v382_v16 = vld [vmem:[%s739_s18 + $0x60] sm:$0xff] }
  0x1d   : > { %v406_v57 = vmax.f32 %v390_v46, 0.0  ;;  %v344_v59 = vmul.f32 %v725_v8, %v325_v42  ;;  %v407_v61 = vmax.f32 %v391_v51, 0.0  ;;  %v392_v62 = vadd.f32 %v376_v47, %v360_v52  ;;  %v383_v22 = vld [vmem:[%s739_s18 + $0x68] sm:$0xff]  ;;  %v384_v31 = vld [vmem:[%s739_s18 + $0x70] sm:$0xff]  ;;  %v385_v32 = vld [vmem:[%s739_s18 + $0x78] sm:$0xff] }
  0x1e   : > { %418 = vst [vmem:[%s772_s26] sm:$0xff] %v402_v43  ;;  %v393_v63 = vadd.f32 %v377_v48, %v361_v53  ;;  %v345_v2 = vmul.f32 %v725_v8, %v326_v49  ;;  %v362_v3 = vadd.f32 %v741_v9, %v343_v58  ;;  %v346_v6 = vmul.f32 %v725_v8, %v327_v54 }
  0x1f   : > { %419 = vst [vmem:[%s772_s26 + $0x8] sm:$0xff] %v403_v44  ;;  %v363_v4 = vadd.f32 %v741_v9, %v344_v59  ;;  %v347_v7 = vmul.f32 %v725_v8, %v328_v55  ;;  %v408_v12 = vmax.f32 %v392_v62, 0.0  ;;  %v348_v17 = vmul.f32 %v725_v8, %v329_v60 }
  0x20   : > { %420 = vst [vmem:[%s772_s26 + $0x10] sm:$0xff] %v404_v50  ;;  %v409_v13 = vmax.f32 %v393_v63, 0.0  ;;  %v364_v14 = vadd.f32 %v741_v9, %v345_v2  ;;  %v394_v18 = vadd.f32 %v378_v0, %v362_v3  ;;  %v365_v20 = vadd.f32 %v741_v9, %v346_v6 }
  0x21   : > { %421 = vst [vmem:[%s772_s26 + $0x18] sm:$0xff] %v405_v56  ;;  %v395_v19 = vadd.f32 %v379_v1, %v363_v4  ;;  %v366_v21 = vadd.f32 %v741_v9, %v347_v7  ;;  %v367_v24 = vadd.f32 %v741_v9, %v348_v17  ;;  %v349_v25 = vmul.f32 %v725_v8, %v330_v10 }
  0x22   : > { %422 = vst [vmem:[%s772_s26 + $0x20] sm:$0xff] %v406_v57  ;;  %v396_v23 = vadd.f32 %v380_v5, %v364_v14  ;;  %v350_v26 = vmul.f32 %v725_v8, %v331_v11  ;;  %v410_v27 = vmax.f32 %v394_v18, 0.0  ;;  %v397_v29 = vadd.f32 %v381_v15, %v365_v20 }
  0x23   : > { %423 = vst [vmem:[%s772_s26 + $0x28] sm:$0xff] %v407_v61  ;;  %v411_v28 = vmax.f32 %v395_v19, 0.0  ;;  %v398_v30 = vadd.f32 %v382_v16, %v366_v21  ;;  %v399_v34 = vadd.f32 %v383_v22, %v367_v24  ;;  %v368_v35 = vadd.f32 %v741_v9, %v349_v25 }
  0x24   : > { %424 = vst [vmem:[%s772_s26 + $0x30] sm:$0xff] %v408_v12  ;;  %v412_v33 = vmax.f32 %v396_v23, 0.0  ;;  %v369_v8 = vadd.f32 %v741_v9, %v350_v26  ;;  %v413_v36 = vmax.f32 %v397_v29, 0.0 }
  0x25   : > { %425 = vst [vmem:[%s772_s26 + $0x38] sm:$0xff] %v409_v13  ;;  %v414_v37 = vmax.f32 %v398_v30, 0.0  ;;  %v415_v38 = vmax.f32 %v399_v34, 0.0  ;;  %v400_v39 = vadd.f32 %v384_v31, %v368_v35 }
  0x26   : > { %426 = vst [vmem:[%s772_s26 + $0x40] sm:$0xff] %v410_v27  ;;  %v401_v40 = vadd.f32 %v385_v32, %v369_v8 }
  0x27   : > { %427 = vst [vmem:[%s772_s26 + $0x48] sm:$0xff] %v411_v28  ;;  %v416_v41 = vmax.f32 %v400_v39, 0.0 }
  0x28   : > { %428 = vst [vmem:[%s772_s26 + $0x50] sm:$0xff] %v412_v33  ;;  %v417_v42 = vmax.f32 %v401_v40, 0.0 }
  0x29   : > { %429 = vst [vmem:[%s772_s26 + $0x58] sm:$0xff] %v413_v36 }
  0x2a   : > { %430 = vst [vmem:[%s772_s26 + $0x60] sm:$0xff] %v414_v37 }
  0x2b   : > { %431 = vst [vmem:[%s772_s26 + $0x68] sm:$0xff] %v415_v38 }
  0x2c   : > { %432 = vst [vmem:[%s772_s26 + $0x70] sm:$0xff] %v416_v41 }
  0x2d   : > { %433 = vst [vmem:[%s772_s26 + $0x78] sm:$0xff] %v417_v42 }
  0x2e PF: > { %s15_s22 = sadd.s32 1, %s651_s22   ;;  %s850_s18 = smov %s643_s20 }
  0x2f   : > { %p12_p7 = scmp.ge.s32.totalorder %s15_s22, 6   ;;  %s851_s19 = smov %s647_s21 }
  0x30   : > { %s852_s20 = smov %s855_s23  ;;  %s853_s21 = smov %s859_s24 }
  0x31   :  { %14 = sbr.rel (!%p12_p7) target bundleno = 3 (0x3), region = 73 }

// kernel: resnet_block_forward.3
= control target key start
LH: loop header
LB: loop body
LE: loop exit
PB: predicated region body
PF: predicated region fallthrough
CT: control target
= control target key end

     0   :  { %s3369_s12 = smov 0   ;;  %s3371_s13 = smov 0   ;;  %s4009_s0 = inlined_call_operand.vmem [shape: bf16[2,18,18,128], index: 0, kind: input, shape index: {}]   ;;  %s4010_s1 = inlined_call_operand.vmem [shape: bf16[1152,128], index: 1, kind: input, shape index: {}]   ;;  %s4011_s2 = inlined_call_operand.vmem [shape: f32[2,16,16,128], index: 2, kind: output, shape index: {0}]   ;;  %s4012_s3 = inlined_call_operand.vmem [shape: f32[2,128], index: 3, kind: output, shape index: {1}]  }
   0x1   :  { %s3373_s14 = smov 0   ;;  %s3375_s15 = smov 0  }
   0x2   :  { %s3377_s16 = smov 0  }
   0x3 LB: > { %s23_s17 = sadd.s32 1, %s3337_s14  ;;  %s26_s18 = sadd.s32 1, %s3341_s15  ;;  %s3345_s16 = sphi %s3377_s16, %s14_s16   ;;  %s3341_s15 = sphi %s3375_s15, %s4021_s15   ;;  %s3337_s14 = sphi %s3373_s14, %s4020_s14   ;;  %s3333_s13 = sphi %s3371_s13, %s4019_s13   ;;  %s3329_s12 = sphi %s3369_s12, %s4018_s12  }
   0x4   : > { %p24_p0 = scmp.ge.s32.totalorder %s23_s17, 2  ;;  %p2494_p1 = scmp.ge.s32.totalorder %s3345_s16, 1 }
   0x5   : > { %p149_p2 = scmp.lt.s32.totalorder %s3345_s16, 5 }
   0x6   : > { %s4023_s17 = smov (%p24_p0, %s23_s17), 0  ;;  %s4025_s18 = smov (!%p24_p0, %s26_s18), %s3341_s15 }
   0x7   : > { %p150_p3 = pnand %p2494_p1, %p149_p2  ;;  %p28_p4 = scmp.ge.s32.totalorder %s4025_s18, 2 }
   0x8   : > { %p178_p5 = scmp.lt.s32.totalorder (!%p150_p3), %s3333_s13, 1  ;;  %s2496_s19 = sshll.u32 (!%p150_p3), %s3329_s12, 3 }
   0x9   : > { %s4027_s18 = smov (%p28_p4, %s4025_s18), 0  ;;  %153 = sbr.rel (%p150_p3) target bundleno = 537 (0x219), region = 28 }
   0xa   : > { %p186_p6 = scmp.lt.s32.totalorder (!%p150_p3), %s2496_s19, 15  ;;  %p194_p7 = scmp.eq.s32.totalorder (!%p150_p3), %s3333_s13, 0 }
   0xb   : > { %p195_p8 = scmp.eq.s32.totalorder (!%p150_p3), %s3329_s12, 0 }
   0xd   : > { %p196_p9 = pnand (!%p150_p3), %p195_p8, %p194_p7 }
   0xe   : > { %s179_s20 = scalar_select %p178_p5, %s3333_s13, 1 }
   0xf   : > { %s4029_s19 = smov (!%p186_p6, %s2496_s19), 15 }
  0x10   : > { %s3260_s21 = smul.u32 216, %s179_s20  ;;  %s2498_s22 = sshll.u32 %s179_s20, 5 }
  0x11   : > { %s2497_s23 = sshll.u32 %s4029_s19, 1  ;;  %199 = sbr.rel (%p196_p9) target bundleno = 24 (0x18), region = 32 }
  0x12   : > { %s182_s26 = scalar_lea.vmem %s4009_s0, %s3260_s21  ;;  %s190_s27 = sadd.s32 %s2498_s22, %s2497_s23 }
  0x13   : > { %s2499_s28 = sshll.u32 %s190_s27, 3 }
  0x14   : > { %s3414_s4 = scalar_lea.vmem %s4011_s2, %s2499_s28 }
  0x16   : > { %v3347_v0 = vmov 0.0  }
  0x17   : > { %200 = vst [vmem:[%s4012_s3] sm:$0x3] %v3347_v0 }
  0x18 PF: > { %v3171_v1 = vld [vmem:[%s4010_s1 + $0x38] sm:$0xff]  ;;  %s3091_s9 = smul.u32 96, %s3329_s12  ;;  %v3170_v2 = vld [vmem:[%s4010_s1 + $0x30] sm:$0xff]  ;;  %v3169_v5 = vld [vmem:[%s4010_s1 + $0x28] sm:$0xff]  ;;  %vm303_vm0 = vsmask.f32 3328 }
  0x19   : > { %3236 = vmatpush.bf16.msra.mxu1 %v3171_v1  ;;  %3237 = vmatpush.bf16.msra.mxu2 %v3171_v1  ;;  %v3168_v8 = vld [vmem:[%s4010_s1 + $0x20] sm:$0xff]  ;;  %v3167_v10 = vld [vmem:[%s4010_s1 + $0x18] sm:$0xff]  ;;  %v3166_v13 = vld [vmem:[%s4010_s1 + $0x10] sm:$0xff]  ;;  %vm304_vm1 = vsmask.f32 7440  ;;  %vm668_vm2 = vcmask 1042432  }
  0x1a   : > { %s3426_s19 = scalar_lea.vmem %s182_s26, %s3091_s9  ;;  %3238 = vmatpush.bf16.msra.mxu3 %v3171_v1  ;;  %1839 = vmatpush.bf16.msra.mxu0 %v3171_v1  ;;  %v3165_v20 = vld [vmem:[%s4010_s1 + $0x8] sm:$0xff]  ;;  %v3164_v22 = vld [vmem:[%s4010_s1] sm:$0xff]  ;;  %v3187_v33 = vld [vmem:[%s4010_s1 + $0xb8] sm:$0xff]  ;;  %vm669_vm3 = vcmask 1046532   ;;  %p2360_p10 = scmp.eq.s32.totalorder %s3333_s13, 1 }
  0x1b   : > { %v209_v3 = vld [vmem:[%s3426_s19 + $0x18] sm:$0xf]  ;;  %v210_v4 = vld [vmem:[%s3426_s19 + $0x1c] sm:$0xf]  ;;  %v213_v6 = vld [vmem:[%s3426_s19 + $0x30] sm:$0xf] }
  0x1c   : > { %229 = vst [vmem:[#allocation2 + $0x90] sm:$0xf] %v209_v3  ;;  %v214_v7 = vld [vmem:[%s3426_s19 + $0x34] sm:$0xf]  ;;  %v217_v9 = vld [vmem:[%s3426_s19 + $0x48] sm:$0xf]  ;;  %vm3553_vm4 = vmor %vm303_vm0, %vm304_vm1 }
  0x1d   : > { %230 = vst [vmem:[#allocation2 + $0xb4] sm:$0xf] %v210_v4  ;;  %3239 = vmatpush.bf16.msra.mxu1 %v3170_v2  ;;  %3240 = vmatpush.bf16.msra.mxu2 %v3170_v2  ;;  %v218_v11 = vld [vmem:[%s3426_s19 + $0x4c] sm:$0xf]  ;;  %v273_v12 = vld [vmem:[%s3426_s19] sm:$0xf]  ;;  %vm3567_vm5 = vmor %vm668_vm2, %vm669_vm3 }
  0x1e   : > { %257 = vst [vmem:[#allocation2 + $0x18] sm:$0xf] %v209_v3  ;;  %3241 = vmatpush.bf16.msra.mxu3 %v3170_v2  ;;  %1840 = vmatpush.bf16.msra.mxu0 %v3170_v2  ;;  %v205_v14 = vld [vmem:[%s3426_s19] sm:$0xf]  ;;  %v206_v15 = vld [vmem:[%s3426_s19 + $0x4] sm:$0xf] }
  0x1f   : > { %258 = vst [vmem:[#allocation2 + $0x3c] sm:$0xf] %v210_v4  ;;  %v307_v16 = vshrl.u32 %v273_v12, 16  ;;  %v310_v17 = vshll.u32 %v273_v12, 16  ;;  %v211_v18 = vld [vmem:[%s3426_s19 + $0x24] sm:$0xf] }
  0x20   : > { %243 = vst [vmem:[#allocation2 + $0x54] sm:$0xf] %v209_v3  ;;  %v274_v19 = vld [vmem:[%s3426_s19 + $0x4] sm:$0xf]  ;;  %v212_v21 = vld [vmem:[%s3426_s19 + $0x28] sm:$0xf] }
  0x21   : > { %244 = vst [vmem:[#allocation2 + $0x78] sm:$0xf] %v210_v4  ;;  %3242 = vmatpush.bf16.msra.mxu1 %v3169_v5  ;;  %3243 = vmatpush.bf16.msra.mxu2 %v3169_v5  ;;  %v309_v24 = vrot.slane %v307_v16, 4  ;;  %v312_v25 = vrot.slane %v310_v17, 5  ;;  %v316_v26 = vshll.u32 %v274_v19, 16  ;;  %v320_v27 = vshrl.u32 %v274_v19, 16 }
  0x22   : > { %233 = vst [vmem:[#allocation2 + $0x120] sm:$0xf] %v213_v6  ;;  %3244 = vmatpush.bf16.msra.mxu3 %v3169_v5  ;;  %1841 = vmatpush.bf16.msra.mxu0 %v3169_v5  ;;  %v215_v29 = vld [vmem:[%s3426_s19 + $0x3c] sm:$0xf]  ;;  %v275_v30 = vld [vmem:[%s3426_s19 + $0x8] sm:$0x1] }
  0x23   : > { %234 = vst [vmem:[#allocation2 + $0x144] sm:$0xf] %v214_v7  ;;  %v2587_v23 = vld [vmem:[#allocation2 + $0x90] sm:$0xf]  ;;  %v216_v34 = vld [vmem:[%s3426_s19 + $0x40] sm:$0xf]  ;;  %v313_v38 = vor.u32 %v312_v25, %v309_v24 }
  0x24   : > { %247 = vst [vmem:[#allocation2 + $0xe4] sm:$0xf] %v213_v6  ;;  %v3114_v28 = vld [vmem:[#allocation2 + $0xb0] sm:$0xf0]  ;;  %v3179_v37 = vld [vmem:[%s4010_s1 + $0x78] sm:$0xff]  ;;  %v3467_v39 = vrot.slane %v316_v26, 5 }
  0x25   : > { %248 = vst [vmem:[#allocation2 + $0x108] sm:$0xf] %v214_v7  ;;  %3245 = vmatpush.bf16.msra.mxu1 %v3168_v8  ;;  %3246 = vmatpush.bf16.msra.mxu2 %v3168_v8  ;;  %v322_v40 = vrot.slane %v320_v27, 4  ;;  %v326_v41 = vshll.u32 %v275_v30, 16  ;;  %v2588_v42 = vor.u32 %v3114_v28, %v2587_v23  ;;  %v3195_v44 = vld [vmem:[%s4010_s1 + $0xf8] sm:$0xff]  ;;  %v3186_v49 = vld [vmem:[%s4010_s1 + $0xb0] sm:$0xff] }
  0x26   : > { %261 = vst [vmem:[#allocation2 + $0xa8] sm:$0xf] %v213_v6  ;;  %3247 = vmatpush.bf16.msra.mxu3 %v3168_v8  ;;  %1842 = vmatpush.bf16.msra.mxu0 %v3168_v8  ;;  %v3203_v46 = vld [vmem:[%s4010_s1 + $0x138] sm:$0xff]  ;;  %v3178_v50 = vld [vmem:[%s4010_s1 + $0x70] sm:$0xff]  ;;  %v3487_v54 = vrot.slane %v313_v38, 4  ;;  %v3185_v63 = vld [vmem:[%s4010_s1 + $0xa8] sm:$0xff] }
  0x27   : > { %262 = vst [vmem:[#allocation2 + $0xcc] sm:$0xf] %v214_v7  ;;  %v3482_v52 = vld [vmem:[%s3426_s19 + $0x54] sm:$0xf]  ;;  %v3485_v53 = vld [vmem:[%s3426_s19 + $0x58] sm:$0xf]  ;;  %v323_v55 = vor.u32 %v322_v40, %v3467_v39 }
  0x28   : > { %237 = vst [vmem:[#allocation2 + $0x1b0] sm:$0xf] %v217_v9  ;;  %v3490_v56 = vrot.slane %v326_v41, 5  ;;  %v3493_v57 = vld [vmem:[%s3426_s19 + $0x4] sm:$0xf]  ;;  %v3194_v58 = vld [vmem:[%s4010_s1 + $0xf0] sm:$0xff] }
  0x29   : > { %238 = vst [vmem:[#allocation2 + $0x1d4] sm:$0xf] %v218_v11  ;;  %3248 = vmatpush.bf16.msra.mxu1 %v3167_v10  ;;  %3249 = vmatpush.bf16.msra.mxu2 %v3167_v10  ;;  %v2659_v31 = vld [vmem:[#allocation2 + $0x120] sm:$0xf]  ;;  %v3202_v59 = vld [vmem:[%s4010_s1 + $0x130] sm:$0xff]  ;;  %v3177_v0 = vld [vmem:[%s4010_s1 + $0x68] sm:$0xff] }
  0x2a   : > { %251 = vst [vmem:[#allocation2 + $0x174] sm:$0xf] %v217_v9  ;;  %3250 = vmatpush.bf16.msra.mxu3 %v3167_v10  ;;  %1843 = vmatpush.bf16.msra.mxu0 %v3167_v10  ;;  %v3132_v32 = vld [vmem:[#allocation2 + $0x140] sm:$0xf0]  ;;  %v3502_v60 = vld [vmem:[%s3426_s19] sm:$0xe] }
  0x2b   : > { %252 = vst [vmem:[#allocation2 + $0x198] sm:$0xf] %v218_v11  ;;  %v2660_v43 = vor.u32 %v3132_v32, %v2659_v31  ;;  %v276_v61 = vld [vmem:[%s3426_s19 + $0xc] sm:$0xf]  ;;  %v277_v62 = vld [vmem:[%s3426_s19 + $0x10] sm:$0xf] }
  0x2c   : > { %265 = vst [vmem:[#allocation2 + $0x138] sm:$0xf] %v217_v9  ;;  %v278_v1 = vld [vmem:[%s3426_s19 + $0x14] sm:$0x1]  ;;  %v331_v2 = vshrl.u32 %v276_v61, 16  ;;  %v673_v3 = vrot.slane %v3493_v57, 5 }
  0x2d   : > { %266 = vst [vmem:[#allocation2 + $0x15c] sm:$0xf] %v218_v11  ;;  %3251 = vmatpush.bf16.msra.mxu1 %v3166_v13  ;;  %3252 = vmatpush.bf16.msra.mxu2 %v3166_v13  ;;  %v334_v4 = vshll.u32 %v276_v61, 16  ;;  %v340_v5 = vshll.u32 %v277_v62, 16  ;;  %v344_v6 = vshrl.u32 %v277_v62, 16  ;;  %v3515_v7 = vrot.slane %v323_v55, 4 }
  0x2e   : > { %225 = vst [vmem:[#allocation2] sm:$0xf] %v205_v14  ;;  %3253 = vmatpush.bf16.msra.mxu3 %v3166_v13  ;;  %1844 = vmatpush.bf16.msra.mxu0 %v3166_v13  ;;  %v3518_v8 = vld [vmem:[%s3426_s19 + $0x8] sm:$0x1]  ;;  %v333_v9 = vrot.slane %v331_v2, 4  ;;  %v3184_v16 = vld [vmem:[%s4010_s1 + $0xa0] sm:$0xff] }
  0x2f   : > { %226 = vst [vmem:[#allocation2 + $0x24] sm:$0xf] %v206_v15  ;;  %v2731_v35 = vld [vmem:[#allocation2 + $0x1b0] sm:$0xf]  ;;  %v3193_v10 = vld [vmem:[%s4010_s1 + $0xe8] sm:$0xff]  ;;  %v336_v13 = vrot.slane %v334_v4, 5 }
  0x30   : > { %231 = vst [vmem:[#allocation2 + $0xd8] sm:$0xf] %v211_v18  ;;  %v3150_v36 = vld [vmem:[#allocation2 + $0x1d0] sm:$0xf0]  ;;  %v3201_v11 = vld [vmem:[%s4010_s1 + $0x128] sm:$0xff]  ;;  %v3528_v14 = vrot.slane %v340_v5, 5 }
  0x31   : > { %232 = vst [vmem:[#allocation2 + $0xfc] sm:$0xf] %v212_v21  ;;  %3254 = vmatpush.bf16.msra.mxu1 %v3165_v20  ;;  %3255 = vmatpush.bf16.msra.mxu2 %v3165_v20  ;;  %v2732_v47 = vor.u32 %v3150_v36, %v2731_v35  ;;  %v207_v12 = vld [vmem:[%s3426_s19 + $0xc] sm:$0xf]  ;;  %v350_v15 = vshll.u32 %v278_v1, 16  ;;  %v3176_v17 = vld [vmem:[%s4010_s1 + $0x60] sm:$0xff]  ;;  %v337_v26 = vor.u32 %v336_v13, %v333_v9 }
  0x32   : > { %245 = vst [vmem:[#allocation2 + $0x9c] sm:$0xf] %v211_v18  ;;  %3256 = vmatpush.bf16.msra.mxu3 %v3165_v20  ;;  %1845 = vmatpush.bf16.msra.mxu0 %v3165_v20  ;;  %v2503_v19 = vrot.slane %v3502_v60, 9  ;;  %v346_v20 = vrot.slane %v344_v6, 4  ;;  %v675_v24 = vrot.slane %v673_v3, 4  ;;  %v676_v25 = vrot.slane %v3518_v8, 5 }
  0x33   : > { %246 = vst [vmem:[#allocation2 + $0xc0] sm:$0xf] %v212_v21  ;;  %v3192_v31 = vld [vmem:[%s4010_s1 + $0xe0] sm:$0xff]  ;;  %v617_v35 = vld [vmem:[%s3426_s19 + $0xc] sm:$0xe]  ;;  %v3175_v38 = vld [vmem:[%s4010_s1 + $0x58] sm:$0xff] }
  0x34   : > { %259 = vst [vmem:[#allocation2 + $0x60] sm:$0xf] %v211_v18  ;;  %v208_v18 = vld [vmem:[%s3426_s19 + $0x10] sm:$0xf]  ;;  %v347_v30 = vor.u32 %v346_v20, %v3528_v14  ;;  %v3200_v32 = vld [vmem:[%s4010_s1 + $0x120] sm:$0xff]  ;;  %v338_v40 = vrot.slane %v337_v26, 4  ;;  %v677_v57 = vsel %vm3567_vm5, %v675_v24, %v676_v25 }
  0x35   : > { %v2515_v45 = vld [vmem:[#allocation2] sm:$0xf]  ;;  %260 = vst [vmem:[#allocation2 + $0x84] sm:$0xf] %v212_v21  ;;  %3257 = vmatpush.bf16.msra.mxu1 %v3164_v22  ;;  %3258 = vmatpush.bf16.msra.mxu2 %v3164_v22  ;;  %v3540_v21 = vld [vmem:[%s3426_s19 + $0x10] sm:$0xf] }
  0x36   : > { %v3096_v48 = vld [vmem:[#allocation2 + $0x20] sm:$0xf0]  ;;  %235 = vst [vmem:[#allocation2 + $0x168] sm:$0xf] %v215_v29  ;;  %3259 = vmatpush.bf16.msra.mxu3 %v3164_v22  ;;  %1846 = vmatpush.bf16.msra.mxu0 %v3164_v22  ;;  %v680_v36 = vrot.slane %v3540_v21, 5  ;;  %v348_v41 = vrot.slane %v347_v30, 4  ;;  %v343_v62 = vsel %vm3553_vm4, %v338_v40, %v3528_v14 }
  0x37   : > { %v2516_v51 = vor.u32 %v3096_v48, %v2515_v45  ;;  %236 = vst [vmem:[#allocation2 + $0x18c] sm:$0xf] %v216_v34  ;;  %v3542_v22 = vld [vmem:[#allocation2 + $0xd8] sm:$0xf]  ;;  %v3585_v45 = vld [vmem:[%s3426_s19 + $0x14] sm:$0x1] }
  0x38   : > { %249 = vst [vmem:[#allocation2 + $0x12c] sm:$0xf] %v215_v29  ;;  %1857 = vmatmul.bf16.vlgmr.msra.gmra.mxu1 %v2588_v42  ;;  %1867 = vmatmul.bf16.vlgmr.msra.gmra.mxu2 %v2660_v43  ;;  %v3544_v23 = vld [vmem:[#allocation2 + $0xf8] sm:$0xf0]  ;;  %v279_v42 = vld [vmem:[%s3426_s19 + $0x18] sm:$0xf] }
  0x39   : > { %1937 = vmatpush.bf16.msrb.mxu2 %v3187_v33  ;;  %1888 = vmatpush.bf16.msrb.mxu1 %v3179_v37  ;;  %250 = vst [vmem:[#allocation2 + $0x150] sm:$0xf] %v216_v34  ;;  %v3183_v37 = vld [vmem:[%s4010_s1 + $0x98] sm:$0xff]  ;;  %v3182_v61 = vld [vmem:[%s4010_s1 + $0x90] sm:$0xff]  ;;  %v682_v4 = vrot.slane %v680_v36, 4  ;;  %v683_v5 = vrot.slane %v3585_v45, 5 }
  0x3a   : > { %1877 = vmatmul.bf16.vlgmr.msra.gmra.mxu3 %v2732_v47  ;;  %1847 = vmatmul.bf16.vlgmr.msra.gmra.mxu0 %v2516_v51  ;;  %263 = vst [vmem:[#allocation2 + $0xf0] sm:$0xf] %v215_v29  ;;  %v2624_v47 = vor.u32 %v3544_v23, %v3542_v22  ;;  %v3174_v2 = vld [vmem:[%s4010_s1 + $0x50] sm:$0xff]  ;;  %v3189_v21 = vld [vmem:[%s4010_s1 + $0xc8] sm:$0xff]  ;;  %v3180_v24 = vld [vmem:[%s4010_s1 + $0x80] sm:$0xff]  ;;  %p2361_p11 = scmp.eq.s32.totalorder %s3329_s12, 1 }
  0x3b   : > { %1986 = vmatpush.bf16.msrb.mxu3 %v3195_v44  ;;  %2035 = vmatpush.bf16.msrb.mxu0 %v3203_v46  ;;  %264 = vst [vmem:[#allocation2 + $0x114] sm:$0xf] %v216_v34  ;;  %v352_v34 = vrot.slane %v350_v15, 5  ;;  %v319_v44 = vsel %vm3553_vm4, %v3487_v54, %v3467_v39  ;;  %v280_v46 = vld [vmem:[%s3426_s19 + $0x1c] sm:$0xf]  ;;  %v674_v39 = vsel %vm3567_vm5, %v2503_v19, %v673_v3  ;;  %v3190_v13 = vld [vmem:[%s4010_s1 + $0xd0] sm:$0xff] }
  0x3c   : > { %239 = vst [vmem:[#allocation2 + $0x1f8] sm:$0xf] %v3482_v52  ;;  %v364_v54 = vshll.u32 %v280_v46, 16  ;;  %v368_v60 = vshrl.u32 %v280_v46, 16  ;;  %v3198_v14 = vld [vmem:[%s4010_s1 + $0x110] sm:$0xff]  ;;  %v684_v19 = vsel %vm3567_vm5, %v682_v4, %v683_v5  ;;  %v3197_v22 = vld [vmem:[%s4010_s1 + $0x108] sm:$0xff]  ;;  %p3937_p12 = pnand %p2361_p11, %p2360_p10 }
  0x3d   : > { %1938 = vmatpush.bf16.msrb.mxu2 %v3186_v49  ;;  %1889 = vmatpush.bf16.msrb.mxu1 %v3178_v50  ;;  %240 = vst [vmem:[#allocation2 + $0x21c] sm:$0xf] %v3485_v53  ;;  %v2695_v27 = vld [vmem:[#allocation2 + $0x168] sm:$0xf]  ;;  %v329_v49 = vsel %vm3553_vm4, %v3515_v7, %v3490_v56  ;;  %v281_v50 = vld [vmem:[%s3426_s19 + $0x20] sm:$0x1]  ;;  %v353_v3 = vsel %vm3553_vm4, %v348_v41, %v352_v34 }
  0x3e   : > { %253 = vst [vmem:[#allocation2 + $0x1bc] sm:$0xf] %v3482_v52  ;;  %v3141_v28 = vld [vmem:[#allocation2 + $0x188] sm:$0xf0]  ;;  %v3199_v56 = vld [vmem:[%s4010_s1 + $0x118] sm:$0xff]  ;;  %v366_v1 = vrot.slane %v364_v54, 5 }
  0x3f   : > { %1987 = vmatpush.bf16.msrb.mxu3 %v3194_v58  ;;  %2036 = vmatpush.bf16.msrb.mxu0 %v3202_v59  ;;  %254 = vst [vmem:[#allocation2 + $0x1e0] sm:$0xf] %v3485_v53  ;;  %v2696_v51 = vor.u32 %v3141_v28, %v2695_v27  ;;  %v3191_v58 = vld [vmem:[%s4010_s1 + $0xd8] sm:$0xff]  ;;  %v2504_v59 = vrot.slane %v617_v35, 9  ;;  %v374_v6 = vshll.u32 %v281_v50, 16  ;;  %v370_v9 = vrot.slane %v368_v60, 4 }
  0x40   : > { %267 = vst [vmem:[#allocation2 + $0x180] sm:$0xf] %v3482_v52  ;;  %v355_v52 = vshrl.u32 %v279_v42, 16  ;;  %v3172_v25 = vld [vmem:[%s4010_s1 + $0x40] sm:$0xff]  ;;  %v621_v26 = vld [vmem:[%s3426_s19 + $0x1c] sm:$0xf] }
  0x41   : > { %1939 = vmatpush.bf16.msrb.mxu2 %v3185_v63  ;;  %1890 = vmatpush.bf16.msrb.mxu1 %v3177_v0  ;;  %268 = vst [vmem:[#allocation2 + $0x1a4] sm:$0xf] %v3485_v53  ;;  %v358_v53 = vshll.u32 %v279_v42, 16  ;;  %v376_v20 = vrot.slane %v374_v6, 5  ;;  %v3219_v27 = vld [vmem:[%s4010_s1 + $0x1b8] sm:$0xff]  ;;  %v687_v41 = vrot.slane %v621_v26, 5 }
  0x42   : > { %227 = vst [vmem:[#allocation2 + $0x48] sm:$0xf] %v207_v12  ;;  %v357_v63 = vrot.slane %v355_v52, 4  ;;  %v3211_v28 = vld [vmem:[%s4010_s1 + $0x178] sm:$0xff]  ;;  %v3188_v42 = vld [vmem:[%s4010_s1 + $0xc0] sm:$0xff]  ;;  %v3218_v52 = vld [vmem:[%s4010_s1 + $0x1b0] sm:$0xff] }
  0x43   : > { %1988 = vmatpush.bf16.msrb.mxu3 %v3193_v10  ;;  %2037 = vmatpush.bf16.msrb.mxu0 %v3201_v11  ;;  %v2767_v43 = vld [vmem:[#allocation2 + $0x1f8] sm:$0xf]  ;;  %228 = vst [vmem:[#allocation2 + $0x6c] sm:$0xf] %v208_v18  ;;  %v360_v0 = vrot.slane %v358_v53, 5  ;;  %v681_v11 = vsel %vm3567_vm5, %v2504_v59, %v680_v36  ;;  %v3196_v45 = vld [vmem:[%s4010_s1 + $0x100] sm:$0xff] }
  0x44   : > { %v3159_v48 = vld [vmem:[#allocation2 + $0x218] sm:$0xf0]  ;;  %241 = vst [vmem:[#allocation2 + $0xc] sm:$0xf] %v207_v12  ;;  %v622_v36 = vld [vmem:[%s3426_s19 + $0x20] sm:$0x1] }
  0x45   : > { %1940 = vmatpush.bf16.msrb.mxu2 %v3184_v16  ;;  %1891 = vmatpush.bf16.msrb.mxu1 %v3176_v17  ;;  %242 = vst [vmem:[#allocation2 + $0x30] sm:$0xf] %v208_v18  ;;  %v2768_v55 = vor.u32 %v3159_v48, %v2767_v43  ;;  %v361_v8 = vor.u32 %v360_v0, %v357_v63  ;;  %v3181_v17 = vld [vmem:[%s4010_s1 + $0x88] sm:$0xff]  ;;  %v3227_v48 = vld [vmem:[%s4010_s1 + $0x1f8] sm:$0xff]  ;;  %v3210_v59 = vld [vmem:[%s4010_s1 + $0x170] sm:$0xff] }
  0x46   : > { %514 = vst [vmem:[#allocation2 + $0x4] sm:$0xf] %v319_v44  ;;  %v371_v16 = vor.u32 %v370_v9, %v366_v1  ;;  %v3173_v18 = vld [vmem:[%s4010_s1 + $0x48] sm:$0xff]  ;;  %v690_v44 = vrot.slane %v622_v36, 5  ;;  %v3226_v63 = vld [vmem:[%s4010_s1 + $0x1f0] sm:$0xff] }
  0x47   : > { %1989 = vmatpush.bf16.msrb.mxu3 %v3192_v31  ;;  %2038 = vmatpush.bf16.msrb.mxu0 %v3200_v32  ;;  %515 = vst [vmem:[#allocation2 + $0x28] sm:$0xf] %v329_v49  ;;  %v362_v15 = vrot.slane %v361_v8, 4  ;;  %v620_v31 = vld [vmem:[%s3426_s19 + $0x18] sm:$0xe]  ;;  %v3234_v0 = vld [vmem:[%s4010_s1 + $0x230] sm:$0xff] }
  0x48   : > { %743 = vst [vmem:[#allocation2 + $0x8] sm:$0xf] %v674_v39  ;;  %1862 = vmatmul.bf16.gmra.mxu1 %v2624_v47  ;;  %1872 = vmatmul.bf16.gmra.mxu2 %v2696_v51  ;;  %v372_v23 = vrot.slane %v371_v16, 4  ;;  %v2505_v40 = vrot.slane %v620_v31, 9  ;;  %v689_v47 = vrot.slane %v687_v41, 4  ;;  %v3235_v49 = vld [vmem:[%s4010_s1 + $0x238] sm:$0xff] }
  0x49   : > { %1941 = vmatpush.bf16.msrb.mxu2 %v3183_v37  ;;  %1892 = vmatpush.bf16.msrb.mxu1 %v3175_v38  ;;  %v2551_v7 = vld [vmem:[#allocation2 + $0x48] sm:$0xf]  ;;  %744 = vst [vmem:[#allocation2 + $0x2c] sm:$0xf] %v677_v57  ;;  %v367_v30 = vsel %vm3553_vm4, %v362_v15, %v366_v1  ;;  %v282_v39 = vld [vmem:[%s3426_s19 + $0x24] sm:$0xf] }
  0x4a   : > { %1882 = vmatmul.bf16.gmra.mxu3 %v2768_v55  ;;  %v3105_v10 = vld [vmem:[#allocation2 + $0x68] sm:$0xf0]  ;;  %556 = vst [vmem:[#allocation2 + $0x10] sm:$0xf] %v343_v62  ;;  %v377_v35 = vsel %vm3553_vm4, %v372_v23, %v376_v20  ;;  %v688_v53 = vsel %vm3567_vm5, %v2505_v40, %v687_v41  ;;  %v283_v54 = vld [vmem:[%s3426_s19 + $0x28] sm:$0xf]  ;;  %v691_v57 = vsel %vm3567_vm5, %v689_v47, %v690_v44 }
  0x4b   : > { %1990 = vmatpush.bf16.msrb.mxu3 %v3191_v58  ;;  %v2552_v12 = vor.u32 %v3105_v10, %v2551_v7  ;;  %2039 = vmatpush.bf16.msrb.mxu0 %v3199_v56  ;;  %557 = vst [vmem:[#allocation2 + $0x34] sm:$0xf] %v353_v3  ;;  %v3093_v38 = vld [vmem:[#allocation2 + $0xc] sm:$0xf]  ;;  %v379_v60 = vshrl.u32 %v282_v39, 16  ;;  %v392_v8 = vshrl.u32 %v283_v54, 16 }
  0x4c   : > { %516 = vst [vmem:[#allocation2 + $0x4c] sm:$0xf] %v343_v62  ;;  %v2525_v46 = vld [vmem:[#allocation2 + $0x2c] sm:$0xf0]  ;;  %v388_v62 = vshll.u32 %v283_v54, 16  ;;  %v3217_v5 = vld [vmem:[%s4010_s1 + $0x1a8] sm:$0xff] }
  0x4d   : > { %1942 = vmatpush.bf16.msrb.mxu2 %v3182_v61  ;;  %1893 = vmatpush.bf16.msrb.mxu1 %v3174_v2  ;;  %517 = vst [vmem:[#allocation2 + $0x70] sm:$0xf] %v353_v3  ;;  %v3092_v32 = vld [vmem:[#allocation2 + $0x4] sm:$0xf]  ;;  %v2528_v55 = vor.u32 %v3093_v38, %v2525_v46  ;;  %v382_v61 = vshll.u32 %v282_v39, 16  ;;  %v381_v3 = vrot.slane %v379_v60, 4 }
  0x4e   : > { %1852 = vmatmul.bf16.gmra.mxu0 %v2552_v12  ;;  %745 = vst [vmem:[#allocation2 + $0x50] sm:$0xf] %v681_v11  ;;  %v2517_v34 = vld [vmem:[#allocation2 + $0x24] sm:$0xf0]  ;;  %v284_v1 = vld [vmem:[%s3426_s19 + $0x2c] sm:$0x1] }
  0x4f   : > { %1991 = vmatpush.bf16.msrb.mxu3 %v3190_v13  ;;  %2040 = vmatpush.bf16.msrb.mxu0 %v3198_v14  ;;  %746 = vst [vmem:[#allocation2 + $0x74] sm:$0xf] %v684_v19  ;;  %v2523_v37 = vld [vmem:[#allocation2 + $0x8] sm:$0xf]  ;;  %v2520_v50 = vor.u32 %v3092_v32, %v2517_v34  ;;  %v384_v4 = vrot.slane %v382_v61, 5  ;;  %v390_v6 = vrot.slane %v388_v62, 5 }
  0x50   : > { %771 = vst [vmem:[#allocation2 + $0x14] sm:$0xf] %v681_v11  ;;  %v3097_v43 = vld [vmem:[#allocation2 + $0x28] sm:$0xf0]  ;;  %v398_v9 = vshll.u32 %v284_v1, 16  ;;  %v394_v13 = vrot.slane %v392_v8, 4 }
  0x51   : > { %1943 = vmatpush.bf16.msrb.mxu2 %v3181_v17  ;;  %1894 = vmatpush.bf16.msrb.mxu1 %v3173_v18  ;;  %772 = vst [vmem:[#allocation2 + $0x38] sm:$0xf] %v684_v19  ;;  %v2524_v51 = vor.u32 %v3097_v43, %v2523_v37  ;;  %v2531_v58 = vld [vmem:[#allocation2 + $0x10] sm:$0xf]  ;;  %v385_v7 = vor.u32 %v384_v4, %v381_v3  ;;  %v624_v10 = vld [vmem:[%s3426_s19 + $0x28] sm:$0xf] }
  0x52   : > { %558 = vst [vmem:[#allocation2 + $0x58] sm:$0xf] %v367_v30  ;;  %v3098_v56 = vld [vmem:[#allocation2 + $0x30] sm:$0xf0]  ;;  %v285_v11 = vld [vmem:[%s3426_s19 + $0x30] sm:$0xf]  ;;  %v395_v18 = vor.u32 %v394_v13, %v390_v6 }
  0x53   : > { %1992 = vmatpush.bf16.msrb.mxu3 %v3189_v21  ;;  %2041 = vmatpush.bf16.msrb.mxu0 %v3197_v22  ;;  %559 = vst [vmem:[#allocation2 + $0x7c] sm:$0xf] %v377_v35  ;;  %v2532_v2 = vor.u32 %v3098_v56, %v2531_v58  ;;  %v386_v12 = vrot.slane %v385_v7, 4  ;;  %v694_v14 = vrot.slane %v624_v10, 5  ;;  %v3225_v15 = vld [vmem:[%s4010_s1 + $0x1e8] sm:$0xff]  ;;  %v400_v19 = vrot.slane %v398_v9, 5 }
  0x54   : > { %598 = vst [vmem:[#allocation2 + $0x1c] sm:$0xf] %v367_v30  ;;  %v3209_v16 = vld [vmem:[%s4010_s1 + $0x168] sm:$0xff]  ;;  %v623_v21 = vld [vmem:[%s3426_s19 + $0x24] sm:$0xe]  ;;  %v403_v22 = vshrl.u32 %v285_v11, 16 }
  0x55   : > { %1944 = vmatpush.bf16.msrb.mxu2 %v3180_v24  ;;  %1895 = vmatpush.bf16.msrb.mxu1 %v3172_v25  ;;  %599 = vst [vmem:[#allocation2 + $0x40] sm:$0xf] %v377_v35  ;;  %v391_v17 = vsel %vm3553_vm4, %v386_v12, %v390_v6  ;;  %v3233_v20 = vld [vmem:[%s4010_s1 + $0x228] sm:$0xff]  ;;  %v2553_v24 = vld [vmem:[#allocation2 + $0x6c] sm:$0xf0]  ;;  %v696_v31 = vrot.slane %v694_v14, 4 }
  0x56   : > { %518 = vst [vmem:[#allocation2 + $0x94] sm:$0xf] %v367_v30  ;;  %v3101_v23 = vld [vmem:[#allocation2 + $0x4c] sm:$0xf]  ;;  %v2559_v25 = vld [vmem:[#allocation2 + $0x50] sm:$0xf] }
  0x57   : > { %1993 = vmatpush.bf16.msrb.mxu3 %v3188_v42  ;;  %2042 = vmatpush.bf16.msrb.mxu0 %v3196_v45  ;;  %519 = vst [vmem:[#allocation2 + $0xb8] sm:$0xf] %v377_v35  ;;  %v3106_v26 = vld [vmem:[#allocation2 + $0x70] sm:$0xf0]  ;;  %v2506_v30 = vrot.slane %v623_v21, 9  ;;  %v405_v41 = vrot.slane %v403_v22, 4  ;;  %v2556_v46 = vor.u32 %v3101_v23, %v2553_v24 }
  0x58   : > { %747 = vst [vmem:[#allocation2 + $0x98] sm:$0xf] %v688_v53  ;;  %1896 = vmatmul.bf16.vlgmr.msrb.gmra.mxu1 %v2520_v50  ;;  %1945 = vmatmul.bf16.vlgmr.msrb.gmra.mxu2 %v2524_v51  ;;  %v286_v34 = vld [vmem:[%s3426_s19 + $0x34] sm:$0xf]  ;;  %v287_v35 = vld [vmem:[%s3426_s19 + $0x38] sm:$0x1]  ;;  %v2560_v47 = vor.u32 %v3106_v26, %v2559_v25 }
  0x59   : > { %2133 = vmatpush.bf16.msra.mxu2 %v3219_v27  ;;  %2084 = vmatpush.bf16.msra.mxu1 %v3211_v28  ;;  %748 = vst [vmem:[#allocation2 + $0xbc] sm:$0xf] %v691_v57  ;;  %v625_v27 = vld [vmem:[%s3426_s19 + $0x2c] sm:$0x1]  ;;  %v396_v28 = vrot.slane %v395_v18, 4  ;;  %v695_v40 = vsel %vm3567_vm5, %v2506_v30, %v694_v14  ;;  %v406_v42 = vshll.u32 %v285_v11, 16 }
  0x5a   : > { %1994 = vmatmul.bf16.vlgmr.msrb.gmra.mxu3 %v2528_v55  ;;  %799 = vst [vmem:[#allocation2 + $0x20] sm:$0xf] %v688_v53  ;;  %v697_v32 = vrot.slane %v625_v27, 5  ;;  %v3102_v36 = vld [vmem:[#allocation2 + $0x54] sm:$0xf]  ;;  %v412_v43 = vshll.u32 %v286_v34, 16 }
  0x5b   : > { %2182 = vmatpush.bf16.msra.mxu3 %v3227_v48  ;;  %2231 = vmatpush.bf16.msra.mxu0 %v3235_v49  ;;  %800 = vst [vmem:[#allocation2 + $0x44] sm:$0xf] %v691_v57  ;;  %v2561_v37 = vld [vmem:[#allocation2 + $0x74] sm:$0xf0]  ;;  %v401_v38 = vsel %vm3553_vm4, %v396_v28, %v400_v19  ;;  %v416_v44 = vshrl.u32 %v286_v34, 16  ;;  %v422_v45 = vshll.u32 %v287_v35, 16 }
  0x5c   : > { %773 = vst [vmem:[#allocation2 + $0x5c] sm:$0xf] %v688_v53  ;;  %v2567_v48 = vld [vmem:[#allocation2 + $0x58] sm:$0xf]  ;;  %v3107_v49 = vld [vmem:[#allocation2 + $0x78] sm:$0xf0]  ;;  %v698_v39 = vsel %vm3567_vm5, %v696_v31, %v697_v32  ;;  %v2564_v50 = vor.u32 %v3102_v36, %v2561_v37 }
  0x5d   : > { %2134 = vmatpush.bf16.msra.mxu2 %v3218_v52  ;;  %2085 = vmatpush.bf16.msra.mxu1 %v3210_v59  ;;  %774 = vst [vmem:[#allocation2 + $0x80] sm:$0xf] %v691_v57  ;;  %v408_v51 = vrot.slane %v406_v42, 5  ;;  %v414_v52 = vrot.slane %v412_v43, 5  ;;  %v418_v53 = vrot.slane %v416_v44, 4  ;;  %v424_v58 = vrot.slane %v422_v45, 5 }
  0x5e   : > { %2043 = vmatmul.bf16.vlgmr.msrb.gmra.mxu0 %v2532_v2  ;;  %560 = vst [vmem:[#allocation2 + $0xa0] sm:$0xf] %v391_v17  ;;  %v2568_v56 = vor.u32 %v3107_v49, %v2567_v48  ;;  %v288_v57 = vld [vmem:[%s3426_s19 + $0x3c] sm:$0xf]  ;;  %v3216_v59 = vld [vmem:[%s4010_s1 + $0x1a0] sm:$0xff] }
  0x5f   : > { %2183 = vmatpush.bf16.msra.mxu3 %v3226_v63  ;;  %2232 = vmatpush.bf16.msra.mxu0 %v3234_v0  ;;  %520 = vst [vmem:[#allocation2 + $0xdc] sm:$0xf] %v391_v17  ;;  %v409_v54 = vor.u32 %v408_v51, %v405_v41  ;;  %v419_v55 = vor.u32 %v418_v53, %v414_v52  ;;  %v627_v62 = vld [vmem:[%s3426_s19 + $0x34] sm:$0xf]  ;;  %v427_v2 = vshrl.u32 %v288_v57, 16  ;;  %v3224_v3 = vld [vmem:[%s4010_s1 + $0x1e0] sm:$0xff] }
  0x60   : > { %600 = vst [vmem:[#allocation2 + $0x64] sm:$0xf] %v391_v17  ;;  %v701_v1 = vrot.slane %v627_v62, 5  ;;  %v3208_v4 = vld [vmem:[%s4010_s1 + $0x160] sm:$0xff]  ;;  %v626_v6 = vld [vmem:[%s3426_s19 + $0x30] sm:$0xe] }
  0x61   : > { %2135 = vmatpush.bf16.msra.mxu2 %v3217_v5  ;;  %2086 = vmatpush.bf16.msra.mxu1 %v3209_v16  ;;  %561 = vst [vmem:[#allocation2 + $0xc4] sm:$0xf] %v401_v38  ;;  %v410_v60 = vrot.slane %v409_v54, 4  ;;  %v420_v61 = vrot.slane %v419_v55, 4  ;;  %v3232_v5 = vld [vmem:[%s4010_s1 + $0x220] sm:$0xff]  ;;  %v2507_v11 = vrot.slane %v626_v6, 9 }
  0x62   : > { %521 = vst [vmem:[#allocation2 + $0x100] sm:$0xf] %v401_v38  ;;  %v628_v7 = vld [vmem:[%s3426_s19 + $0x38] sm:$0x1]  ;;  %v3110_v8 = vld [vmem:[#allocation2 + $0x94] sm:$0xf] }
  0x63   : > { %2184 = vmatpush.bf16.msra.mxu3 %v3225_v15  ;;  %2233 = vmatpush.bf16.msra.mxu0 %v3233_v20  ;;  %601 = vst [vmem:[#allocation2 + $0x88] sm:$0xf] %v401_v38  ;;  %v415_v63 = vsel %vm3553_vm4, %v410_v60, %v414_v52  ;;  %v425_v0 = vsel %vm3553_vm4, %v420_v61, %v424_v58  ;;  %v2589_v9 = vld [vmem:[#allocation2 + $0xb4] sm:$0xf0]  ;;  %v703_v12 = vrot.slane %v701_v1, 4  ;;  %v704_v13 = vrot.slane %v628_v7, 5 }
  0x64   : > { %749 = vst [vmem:[#allocation2 + $0xe0] sm:$0xf] %v695_v40  ;;  %v2595_v10 = vld [vmem:[#allocation2 + $0x98] sm:$0xf]  ;;  %v429_v14 = vrot.slane %v427_v2, 4  ;;  %v702_v19 = vsel %vm3567_vm5, %v2507_v11, %v701_v1  ;;  %v430_v21 = vshll.u32 %v288_v57, 16  ;;  %v2592_v28 = vor.u32 %v3110_v8, %v2589_v9 }
  0x65   : > { %750 = vst [vmem:[#allocation2 + $0x104] sm:$0xf] %v698_v39  ;;  %2136 = vmatpush.bf16.msra.mxu2 %v3216_v59  ;;  %2087 = vmatpush.bf16.msra.mxu1 %v3208_v4  ;;  %v3111_v15 = vld [vmem:[#allocation2 + $0x9c] sm:$0xf]  ;;  %v289_v16 = vld [vmem:[%s3426_s19 + $0x40] sm:$0xf]  ;;  %v705_v20 = vsel %vm3567_vm5, %v703_v12, %v704_v13 }
  0x66   : > { %775 = vst [vmem:[#allocation2 + $0xa4] sm:$0xf] %v695_v40  ;;  %v290_v17 = vld [vmem:[%s3426_s19 + $0x44] sm:$0x1]  ;;  %v3115_v18 = vld [vmem:[#allocation2 + $0xb8] sm:$0xf0] }
  0x67   : > { %776 = vst [vmem:[#allocation2 + $0xc8] sm:$0xf] %v698_v39  ;;  %2185 = vmatpush.bf16.msra.mxu3 %v3224_v3  ;;  %2234 = vmatpush.bf16.msra.mxu0 %v3232_v5  ;;  %v436_v22 = vshll.u32 %v289_v16, 16  ;;  %v2597_v23 = vld [vmem:[#allocation2 + $0xbc] sm:$0xf0]  ;;  %v440_v24 = vshrl.u32 %v289_v16, 16  ;;  %v2596_v30 = vor.u32 %v3115_v18, %v2595_v10 }
  0x68   : > { %1901 = vmatmul.bf16.gmra.mxu1 %v2556_v46  ;;  %1950 = vmatmul.bf16.gmra.mxu2 %v2560_v47  ;;  %801 = vst [vmem:[#allocation2 + $0x68] sm:$0xf] %v695_v40  ;;  %v446_v25 = vshll.u32 %v290_v17, 16  ;;  %v432_v26 = vrot.slane %v430_v21, 5  ;;  %v2600_v32 = vor.u32 %v3111_v15, %v2597_v23  ;;  %v2603_v34 = vld [vmem:[#allocation2 + $0xa0] sm:$0xf] }
  0x69   : > { %802 = vst [vmem:[#allocation2 + $0x8c] sm:$0xf] %v698_v39  ;;  %v438_v27 = vrot.slane %v436_v22, 5  ;;  %v442_v31 = vrot.slane %v440_v24, 4  ;;  %v3116_v35 = vld [vmem:[#allocation2 + $0xc0] sm:$0xf0] }
  0x6a   : > { %1999 = vmatmul.bf16.gmra.mxu3 %v2564_v50  ;;  %562 = vst [vmem:[#allocation2 + $0xe8] sm:$0xf] %v415_v63  ;;  %v433_v36 = vor.u32 %v432_v26, %v429_v14  ;;  %v448_v38 = vrot.slane %v446_v25, 5  ;;  %v2604_v40 = vor.u32 %v3116_v35, %v2603_v34  ;;  %v291_v43 = vld [vmem:[%s3426_s19 + $0x48] sm:$0xf]  ;;  %v3215_v45 = vld [vmem:[%s4010_s1 + $0x198] sm:$0xff] }
  0x6b   : > { %563 = vst [vmem:[#allocation2 + $0x10c] sm:$0xf] %v425_v0  ;;  %v443_v37 = vor.u32 %v442_v31, %v438_v27  ;;  %v292_v44 = vld [vmem:[%s3426_s19 + $0x4c] sm:$0xf]  ;;  %v451_v46 = vshrl.u32 %v291_v43, 16  ;;  %v454_v47 = vshll.u32 %v291_v43, 16  ;;  %2137 = vmatpush.bf16.msra.mxu2 %v3215_v45 }
  0x6c   : > { %522 = vst [vmem:[#allocation2 + $0x124] sm:$0xf] %v415_v63  ;;  %v434_v41 = vrot.slane %v433_v36, 4  ;;  %v460_v48 = vshll.u32 %v292_v44, 16  ;;  %v630_v50 = vld [vmem:[%s3426_s19 + $0x40] sm:$0xf] }
  0x6d   : > { %523 = vst [vmem:[#allocation2 + $0x148] sm:$0xf] %v425_v0  ;;  %v444_v42 = vrot.slane %v443_v37, 4  ;;  %v464_v51 = vshrl.u32 %v292_v44, 16  ;;  %v708_v52 = vrot.slane %v630_v50, 5  ;;  %v453_v53 = vrot.slane %v451_v46, 4 }
  0x6e   : > { %2048 = vmatmul.bf16.gmra.mxu0 %v2568_v56  ;;  %602 = vst [vmem:[#allocation2 + $0xac] sm:$0xf] %v415_v63  ;;  %v439_v49 = vsel %vm3553_vm4, %v434_v41, %v438_v27  ;;  %v456_v54 = vrot.slane %v454_v47, 5  ;;  %v3223_v55 = vld [vmem:[%s4010_s1 + $0x1d8] sm:$0xff]  ;;  %v462_v57 = vrot.slane %v460_v48, 5  ;;  %v3214_v25 = vld [vmem:[%s4010_s1 + $0x190] sm:$0xff] }
  0x6f   : > { %603 = vst [vmem:[#allocation2 + $0xd0] sm:$0xf] %v425_v0  ;;  %v449_v39 = vsel %vm3553_vm4, %v444_v42, %v448_v38  ;;  %v3207_v58 = vld [vmem:[%s4010_s1 + $0x158] sm:$0xff]  ;;  %v631_v60 = vld [vmem:[%s3426_s19 + $0x44] sm:$0x1]  ;;  %2186 = vmatpush.bf16.msra.mxu3 %v3223_v55  ;;  %v710_v63 = vrot.slane %v708_v52, 4  ;;  %2138 = vmatpush.bf16.msra.mxu2 %v3214_v25 }
  0x70   : > { %751 = vst [vmem:[#allocation2 + $0x128] sm:$0xf] %v702_v19  ;;  %v3231_v56 = vld [vmem:[%s4010_s1 + $0x218] sm:$0xff]  ;;  %v457_v61 = vor.u32 %v456_v54, %v453_v53  ;;  %2088 = vmatpush.bf16.msra.mxu1 %v3207_v58  ;;  %v711_v0 = vrot.slane %v631_v60, 5  ;;  %v466_v1 = vrot.slane %v464_v51, 4  ;;  %v3222_v35 = vld [vmem:[%s4010_s1 + $0x1d0] sm:$0xff] }
  0x71   : > { %752 = vst [vmem:[#allocation2 + $0x14c] sm:$0xf] %v705_v20  ;;  %v629_v59 = vld [vmem:[%s3426_s19 + $0x3c] sm:$0xe]  ;;  %2235 = vmatpush.bf16.msra.mxu0 %v3231_v56  ;;  %v293_v3 = vld [vmem:[%s3426_s19 + $0x50] sm:$0x1] }
  0x72   : > { %777 = vst [vmem:[#allocation2 + $0xec] sm:$0xf] %v702_v19  ;;  %v2508_v62 = vrot.slane %v629_v59, 9  ;;  %v3119_v2 = vld [vmem:[#allocation2 + $0xdc] sm:$0xf]  ;;  %v458_v4 = vrot.slane %v457_v61, 4  ;;  %v712_v8 = vsel %vm3567_vm5, %v710_v63, %v711_v0  ;;  %v467_v9 = vor.u32 %v466_v1, %v462_v57 }
  0x73   : > { %778 = vst [vmem:[#allocation2 + $0x110] sm:$0xf] %v705_v20  ;;  %v2625_v5 = vld [vmem:[#allocation2 + $0xfc] sm:$0xf0]  ;;  %v3120_v6 = vld [vmem:[#allocation2 + $0xe4] sm:$0xf]  ;;  %2187 = vmatpush.bf16.msra.mxu3 %v3222_v35 }
  0x74   : > { %803 = vst [vmem:[#allocation2 + $0xb0] sm:$0xf] %v702_v19  ;;  %v709_v7 = vsel %vm3567_vm5, %v2508_v62, %v708_v52  ;;  %v470_v10 = vshll.u32 %v293_v3, 16  ;;  %v2631_v11 = vld [vmem:[#allocation2 + $0xe0] sm:$0xf]  ;;  %v468_v14 = vrot.slane %v467_v9, 4  ;;  %v2628_v16 = vor.u32 %v3119_v2, %v2625_v5 }
  0x75   : > { %804 = vst [vmem:[#allocation2 + $0xd4] sm:$0xf] %v705_v20  ;;  %v3124_v12 = vld [vmem:[#allocation2 + $0x100] sm:$0xf0]  ;;  %v2633_v13 = vld [vmem:[#allocation2 + $0x104] sm:$0xf0]  ;;  %v463_v18 = vsel %vm3553_vm4, %v458_v4, %v462_v57 }
  0x76   : > { %564 = vst [vmem:[#allocation2 + $0x130] sm:$0xf] %v439_v49  ;;  %v472_v15 = vrot.slane %v470_v10, 5  ;;  %v2632_v17 = vor.u32 %v3124_v12, %v2631_v11  ;;  %v2636_v19 = vor.u32 %v3120_v6, %v2633_v13  ;;  %v2639_v20 = vld [vmem:[#allocation2 + $0xe8] sm:$0xf]  ;;  %v3206_v36 = vld [vmem:[%s4010_s1 + $0x150] sm:$0xff] }
  0x77   : > { %565 = vst [vmem:[#allocation2 + $0x154] sm:$0xf] %v449_v39  ;;  %v3125_v21 = vld [vmem:[#allocation2 + $0x108] sm:$0xf0]  ;;  %v294_v24 = vld [vmem:[%s3426_s19 + $0x54] sm:$0xf]  ;;  %2089 = vmatpush.bf16.msra.mxu1 %v3206_v36 }
  0x78   : > { %1906 = vmatmul.bf16.gmra.mxu1 %v2592_v28  ;;  %1955 = vmatmul.bf16.gmra.mxu2 %v2596_v30  ;;  %524 = vst [vmem:[#allocation2 + $0x16c] sm:$0xf] %v439_v49  ;;  %v473_v22 = vsel %vm3553_vm4, %v468_v14, %v472_v15  ;;  %v2640_v23 = vor.u32 %v3125_v21, %v2639_v20  ;;  %v475_v26 = vshrl.u32 %v294_v24, 16  ;;  %v633_v27 = vld [vmem:[%s3426_s19 + $0x4c] sm:$0xf]  ;;  %v3230_v37 = vld [vmem:[%s4010_s1 + $0x210] sm:$0xff] }
  0x79   : > { %525 = vst [vmem:[#allocation2 + $0x190] sm:$0xf] %v449_v39  ;;  %v295_v28 = vld [vmem:[%s3426_s19 + $0x58] sm:$0xf]  ;;  %v715_v30 = vrot.slane %v633_v27, 5  ;;  %2236 = vmatpush.bf16.msra.mxu0 %v3230_v37  ;;  %v3221_v15 = vld [vmem:[%s4010_s1 + $0x1c8] sm:$0xff] }
  0x7a   : > { %2004 = vmatmul.bf16.gmra.mxu3 %v2600_v32  ;;  %604 = vst [vmem:[#allocation2 + $0xf4] sm:$0xf] %v439_v49  ;;  %v477_v31 = vrot.slane %v475_v26, 4  ;;  %v478_v32 = vshll.u32 %v294_v24, 16  ;;  %v484_v34 = vshll.u32 %v295_v28, 16  ;;  %v488_v38 = vshrl.u32 %v295_v28, 16 }
  0x7b   : > { %605 = vst [vmem:[#allocation2 + $0x118] sm:$0xf] %v449_v39  ;;  %v634_v41 = vld [vmem:[%s3426_s19 + $0x50] sm:$0x1]  ;;  %v717_v42 = vrot.slane %v715_v30, 4  ;;  %2188 = vmatpush.bf16.msra.mxu3 %v3221_v15  ;;  %v3229_v21 = vld [vmem:[%s4010_s1 + $0x208] sm:$0xff] }
  0x7c   : > { %753 = vst [vmem:[#allocation2 + $0x170] sm:$0xf] %v709_v7  ;;  %v480_v43 = vrot.slane %v478_v32, 5  ;;  %v718_v45 = vrot.slane %v634_v41, 5  ;;  %v296_v46 = vld [vmem:[%s3426_s19 + $0x5c] sm:$0x1] }
  0x7d   : > { %754 = vst [vmem:[#allocation2 + $0x194] sm:$0xf] %v712_v8  ;;  %v486_v48 = vrot.slane %v484_v34, 5  ;;  %v490_v49 = vrot.slane %v488_v38, 4  ;;  %v494_v39 = vshll.u32 %v296_v46, 16  ;;  %2237 = vmatpush.bf16.msra.mxu0 %v3229_v21 }
  0x7e   : > { %2053 = vmatmul.bf16.gmra.mxu0 %v2604_v40  ;;  %779 = vst [vmem:[#allocation2 + $0x134] sm:$0xf] %v709_v7  ;;  %v632_v40 = vld [vmem:[%s3426_s19 + $0x48] sm:$0xe]  ;;  %v481_v47 = vor.u32 %v480_v43, %v477_v31  ;;  %v3128_v50 = vld [vmem:[#allocation2 + $0x124] sm:$0xf]  ;;  %v719_v54 = vsel %vm3567_vm5, %v717_v42, %v718_v45 }
  0x7f   : > { %780 = vst [vmem:[#allocation2 + $0x158] sm:$0xf] %v712_v8  ;;  %v2509_v44 = vrot.slane %v632_v40, 9  ;;  %v2661_v51 = vld [vmem:[#allocation2 + $0x144] sm:$0xf0]  ;;  %v491_v56 = vor.u32 %v490_v49, %v486_v48  ;;  %v496_v57 = vrot.slane %v494_v39, 5 }
  0x80   : > { %805 = vst [vmem:[#allocation2 + $0xf8] sm:$0xf] %v709_v7  ;;  %v2667_v52 = vld [vmem:[#allocation2 + $0x128] sm:$0xf]  ;;  %v3133_v55 = vld [vmem:[#allocation2 + $0x148] sm:$0xf0]  ;;  %v2664_v62 = vor.u32 %v3128_v50, %v2661_v51 }
  0x81   : > { %806 = vst [vmem:[#allocation2 + $0x11c] sm:$0xf] %v712_v8  ;;  %v716_v53 = vsel %vm3567_vm5, %v2509_v44, %v715_v30  ;;  %v482_v58 = vrot.slane %v481_v47, 4  ;;  %v3129_v59 = vld [vmem:[#allocation2 + $0x12c] sm:$0xf]  ;;  %v492_v61 = vrot.slane %v491_v56, 4  ;;  %v2668_v63 = vor.u32 %v3133_v55, %v2667_v52 }
  0x82   : > { %566 = vst [vmem:[#allocation2 + $0x178] sm:$0xf] %v463_v18  ;;  %v2669_v60 = vld [vmem:[#allocation2 + $0x14c] sm:$0xf0]  ;;  %v3134_v3 = vld [vmem:[#allocation2 + $0x150] sm:$0xf0] }
  0x83   : > { %567 = vst [vmem:[#allocation2 + $0x19c] sm:$0xf] %v473_v22  ;;  %v487_v0 = vsel %vm3553_vm4, %v482_v58, %v486_v48  ;;  %v2672_v1 = vor.u32 %v3129_v59, %v2669_v60  ;;  %v2675_v2 = vld [vmem:[#allocation2 + $0x130] sm:$0xf]  ;;  %v497_v4 = vsel %vm3553_vm4, %v492_v61, %v496_v57  ;;  %v297_v6 = vld [vmem:[%s3426_s19 + $0x60] sm:$0xf] }
  0x84   : > { %526 = vst [vmem:[#allocation2 + $0x1b4] sm:$0xf] %v463_v18  ;;  %v2676_v5 = vor.u32 %v3134_v3, %v2675_v2  ;;  %v3213_v7 = vld [vmem:[%s4010_s1 + $0x188] sm:$0xff]  ;;  %v531_v8 = vshrl.u32 %v297_v6, 16  ;;  %v636_v9 = vld [vmem:[%s3426_s19 + $0x58] sm:$0xf] }
  0x85   : > { %527 = vst [vmem:[#allocation2 + $0x1d8] sm:$0xf] %v473_v22  ;;  %v298_v10 = vld [vmem:[%s3426_s19 + $0x64] sm:$0xf]  ;;  %2139 = vmatpush.bf16.msra.mxu2 %v3213_v7  ;;  %v722_v11 = vrot.slane %v636_v9, 5  ;;  %v534_v13 = vshll.u32 %v297_v6, 16 }
  0x86   : > { %606 = vst [vmem:[#allocation2 + $0x13c] sm:$0xf] %v463_v18  ;;  %v533_v12 = vrot.slane %v531_v8, 4  ;;  %v540_v14 = vshll.u32 %v298_v10, 16  ;;  %v637_v18 = vld [vmem:[%s3426_s19 + $0x5c] sm:$0x1] }
  0x87   : > { %607 = vst [vmem:[#allocation2 + $0x160] sm:$0xf] %v473_v22  ;;  %v724_v20 = vrot.slane %v722_v11, 4  ;;  %v725_v22 = vrot.slane %v637_v18, 5  ;;  %v536_v24 = vrot.slane %v534_v13, 5  ;;  %v544_v35 = vshrl.u32 %v298_v10, 16 }
  0x88   : > { %1911 = vmatmul.bf16.gmra.mxu1 %v2628_v16  ;;  %1960 = vmatmul.bf16.gmra.mxu2 %v2632_v17  ;;  %755 = vst [vmem:[#allocation2 + $0x1b8] sm:$0xf] %v716_v53  ;;  %v3205_v16 = vld [vmem:[%s4010_s1 + $0x148] sm:$0xff]  ;;  %v635_v17 = vld [vmem:[%s3426_s19 + $0x54] sm:$0xe]  ;;  %v542_v34 = vrot.slane %v540_v14, 5 }
  0x89   : > { %756 = vst [vmem:[#allocation2 + $0x1dc] sm:$0xf] %v719_v54  ;;  %2090 = vmatpush.bf16.msra.mxu1 %v3205_v16  ;;  %v3137_v25 = vld [vmem:[#allocation2 + $0x16c] sm:$0xf]  ;;  %v2697_v26 = vld [vmem:[#allocation2 + $0x18c] sm:$0xf0]  ;;  %v726_v31 = vsel %vm3567_vm5, %v724_v20, %v725_v22  ;;  %v537_v32 = vor.u32 %v536_v24, %v533_v12 }
  0x8a   : > { %2009 = vmatmul.bf16.gmra.mxu3 %v2636_v19  ;;  %781 = vst [vmem:[#allocation2 + $0x17c] sm:$0xf] %v716_v53  ;;  %v2510_v19 = vrot.slane %v635_v17, 9  ;;  %v2703_v28 = vld [vmem:[#allocation2 + $0x170] sm:$0xf]  ;;  %v546_v40 = vrot.slane %v544_v35, 4  ;;  %v2700_v43 = vor.u32 %v3137_v25, %v2697_v26 }
  0x8b   : > { %782 = vst [vmem:[#allocation2 + $0x1a0] sm:$0xf] %v719_v54  ;;  %v3138_v30 = vld [vmem:[#allocation2 + $0x174] sm:$0xf]  ;;  %v2705_v38 = vld [vmem:[#allocation2 + $0x194] sm:$0xf0] }
  0x8c   : > { %807 = vst [vmem:[#allocation2 + $0x140] sm:$0xf] %v716_v53  ;;  %v723_v27 = vsel %vm3567_vm5, %v2510_v19, %v722_v11  ;;  %v3142_v36 = vld [vmem:[#allocation2 + $0x190] sm:$0xf0]  ;;  %v2711_v41 = vld [vmem:[#allocation2 + $0x178] sm:$0xf]  ;;  %v547_v47 = vor.u32 %v546_v40, %v542_v34  ;;  %v2708_v48 = vor.u32 %v3138_v30, %v2705_v38 }
  0x8d   : > { %808 = vst [vmem:[#allocation2 + $0x164] sm:$0xf] %v719_v54  ;;  %v221_v42 = vld [vmem:[%s3426_s19 + $0x60] sm:$0xf]  ;;  %v2704_v44 = vor.u32 %v3142_v36, %v2703_v28  ;;  %v3143_v45 = vld [vmem:[#allocation2 + $0x198] sm:$0xf0] }
  0x8e   : > { %2058 = vmatmul.bf16.gmra.mxu0 %v2640_v23  ;;  %568 = vst [vmem:[#allocation2 + $0x1c0] sm:$0xf] %v487_v0  ;;  %v299_v23 = vld [vmem:[%s3426_s19 + $0x68] sm:$0x1]  ;;  %v538_v46 = vrot.slane %v537_v32, 4  ;;  %v548_v50 = vrot.slane %v547_v47, 4  ;;  %v2712_v51 = vor.u32 %v3143_v45, %v2711_v41 }
  0x8f   : > { %569 = vst [vmem:[#allocation2 + $0x1e4] sm:$0xf] %v497_v4  ;;  %v550_v37 = vshll.u32 %v299_v23, 16  ;;  %v222_v49 = vld [vmem:[%s3426_s19 + $0x64] sm:$0xf] }
  0x90   : > { %528 = vst [vmem:[#allocation2 + $0x1fc] sm:$0xf] %v487_v0  ;;  %v543_v52 = vsel %vm3553_vm4, %v538_v46, %v542_v34  ;;  %v3212_v53 = vld [vmem:[%s4010_s1 + $0x180] sm:$0xff]  ;;  %v3146_v56 = vld [vmem:[#allocation2 + $0x1b4] sm:$0xf] }
  0x91   : > { %529 = vst [vmem:[#allocation2 + $0x220] sm:$0xf] %v497_v4  ;;  %v552_v39 = vrot.slane %v550_v37, 5  ;;  %2140 = vmatpush.bf16.msra.mxu2 %v3212_v53  ;;  %v3220_v55 = vld [vmem:[%s4010_s1 + $0x1c0] sm:$0xff]  ;;  %v2733_v57 = vld [vmem:[#allocation2 + $0x1d4] sm:$0xf0] }
  0x92   : > { %608 = vst [vmem:[#allocation2 + $0x184] sm:$0xf] %v487_v0  ;;  %v3204_v58 = vld [vmem:[%s4010_s1 + $0x140] sm:$0xff]  ;;  %2189 = vmatpush.bf16.msra.mxu3 %v3220_v55  ;;  %v2739_v59 = vld [vmem:[#allocation2 + $0x1b8] sm:$0xf]  ;;  %v2736_v0 = vor.u32 %v3146_v56, %v2733_v57 }
  0x93   : > { %609 = vst [vmem:[#allocation2 + $0x1a8] sm:$0xf] %v497_v4  ;;  %v553_v54 = vsel %vm3553_vm4, %v548_v50, %v552_v39  ;;  %2091 = vmatpush.bf16.msra.mxu1 %v3204_v58  ;;  %v3151_v60 = vld [vmem:[#allocation2 + $0x1d8] sm:$0xf0]  ;;  %v3228_v61 = vld [vmem:[%s4010_s1 + $0x200] sm:$0xff] }
  0x94   : > { %757 = vst [vmem:[#allocation2 + $0x200] sm:$0xf] %v723_v27  ;;  %2238 = vmatpush.bf16.msra.mxu0 %v3228_v61  ;;  %v3094_v32 = vld [vmem:[#allocation2 + $0x14] sm:$0xf]  ;;  %v2533_v35 = vld [vmem:[#allocation2 + $0x34] sm:$0xf0] }
  0x95   : > { %758 = vst [vmem:[#allocation2 + $0x224] sm:$0xf] %v726_v31  ;;  %v2747_v4 = vld [vmem:[#allocation2 + $0x1c0] sm:$0xf]  ;;  %v2539_v36 = vld [vmem:[#allocation2 + $0x18] sm:$0xf] }
  0x96   : > { %783 = vst [vmem:[#allocation2 + $0x1c4] sm:$0xf] %v723_v27  ;;  %v3099_v37 = vld [vmem:[#allocation2 + $0x38] sm:$0xf0]  ;;  %v2541_v40 = vld [vmem:[#allocation2 + $0x3c] sm:$0xf0] }
  0x97   : > { %784 = vst [vmem:[#allocation2 + $0x1e8] sm:$0xf] %v726_v31  ;;  %v3155_v12 = vld [vmem:[#allocation2 + $0x1fc] sm:$0xf]  ;;  %v2547_v47 = vld [vmem:[#allocation2 + $0x20] sm:$0xf] }
  0x98   : > { %1916 = vmatmul.bf16.gmra.mxu1 %v2664_v62  ;;  %1965 = vmatmul.bf16.gmra.mxu2 %v2668_v63  ;;  %809 = vst [vmem:[#allocation2 + $0x188] sm:$0xf] %v723_v27  ;;  %v3147_v62 = vld [vmem:[#allocation2 + $0x1bc] sm:$0xf]  ;;  %v2741_v63 = vld [vmem:[#allocation2 + $0x1dc] sm:$0xf0] }
  0x99   : > { %810 = vst [vmem:[#allocation2 + $0x1ac] sm:$0xf] %v726_v31  ;;  %v2744_v3 = vor.u32 %v3147_v62, %v2741_v63  ;;  %v2769_v13 = vld [vmem:[#allocation2 + $0x21c] sm:$0xf0]  ;;  %v3095_v38 = vld [vmem:[#allocation2 + $0x1c] sm:$0xf] }
  0x9a   : > { %2014 = vmatmul.bf16.gmra.mxu3 %v2672_v1  ;;  %255 = vst [vmem:[#allocation2 + $0x204] sm:$0xf] %v221_v42  ;;  %v2740_v1 = vor.u32 %v3151_v60, %v2739_v59  ;;  %v2772_v20 = vor.u32 %v3155_v12, %v2769_v13  ;;  %v2544_v46 = vor.u32 %v3095_v38, %v2541_v40  ;;  %v3103_v56 = vld [vmem:[#allocation2 + $0x5c] sm:$0xf]  ;;  %v2569_v60 = vld [vmem:[#allocation2 + $0x7c] sm:$0xf0] }
  0x9b   : > { %256 = vst [vmem:[#allocation2 + $0x228] sm:$0xf] %v222_v49  ;;  %v2775_v14 = vld [vmem:[#allocation2 + $0x200] sm:$0xf]  ;;  %v3108_v62 = vld [vmem:[#allocation2 + $0x80] sm:$0xf0] }
  0x9c   : > { %269 = vst [vmem:[#allocation2 + $0x1c8] sm:$0xf] %v221_v42  ;;  %v3160_v15 = vld [vmem:[#allocation2 + $0x220] sm:$0xf0]  ;;  %v2575_v61 = vld [vmem:[#allocation2 + $0x60] sm:$0xf] }
  0x9d   : > { %270 = vst [vmem:[#allocation2 + $0x1ec] sm:$0xf] %v222_v49  ;;  %v2776_v21 = vor.u32 %v3160_v15, %v2775_v14  ;;  %v3104_v63 = vld [vmem:[#allocation2 + $0x64] sm:$0xf]  ;;  %v2583_v13 = vld [vmem:[#allocation2 + $0x68] sm:$0xf] }
  0x9e   : > { %2063 = vmatmul.bf16.gmra.mxu0 %v2676_v5  ;;  %570 = vst [vmem:[#allocation2 + $0x208] sm:$0xf] %v543_v52  ;;  %v3152_v5 = vld [vmem:[#allocation2 + $0x1e0] sm:$0xf0]  ;;  %v3109_v14 = vld [vmem:[#allocation2 + $0x88] sm:$0xf0] }
  0x9f   : > { %571 = vst [vmem:[#allocation2 + $0x22c] sm:$0xf] %v553_v54  ;;  %v2748_v7 = vor.u32 %v3152_v5, %v2747_v4  ;;  %v2572_v5 = vor.u32 %v3103_v56, %v2569_v60  ;;  %v2605_v38 = vld [vmem:[#allocation2 + $0xc4] sm:$0xf0]  ;;  %v3117_v40 = vld [vmem:[#allocation2 + $0xc8] sm:$0xf0] }
  0xa0   : > { %610 = vst [vmem:[#allocation2 + $0x1cc] sm:$0xf] %v543_v52 }
  0xa1   : > { %611 = vst [vmem:[#allocation2 + $0x1f0] sm:$0xf] %v553_v54  ;;  %v3156_v16 = vld [vmem:[#allocation2 + $0x204] sm:$0xf] }
  0xa2   : > { %v2777_v17 = vld [vmem:[#allocation2 + $0x224] sm:$0xf0] }
  0xa3   : > { %v2780_v23 = vor.u32 %v3156_v16, %v2777_v17  ;;  %v2584_v16 = vor.u32 %v3109_v14, %v2583_v13 }
  0xa5   : > { %v2783_v24 = vld [vmem:[#allocation2 + $0x208] sm:$0xf] }
  0xa6   : > { %v3161_v25 = vld [vmem:[#allocation2 + $0x228] sm:$0xf0] }
  0xa7   : > { %v2784_v26 = vor.u32 %v3161_v25, %v2783_v24 }
  0xa8   : > { %1921 = vmatmul.bf16.gmra.mxu1 %v2700_v43  ;;  %1970 = vmatmul.bf16.gmra.mxu2 %v2704_v44  ;;  %v2536_v43 = vor.u32 %v3094_v32, %v2533_v35  ;;  %v2540_v44 = vor.u32 %v3099_v37, %v2539_v36  ;;  %v3112_v35 = vld [vmem:[#allocation2 + $0xa4] sm:$0xf] }
  0xaa   : > { %2019 = vmatmul.bf16.gmra.mxu3 %v2708_v48  ;;  %v3100_v48 = vld [vmem:[#allocation2 + $0x40] sm:$0xf0] }
  0xab   : > { %v2548_v39 = vor.u32 %v3100_v48, %v2547_v47  ;;  %v2608_v48 = vor.u32 %v3112_v35, %v2605_v38 }
  0xae   : > { %2068 = vmatmul.bf16.gmra.mxu0 %v2712_v51 }
  0xb5   : > { %v3839_v2 = vpop.f32.mrf.mxu1 }
  0xb7   : > { %v1848_v6 = vpop.f32.mrf.mxu0 }
  0xb8   : > { %1926 = vmatmul.bf16.gmra.mxu1 %v2736_v0  ;;  %1975 = vmatmul.bf16.gmra.mxu2 %v2740_v1  ;;  %v2577_v0 = vld [vmem:[#allocation2 + $0x84] sm:$0xf0] }
  0xb9   : > { %v2580_v12 = vor.u32 %v3104_v63, %v2577_v0  ;;  %v3121_v0 = vld [vmem:[#allocation2 + $0xec] sm:$0xf] }
  0xba   : > { %2024 = vmatmul.bf16.gmra.mxu3 %v2744_v3 }
  0xbb   : > { %v3841_v8 = vpop.f32.mrf.mxu2 }
  0xbd   : > { %v3843_v9 = vpop.f32.mrf.mxu3  ;;  %v3845_v10 = vpop.f32.mrf.mxu1 }
  0xbe   : > { %2073 = vmatmul.bf16.gmra.mxu0 %v2748_v7 }
  0xbf   : > { %v1850_v11 = vpop.f32.mrf.mxu0 }
  0xc3   : > { %v3847_v18 = vpop.f32.mrf.mxu2 }
  0xc5   : > { %v3849_v19 = vpop.f32.mrf.mxu3  ;;  %v3851_v22 = vpop.f32.mrf.mxu1 }
  0xc8   : > { %1931 = vmatmul.bf16.gmra.mxu1 %v2772_v20  ;;  %1980 = vmatmul.bf16.gmra.mxu2 %v2776_v21 }
  0xca   : > { %2029 = vmatmul.bf16.gmra.mxu3 %v2780_v23 }
  0xcb   : > { %v1853_v27 = vpop.f32.mrf.mxu0  ;;  %v3853_v28 = vpop.f32.mrf.mxu2 }
  0xcd   : > { %v3855_v30 = vpop.f32.mrf.mxu3  ;;  %v3857_v31 = vpop.f32.mrf.mxu1 }
  0xce   : > { %2078 = vmatmul.bf16.gmra.mxu0 %v2784_v26 }
  0xd3   : > { %v1855_v34 = vpop.f32.mrf.mxu0  ;;  %v3859_v41 = vpop.f32.mrf.mxu2 }
  0xd5   : > { %v3861_v42 = vpop.f32.mrf.mxu3  ;;  %v1897_v45 = vpop.f32.mrf.mxu1 }
  0xd6   : > { %v1898_v49 = vadd.f32 %v1897_v45, %v1848_v6  ;;  %v2576_v6 = vor.u32 %v3108_v62, %v2575_v61 }
  0xd8   : > { %2092 = vmatmul.bf16.vlgmr.msra.gmra.mxu1 %v2536_v43  ;;  %2141 = vmatmul.bf16.vlgmr.msra.gmra.mxu2 %v2540_v44  ;;  %v3113_v43 = vld [vmem:[#allocation2 + $0xac] sm:$0xf]  ;;  %v2613_v44 = vld [vmem:[#allocation2 + $0xcc] sm:$0xf0] }
  0xda   : > { %2190 = vmatmul.bf16.vlgmr.msra.gmra.mxu3 %v2544_v46 }
  0xdb   : > { %v2044_v50 = vpop.f32.mrf.mxu0  ;;  %v1946_v51 = vpop.f32.mrf.mxu2 }
  0xdc   : > { %v1947_v52 = vadd.f32 %v1946_v51, %v1898_v49  ;;  %v2619_v51 = vld [vmem:[#allocation2 + $0xb0] sm:$0xf] }
  0xdd   : > { %v1995_v53 = vpop.f32.mrf.mxu3  ;;  %v1899_v54 = vpop.f32.mrf.mxu1 }
  0xde   : > { %2239 = vmatmul.bf16.vlgmr.msra.gmra.mxu0 %v2548_v39  ;;  %v1996_v55 = vadd.f32 %v1995_v53, %v1947_v52  ;;  %v1900_v58 = vadd.f32 %v1899_v54, %v1850_v11  ;;  %v3118_v52 = vld [vmem:[#allocation2 + $0xd0] sm:$0xf0] }
  0xdf   : > { %v2620_v54 = vor.u32 %v3118_v52, %v2619_v51  ;;  %v2677_v52 = vld [vmem:[#allocation2 + $0x154] sm:$0xf0] }
  0xe0   : > { %v3863_v57 = vadd.f32 %v2044_v50, %v1996_v55  ;;  %v2616_v50 = vor.u32 %v3113_v43, %v2613_v44 }
  0xe3   : > { %v2046_v59 = vpop.f32.mrf.mxu0  ;;  %v1948_v1 = vpop.f32.mrf.mxu2 }
  0xe4   : > { %v1949_v3 = vadd.f32 %v1948_v1, %v1900_v58 }
  0xe5   : > { %v1997_v4 = vpop.f32.mrf.mxu3  ;;  %v1902_v7 = vpop.f32.mrf.mxu1 }
  0xe6   : > { %v1998_v15 = vadd.f32 %v1997_v4, %v1949_v3  ;;  %v1903_v11 = vadd.f32 %v1902_v7, %v1853_v27  ;;  %v2611_v27 = vld [vmem:[#allocation2 + $0xa8] sm:$0xf]  ;;  %v2647_v4 = vld [vmem:[#allocation2 + $0xf0] sm:$0xf]  ;;  %v2649_v7 = vld [vmem:[#allocation2 + $0x114] sm:$0xf0] }
  0xe7   : > { %v2612_v49 = vor.u32 %v3117_v40, %v2611_v27  ;;  %v639_v27 = vld [vmem:[%s3426_s19 + $0x64] sm:$0xf] }
  0xe8   : > { %2097 = vmatmul.bf16.gmra.mxu1 %v2572_v5  ;;  %2146 = vmatmul.bf16.gmra.mxu2 %v2576_v6  ;;  %v3865_v17 = vadd.f32 %v2046_v59, %v1998_v15  ;;  %v3126_v5 = vld [vmem:[#allocation2 + $0x110] sm:$0xf0]  ;;  %v764_v43 = vrot.slane %v639_v27, 5 }
  0xe9   : > { %v3122_v6 = vld [vmem:[#allocation2 + $0xf4] sm:$0xf] }
  0xea   : > { %2195 = vmatmul.bf16.gmra.mxu3 %v2580_v12 }
  0xeb   : > { %v2049_v20 = vpop.f32.mrf.mxu0  ;;  %v1951_v21 = vpop.f32.mrf.mxu2 }
  0xec   : > { %v1952_v23 = vadd.f32 %v1951_v21, %v1903_v11  ;;  %v2648_v11 = vor.u32 %v3126_v5, %v2647_v4  ;;  %v2655_v21 = vld [vmem:[#allocation2 + $0xf8] sm:$0xf]  ;;  %v3136_v4 = vld [vmem:[#allocation2 + $0x160] sm:$0xf0] }
  0xed   : > { %v2000_v24 = vpop.f32.mrf.mxu3  ;;  %v1904_v25 = vpop.f32.mrf.mxu1 }
  0xee   : > { %2244 = vmatmul.bf16.gmra.mxu0 %v2584_v16  ;;  %v2001_v26 = vadd.f32 %v2000_v24, %v1952_v23  ;;  %v1905_v32 = vadd.f32 %v1904_v25, %v1855_v34  ;;  %v3127_v23 = vld [vmem:[#allocation2 + $0x118] sm:$0xf0] }
  0xef   : > { %v2656_v25 = vor.u32 %v3127_v23, %v2655_v21 }
  0xf0   : > { %v3867_v36 = vadd.f32 %v2049_v20, %v2001_v26  ;;  %v2652_v20 = vor.u32 %v3122_v6, %v2649_v7  ;;  %v300_v6 = vld [vmem:[%s3426_s19 + $0x6c] sm:$0xf]  ;;  %v301_v7 = vld [vmem:[%s3426_s19 + $0x70] sm:$0xf] }
  0xf1   : > { %v582_v21 = vshll.u32 %v301_v7, 16  ;;  %v586_v23 = vshrl.u32 %v301_v7, 16 }
  0xf3   : > { %v2051_v37 = vpop.f32.mrf.mxu0  ;;  %v1953_v45 = vpop.f32.mrf.mxu2  ;;  %v588_v27 = vrot.slane %v586_v23, 4 }
  0xf4   : > { %v1954_v46 = vadd.f32 %v1953_v45, %v1905_v32 }
  0xf5   : > { %v2002_v47 = vpop.f32.mrf.mxu3  ;;  %v1907_v39 = vpop.f32.mrf.mxu1 }
  0xf6   : > { %v2003_v53 = vadd.f32 %v2002_v47, %v1954_v46  ;;  %v1908_v34 = vadd.f32 %v1907_v39, %v3839_v2  ;;  %v2641_v2 = vld [vmem:[#allocation2 + $0x10c] sm:$0xf0]  ;;  %v640_v46 = vld [vmem:[%s3426_s19 + $0x68] sm:$0x1]  ;;  %v3130_v39 = vld [vmem:[#allocation2 + $0x134] sm:$0xf] }
  0xf7   : > { %v2644_v15 = vor.u32 %v3121_v0, %v2641_v2  ;;  %v2691_v2 = vld [vmem:[#allocation2 + $0x140] sm:$0xf] }
  0xf8   : > { %2102 = vmatmul.bf16.gmra.mxu1 %v2608_v48  ;;  %2151 = vmatmul.bf16.gmra.mxu2 %v2612_v49  ;;  %v3870_v55 = vadd.f32 %v2051_v37, %v2003_v53  ;;  %v766_v48 = vrot.slane %v764_v43, 4  ;;  %v767_v49 = vrot.slane %v640_v46, 5  ;;  %v2683_v53 = vld [vmem:[#allocation2 + $0x138] sm:$0xf] }
  0xfa   : > { %2200 = vmatmul.bf16.gmra.mxu3 %v2616_v50 }
  0xfb   : > { %v2054_v58 = vpop.f32.mrf.mxu0  ;;  %v1956_v56 = vpop.f32.mrf.mxu2 }
  0xfc   : > { %v1957_v59 = vadd.f32 %v1956_v56, %v1908_v34  ;;  %v3135_v34 = vld [vmem:[#allocation2 + $0x158] sm:$0xf0] }
  0xfd   : > { %v2005_v60 = vpop.f32.mrf.mxu3  ;;  %v1909_v61 = vpop.f32.mrf.mxu1  ;;  %v3131_v56 = vld [vmem:[#allocation2 + $0x13c] sm:$0xf] }
  0xfe   : > { %2249 = vmatmul.bf16.gmra.mxu0 %v2620_v54  ;;  %v2006_v62 = vadd.f32 %v2005_v60, %v1957_v59  ;;  %v1910_v63 = vadd.f32 %v1909_v61, %v3845_v10 }
 0x100   : > { %v3873_v1 = vadd.f32 %v2054_v58, %v2006_v62  ;;  %v768_v58 = vsel %vm3567_vm5, %v766_v48, %v767_v49  ;;  %v2680_v62 = vor.u32 %v3130_v39, %v2677_v52  ;;  %v643_v48 = vld [vmem:[%s3426_s19 + $0x74] sm:$0x1]  ;;  %v3139_v49 = vld [vmem:[#allocation2 + $0x17c] sm:$0xf]  ;;  %v2713_v39 = vld [vmem:[#allocation2 + $0x19c] sm:$0xf0] }
 0x101   : > { %812 = vst [vmem:[#allocation2 + $0x1f4] sm:$0xf] %v768_v58  ;;  %v224_v52 = vld [vmem:[%s3426_s19 + $0x70] sm:$0xf] }
 0x102   : > { %786 = vst [vmem:[#allocation2 + $0x230] sm:$0xf] %v768_v58 }
 0x103   : > { %v2056_v3 = vpop.f32.mrf.mxu0  ;;  %v1958_v12 = vpop.f32.mrf.mxu2  ;;  %272 = vst [vmem:[#allocation2 + $0x234] sm:$0xf] %v224_v52 }
 0x104   : > { %v1959_v13 = vadd.f32 %v1958_v12, %v1910_v63  ;;  %v2684_v63 = vor.u32 %v3135_v34, %v2683_v53  ;;  %v2692_v12 = vor.u32 %v3136_v4, %v2691_v2  ;;  %v2721_v2 = vld [vmem:[#allocation2 + $0x1a4] sm:$0xf0] }
 0x105   : > { %v2007_v14 = vpop.f32.mrf.mxu3  ;;  %v1912_v16 = vpop.f32.mrf.mxu1 }
 0x106   : > { %v2008_v10 = vadd.f32 %v2007_v14, %v1959_v13  ;;  %v1913_v24 = vadd.f32 %v1912_v16, %v3851_v22  ;;  %v638_v22 = vld [vmem:[%s3426_s19 + $0x60] sm:$0xe] }
 0x107   : > { %v2511_v47 = vrot.slane %v638_v22, 9 }
 0x108   : > { %2107 = vmatmul.bf16.gmra.mxu1 %v2644_v15  ;;  %2156 = vmatmul.bf16.gmra.mxu2 %v2648_v11  ;;  %v3876_v26 = vadd.f32 %v2056_v3, %v2008_v10  ;;  %v573_v15 = vshrl.u32 %v300_v6, 16  ;;  %v576_v11 = vshll.u32 %v300_v6, 16 }
 0x109   : > { %v765_v54 = vsel %vm3567_vm5, %v2511_v47, %v764_v43  ;;  %v641_v47 = vld [vmem:[%s3426_s19 + $0x6c] sm:$0xe] }
 0x10a   : > { %2205 = vmatmul.bf16.gmra.mxu3 %v2652_v20  ;;  %811 = vst [vmem:[#allocation2 + $0x1d0] sm:$0xf] %v765_v54  ;;  %v302_v20 = vld [vmem:[%s3426_s19 + $0x74] sm:$0x1]  ;;  %v2512_v34 = vrot.slane %v641_v47, 9 }
 0x10b   : > { %v2059_v32 = vpop.f32.mrf.mxu0  ;;  %v1961_v35 = vpop.f32.mrf.mxu2  ;;  %785 = vst [vmem:[#allocation2 + $0x20c] sm:$0xf] %v765_v54 }
 0x10c   : > { %v1962_v37 = vadd.f32 %v1961_v35, %v1913_v24  ;;  %v575_v24 = vrot.slane %v573_v15, 4 }
 0x10d   : > { %v2010_v38 = vpop.f32.mrf.mxu3  ;;  %v1914_v40 = vpop.f32.mrf.mxu1 }
 0x10e   : > { %2254 = vmatmul.bf16.gmra.mxu0 %v2656_v25  ;;  %v2011_v44 = vadd.f32 %v2010_v38, %v1962_v37  ;;  %v1915_v45 = vadd.f32 %v1914_v40, %v3857_v31  ;;  %v2685_v31 = vld [vmem:[#allocation2 + $0x15c] sm:$0xf0]  ;;  %v578_v25 = vrot.slane %v576_v11, 5  ;;  %v584_v38 = vrot.slane %v582_v21, 5  ;;  %v642_v40 = vld [vmem:[%s3426_s19 + $0x70] sm:$0xf] }
 0x10f   : > { %v2688_v3 = vor.u32 %v3131_v56, %v2685_v31  ;;  %v795_v56 = vrot.slane %v643_v48, 5 }
 0x110   : > { %v3882_v50 = vadd.f32 %v2059_v32, %v2011_v44  ;;  %v592_v32 = vshll.u32 %v302_v20, 16  ;;  %v579_v44 = vor.u32 %v578_v25, %v575_v24  ;;  %v589_v22 = vor.u32 %v588_v27, %v584_v38  ;;  %v2727_v20 = vld [vmem:[#allocation2 + $0x188] sm:$0xf] }
 0x112   : > { %v594_v46 = vrot.slane %v592_v32, 5  ;;  %v580_v53 = vrot.slane %v579_v44, 4  ;;  %v590_v54 = vrot.slane %v589_v22, 4  ;;  %v2755_v44 = vld [vmem:[#allocation2 + $0x1c8] sm:$0xf] }
 0x113   : > { %v2061_v51 = vpop.f32.mrf.mxu0  ;;  %v1963_v59 = vpop.f32.mrf.mxu2  ;;  %v3149_v22 = vld [vmem:[#allocation2 + $0x1cc] sm:$0xf] }
 0x114   : > { %v1964_v60 = vadd.f32 %v1963_v59, %v1915_v45  ;;  %v595_v4 = vsel %vm3553_vm4, %v590_v54, %v594_v46  ;;  %v2757_v46 = vld [vmem:[#allocation2 + $0x1ec] sm:$0xf0] }
 0x115   : > { %v2012_v61 = vpop.f32.mrf.mxu3  ;;  %v1917_v0 = vpop.f32.mrf.mxu1  ;;  %613 = vst [vmem:[#allocation2 + $0x238] sm:$0xf] %v595_v4  ;;  %v2760_v52 = vor.u32 %v3149_v22, %v2757_v46 }
 0x116   : > { %v2013_v5 = vadd.f32 %v2012_v61, %v1964_v60  ;;  %v1918_v16 = vadd.f32 %v1917_v0, %v3841_v8  ;;  %v792_v8 = vrot.slane %v642_v40, 5  ;;  %v2719_v60 = vld [vmem:[#allocation2 + $0x180] sm:$0xf]  ;;  %v3144_v61 = vld [vmem:[#allocation2 + $0x1a0] sm:$0xf0] }
 0x117   : > { %v2720_v15 = vor.u32 %v3144_v61, %v2719_v60 }
 0x118   : > { %2112 = vmatmul.bf16.gmra.mxu1 %v2680_v62  ;;  %2161 = vmatmul.bf16.gmra.mxu2 %v2684_v63  ;;  %v3890_v13 = vadd.f32 %v2061_v51, %v2013_v5  ;;  %v223_v51 = vld [vmem:[%s3426_s19 + $0x6c] sm:$0xf]  ;;  %v794_v58 = vrot.slane %v792_v8, 4  ;;  %v585_v62 = vsel %vm3553_vm4, %v580_v53, %v584_v38  ;;  %v793_v63 = vsel %vm3567_vm5, %v2512_v34, %v792_v8  ;;  %v3148_v38 = vld [vmem:[#allocation2 + $0x1c4] sm:$0xf] }
 0x119   : > { %271 = vst [vmem:[#allocation2 + $0x210] sm:$0xf] %v223_v51  ;;  %v3153_v8 = vld [vmem:[#allocation2 + $0x1e8] sm:$0xf0]  ;;  %v2763_v53 = vld [vmem:[#allocation2 + $0x1d0] sm:$0xf] }
 0x11a   : > { %2210 = vmatmul.bf16.gmra.mxu3 %v2688_v3  ;;  %v3140_v3 = vld [vmem:[#allocation2 + $0x184] sm:$0xf]  ;;  %612 = vst [vmem:[#allocation2 + $0x214] sm:$0xf] %v585_v62  ;;  %v796_v5 = vsel %vm3567_vm5, %v794_v58, %v795_v56  ;;  %v3154_v34 = vld [vmem:[#allocation2 + $0x1f0] sm:$0xf0] }
 0x11b   : > { %v2064_v14 = vpop.f32.mrf.mxu0  ;;  %v1966_v10 = vpop.f32.mrf.mxu2  ;;  %813 = vst [vmem:[#allocation2 + $0x218] sm:$0xf] %v793_v63  ;;  %v2764_v58 = vor.u32 %v3154_v34, %v2763_v53 }
 0x11c   : > { %v1967_v35 = vadd.f32 %v1966_v10, %v1918_v16  ;;  %v2724_v16 = vor.u32 %v3140_v3, %v2721_v2  ;;  %814 = vst [vmem:[#allocation2 + $0x23c] sm:$0xf] %v796_v5  ;;  %v3157_v3 = vld [vmem:[#allocation2 + $0x20c] sm:$0xf]  ;;  %v2785_v5 = vld [vmem:[#allocation2 + $0x22c] sm:$0xf0] }
 0x11d   : > { %v2015_v37 = vpop.f32.mrf.mxu3  ;;  %v1919_v43 = vpop.f32.mrf.mxu1 }
 0x11e   : > { %2259 = vmatmul.bf16.gmra.mxu0 %v2692_v12  ;;  %v2016_v45 = vadd.f32 %v2015_v37, %v1967_v35  ;;  %v1920_v0 = vadd.f32 %v1919_v43, %v3847_v18  ;;  %v3145_v18 = vld [vmem:[#allocation2 + $0x1a8] sm:$0xf0]  ;;  %v2749_v43 = vld [vmem:[#allocation2 + $0x1e4] sm:$0xf0] }
 0x11f   : > { %v2728_v29 = vor.u32 %v3145_v18, %v2727_v20  ;;  %v2788_v20 = vor.u32 %v3157_v3, %v2785_v5 }
 0x120   : > { %v3899_v31 = vadd.f32 %v2064_v14, %v2016_v45  ;;  %v2716_v14 = vor.u32 %v3139_v49, %v2713_v39  ;;  %v2752_v49 = vor.u32 %v3148_v38, %v2749_v43  ;;  %v2756_v39 = vor.u32 %v3153_v8, %v2755_v44 }
 0x123   : > { %v2066_v59 = vpop.f32.mrf.mxu0  ;;  %v1968_v6 = vpop.f32.mrf.mxu2 }
 0x124   : > { %v1969_v7 = vadd.f32 %v1968_v6, %v1920_v0  ;;  %v2791_v6 = vld [vmem:[#allocation2 + $0x210] sm:$0xf] }
 0x125   : > { %v2017_v12 = vpop.f32.mrf.mxu3  ;;  %v1922_v11 = vpop.f32.mrf.mxu1 }
 0x126   : > { %v2018_v21 = vadd.f32 %v2017_v12, %v1969_v7  ;;  %v1923_v10 = vadd.f32 %v1922_v11, %v3853_v28  ;;  %v3162_v7 = vld [vmem:[#allocation2 + $0x230] sm:$0xf0] }
 0x127   : > { %v2792_v18 = vor.u32 %v3162_v7, %v2791_v6 }
 0x128   : > { %2117 = vmatmul.bf16.gmra.mxu1 %v2716_v14  ;;  %2166 = vmatmul.bf16.gmra.mxu2 %v2720_v15  ;;  %v3910_v23 = vadd.f32 %v2066_v59, %v2018_v21  ;;  %v3158_v14 = vld [vmem:[#allocation2 + $0x214] sm:$0xf]  ;;  %v2793_v15 = vld [vmem:[#allocation2 + $0x234] sm:$0xf0] }
 0x12a   : > { %2215 = vmatmul.bf16.gmra.mxu3 %v2724_v16 }
 0x12b   : > { %v2069_v33 = vpop.f32.mrf.mxu0  ;;  %v1971_v24 = vpop.f32.mrf.mxu2 }
 0x12c   : > { %v1972_v25 = vadd.f32 %v1971_v24, %v1923_v10  ;;  %v3163_v10 = vld [vmem:[#allocation2 + $0x238] sm:$0xf0] }
 0x12d   : > { %v2020_v32 = vpop.f32.mrf.mxu3  ;;  %v1924_v35 = vpop.f32.mrf.mxu1 }
 0x12e   : > { %2264 = vmatmul.bf16.gmra.mxu0 %v2728_v29  ;;  %v2021_v37 = vadd.f32 %v2020_v32, %v1972_v25  ;;  %v1925_v45 = vadd.f32 %v1924_v35, %v3859_v41  ;;  %v2796_v29 = vor.u32 %v3158_v14, %v2793_v15 }
 0x130   : > { %v3913_v27 = vadd.f32 %v2069_v33, %v2021_v37  ;;  %v2799_v33 = vld [vmem:[#allocation2 + $0x218] sm:$0xf] }
 0x131   : > { %v2800_v25 = vor.u32 %v3163_v10, %v2799_v33 }
 0x133   : > { %v2071_v40 = vpop.f32.mrf.mxu0  ;;  %v1973_v47 = vpop.f32.mrf.mxu2 }
 0x134   : > { %v1974_v48 = vadd.f32 %v1973_v47, %v1925_v45 }
 0x135   : > { %v2022_v28 = vpop.f32.mrf.mxu3  ;;  %v1927_v51 = vpop.f32.mrf.mxu1 }
 0x136   : > { %v2023_v54 = vadd.f32 %v2022_v28, %v1974_v48  ;;  %v1928_v41 = vadd.f32 %v1927_v51, %v3843_v9 }
 0x138   : > { %2122 = vmatmul.bf16.gmra.mxu1 %v2752_v49  ;;  %2171 = vmatmul.bf16.gmra.mxu2 %v2756_v39  ;;  %v3916_v56 = vadd.f32 %v2071_v40, %v2023_v54 }
 0x13a   : > { %2220 = vmatmul.bf16.gmra.mxu3 %v2760_v52 }
 0x13b   : > { %v2074_v59 = vpop.f32.mrf.mxu0  ;;  %v1976_v60 = vpop.f32.mrf.mxu2 }
 0x13c   : > { %v1977_v61 = vadd.f32 %v1976_v60, %v1928_v41 }
 0x13d   : > { %v2025_v62 = vpop.f32.mrf.mxu3  ;;  %v1929_v63 = vpop.f32.mrf.mxu1 }
 0x13e   : > { %2269 = vmatmul.bf16.gmra.mxu0 %v2764_v58  ;;  %v2026_v0 = vadd.f32 %v2025_v62, %v1977_v61  ;;  %v1930_v12 = vadd.f32 %v1929_v63, %v3849_v19 }
 0x140   : > { %v3919_v2 = vadd.f32 %v2074_v59, %v2026_v0 }
 0x143   : > { %v2076_v4 = vpop.f32.mrf.mxu0  ;;  %v1978_v11 = vpop.f32.mrf.mxu2 }
 0x144   : > { %v1979_v16 = vadd.f32 %v1978_v11, %v1930_v12 }
 0x145   : > { %v2027_v9 = vpop.f32.mrf.mxu3  ;;  %v1932_v21 = vpop.f32.mrf.mxu1 }
 0x146   : > { %v2028_v24 = vadd.f32 %v2027_v9, %v1979_v16  ;;  %v1933_v19 = vadd.f32 %v1932_v21, %v3855_v30 }
 0x148   : > { %2127 = vmatmul.bf16.gmra.mxu1 %v2788_v20  ;;  %2176 = vmatmul.bf16.gmra.mxu2 %v2792_v18  ;;  %v3922_v32 = vadd.f32 %v2076_v4, %v2028_v24 }
 0x14a   : > { %2225 = vmatmul.bf16.gmra.mxu3 %v2796_v29 }
 0x14b   : > { %v2079_v35 = vpop.f32.mrf.mxu0  ;;  %v1981_v37 = vpop.f32.mrf.mxu2 }
 0x14c   : > { %v1982_v38 = vadd.f32 %v1981_v37, %v1933_v19 }
 0x14d   : > { %v2030_v40 = vpop.f32.mrf.mxu3  ;;  %v1934_v43 = vpop.f32.mrf.mxu1 }
 0x14e   : > { %2274 = vmatmul.bf16.gmra.mxu0 %v2800_v25  ;;  %v2031_v44 = vadd.f32 %v2030_v40, %v1982_v38  ;;  %v1935_v22 = vadd.f32 %v1934_v43, %v3861_v42 }
 0x150   : > { %v3925_v8 = vadd.f32 %v2079_v35, %v2031_v44 }
 0x153   : > { %v2081_v45 = vpop.f32.mrf.mxu0  ;;  %v1983_v46 = vpop.f32.mrf.mxu2 }
 0x154   : > { %v1984_v47 = vadd.f32 %v1983_v46, %v1935_v22 }
 0x155   : > { %v2032_v48 = vpop.f32.mrf.mxu3  ;;  %v2093_v28 = vpop.f32.mrf.mxu1 }
 0x156   : > { %v2033_v49 = vadd.f32 %v2032_v48, %v1984_v47  ;;  %v2094_v51 = vadd.f32 %v2093_v28, %v3863_v57 }
 0x158   : > { %v3928_v39 = vadd.f32 %v2081_v45, %v2033_v49 }
 0x15b   : > { %v2240_v30 = vpop.f32.mrf.mxu0  ;;  %v2142_v52 = vpop.f32.mrf.mxu2 }
 0x15c   : > { %v2143_v53 = vadd.f32 %v2142_v52, %v2094_v51 }
 0x15d   : > { %v2191_v34 = vpop.f32.mrf.mxu3  ;;  %v2095_v54 = vpop.f32.mrf.mxu1 }
 0x15e   : > { %v2192_v58 = vadd.f32 %v2191_v34, %v2143_v53  ;;  %v2096_v42 = vadd.f32 %v2095_v54, %v3865_v17 }
 0x160   : > { %v2241_v59 = vadd.f32 %v2240_v30, %v2192_v58 }
 0x162   : > { %2280 = vst [vmem:[%s3414_s4] sm:$0xff] %v2241_v59  ;;  %v2321_v4 = vmul.f32 %v2241_v59, %v2241_v59 }
 0x163   : > { %v2242_v41 = vpop.f32.mrf.mxu0  ;;  %v2144_v60 = vpop.f32.mrf.mxu2 }
 0x164   : > { %v2145_v61 = vadd.f32 %v2144_v60, %v2096_v42 }
 0x165   : > { %v2193_v62 = vpop.f32.mrf.mxu3  ;;  %v2098_v63 = vpop.f32.mrf.mxu1 }
 0x166   : > { %v2194_v0 = vadd.f32 %v2193_v62, %v2145_v61  ;;  %v2099_v7 = vadd.f32 %v2098_v63, %v3867_v36 }
 0x168   : > { %v2243_v3 = vadd.f32 %v2242_v41, %v2194_v0 }
 0x16a   : > { %2281 = vst [vmem:[%s3414_s4 + $0x8] sm:$0xff] %v2243_v3  ;;  %v2297_v5 = vadd.f32 %v2243_v3, %v2241_v59  ;;  %v2322_v6 = vmul.f32 %v2243_v3, %v2243_v3 }
 0x16b   : > { %v2245_v57 = vpop.f32.mrf.mxu0  ;;  %v2147_v12 = vpop.f32.mrf.mxu2 }
 0x16c   : > { %v2337_v14 = vadd.f32 %v2322_v6, %v2321_v4  ;;  %v2148_v15 = vadd.f32 %v2147_v12, %v2099_v7 }
 0x16d   : > { %v2196_v17 = vpop.f32.mrf.mxu3  ;;  %v2100_v11 = vpop.f32.mrf.mxu1 }
 0x16e   : > { %v2197_v16 = vadd.f32 %v2196_v17, %v2148_v15  ;;  %v2101_v36 = vadd.f32 %v2100_v11, %v3870_v55 }
 0x170   : > { %v2246_v9 = vadd.f32 %v2245_v57, %v2197_v16 }
 0x172   : > { %2282 = vst [vmem:[%s3414_s4 + $0x10] sm:$0xff] %v2246_v9  ;;  %v2298_v18 = vadd.f32 %v2297_v5, %v2246_v9  ;;  %v2323_v21 = vmul.f32 %v2246_v9, %v2246_v9 }
 0x173   : > { %v2247_v20 = vpop.f32.mrf.mxu0  ;;  %v2149_v29 = vpop.f32.mrf.mxu2 }
 0x174   : > { %v2338_v33 = vadd.f32 %v2337_v14, %v2323_v21  ;;  %v2150_v10 = vadd.f32 %v2149_v29, %v2101_v36 }
 0x175   : > { %v2198_v24 = vpop.f32.mrf.mxu3  ;;  %v2103_v25 = vpop.f32.mrf.mxu1 }
 0x176   : > { %v2199_v35 = vadd.f32 %v2198_v24, %v2150_v10  ;;  %v2104_v43 = vadd.f32 %v2103_v25, %v3873_v1 }
 0x178   : > { %v2248_v19 = vadd.f32 %v2247_v20, %v2199_v35 }
 0x17a   : > { %2283 = vst [vmem:[%s3414_s4 + $0x18] sm:$0xff] %v2248_v19  ;;  %v2299_v38 = vadd.f32 %v2298_v18, %v2248_v19  ;;  %v2324_v40 = vmul.f32 %v2248_v19, %v2248_v19 }
 0x17b   : > { %v2250_v37 = vpop.f32.mrf.mxu0  ;;  %v2152_v44 = vpop.f32.mrf.mxu2 }
 0x17c   : > { %v2339_v45 = vadd.f32 %v2338_v33, %v2324_v40  ;;  %v2153_v22 = vadd.f32 %v2152_v44, %v2104_v43 }
 0x17d   : > { %v2201_v46 = vpop.f32.mrf.mxu3  ;;  %v2105_v47 = vpop.f32.mrf.mxu1 }
 0x17e   : > { %v2202_v55 = vadd.f32 %v2201_v46, %v2153_v22  ;;  %v2106_v51 = vadd.f32 %v2105_v47, %v3876_v26 }
 0x180   : > { %v2251_v48 = vadd.f32 %v2250_v37, %v2202_v55 }
 0x182   : > { %2284 = vst [vmem:[%s3414_s4 + $0x20] sm:$0xff] %v2251_v48  ;;  %v2300_v49 = vadd.f32 %v2299_v38, %v2251_v48  ;;  %v2325_v30 = vmul.f32 %v2251_v48, %v2251_v48 }
 0x183   : > { %v2252_v28 = vpop.f32.mrf.mxu0  ;;  %v2154_v52 = vpop.f32.mrf.mxu2 }
 0x184   : > { %v2340_v53 = vadd.f32 %v2339_v45, %v2325_v30  ;;  %v2155_v34 = vadd.f32 %v2154_v52, %v2106_v51 }
 0x185   : > { %v2203_v54 = vpop.f32.mrf.mxu3  ;;  %v2108_v58 = vpop.f32.mrf.mxu1 }
 0x186   : > { %v2204_v1 = vadd.f32 %v2203_v54, %v2155_v34  ;;  %v2109_v61 = vadd.f32 %v2108_v58, %v3882_v50 }
 0x188   : > { %v2253_v59 = vadd.f32 %v2252_v28, %v2204_v1 }
 0x18a   : > { %2285 = vst [vmem:[%s3414_s4 + $0x28] sm:$0xff] %v2253_v59  ;;  %v2301_v42 = vadd.f32 %v2300_v49, %v2253_v59  ;;  %v2326_v60 = vmul.f32 %v2253_v59, %v2253_v59 }
 0x18b   : > { %v2255_v41 = vpop.f32.mrf.mxu0  ;;  %v2157_v62 = vpop.f32.mrf.mxu2 }
 0x18c   : > { %v2341_v63 = vadd.f32 %v2340_v53, %v2326_v60  ;;  %v2158_v0 = vadd.f32 %v2157_v62, %v2109_v61 }
 0x18d   : > { %v2206_v3 = vpop.f32.mrf.mxu3  ;;  %v2110_v57 = vpop.f32.mrf.mxu1 }
 0x18e   : > { %v2207_v26 = vadd.f32 %v2206_v3, %v2158_v0  ;;  %v2111_v12 = vadd.f32 %v2110_v57, %v3890_v13 }
 0x190   : > { %v2256_v4 = vadd.f32 %v2255_v41, %v2207_v26 }
 0x192   : > { %2286 = vst [vmem:[%s3414_s4 + $0x30] sm:$0xff] %v2256_v4  ;;  %v2302_v6 = vadd.f32 %v2301_v42, %v2256_v4  ;;  %v2327_v7 = vmul.f32 %v2256_v4, %v2256_v4 }
 0x193   : > { %v2257_v5 = vpop.f32.mrf.mxu0  ;;  %v2159_v14 = vpop.f32.mrf.mxu2 }
 0x194   : > { %v2342_v15 = vadd.f32 %v2341_v63, %v2327_v7  ;;  %v2160_v17 = vadd.f32 %v2159_v14, %v2111_v12 }
 0x195   : > { %v2208_v11 = vpop.f32.mrf.mxu3  ;;  %v2113_v16 = vpop.f32.mrf.mxu1 }
 0x196   : > { %v2209_v50 = vadd.f32 %v2208_v11, %v2160_v17  ;;  %v2114_v36 = vadd.f32 %v2113_v16, %v3899_v31 }
 0x198   : > { %v2258_v9 = vadd.f32 %v2257_v5, %v2209_v50 }
 0x19a   : > { %2287 = vst [vmem:[%s3414_s4 + $0x38] sm:$0xff] %v2258_v9  ;;  %v2303_v18 = vadd.f32 %v2302_v6, %v2258_v9  ;;  %v2328_v21 = vmul.f32 %v2258_v9, %v2258_v9 }
 0x19b   : > { %v2260_v20 = vpop.f32.mrf.mxu0  ;;  %v2162_v29 = vpop.f32.mrf.mxu2 }
 0x19c   : > { %v2343_v33 = vadd.f32 %v2342_v15, %v2328_v21  ;;  %v2163_v10 = vadd.f32 %v2162_v29, %v2114_v36 }
 0x19d   : > { %v2211_v24 = vpop.f32.mrf.mxu3  ;;  %v2115_v25 = vpop.f32.mrf.mxu1 }
 0x19e   : > { %v2212_v13 = vadd.f32 %v2211_v24, %v2163_v10  ;;  %v2116_v40 = vadd.f32 %v2115_v25, %v3910_v23 }
 0x1a0   : > { %v2261_v35 = vadd.f32 %v2260_v20, %v2212_v13 }
 0x1a2   : > { %2288 = vst [vmem:[%s3414_s4 + $0x40] sm:$0xff] %v2261_v35  ;;  %v2304_v37 = vadd.f32 %v2303_v18, %v2261_v35  ;;  %v2329_v38 = vmul.f32 %v2261_v35, %v2261_v35 }
 0x1a3   : > { %v2262_v19 = vpop.f32.mrf.mxu0  ;;  %v2164_v43 = vpop.f32.mrf.mxu2 }
 0x1a4   : > { %v2344_v44 = vadd.f32 %v2343_v33, %v2329_v38  ;;  %v2165_v45 = vadd.f32 %v2164_v43, %v2116_v40 }
 0x1a5   : > { %v2213_v22 = vpop.f32.mrf.mxu3  ;;  %v2118_v46 = vpop.f32.mrf.mxu1 }
 0x1a6   : > { %v2214_v31 = vadd.f32 %v2213_v22, %v2165_v45  ;;  %v2119_v49 = vadd.f32 %v2118_v46, %v3913_v27 }
 0x1a8   : > { %v2263_v47 = vadd.f32 %v2262_v19, %v2214_v31 }
 0x1aa   : > { %2289 = vst [vmem:[%s3414_s4 + $0x48] sm:$0xff] %v2263_v47  ;;  %v2305_v48 = vadd.f32 %v2304_v37, %v2263_v47  ;;  %v2330_v28 = vmul.f32 %v2263_v47, %v2263_v47 }
 0x1ab   : > { %v2265_v55 = vpop.f32.mrf.mxu0  ;;  %v2167_v30 = vpop.f32.mrf.mxu2 }
 0x1ac   : > { %v2345_v51 = vadd.f32 %v2344_v44, %v2330_v28  ;;  %v2168_v52 = vadd.f32 %v2167_v30, %v2119_v49 }
 0x1ad   : > { %v2216_v53 = vpop.f32.mrf.mxu3  ;;  %v2120_v34 = vpop.f32.mrf.mxu1 }
 0x1ae   : > { %v2217_v23 = vadd.f32 %v2216_v53, %v2168_v52  ;;  %v2121_v41 = vadd.f32 %v2120_v34, %v3916_v56 }
 0x1b0   : > { %v2266_v54 = vadd.f32 %v2265_v55, %v2217_v23 }
 0x1b2   : > { %2290 = vst [vmem:[%s3414_s4 + $0x50] sm:$0xff] %v2266_v54  ;;  %v2306_v1 = vadd.f32 %v2305_v48, %v2266_v54  ;;  %v2331_v59 = vmul.f32 %v2266_v54, %v2266_v54 }
 0x1b3   : > { %v2267_v58 = vpop.f32.mrf.mxu0  ;;  %v2169_v42 = vpop.f32.mrf.mxu2 }
 0x1b4   : > { %v2346_v60 = vadd.f32 %v2345_v51, %v2331_v59  ;;  %v2170_v61 = vadd.f32 %v2169_v42, %v2121_v41  ;;  %v2296_v59 = vld [vmem:[%s4012_s3] sm:$0x1] }
 0x1b5   : > { %v2218_v62 = vpop.f32.mrf.mxu3  ;;  %v2123_v27 = vpop.f32.mrf.mxu1 }
 0x1b6   : > { %v2219_v63 = vadd.f32 %v2218_v62, %v2170_v61  ;;  %v2124_v4 = vadd.f32 %v2123_v27, %v3919_v2 }
 0x1b8   : > { %v2268_v0 = vadd.f32 %v2267_v58, %v2219_v63 }
 0x1ba   : > { %2291 = vst [vmem:[%s3414_s4 + $0x58] sm:$0xff] %v2268_v0  ;;  %v2307_v57 = vadd.f32 %v2306_v1, %v2268_v0  ;;  %v2332_v26 = vmul.f32 %v2268_v0, %v2268_v0 }
 0x1bb   : > { %v2270_v3 = vpop.f32.mrf.mxu0  ;;  %v2172_v5 = vpop.f32.mrf.mxu2 }
 0x1bc   : > { %v2347_v6 = vadd.f32 %v2346_v60, %v2332_v26  ;;  %v2173_v7 = vadd.f32 %v2172_v5, %v2124_v4  ;;  %v2320_v60 = vld [vmem:[%s4012_s3 + $0x1] sm:$0x1] }
 0x1bd   : > { %v2221_v12 = vpop.f32.mrf.mxu3  ;;  %v2125_v56 = vpop.f32.mrf.mxu1 }
 0x1be   : > { %v2222_v14 = vadd.f32 %v2221_v12, %v2173_v7  ;;  %v2126_v16 = vadd.f32 %v2125_v56, %v3922_v32 }
 0x1c0   : > { %v2271_v15 = vadd.f32 %v2270_v3, %v2222_v14 }
 0x1c2   : > { %2292 = vst [vmem:[%s3414_s4 + $0x60] sm:$0xff] %v2271_v15  ;;  %v2308_v17 = vadd.f32 %v2307_v57, %v2271_v15  ;;  %v2333_v11 = vmul.f32 %v2271_v15, %v2271_v15 }
 0x1c3   : > { %v2272_v50 = vpop.f32.mrf.mxu0  ;;  %v2174_v9 = vpop.f32.mrf.mxu2 }
 0x1c4   : > { %v2348_v20 = vadd.f32 %v2347_v6, %v2333_v11  ;;  %v2175_v18 = vadd.f32 %v2174_v9, %v2126_v16 }
 0x1c5   : > { %v2223_v21 = vpop.f32.mrf.mxu3  ;;  %v2128_v2 = vpop.f32.mrf.mxu1 }
 0x1c6   : > { %v2224_v36 = vadd.f32 %v2223_v21, %v2175_v18  ;;  %v2129_v24 = vadd.f32 %v2128_v2, %v3925_v8 }
 0x1c8   : > { %v2273_v29 = vadd.f32 %v2272_v50, %v2224_v36 }
 0x1ca   : > { %2293 = vst [vmem:[%s3414_s4 + $0x68] sm:$0xff] %v2273_v29  ;;  %v2309_v33 = vadd.f32 %v2308_v17, %v2273_v29  ;;  %v2334_v10 = vmul.f32 %v2273_v29, %v2273_v29 }
 0x1cb   : > { %v2177_v25 = vpop.f32.mrf.mxu2  ;;  %v2275_v32 = vpop.f32.mrf.mxu0 }
 0x1cc   : > { %v2349_v13 = vadd.f32 %v2348_v20, %v2334_v10  ;;  %v2178_v35 = vadd.f32 %v2177_v25, %v2129_v24 }
 0x1cd   : > { %v2226_v19 = vpop.f32.mrf.mxu3  ;;  %v2130_v38 = vpop.f32.mrf.mxu1 }
 0x1ce   : > { %v2227_v37 = vadd.f32 %v2226_v19, %v2178_v35  ;;  %v2131_v45 = vadd.f32 %v2130_v38, %v3928_v39 }
 0x1d0   : > { %v2276_v40 = vadd.f32 %v2275_v32, %v2227_v37 }
 0x1d2   : > { %2294 = vst [vmem:[%s3414_s4 + $0x70] sm:$0xff] %v2276_v40  ;;  %v2310_v43 = vadd.f32 %v2309_v33, %v2276_v40  ;;  %v2335_v44 = vmul.f32 %v2276_v40, %v2276_v40 }
 0x1d3   : > { %v2179_v22 = vpop.f32.mrf.mxu2  ;;  %v2277_v8 = vpop.f32.mrf.mxu0 }
 0x1d4   : > { %v2350_v46 = vadd.f32 %v2349_v13, %v2335_v44  ;;  %v2180_v31 = vadd.f32 %v2179_v22, %v2131_v45 }
 0x1d5   : > { %v2228_v47 = vpop.f32.mrf.mxu3 }
 0x1d6   : > { %v2229_v55 = vadd.f32 %v2228_v47, %v2180_v31 }
 0x1d8   : > { %v2278_v48 = vadd.f32 %v2277_v8, %v2229_v55 }
 0x1da   : > { %2295 = vst [vmem:[%s3414_s4 + $0x78] sm:$0xff] %v2278_v48  ;;  %v2311_v28 = vadd.f32 %v2310_v43, %v2278_v48  ;;  %v2336_v49 = vmul.f32 %v2278_v48, %v2278_v48 }
 0x1dc   : > { %v2312_v30 = vrot.slane %v2311_v28, 4  ;;  %v2351_v51 = vadd.f32 %v2350_v46, %v2336_v49 }
 0x1de   : > { %v2313_v52 = vadd.f32 %v2312_v30, %v2311_v28  ;;  %v2352_v53 = vrot.slane %v2351_v51, 4 }
 0x1e0   : > { %v2314_v34 = vrot.slane %v2313_v52, 2  ;;  %v2353_v23 = vadd.f32 %v2352_v53, %v2351_v51 }
 0x1e2   : > { %v2315_v54 = vadd.f32 %v2314_v34, %v2313_v52  ;;  %v2354_v58 = vrot.slane %v2353_v23, 2 }
 0x1e4   : > { %v2316_v1 = vrot.slane %v2315_v54, 1  ;;  %v2355_v39 = vadd.f32 %v2354_v58, %v2353_v23 }
 0x1e6   : > { %v2317_v41 = vadd.f32 %v2316_v1, %v2315_v54  ;;  %v2356_v42 = vrot.slane %v2355_v39, 1 }
 0x1e8   : > { %v2318_v61 = vadd.f32 %v2317_v41, %v2296_v59  ;;  %v2357_v62 = vadd.f32 %v2356_v42, %v2355_v39  ;;  %2365 = sbr.rel (%p3937_p12) target bundleno = 537 (0x219), region = 36 }
 0x1ea   : > { %2319 = vst [vmem:[%s4012_s3] sm:$0x1] %v2318_v61  ;;  %v2358_v27 = vadd.f32 %v2357_v62, %v2320_v60 }
 0x1ec   : > { %2359 = vst [vmem:[%s4012_s3 + $0x1] sm:$0x1] %v2358_v27 }
 0x1ed   : > { %v3348_v63 = vmov 512.0  }
 0x1ee   : > { %3303 = vrcp.f32 %v3348_v63 }
 0x1f1   : > { %v2366_v4 = vld [vmem:[%s4012_s3] sm:$0x1] }
 0x1f3   : > { %v2375_v6 = vld [vmem:[%s4012_s3 + $0x1] sm:$0x1] }
 0x1f4   : > { %v3304_v0 = vpop.eup %3303 }
 0x1f5   : > { %v2368_v3 = vmul.f32 512.0, %v3304_v0  ;;  %vm2372_vm6 = vweird.f32 %v3304_v0 }
 0x1f7   : > { %v2369_v57 = vsub.f32 1.0, %v2368_v3 }
 0x1f9   : > { %v2370_v26 = vmul.f32 %v3304_v0, %v2369_v57 }
 0x1fb   : > { %v2371_v5 = vadd.f32 %v3304_v0, %v2370_v26 }
 0x1fd   : > { %v2373_v7 = vsel %vm2372_vm6, %v3304_v0, %v2371_v5 }
 0x1fe   : > { %v2374_v12 = vmul.f32 %v2373_v7, %v2366_v4  ;;  %v2376_v56 = vmul.f32 %v2375_v6, %v2373_v7 }
 0x200   : > { %v2377_v14 = vmul.f32 %v2374_v12, %v2374_v12  ;;  %2379 = vst [vmem:[%s4012_s3] sm:$0x1] %v2374_v12 }
 0x202   : > { %v2378_v15 = vsub.f32 %v2376_v56, %v2377_v14 }
 0x204   : > { %v2380_v17 = vadd.f32 1e-05, %v2378_v15 }
 0x206   : > { %3305 = vrsqrt.f32 %v2380_v17  ;;  %vm2387_vm7 = vweird.f32 %v2380_v17 }
 0x20c   : > { %v3306_v11 = vpop.eup %3305 }
 0x20d   : > { %v2382_v16 = vmul.f32 %v3306_v11, %v2380_v17  ;;  %vm2388_vm8 = vweird.f32 %v3306_v11 }
 0x20e   : > { %vm2389_vm9 = vmor %vm2387_vm7, %vm2388_vm8 }
 0x20f   : > { %v2383_v50 = vmul.f32 %v3306_v11, %v2382_v16 }
 0x211   : > { %v2384_v9 = vmul.f32 0.5, %v2383_v50 }
 0x213   : > { %v2385_v20 = vsub.f32 1.5, %v2384_v9 }
 0x215   : > { %v2386_v18 = vmul.f32 %v3306_v11, %v2385_v20 }
 0x217   : > { %v2390_v21 = vsel %vm2389_vm9, %v3306_v11, %v2386_v18 }
 0x218   : > { %2391 = vst [vmem:[%s4012_s3 + $0x1] sm:$0x1] %v2390_v21 }
 0x219 PF: > { %s14_s16 = sadd.s32 1, %s3345_s16   ;;  %s4018_s12 = smov %s3337_s14 }
 0x21a   : > { %p11_p13 = scmp.ge.s32.totalorder %s14_s16, 6   ;;  %s4019_s13 = smov %s3341_s15 }
 0x21b   : > { %s4020_s14 = smov %s4023_s17  ;;  %s4021_s15 = smov %s4027_s18 }
 0x21c   :  { %13 = sbr.rel (!%p11_p13) target bundleno = 3 (0x3), region = 75 }

// kernel: resnet_block_forward.4
= control target key start
LH: loop header
LB: loop body
LE: loop exit
PB: predicated region body
PF: predicated region fallthrough
CT: control target
= control target key end

     0   :  { %s6908_s21 = smov 0   ;;  %s8705_s0 = inlined_call_operand.vmem [shape: f32[2,16,16,128], index: 0, kind: input, shape index: {}]   ;;  %s8706_s1 = inlined_call_operand.vmem [shape: f32[2,128], index: 1, kind: input, shape index: {}]   ;;  %s8707_s2 = inlined_call_operand.vmem [shape: f32[1,128], index: 2, kind: input, shape index: {}]   ;;  %s8708_s3 = inlined_call_operand.vmem [shape: f32[1,128], index: 3, kind: input, shape index: {}]   ;;  %s8709_s4 = inlined_call_operand.vmem [shape: bf16[1152,128], index: 4, kind: input, shape index: {}]   ;;  %s8710_s5 = inlined_call_operand.vmem [shape: f32[2,16,16,128], index: 5, kind: output, shape index: {0}]   ;;  %s8711_s6 = inlined_call_operand.vmem [shape: f32[2,128], index: 6, kind: output, shape index: {1}]  }
   0x1 LB: > { %s6914_s22 = sadd.s32 4294967295, %s6868_s21   ;;  %p5328_p0 = scmp.ge.s32.totalorder %s6868_s21, 1  ;;  %s6868_s21 = sphi %s6908_s21, %s17_s21  }
   0x2   : > { %p210_p1 = scmp.lt.s32.totalorder %s6868_s21, 3 }
   0x4   : > { %p211_p2 = pnand %p5328_p0, %p210_p1 }
   0x6   : > { %214 = sbr.rel (%p211_p2) target bundleno = 1019 (0x3fb), region = 40 }
   0xb   : > { %p240_p3 = scmp.lt.s32.totalorder %s6914_s22, 1  ;;  %p5333_p4 = scmp.ne.s32.totalorder %s6914_s22, 0 }
   0xd   : > { %s241_s23 = scalar_select %p240_p3, %s6914_s22, 1 }
   0xe   : > { %254 = sbr.rel (%p5333_p4) target bundleno = 75 (0x4b), region = 44 }
   0xf   : > { %s6541_s24 = sshll.u32 %s241_s23, 8 }
  0x10   : > { %s6923_s27 = scalar_lea.vmem %s8705_s0, %s6541_s24  ;;  %s6928_s30 = scalar_lea.vmem %s8710_s5, %s6541_s24 }
  0x13   : > { %v6870_v0 = vmov 0.0   ;;  %v6871_v1 = vmov 0  }
  0x14   : > { %255 = vst [vmem:[%s8711_s6] sm:$0x3] %v6870_v0 }
  0x15   : > { %256 = vst [vmem:[#allocation2] sm:$0xf] %v6871_v1 }
  0x16   : > { %257 = vst [vmem:[#allocation2 + $0x4] sm:$0xf] %v6871_v1 }
  0x17   : > { %258 = vst [vmem:[#allocation2 + $0x8] sm:$0x1] %v6871_v1 }
  0x18   : > { %259 = vst [vmem:[#allocation2 + $0xc] sm:$0xf] %v6871_v1 }
  0x19   : > { %260 = vst [vmem:[#allocation2 + $0x10] sm:$0xf] %v6871_v1 }
  0x1a   : > { %261 = vst [vmem:[#allocation2 + $0x14] sm:$0x1] %v6871_v1 }
  0x1b   : > { %262 = vst [vmem:[#allocation2 + $0x18] sm:$0xf] %v6871_v1 }
  0x1c   : > { %263 = vst [vmem:[#allocation2 + $0x1c] sm:$0xf] %v6871_v1 }
  0x1d   : > { %264 = vst [vmem:[#allocation2 + $0x20] sm:$0x1] %v6871_v1 }
  0x1e   : > { %265 = vst [vmem:[#allocation2 + $0x24] sm:$0xf] %v6871_v1 }
  0x1f   : > { %266 = vst [vmem:[#allocation2 + $0x28] sm:$0xf] %v6871_v1 }
  0x20   : > { %267 = vst [vmem:[#allocation2 + $0x2c] sm:$0x1] %v6871_v1 }
  0x21   : > { %268 = vst [vmem:[#allocation2 + $0x30] sm:$0xf] %v6871_v1 }
  0x22   : > { %269 = vst [vmem:[#allocation2 + $0x34] sm:$0xf] %v6871_v1 }
  0x23   : > { %270 = vst [vmem:[#allocation2 + $0x38] sm:$0x1] %v6871_v1 }
  0x24   : > { %271 = vst [vmem:[#allocation2 + $0x3c] sm:$0xf] %v6871_v1 }
  0x25   : > { %272 = vst [vmem:[#allocation2 + $0x40] sm:$0xf] %v6871_v1 }
  0x26   : > { %273 = vst [vmem:[#allocation2 + $0x44] sm:$0x1] %v6871_v1 }
  0x27   : > { %274 = vst [vmem:[#allocation2 + $0x48] sm:$0xf] %v6871_v1 }
  0x28   : > { %275 = vst [vmem:[#allocation2 + $0x4c] sm:$0xf] %v6871_v1 }
  0x29   : > { %276 = vst [vmem:[#allocation2 + $0x50] sm:$0x1] %v6871_v1 }
  0x2a   : > { %277 = vst [vmem:[#allocation2 + $0x54] sm:$0xf] %v6871_v1 }
  0x2b   : > { %278 = vst [vmem:[#allocation2 + $0x58] sm:$0xf] %v6871_v1 }
  0x2c   : > { %279 = vst [vmem:[#allocation2 + $0x5c] sm:$0x1] %v6871_v1 }
  0x2d   : > { %280 = vst [vmem:[#allocation2 + $0x60] sm:$0xf] %v6871_v1 }
  0x2e   : > { %281 = vst [vmem:[#allocation2 + $0x64] sm:$0xf] %v6871_v1 }
  0x2f   : > { %282 = vst [vmem:[#allocation2 + $0x68] sm:$0x1] %v6871_v1 }
  0x30   : > { %283 = vst [vmem:[#allocation2 + $0x6c] sm:$0xf] %v6871_v1 }
  0x31   : > { %284 = vst [vmem:[#allocation2 + $0x70] sm:$0xf] %v6871_v1 }
  0x32   : > { %285 = vst [vmem:[#allocation2 + $0x74] sm:$0x1] %v6871_v1 }
  0x33   : > { %286 = vst [vmem:[#allocation2 + $0x78] sm:$0xf] %v6871_v1 }
  0x34   : > { %287 = vst [vmem:[#allocation2 + $0x7c] sm:$0xf] %v6871_v1 }
  0x35   : > { %288 = vst [vmem:[#allocation2 + $0x80] sm:$0x1] %v6871_v1 }
  0x36   : > { %289 = vst [vmem:[#allocation2 + $0x84] sm:$0xf] %v6871_v1 }
  0x37   : > { %290 = vst [vmem:[#allocation2 + $0x88] sm:$0xf] %v6871_v1 }
  0x38   : > { %291 = vst [vmem:[#allocation2 + $0x8c] sm:$0x1] %v6871_v1 }
  0x39   : > { %292 = vst [vmem:[#allocation2 + $0x90] sm:$0xf] %v6871_v1 }
  0x3a   : > { %293 = vst [vmem:[#allocation2 + $0x94] sm:$0xf] %v6871_v1 }
  0x3b   : > { %294 = vst [vmem:[#allocation2 + $0x98] sm:$0x1] %v6871_v1 }
  0x3c   : > { %295 = vst [vmem:[#allocation2 + $0x9c] sm:$0xf] %v6871_v1 }
  0x3d   : > { %296 = vst [vmem:[#allocation2 + $0xa0] sm:$0xf] %v6871_v1 }
  0x3e   : > { %297 = vst [vmem:[#allocation2 + $0xa4] sm:$0x1] %v6871_v1 }
  0x3f   : > { %298 = vst [vmem:[#allocation2 + $0xa8] sm:$0xf] %v6871_v1 }
  0x40   : > { %299 = vst [vmem:[#allocation2 + $0xac] sm:$0xf] %v6871_v1 }
  0x41   : > { %300 = vst [vmem:[#allocation2 + $0xb0] sm:$0x1] %v6871_v1 }
  0x42   : > { %301 = vst [vmem:[#allocation2 + $0xb4] sm:$0xf] %v6871_v1 }
  0x43   : > { %302 = vst [vmem:[#allocation2 + $0xb8] sm:$0xf] %v6871_v1 }
  0x44   : > { %303 = vst [vmem:[#allocation2 + $0xbc] sm:$0x1] %v6871_v1 }
  0x45   : > { %304 = vst [vmem:[#allocation2 + $0xc0] sm:$0xf] %v6871_v1 }
  0x46   : > { %305 = vst [vmem:[#allocation2 + $0xc4] sm:$0xf] %v6871_v1 }
  0x47   : > { %306 = vst [vmem:[#allocation2 + $0xc8] sm:$0x1] %v6871_v1 }
  0x48   : > { %307 = vst [vmem:[#allocation2 + $0xcc] sm:$0xf] %v6871_v1 }
  0x49   : > { %308 = vst [vmem:[#allocation2 + $0xd0] sm:$0xf] %v6871_v1 }
  0x4a   : > { %309 = vst [vmem:[#allocation2 + $0xd4] sm:$0x1] %v6871_v1 }
  0x4b PF: > { %v6622_v2 = vld [vmem:[%s8709_s4 + $0x38] sm:$0xff]  ;;  %v6621_v4 = vld [vmem:[%s8709_s4 + $0x30] sm:$0xff]  ;;  %v310_v6 = vld [vmem:[%s8706_s1 + $0x1] sm:$0x1]  ;;  %vm404_vm0 = vsmask.f32 256 }
  0x4c   : > { %v6630_v3 = vld [vmem:[%s8709_s4 + $0x78] sm:$0xff]  ;;  %6831 = vmatpush.bf16.msra.mxu2 %v6622_v2  ;;  %2561 = vmatpush.bf16.msra.mxu0 %v6622_v2  ;;  %v6629_v5 = vld [vmem:[%s8709_s4 + $0x70] sm:$0xff]  ;;  %v311_v7 = vld [vmem:[%s8707_s2] sm:$0x1]  ;;  %vm405_vm1 = vsmask.f32 4368 }
  0x4d   : > { %2610 = vmatpush.bf16.msra.mxu1 %v6630_v3  ;;  %6839 = vmatpush.bf16.msra.mxu3 %v6630_v3  ;;  %v314_v8 = vld [vmem:[%s8706_s1] sm:$0x1]  ;;  %v6620_v9 = vld [vmem:[%s8709_s4 + $0x28] sm:$0xff]  ;;  %v312_v11 = vmul.f32 %v311_v7, %v310_v6  ;;  %v324_v14 = vld [vmem:[%s6923_s27 + $0x30] sm:$0xff]  ;;  %vm1025_vm2 = vsmask.f32 3328 }
  0x4e   : > { %v6628_v10 = vld [vmem:[%s8709_s4 + $0x68] sm:$0xff]  ;;  %v315_v12 = vmul.f32 %v314_v8, %v311_v7  ;;  %v313_v13 = vld [vmem:[%s8708_s3] sm:$0x1]  ;;  %v325_v15 = vld [vmem:[%s6923_s27 + $0x38] sm:$0xff]  ;;  %vm568_vm3 = vcmask 1043456   ;;  %vm575_vm5 = vcmask 1040384  }
  0x4f   : > { %v6966_v17 = vperm.slane %v312_v11, 0  ;;  %v5340_v18 = vld [vmem:[%s6923_s27 + $0xb0] sm:$0xff]  ;;  %v5341_v19 = vld [vmem:[%s6923_s27 + $0xb8] sm:$0xff]  ;;  %v6619_v20 = vld [vmem:[%s8709_s4 + $0x20] sm:$0xff]  ;;  %vm569_vm4 = vsmask.f32 7938 }
  0x50   : > { %6832 = vmatpush.bf16.msra.mxu2 %v6621_v4  ;;  %2562 = vmatpush.bf16.msra.mxu0 %v6621_v4  ;;  %v316_v16 = vmul.f32 %v315_v12, %v310_v6  ;;  %v995_v21 = vld [vmem:[#allocation2] sm:$0xf]  ;;  %v6975_v25 = vld [vmem:[#allocation2 + $0x4] sm:$0xf]  ;;  %v327_v27 = vld [vmem:[%s6923_s27 + $0x48] sm:$0xff]  ;;  %vm1390_vm11 = vcmask 1042432  }
  0x51   : > { %2611 = vmatpush.bf16.msra.mxu1 %v6629_v5  ;;  %6840 = vmatpush.bf16.msra.mxu3 %v6629_v5  ;;  %v343_v23 = vmul.f32 %v6966_v17, %v324_v14  ;;  %v344_v24 = vmul.f32 %v6966_v17, %v325_v15  ;;  %v326_v26 = vld [vmem:[%s6923_s27 + $0x40] sm:$0xff]  ;;  %v652_v29 = vmul.f32 %v5340_v18, %v6966_v17  ;;  %v6984_v31 = vld [vmem:[#allocation2 + $0x8] sm:$0x1]  ;;  %v1029_v32 = vshrl.u32 %v995_v21, 16  ;;  %v6618_v41 = vld [vmem:[%s8709_s4 + $0x18] sm:$0xff]  ;;  %p6538_p5 = scmp.ne.s32.totalorder %s6914_s22, 1 }
  0x52   : > { %v317_v22 = vsub.f32 %v313_v13, %v316_v16  ;;  %v6627_v28 = vld [vmem:[%s8709_s4 + $0x60] sm:$0xff]  ;;  %v653_v30 = vmul.f32 %v5341_v19, %v6966_v17  ;;  %v1032_v36 = vshll.u32 %v995_v21, 16  ;;  %v1038_v38 = vshll.u32 %v6975_v25, 16  ;;  %v6626_v45 = vld [vmem:[%s8709_s4 + $0x58] sm:$0xff]  ;;  %v332_v47 = vld [vmem:[%s6923_s27 + $0x70] sm:$0xff] }
  0x53   : > { %v927_v34 = vld [vmem:[#allocation2] sm:$0xf]  ;;  %v928_v35 = vld [vmem:[#allocation2 + $0x4] sm:$0xf]  ;;  %v1031_v37 = vrot.slane %v1029_v32, 4  ;;  %v345_v39 = vmul.f32 %v6966_v17, %v326_v26  ;;  %v6991_v40 = vmul.f32 %v6966_v17, %v327_v27  ;;  %v333_v48 = vld [vmem:[%s6923_s27 + $0x78] sm:$0xff]  ;;  %v351_v55 = vmul.f32 %v6966_v17, %v332_v47 }
  0x54   : > { %6833 = vmatpush.bf16.msra.mxu2 %v6620_v9  ;;  %2563 = vmatpush.bf16.msra.mxu0 %v6620_v9  ;;  %v6986_v33 = vperm.slane %v317_v22, 0  ;;  %947 = vst [vmem:[#allocation3] sm:$0xf] %v927_v34  ;;  %vm1026_vm6 = vsmask.f32 7440  ;;  %v1034_v49 = vrot.slane %v1032_v36, 5  ;;  %v352_v57 = vmul.f32 %v6966_v17, %v333_v48  ;;  %vm7033_vm8 = vmor %vm404_vm0, %vm405_vm1 }
  0x55   : > { %2612 = vmatpush.bf16.msra.mxu1 %v6628_v10  ;;  %6841 = vmatpush.bf16.msra.mxu3 %v6628_v10  ;;  %948 = vst [vmem:[#allocation3 + $0x24] sm:$0xf] %v928_v35  ;;  %v1042_v50 = vshrl.u32 %v6975_v25, 16  ;;  %v1048_v51 = vshll.u32 %v6984_v31, 16  ;;  %v6617_v60 = vld [vmem:[%s8709_s4 + $0x10] sm:$0xff]  ;;  %v7015_v0 = vrot.slane %v1038_v38, 5  ;;  %vm7024_vm7 = vmor %vm1025_vm2, %vm1026_vm6 }
  0x56   : > { %v362_v42 = vadd.f32 %v6986_v33, %v343_v23  ;;  %v363_v43 = vadd.f32 %v6986_v33, %v344_v24  ;;  %v668_v44 = vadd.f32 %v652_v29, %v6986_v33  ;;  %v669_v46 = vadd.f32 %v653_v30, %v6986_v33  ;;  %v6625_v1 = vld [vmem:[%s8709_s4 + $0x50] sm:$0xff]  ;;  %v6616_v15 = vld [vmem:[%s8709_s4 + $0x8] sm:$0xff]  ;;  %vm7039_vm9 = vmand %vm568_vm3, %vm569_vm4 }
  0x57   : > { %v1035_v58 = vor.u32 %v1034_v49, %v1031_v37  ;;  %v7010_v59 = vadd.f32 %v6986_v33, %v345_v39  ;;  %v370_v3 = vadd.f32 %v6986_v33, %v351_v55  ;;  %v371_v4 = vadd.f32 %v6986_v33, %v352_v57  ;;  %v594_v23 = vld [vmem:[#allocation2 + $0x30] sm:$0xf]  ;;  %v6624_v26 = vld [vmem:[%s8709_s4 + $0x48] sm:$0xff]  ;;  %vm7051_vm10 = vmand %vm575_vm5, %vm404_vm0 }
  0x58   : > { %6834 = vmatpush.bf16.msra.mxu2 %v6619_v20  ;;  %2564 = vmatpush.bf16.msra.mxu0 %v6619_v20  ;;  %v378_v52 = vmax.f32 %v362_v42, 0.0  ;;  %v379_v53 = vmax.f32 %v363_v43, 0.0  ;;  %v684_v54 = vmax.f32 %v668_v44, 0.0  ;;  %v685_v56 = vmax.f32 %v669_v46, 0.0  ;;  %v892_v35 = vld [vmem:[#allocation2 + $0x90] sm:$0xf] }
  0x59   : > { %2613 = vmatpush.bf16.msra.mxu1 %v6627_v28  ;;  %6842 = vmatpush.bf16.msra.mxu3 %v6627_v28  ;;  %v1036_v5 = vrot.slane %v1035_v58, 4  ;;  %v386_v20 = vmax.f32 %v370_v3, 0.0  ;;  %v1044_v21 = vrot.slane %v1042_v50, 4  ;;  %v387_v27 = vmax.f32 %v371_v4, 0.0  ;;  %v598_v42 = vld [vmem:[#allocation2 + $0x38] sm:$0x1] }
  0x5a   : > { %v394_v61 = vpack.c.bf16 %v378_v52, %v378_v52  ;;  %v395_v62 = vpack.c.bf16 %v379_v53, %v379_v53  ;;  %v700_v63 = vpack.c.bf16 %v684_v54, %v684_v54  ;;  %v701_v2 = vpack.c.bf16 %v685_v56, %v685_v56  ;;  %v6615_v43 = vld [vmem:[%s8709_s4] sm:$0xff]  ;;  %v6638_v54 = vld [vmem:[%s8709_s4 + $0xb8] sm:$0xff] }
  0x5b   : > { %v1041_v28 = vsel %vm7024_vm7, %v1036_v5, %v7015_v0  ;;  %v402_v46 = vpack.c.bf16 %v386_v20, %v386_v20  ;;  %v5362_v47 = vld [vmem:[#allocation3] sm:$0xf]  ;;  %v380_v49 = vmax.f32 %v7010_v59, 0.0  ;;  %v6623_v53 = vld [vmem:[%s8709_s4 + $0x40] sm:$0xff]  ;;  %v403_v55 = vpack.c.bf16 %v387_v27, %v387_v27 }
  0x5c   : > { %6835 = vmatpush.bf16.msra.mxu2 %v6618_v41  ;;  %2565 = vmatpush.bf16.msra.mxu0 %v6618_v41  ;;  %v459_v6 = vshrl.u32 %v394_v61, 16  ;;  %v462_v7 = vshll.u32 %v394_v61, 16  ;;  %v467_v8 = vshrl.u32 %v395_v62, 16  ;;  %v470_v9 = vshll.u32 %v395_v62, 16  ;;  %1236 = vst [vmem:[#allocation3 + $0x4] sm:$0xf] %v1041_v28 }
  0x5d   : > { %2614 = vmatpush.bf16.msra.mxu1 %v6626_v45  ;;  %6843 = vmatpush.bf16.msra.mxu3 %v6626_v45  ;;  %v762_v11 = vshrl.u32 %v700_v63, 16  ;;  %v765_v12 = vshll.u32 %v700_v63, 16  ;;  %v770_v13 = vshrl.u32 %v701_v2, 16  ;;  %v773_v14 = vshll.u32 %v701_v2, 16  ;;  %v6547_v48 = vld [vmem:[#allocation3 + $0x20] sm:$0xf0] }
  0x5e   : > { %v461_v18 = vrot.slane %v459_v6, 7  ;;  %v469_v19 = vrot.slane %v467_v8, 7  ;;  %v527_v56 = vshrl.u32 %v402_v46, 16  ;;  %v1045_v57 = vor.u32 %v1044_v21, %v7015_v0  ;;  %v6646_v2 = vld [vmem:[%s8709_s4 + $0xf8] sm:$0xff]  ;;  %v318_v28 = vld [vmem:[%s6923_s27] sm:$0xff] }
  0x5f   : > { %v764_v24 = vrot.slane %v762_v11, 7  ;;  %v772_v25 = vrot.slane %v770_v13, 7  ;;  %v1050_v58 = vrot.slane %v1048_v51, 5  ;;  %v530_v61 = vshll.u32 %v402_v46, 16  ;;  %v5343_v11 = vld [vmem:[%s6923_s27 + $0xc8] sm:$0xff]  ;;  %v6759_v16 = vld [vmem:[%s8709_s4] sm:$0xff] }
  0x60   : > { %6836 = vmatpush.bf16.msra.mxu2 %v6617_v60  ;;  %2566 = vmatpush.bf16.msra.mxu0 %v6617_v60  ;;  %v464_v29 = vor.u32 %v462_v7, %v461_v18  ;;  %v465_v30 = vrot.slane %v461_v18, 4  ;;  %v472_v32 = vor.u32 %v470_v9, %v469_v19  ;;  %v474_v34 = vrot.slane %v469_v19, 4  ;;  %v896_v60 = vld [vmem:[#allocation2 + $0x98] sm:$0x1]  ;;  %v622_v7 = vld [vmem:[#allocation2 + $0x60] sm:$0xf] }
  0x61   : > { %2615 = vmatpush.bf16.msra.mxu1 %v6625_v1  ;;  %6844 = vmatpush.bf16.msra.mxu3 %v6625_v1  ;;  %v767_v36 = vor.u32 %v765_v12, %v764_v24  ;;  %v768_v37 = vrot.slane %v764_v24, 4  ;;  %v775_v38 = vor.u32 %v773_v14, %v772_v25  ;;  %v777_v39 = vrot.slane %v772_v25, 4  ;;  %v5342_v9 = vld [vmem:[%s6923_s27 + $0xc0] sm:$0xff] }
  0x62   : > { %v473_v44 = vsel %vm7033_vm8, %v465_v30, %v472_v32  ;;  %v595_v45 = vsel %vm7039_vm9, %v464_v29, %v594_v23  ;;  %v599_v59 = vsel %vm7051_vm10, %v474_v34, %v598_v42  ;;  %v535_v62 = vshrl.u32 %v403_v55, 16  ;;  %v626_v29 = vld [vmem:[#allocation2 + $0x68] sm:$0x1] }
  0x63   : > { %596 = vst [vmem:[#allocation2 + $0x30] sm:$0xf] %v595_v45  ;;  %v776_v50 = vsel %vm7033_vm8, %v768_v37, %v775_v38  ;;  %v893_v52 = vsel %vm7039_vm9, %v767_v36, %v892_v35  ;;  %v5363_v63 = vor.u32 %v6547_v48, %v5362_v47  ;;  %v897_v1 = vsel %vm7051_vm10, %v777_v39, %v896_v60  ;;  %v6543_v24 = vld [vmem:[#allocation3 + $0x4] sm:$0xf] }
  0x64   : > { %6837 = vmatpush.bf16.msra.mxu2 %v6616_v15  ;;  %2567 = vmatpush.bf16.msra.mxu0 %v6616_v15  ;;  %597 = vst [vmem:[#allocation2 + $0x34] sm:$0xf] %v473_v44  ;;  %v529_v31 = vrot.slane %v527_v56, 7  ;;  %v1046_v51 = vrot.slane %v1045_v57, 4  ;;  %v365_v0 = vadd.f32 %v6986_v33, %v6991_v40  ;;  %v7085_v3 = vpack.c.bf16 %v380_v49, %v380_v49  ;;  %v6637_v40 = vld [vmem:[%s8709_s4 + $0xb0] sm:$0xff]  ;;  %v319_v49 = vld [vmem:[%s6923_s27 + $0x8] sm:$0xff] }
  0x65   : > { %2616 = vmatpush.bf16.msra.mxu1 %v6624_v26  ;;  %6845 = vmatpush.bf16.msra.mxu3 %v6624_v26  ;;  %894 = vst [vmem:[#allocation2 + $0x90] sm:$0xf] %v893_v52  ;;  %v7087_v4 = vrot.slane %v535_v62, 7  ;;  %v538_v5 = vshll.u32 %v403_v55, 16  ;;  %v654_v27 = vmul.f32 %v5342_v9, %v6966_v17  ;;  %v337_v56 = vmul.f32 %v6966_v17, %v318_v28 }
  0x66   : > { %895 = vst [vmem:[#allocation2 + $0x94] sm:$0xf] %v776_v50  ;;  %v1051_v6 = vsel %vm7024_vm7, %v1046_v51, %v1050_v58  ;;  %v476_v8 = vshrl.u32 %v7085_v3, 16  ;;  %v532_v13 = vor.u32 %v530_v61, %v529_v31  ;;  %v533_v14 = vrot.slane %v529_v31, 4 }
  0x67   : > { %600 = vst [vmem:[#allocation2 + $0x38] sm:$0x1] %v599_v59  ;;  %v381_v18 = vmax.f32 %v365_v0, 0.0  ;;  %v540_v20 = vor.u32 %v538_v5, %v7087_v4  ;;  %v542_v23 = vrot.slane %v7087_v4, 4  ;;  %v479_v35 = vshll.u32 %v7085_v3, 16 }
  0x68   : > { %6838 = vmatpush.bf16.msra.mxu2 %v6615_v43  ;;  %2568 = vmatpush.bf16.msra.mxu0 %v6615_v43  ;;  %898 = vst [vmem:[#allocation2 + $0x98] sm:$0x1] %v897_v1  ;;  %v7101_v34 = vrot.slane %v476_v8, 7  ;;  %v623_v37 = vsel %vm7039_vm9, %v532_v13, %v622_v7  ;;  %v655_v43 = vmul.f32 %v5343_v11, %v6966_v17  ;;  %v7131_v11 = vld [vmem:[#allocation2 + $0x3c] sm:$0xf]  ;;  %vm1391_vm12 = vcmask 1046532  }
  0x69   : > { %2617 = vmatpush.bf16.msra.mxu1 %v6623_v53  ;;  %6846 = vmatpush.bf16.msra.mxu3 %v6623_v53  ;;  %1237 = vst [vmem:[#allocation3 + $0x28] sm:$0xf] %v1051_v6  ;;  %v541_v45 = vsel %vm7033_vm8, %v533_v14, %v540_v20  ;;  %v670_v55 = vadd.f32 %v654_v27, %v6986_v33  ;;  %vm7633_vm13 = vmor %vm1390_vm11, %vm1391_vm12 }
  0x6a   : > { %v935_v12 = vld [vmem:[#allocation2 + $0x30] sm:$0xf]  ;;  %624 = vst [vmem:[#allocation2 + $0x60] sm:$0xf] %v623_v37  ;;  %v671_v31 = vadd.f32 %v655_v43, %v6986_v33  ;;  %v7123_v4 = vor.u32 %v479_v35, %v7101_v34  ;;  %v338_v5 = vmul.f32 %v6966_v17, %v319_v49  ;;  %v7148_v35 = vadd.f32 %v6986_v33, %v337_v56  ;;  %v6662_v56 = vld [vmem:[%s8709_s4 + $0x178] sm:$0xff] }
  0x6b   : > { %2569 = vmatmul.bf16.vlgmr.msra.gmra.mxu0 %v5363_v63  ;;  %v1007_v15 = vld [vmem:[#allocation2 + $0x30] sm:$0xf]  ;;  %v936_v19 = vld [vmem:[#allocation2 + $0x34] sm:$0xf]  ;;  %955 = vst [vmem:[#allocation3 + $0x120] sm:$0xf] %v935_v12  ;;  %v627_v63 = vsel %vm7051_vm10, %v542_v23, %v626_v29 }
  0x6c   : > { %2659 = vmatpush.bf16.msrb.mxu2 %v6638_v54  ;;  %v1008_v21 = vld [vmem:[#allocation2 + $0x34] sm:$0xf]  ;;  %956 = vst [vmem:[#allocation3 + $0x144] sm:$0xf] %v936_v19  ;;  %v1125_v25 = vshrl.u32 %v1007_v15, 16  ;;  %v1128_v26 = vshll.u32 %v1007_v15, 16  ;;  %v7114_v54 = vpack.c.bf16 %v381_v18, %v381_v18  ;;  %v7151_v37 = vadd.f32 %v6986_v33, %v338_v5 }
  0x6d   : > { %2708 = vmatpush.bf16.msrb.mxu3 %v6646_v2  ;;  %969 = vst [vmem:[#allocation3 + $0xe4] sm:$0xf] %v935_v12  ;;  %v1134_v30 = vshll.u32 %v1008_v21, 16  ;;  %v1138_v32 = vshrl.u32 %v1008_v21, 16  ;;  %v7104_v36 = vld [vmem:[#allocation2 + $0x90] sm:$0xf]  ;;  %v602_v43 = vsel %vm7039_vm9, %v7123_v4, %v7131_v11  ;;  %2806 = vmatpush.bf16.msrb.mxu1 %v6662_v56 }
  0x6e   : > { %970 = vst [vmem:[#allocation3 + $0x108] sm:$0xf] %v936_v19  ;;  %v1009_v38 = vld [vmem:[#allocation2 + $0x38] sm:$0x1]  ;;  %v1127_v39 = vrot.slane %v1125_v25, 4  ;;  %v1130_v42 = vrot.slane %v1128_v26, 5 }
  0x6f   : > { %v7109_v44 = vld [vmem:[#allocation2 + $0x94] sm:$0xf]  ;;  %983 = vst [vmem:[#allocation3 + $0xa8] sm:$0xf] %v935_v12  ;;  %v1136_v46 = vrot.slane %v1134_v30, 5  ;;  %v1140_v47 = vrot.slane %v1138_v32, 4 }
  0x70   : > { %2660 = vmatpush.bf16.msrb.mxu2 %v6637_v40  ;;  %v1144_v48 = vshll.u32 %v1009_v38, 16  ;;  %984 = vst [vmem:[#allocation3 + $0xcc] sm:$0xf] %v936_v19  ;;  %v5364_v50 = vld [vmem:[#allocation3 + $0x24] sm:$0xf0]  ;;  %v1131_v52 = vor.u32 %v1130_v42, %v1127_v39  ;;  %v484_v15 = vshrl.u32 %v7114_v54, 16 }
  0x71   : > { %v3163_v53 = vld [vmem:[#allocation2 + $0x90] sm:$0xf]  ;;  %v5367_v57 = vor.u32 %v6543_v24, %v5364_v50  ;;  %v1141_v58 = vor.u32 %v1140_v47, %v1136_v46  ;;  %v3164_v60 = vld [vmem:[#allocation2 + $0x94] sm:$0xf]  ;;  %625 = vst [vmem:[#allocation2 + $0x64] sm:$0xf] %v541_v45 }
  0x72   : > { %v1146_v59 = vrot.slane %v1144_v48, 5  ;;  %v3278_v61 = vshrl.u32 %v3163_v53, 16  ;;  %v5506_v62 = vld [vmem:[#allocation3 + $0x120] sm:$0xf]  ;;  %v1132_v1 = vrot.slane %v1131_v52, 4  ;;  %v3281_v2 = vshll.u32 %v3163_v53, 16 }
  0x73   : > { %v6583_v51 = vld [vmem:[#allocation3 + $0x140] sm:$0xf0]  ;;  %3111 = vst [vmem:[#allocation3 + $0x120] sm:$0xf] %v7104_v36  ;;  %2618 = vmatmul.bf16.vlgmr.msra.gmra.mxu1 %v5367_v57  ;;  %v1142_v0 = vrot.slane %v1141_v58, 4  ;;  %v3287_v9 = vshll.u32 %v3164_v60, 16 }
  0x74   : > { %v3280_v3 = vrot.slane %v3278_v61, 4  ;;  %v5507_v6 = vor.u32 %v6583_v51, %v5506_v62  ;;  %3112 = vst [vmem:[#allocation3 + $0x144] sm:$0xf] %v7109_v44  ;;  %v7129_v40 = vsel %vm7024_vm7, %v1132_v1, %v1136_v46  ;;  %v3165_v7 = vld [vmem:[#allocation2 + $0x98] sm:$0x1]  ;;  %v3283_v8 = vrot.slane %v3281_v2, 5 }
  0x75   : > { %628 = vst [vmem:[#allocation2 + $0x68] sm:$0x1] %v627_v63  ;;  %v7135_v12 = vsel %vm7024_vm7, %v1142_v0, %v1146_v59  ;;  %v3291_v13 = vshrl.u32 %v3164_v60, 16  ;;  %v3297_v14 = vshll.u32 %v3165_v7, 16  ;;  %v3289_v19 = vrot.slane %v3287_v9, 5  ;;  %v328_v23 = vld [vmem:[%s6923_s27 + $0x50] sm:$0xff] }
  0x76   : > { %2589 = vmatmul.bf16.vlgmr.msra.gmra.mxu2 %v5507_v6  ;;  %1244 = vst [vmem:[#allocation3 + $0x124] sm:$0xf] %v7129_v40  ;;  %v3284_v18 = vor.u32 %v3283_v8, %v3280_v3  ;;  %v487_v20 = vshll.u32 %v7114_v54, 16  ;;  %v686_v21 = vmax.f32 %v670_v55, 0.0  ;;  %v7142_v26 = vrot.slane %v484_v15, 7  ;;  %v6645_v32 = vld [vmem:[%s8709_s4 + $0xf0] sm:$0xff] }
  0x77   : > { %1245 = vst [vmem:[#allocation3 + $0x148] sm:$0xf] %v7135_v12  ;;  %v3293_v24 = vrot.slane %v3291_v13, 4  ;;  %v3299_v25 = vrot.slane %v3297_v14, 5  ;;  %v687_v27 = vmax.f32 %v671_v31, 0.0  ;;  %2709 = vmatpush.bf16.msrb.mxu3 %v6645_v32  ;;  %v482_v53 = vrot.slane %v7101_v34, 4 }
  0x78   : > { %v3083_v28 = vld [vmem:[#allocation2 + $0x60] sm:$0xf]  ;;  %v3285_v30 = vrot.slane %v3284_v18, 4  ;;  %v3084_v38 = vld [vmem:[#allocation2 + $0x64] sm:$0xf]  ;;  %v702_v45 = vpack.c.bf16 %v686_v21, %v686_v21  ;;  %v489_v54 = vor.u32 %v487_v20, %v7142_v26  ;;  %v6654_v55 = vld [vmem:[%s8709_s4 + $0x138] sm:$0xff]  ;;  %v7167_v57 = vmul.f32 %v6966_v17, %v328_v23 }
  0x79   : > { %v3151_v29 = vld [vmem:[#allocation2 + $0x60] sm:$0xf]  ;;  %3103 = vst [vmem:[#allocation3] sm:$0xf] %v3083_v28  ;;  %v3152_v39 = vld [vmem:[#allocation2 + $0x64] sm:$0xf]  ;;  %v3294_v42 = vor.u32 %v3293_v24, %v3289_v19  ;;  %v703_v46 = vpack.c.bf16 %v687_v27, %v687_v27  ;;  %2757 = vmatpush.bf16.msrb.mxu0 %v6654_v55 }
  0x7a   : > { %3104 = vst [vmem:[#allocation3 + $0x24] sm:$0xf] %v3084_v38  ;;  %v3182_v47 = vshrl.u32 %v3151_v29, 16  ;;  %v3185_v48 = vshll.u32 %v3151_v29, 16  ;;  %v3191_v49 = vshll.u32 %v3152_v39, 16  ;;  %v3195_v50 = vshrl.u32 %v3152_v39, 16 }
  0x7b   : > { %v3295_v52 = vrot.slane %v3294_v42, 4  ;;  %1284 = vst [vmem:[#allocation3 + $0xe8] sm:$0xf] %v7129_v40  ;;  %v7171_v1 = vsel %vm7024_vm7, %v3285_v30, %v3289_v19  ;;  %v779_v31 = vshrl.u32 %v702_v45, 16  ;;  %v782_v4 = vshll.u32 %v702_v45, 16  ;;  %v6636_v13 = vld [vmem:[%s8709_s4 + $0xa8] sm:$0xff] }
  0x7c   : > { %v3153_v58 = vld [vmem:[#allocation2 + $0x68] sm:$0x1]  ;;  %v3184_v59 = vrot.slane %v3182_v47, 4  ;;  %v3187_v60 = vrot.slane %v3185_v48, 5  ;;  %v3193_v61 = vrot.slane %v3191_v49, 5  ;;  %v3197_v62 = vrot.slane %v3195_v50, 4  ;;  %2661 = vmatpush.bf16.msrb.mxu2 %v6636_v13 }
  0x7d   : > { %v3201_v63 = vshll.u32 %v3153_v58, 16  ;;  %v6579_v34 = vld [vmem:[#allocation3 + $0x124] sm:$0xf]  ;;  %v7175_v2 = vsel %vm7024_vm7, %v3295_v52, %v3299_v25  ;;  %1285 = vst [vmem:[#allocation3 + $0x10c] sm:$0xf] %v7135_v12  ;;  %v787_v5 = vshrl.u32 %v703_v46, 16  ;;  %v490_v20 = vsel %vm7033_vm8, %v482_v53, %v489_v54 }
  0x7e   : > { %v3188_v51 = vor.u32 %v3187_v60, %v3184_v59  ;;  %v3198_v0 = vor.u32 %v3197_v62, %v3193_v61  ;;  %v5508_v3 = vld [vmem:[#allocation3 + $0x144] sm:$0xf0]  ;;  %3397 = vst [vmem:[#allocation3 + $0x124] sm:$0xf] %v7171_v1  ;;  %v899_v6 = vld [vmem:[#allocation2 + $0x9c] sm:$0xf]  ;;  %v366_v53 = vadd.f32 %v6986_v33, %v7167_v57 }
  0x7f   : > { %v3203_v7 = vrot.slane %v3201_v63, 5  ;;  %v5511_v8 = vor.u32 %v6579_v34, %v5508_v3  ;;  %3398 = vst [vmem:[#allocation3 + $0x148] sm:$0xf] %v7175_v2  ;;  %v781_v9 = vrot.slane %v779_v31, 7  ;;  %v790_v11 = vshll.u32 %v703_v46, 16  ;;  %v5335_v29 = vld [vmem:[%s6923_s27 + $0x88] sm:$0xff] }
  0x80   : > { %v3189_v14 = vrot.slane %v3188_v51, 4  ;;  %v3199_v15 = vrot.slane %v3198_v0, 4  ;;  %1324 = vst [vmem:[#allocation3 + $0xac] sm:$0xf] %v7129_v40  ;;  %v7184_v18 = vrot.slane %v787_v5, 7  ;;  %v372_v19 = vmax.f32 %v7148_v35, 0.0 }
  0x81   : > { %2638 = vmatmul.bf16.vlgmr.msra.gmra.mxu3 %v5511_v8  ;;  %1325 = vst [vmem:[#allocation3 + $0xd0] sm:$0xf] %v7135_v12  ;;  %v784_v21 = vor.u32 %v782_v4, %v781_v9  ;;  %v785_v23 = vrot.slane %v781_v9, 4  ;;  %v373_v24 = vmax.f32 %v7151_v37, 0.0  ;;  %v491_v27 = vrot.slane %v7142_v26, 4  ;;  %v5334_v12 = vld [vmem:[%s6923_s27 + $0x80] sm:$0xff] }
  0x82   : > { %v3194_v25 = vsel %vm7024_vm7, %v3189_v14, %v3193_v61  ;;  %v3204_v40 = vsel %vm7024_vm7, %v3199_v15, %v3203_v7  ;;  %603 = vst [vmem:[#allocation2 + $0x3c] sm:$0xf] %v602_v43  ;;  %v792_v28 = vor.u32 %v790_v11, %v7184_v18  ;;  %v388_v32 = vpack.c.bf16 %v372_v19, %v372_v19  ;;  %v605_v26 = vld [vmem:[#allocation2 + $0x44] sm:$0x1]  ;;  %v329_v56 = vld [vmem:[%s6923_s27 + $0x58] sm:$0xff] }
  0x83   : > { %3389 = vst [vmem:[#allocation3 + $0x4] sm:$0xf] %v3194_v25  ;;  %v900_v30 = vsel %vm7039_vm9, %v784_v21, %v899_v6  ;;  %v389_v35 = vpack.c.bf16 %v373_v24, %v373_v24  ;;  %v646_v37 = vmul.f32 %v5334_v12, %v6966_v17  ;;  %v647_v39 = vmul.f32 %v5335_v29, %v6966_v17  ;;  %v571_v63 = vld [vmem:[#allocation2 + $0xc] sm:$0xf]  ;;  %v577_v19 = vld [vmem:[#allocation2 + $0x14] sm:$0x1] }
  0x84   : > { %3390 = vst [vmem:[#allocation3 + $0x28] sm:$0xf] %v3204_v40  ;;  %v793_v38 = vsel %vm7033_vm8, %v785_v23, %v792_v28  ;;  %v408_v42 = vshrl.u32 %v388_v32, 16  ;;  %v411_v43 = vshll.u32 %v388_v32, 16  ;;  %v606_v49 = vsel %vm7051_vm10, %v491_v27, %v605_v26  ;;  %v871_v11 = vld [vmem:[#allocation2 + $0x6c] sm:$0xf] }
  0x85   : > { %604 = vst [vmem:[#allocation2 + $0x40] sm:$0xf] %v490_v20  ;;  %v416_v45 = vshrl.u32 %v389_v35, 16  ;;  %v419_v46 = vshll.u32 %v389_v35, 16  ;;  %v662_v47 = vadd.f32 %v646_v37, %v6986_v33  ;;  %v663_v48 = vadd.f32 %v647_v39, %v6986_v33  ;;  %v875_v24 = vld [vmem:[#allocation2 + $0x74] sm:$0x1] }
  0x86   : > { %901 = vst [vmem:[#allocation2 + $0x9c] sm:$0xf] %v900_v30  ;;  %v410_v50 = vrot.slane %v408_v42, 7  ;;  %v348_v3 = vmul.f32 %v6966_v17, %v329_v56  ;;  %v382_v57 = vmax.f32 %v366_v53, 0.0  ;;  %v794_v28 = vrot.slane %v7184_v18, 4  ;;  %v6644_v18 = vld [vmem:[%s8709_s4 + $0xe8] sm:$0xff] }
  0x87   : > { %902 = vst [vmem:[#allocation2 + $0xa0] sm:$0xf] %v793_v38  ;;  %v7209_v52 = vrot.slane %v416_v45, 7  ;;  %v678_v54 = vmax.f32 %v662_v47, 0.0  ;;  %v679_v55 = vmax.f32 %v663_v48, 0.0  ;;  %2710 = vmatpush.bf16.msrb.mxu3 %v6644_v18 }
  0x88   : > { %607 = vst [vmem:[#allocation2 + $0x44] sm:$0x1] %v606_v49  ;;  %v413_v59 = vor.u32 %v411_v43, %v410_v50  ;;  %v414_v60 = vrot.slane %v410_v50, 4  ;;  %v7224_v40 = vadd.f32 %v6986_v33, %v348_v3  ;;  %v7226_v27 = vpack.c.bf16 %v382_v57, %v382_v57 }
  0x89   : > { %v937_v58 = vld [vmem:[#allocation2 + $0x3c] sm:$0xf]  ;;  %v421_v62 = vor.u32 %v419_v46, %v7209_v52  ;;  %v694_v34 = vpack.c.bf16 %v678_v54, %v678_v54  ;;  %v695_v31 = vpack.c.bf16 %v679_v55, %v679_v55  ;;  %v423_v14 = vrot.slane %v7209_v52, 4 }
  0x8a   : > { %v1010_v61 = vld [vmem:[#allocation2 + $0x3c] sm:$0xf]  ;;  %957 = vst [vmem:[#allocation3 + $0x168] sm:$0xf] %v937_v58  ;;  %v572_v7 = vsel %vm7039_vm9, %v413_v59, %v571_v63  ;;  %v383_v49 = vmax.f32 %v7224_v40, 0.0  ;;  %v493_v50 = vshrl.u32 %v7226_v27, 16 }
  0x8b   : > { %v1149_v51 = vshrl.u32 %v1010_v61, 16  ;;  %971 = vst [vmem:[#allocation3 + $0x12c] sm:$0xf] %v937_v58  ;;  %v1152_v0 = vshll.u32 %v1010_v61, 16  ;;  %v711_v5 = vshrl.u32 %v694_v34, 16  ;;  %v714_v6 = vshll.u32 %v694_v34, 16 }
  0x8c   : > { %v938_v4 = vld [vmem:[#allocation2 + $0x40] sm:$0xf]  ;;  %985 = vst [vmem:[#allocation3 + $0xf0] sm:$0xf] %v937_v58  ;;  %v719_v8 = vshrl.u32 %v695_v31, 16  ;;  %v722_v9 = vshll.u32 %v695_v31, 16  ;;  %v422_v13 = vsel %vm7033_vm8, %v414_v60, %v421_v62  ;;  %v578_v47 = vsel %vm7051_vm10, %v423_v14, %v577_v19 }
  0x8d   : > { %958 = vst [vmem:[#allocation3 + $0x18c] sm:$0xf] %v938_v4  ;;  %v713_v15 = vrot.slane %v711_v5, 7  ;;  %v1151_v20 = vrot.slane %v1149_v51, 4  ;;  %v7221_v21 = vld [vmem:[#allocation2 + $0x9c] sm:$0xf] }
  0x8e   : > { %972 = vst [vmem:[#allocation3 + $0x150] sm:$0xf] %v938_v4  ;;  %v721_v23 = vrot.slane %v719_v8, 7  ;;  %v1154_v25 = vrot.slane %v1152_v0, 5  ;;  %v7229_v12 = vld [vmem:[#allocation2 + $0xa0] sm:$0xf] }
  0x8f   : > { %986 = vst [vmem:[#allocation3 + $0x114] sm:$0xf] %v938_v4  ;;  %v716_v29 = vor.u32 %v714_v6, %v713_v15  ;;  %v717_v30 = vrot.slane %v713_v15, 4  ;;  %v1011_v32 = vld [vmem:[#allocation2 + $0x40] sm:$0xf]  ;;  %v320_v62 = vld [vmem:[%s6923_s27 + $0x10] sm:$0xff] }
  0x90   : > { %573 = vst [vmem:[#allocation2 + $0xc] sm:$0xf] %v572_v7  ;;  %v724_v37 = vor.u32 %v722_v9, %v721_v23  ;;  %v726_v38 = vrot.slane %v721_v23, 4  ;;  %v1155_v39 = vor.u32 %v1154_v25, %v1151_v20  ;;  %v1158_v26 = vshll.u32 %v1011_v32, 16  ;;  %v1012_v43 = vld [vmem:[#allocation2 + $0x44] sm:$0x1] }
  0x91   : > { %v5542_v35 = vld [vmem:[#allocation3 + $0x168] sm:$0xf]  ;;  %574 = vst [vmem:[#allocation2 + $0x10] sm:$0xf] %v422_v13  ;;  %v872_v42 = vsel %vm7039_vm9, %v716_v29, %v871_v11  ;;  %v1162_v45 = vshrl.u32 %v1011_v32, 16  ;;  %v1168_v55 = vshll.u32 %v1012_v43, 16  ;;  %v339_v19 = vmul.f32 %v6966_v17, %v320_v62 }
  0x92   : > { %3113 = vst [vmem:[#allocation3 + $0x168] sm:$0xf] %v7221_v21  ;;  %v725_v46 = vsel %vm7033_vm8, %v717_v30, %v724_v37  ;;  %v7241_v48 = vld [vmem:[#allocation2 + $0x9c] sm:$0xf]  ;;  %v876_v53 = vsel %vm7051_vm10, %v726_v38, %v875_v24  ;;  %v7247_v54 = vrot.slane %v1155_v39, 4  ;;  %v7250_v59 = vrot.slane %v1158_v26, 5 }
  0x93   : > { %873 = vst [vmem:[#allocation2 + $0x6c] sm:$0xf] %v872_v42  ;;  %v903_v58 = vld [vmem:[#allocation2 + $0xa4] sm:$0x1]  ;;  %v7252_v60 = vrot.slane %v1162_v45, 4  ;;  %v7257_v63 = vrot.slane %v1168_v55, 5  ;;  %v7272_v25 = vpack.c.bf16 %v383_v49, %v383_v49 }
  0x94   : > { %v6592_v52 = vld [vmem:[#allocation3 + $0x188] sm:$0xf0]  ;;  %874 = vst [vmem:[#allocation2 + $0x70] sm:$0xf] %v725_v46  ;;  %v7254_v61 = vld [vmem:[#allocation2 + $0xa0] sm:$0xf]  ;;  %v904_v13 = vsel %vm7051_vm10, %v794_v28, %v903_v58 }
  0x95   : > { %v5543_v56 = vor.u32 %v6592_v52, %v5542_v35  ;;  %3114 = vst [vmem:[#allocation3 + $0x18c] sm:$0xf] %v7229_v12  ;;  %v3302_v34 = vshrl.u32 %v7241_v48, 16  ;;  %v3305_v31 = vshll.u32 %v7241_v48, 16  ;;  %v6653_v51 = vld [vmem:[%s8709_s4 + $0x130] sm:$0xff]  ;;  %v321_v0 = vld [vmem:[%s6923_s27 + $0x18] sm:$0xff]  ;;  %v1165_v43 = vor.u32 %v7252_v60, %v7250_v59 }
  0x96   : > { %579 = vst [vmem:[#allocation2 + $0x14] sm:$0x1] %v578_v47  ;;  %2758 = vmatpush.bf16.msrb.mxu0 %v6653_v51  ;;  %v3311_v14 = vshll.u32 %v7254_v61, 16  ;;  %v3315_v15 = vshrl.u32 %v7254_v61, 16  ;;  %v7275_v40 = vmul.f32 %v6966_v17, %v321_v0  ;;  %v6661_v52 = vld [vmem:[%s8709_s4 + $0x170] sm:$0xff]  ;;  %v358_v48 = vadd.f32 %v6986_v33, %v339_v19 }
  0x97   : > { %2594 = vmatmul.bf16.gmra.mxu2 %v5543_v56  ;;  %v929_v3 = vld [vmem:[#allocation2 + $0xc] sm:$0xf]  ;;  %877 = vst [vmem:[#allocation2 + $0x74] sm:$0x1] %v876_v53  ;;  %2807 = vmatpush.bf16.msrb.mxu1 %v6661_v52  ;;  %v501_v19 = vshrl.u32 %v7272_v25, 16  ;;  %v6634_v52 = vld [vmem:[%s8709_s4 + $0x98] sm:$0xff] }
  0x98   : > { %v998_v57 = vld [vmem:[#allocation2 + $0xc] sm:$0xf]  ;;  %v930_v4 = vld [vmem:[#allocation2 + $0x10] sm:$0xf]  ;;  %949 = vst [vmem:[#allocation3 + $0x48] sm:$0xf] %v929_v3 }
  0x99   : > { %v999_v5 = vld [vmem:[#allocation2 + $0x10] sm:$0xf]  ;;  %950 = vst [vmem:[#allocation3 + $0x6c] sm:$0xf] %v930_v4  ;;  %v1053_v6 = vshrl.u32 %v998_v57, 16  ;;  %v1056_v7 = vshll.u32 %v998_v57, 16 }
  0x9a   : > { %v1062_v8 = vshll.u32 %v999_v5, 16  ;;  %v1066_v9 = vshrl.u32 %v999_v5, 16  ;;  %963 = vst [vmem:[#allocation3 + $0xc] sm:$0xf] %v929_v3  ;;  %v3154_v11 = vld [vmem:[#allocation2 + $0x6c] sm:$0xf]  ;;  %v7289_v3 = vsel %vm7024_vm7, %v7247_v54, %v7250_v59 }
  0x9b   : > { %964 = vst [vmem:[#allocation3 + $0x30] sm:$0xf] %v930_v4  ;;  %v7270_v20 = vld [vmem:[#allocation2 + $0x6c] sm:$0xf]  ;;  %v1055_v23 = vrot.slane %v1053_v6, 4  ;;  %v1058_v24 = vrot.slane %v1056_v7, 5 }
  0x9c   : > { %v7277_v29 = vld [vmem:[#allocation2 + $0x70] sm:$0xf]  ;;  %v1064_v30 = vrot.slane %v1062_v8, 5  ;;  %v1068_v28 = vrot.slane %v1066_v9, 4  ;;  %v3206_v35 = vshrl.u32 %v3154_v11, 16  ;;  %v3209_v37 = vshll.u32 %v3154_v11, 16 }
  0x9d   : > { %v3155_v32 = vld [vmem:[#allocation2 + $0x70] sm:$0xf]  ;;  %v1000_v38 = vld [vmem:[#allocation2 + $0x14] sm:$0x1]  ;;  %v1059_v39 = vor.u32 %v1058_v24, %v1055_v23  ;;  %905 = vst [vmem:[#allocation2 + $0xa4] sm:$0x1] %v904_v13 }
  0x9e   : > { %v3215_v26 = vshll.u32 %v3155_v32, 16  ;;  %v3219_v42 = vshrl.u32 %v3155_v32, 16  ;;  %v1069_v45 = vor.u32 %v1068_v28, %v1064_v30  ;;  %v1072_v18 = vshll.u32 %v1000_v38, 16  ;;  %v3156_v46 = vld [vmem:[#allocation2 + $0x74] sm:$0x1]  ;;  %v6635_v7 = vld [vmem:[%s8709_s4 + $0xa0] sm:$0xff] }
  0x9f   : > { %v3208_v47 = vrot.slane %v3206_v35, 4  ;;  %v3211_v49 = vrot.slane %v3209_v37, 5  ;;  %v5398_v53 = vld [vmem:[#allocation3 + $0x48] sm:$0xf]  ;;  %v1060_v55 = vrot.slane %v1059_v39, 4  ;;  %v3225_v61 = vshll.u32 %v3156_v46, 16  ;;  %2662 = vmatpush.bf16.msrb.mxu2 %v6635_v7 }
  0xa0   : > { %v3217_v56 = vrot.slane %v3215_v26, 5  ;;  %v3221_v58 = vrot.slane %v3219_v42, 4  ;;  %v6556_v62 = vld [vmem:[#allocation3 + $0x68] sm:$0xf0]  ;;  %3105 = vst [vmem:[#allocation3 + $0x48] sm:$0xf] %v7270_v20  ;;  %v359_v39 = vadd.f32 %v6986_v33, %v7275_v40 }
  0xa1   : > { %v1070_v51 = vrot.slane %v1069_v45, 4  ;;  %v1074_v60 = vrot.slane %v1072_v18, 5  ;;  %v3212_v0 = vor.u32 %v3211_v49, %v3208_v47  ;;  %v5399_v57 = vor.u32 %v6556_v62, %v5398_v53  ;;  %3106 = vst [vmem:[#allocation3 + $0x6c] sm:$0xf] %v7277_v29  ;;  %v5344_v11 = vld [vmem:[%s6923_s27 + $0xd0] sm:$0xff]  ;;  %v5345_v38 = vld [vmem:[%s6923_s27 + $0xd8] sm:$0xff] }
  0xa2   : > { %v1065_v4 = vsel %vm7024_vm7, %v1060_v55, %v1064_v30  ;;  %v3222_v5 = vor.u32 %v3221_v58, %v3217_v56  ;;  %v3227_v6 = vrot.slane %v3225_v61, 5  ;;  %v1166_v54 = vrot.slane %v1165_v43, 4  ;;  %v7312_v37 = vld [vmem:[#allocation2 + $0x48] sm:$0xf]  ;;  %1246 = vst [vmem:[#allocation3 + $0x16c] sm:$0xf] %v7289_v3 }
  0xa3   : > { %v1075_v8 = vsel %vm7024_vm7, %v1070_v51, %v1074_v60  ;;  %1238 = vst [vmem:[#allocation3 + $0x4c] sm:$0xf] %v1065_v4  ;;  %v3213_v9 = vrot.slane %v3212_v0, 4  ;;  %v3304_v59 = vrot.slane %v3302_v34, 4  ;;  %2574 = vmatmul.bf16.gmra.mxu0 %v5399_v57  ;;  %v3307_v23 = vrot.slane %v3305_v31, 5  ;;  %v6652_v42 = vld [vmem:[%s8709_s4 + $0x128] sm:$0xff]  ;;  %2663 = vmatpush.bf16.msrb.mxu2 %v6634_v52 }
  0xa4   : > { %1239 = vst [vmem:[#allocation3 + $0x70] sm:$0xf] %v1075_v8  ;;  %v3223_v13 = vrot.slane %v3222_v5, 4  ;;  %v3313_v24 = vrot.slane %v3311_v14, 5  ;;  %v3317_v30 = vrot.slane %v3315_v15, 4  ;;  %v1171_v28 = vsel %vm7024_vm7, %v1166_v54, %v7257_v63  ;;  %v6643_v63 = vld [vmem:[%s8709_s4 + $0xe0] sm:$0xff]  ;;  %2759 = vmatpush.bf16.msrb.mxu0 %v6652_v42 }
  0xa5   : > { %1278 = vst [vmem:[#allocation3 + $0x10] sm:$0xf] %v1065_v4  ;;  %v3168_v32 = vld [vmem:[#allocation2 + $0xa4] sm:$0x1]  ;;  %v7309_v34 = vrot.slane %v493_v50, 7  ;;  %v496_v35 = vshll.u32 %v7226_v27, 16  ;;  %v3308_v31 = vor.u32 %v3307_v23, %v3304_v59  ;;  %v7323_v50 = vsel %vm7024_vm7, %v3213_v9, %v3217_v56  ;;  %2711 = vmatpush.bf16.msrb.mxu3 %v6643_v63 }
  0xa6   : > { %1279 = vst [vmem:[#allocation3 + $0x34] sm:$0xf] %v1075_v8  ;;  %v3318_v14 = vor.u32 %v3317_v30, %v3313_v24  ;;  %v3321_v15 = vshll.u32 %v3168_v32, 16  ;;  %v504_v26 = vshll.u32 %v7272_v25, 16  ;;  %v656_v18 = vmul.f32 %v5344_v11, %v6966_v17  ;;  %v6660_v46 = vld [vmem:[%s8709_s4 + $0x168] sm:$0xff]  ;;  %v5336_v55 = vld [vmem:[%s6923_s27 + $0x90] sm:$0xff] }
  0xa7   : > { %v7327_v27 = vor.u32 %v496_v35, %v7309_v34  ;;  %1247 = vst [vmem:[#allocation3 + $0x190] sm:$0xf] %v1171_v28  ;;  %v3309_v40 = vrot.slane %v3308_v31, 4  ;;  %v7340_v47 = vsel %vm7024_vm7, %v3223_v13, %v3227_v6  ;;  %v7343_v25 = vrot.slane %v501_v19, 7  ;;  %2808 = vmatpush.bf16.msrb.mxu1 %v6660_v46  ;;  %v5337_v6 = vld [vmem:[%s6923_s27 + $0x98] sm:$0xff] }
  0xa8   : > { %v3319_v43 = vrot.slane %v3318_v14, 4  ;;  %v3323_v45 = vrot.slane %v3321_v15, 5  ;;  %1286 = vst [vmem:[#allocation3 + $0x130] sm:$0xf] %v7289_v3  ;;  %v657_v49 = vmul.f32 %v5345_v38, %v6966_v17  ;;  %v374_v53 = vmax.f32 %v358_v48, 0.0 }
  0xa9   : > { %v7352_v58 = vsel %vm7024_vm7, %v3309_v40, %v3313_v24  ;;  %1287 = vst [vmem:[#allocation3 + $0x154] sm:$0xf] %v1171_v28  ;;  %v609_v61 = vsel %vm7039_vm9, %v7327_v27, %v7312_v37  ;;  %v672_v62 = vadd.f32 %v656_v18, %v6986_v33  ;;  %v375_v51 = vmax.f32 %v359_v39, 0.0  ;;  %v6588_v24 = vld [vmem:[#allocation3 + $0x16c] sm:$0xf] }
  0xaa   : > { %v6552_v56 = vld [vmem:[#allocation3 + $0x4c] sm:$0xf]  ;;  %8734 = vst [vmem:[#allocation4_spill] sm:$0xff] %v7352_v58  ;;  %v499_v0 = vrot.slane %v7309_v34, 4  ;;  %v506_v57 = vor.u32 %v504_v26, %v7343_v25  ;;  %v673_v4 = vadd.f32 %v657_v49, %v6986_v33  ;;  %v390_v5 = vpack.c.bf16 %v374_v53, %v374_v53  ;;  %v580_v35 = vld [vmem:[#allocation2 + $0x18] sm:$0xf] }
  0xab   : > { %v5400_v60 = vld [vmem:[#allocation3 + $0x6c] sm:$0xf0]  ;;  %3391 = vst [vmem:[#allocation3 + $0x4c] sm:$0xf] %v7323_v50  ;;  %v688_v8 = vmax.f32 %v672_v62, 0.0  ;;  %v391_v9 = vpack.c.bf16 %v375_v51, %v375_v51  ;;  %v648_v54 = vmul.f32 %v5336_v55, %v6966_v17  ;;  %v7368_v59 = vsel %vm7024_vm7, %v3319_v43, %v3323_v45 }
  0xac   : > { %v5403_v7 = vor.u32 %v6552_v56, %v5400_v60  ;;  %3392 = vst [vmem:[#allocation3 + $0x70] sm:$0xf] %v7340_v47  ;;  %v689_v11 = vmax.f32 %v673_v4, 0.0  ;;  %v425_v13 = vshrl.u32 %v390_v5, 16  ;;  %v428_v23 = vshll.u32 %v390_v5, 16 }
  0xad   : > { %8735 = vst [vmem:[#allocation5_spill] sm:$0xff] %v7368_v59  ;;  %v704_v30 = vpack.c.bf16 %v688_v8, %v688_v8  ;;  %v433_v32 = vshrl.u32 %v391_v9, 16  ;;  %v436_v34 = vshll.u32 %v391_v9, 16  ;;  %v649_v37 = vmul.f32 %v5337_v6, %v6966_v17  ;;  %v906_v49 = vld [vmem:[#allocation2 + $0xa8] sm:$0xf]  ;;  %v330_v9 = vld [vmem:[%s6923_s27 + $0x60] sm:$0xff] }
  0xae   : > { %1326 = vst [vmem:[#allocation3 + $0xf4] sm:$0xf] %v7289_v3  ;;  %2623 = vmatmul.bf16.gmra.mxu1 %v5403_v7  ;;  %v5544_v48 = vld [vmem:[#allocation3 + $0x18c] sm:$0xf0]  ;;  %v507_v31 = vsel %vm7033_vm8, %v499_v0, %v506_v57  ;;  %v705_v14 = vpack.c.bf16 %v689_v11, %v689_v11  ;;  %v427_v3 = vrot.slane %v425_v13, 7  ;;  %v664_v15 = vadd.f32 %v648_v54, %v6986_v33 }
  0xaf   : > { %1327 = vst [vmem:[#allocation3 + $0x118] sm:$0xf] %v1171_v28  ;;  %v5547_v38 = vor.u32 %v6588_v24, %v5544_v48  ;;  %v796_v28 = vshrl.u32 %v704_v30, 16  ;;  %v799_v63 = vshll.u32 %v704_v30, 16  ;;  %v435_v39 = vrot.slane %v433_v32, 7  ;;  %v331_v30 = vld [vmem:[%s6923_s27 + $0x68] sm:$0xff] }
  0xb0   : > { %3399 = vst [vmem:[#allocation3 + $0x16c] sm:$0xf] %v7352_v58  ;;  %v804_v27 = vshrl.u32 %v705_v14, 16  ;;  %v807_v19 = vshll.u32 %v705_v14, 16  ;;  %v430_v26 = vor.u32 %v428_v23, %v427_v3  ;;  %v431_v42 = vrot.slane %v427_v3, 4 }
  0xb1   : > { %3400 = vst [vmem:[#allocation3 + $0x190] sm:$0xf] %v7368_v59  ;;  %2643 = vmatmul.bf16.gmra.mxu3 %v5547_v38  ;;  %v798_v40 = vrot.slane %v796_v28, 7  ;;  %v438_v43 = vor.u32 %v436_v34, %v435_v39  ;;  %v440_v45 = vrot.slane %v435_v39, 4  ;;  %v665_v18 = vadd.f32 %v649_v37, %v6986_v33  ;;  %v584_v55 = vld [vmem:[#allocation2 + $0x20] sm:$0x1] }
  0xb2   : > { %610 = vst [vmem:[#allocation2 + $0x48] sm:$0xf] %v609_v61  ;;  %v7378_v46 = vrot.slane %v804_v27, 7  ;;  %v581_v52 = vsel %vm7039_vm9, %v430_v26, %v580_v35  ;;  %v680_v53 = vmax.f32 %v664_v15, 0.0  ;;  %v878_v34 = vld [vmem:[#allocation2 + $0x78] sm:$0xf]  ;;  %v350_v38 = vmul.f32 %v6966_v17, %v331_v30 }
  0xb3   : > { %611 = vst [vmem:[#allocation2 + $0x4c] sm:$0xf] %v507_v31  ;;  %v801_v56 = vor.u32 %v799_v63, %v798_v40  ;;  %v802_v61 = vrot.slane %v798_v40, 4  ;;  %v439_v62 = vsel %vm7033_vm8, %v431_v42, %v438_v43  ;;  %v681_v51 = vmax.f32 %v665_v18, 0.0 }
  0xb4   : > { %582 = vst [vmem:[#allocation2 + $0x18] sm:$0xf] %v581_v52  ;;  %v809_v60 = vor.u32 %v807_v19, %v7378_v46  ;;  %v696_v0 = vpack.c.bf16 %v680_v53, %v680_v53  ;;  %v585_v57 = vsel %vm7051_vm10, %v440_v45, %v584_v55  ;;  %v508_v35 = vrot.slane %v7343_v25, 4 }
  0xb5   : > { %583 = vst [vmem:[#allocation2 + $0x1c] sm:$0xf] %v439_v62  ;;  %v907_v4 = vsel %vm7039_vm9, %v801_v56, %v906_v49  ;;  %v697_v5 = vpack.c.bf16 %v681_v51, %v681_v51  ;;  %v349_v31 = vmul.f32 %v6966_v17, %v330_v9  ;;  %v811_v14 = vrot.slane %v7378_v46, 4  ;;  %v882_v62 = vld [vmem:[#allocation2 + $0x80] sm:$0x1] }
  0xb6   : > { %586 = vst [vmem:[#allocation2 + $0x20] sm:$0x1] %v585_v57  ;;  %v810_v6 = vsel %vm7033_vm8, %v802_v61, %v809_v60  ;;  %v728_v7 = vshrl.u32 %v696_v0, 16  ;;  %v731_v8 = vshll.u32 %v696_v0, 16  ;;  %v7407_v56 = vadd.f32 %v6986_v33, %v350_v38 }
  0xb7   : > { %908 = vst [vmem:[#allocation2 + $0xa8] sm:$0xf] %v907_v4  ;;  %v736_v11 = vshrl.u32 %v697_v5, 16  ;;  %v739_v13 = vshll.u32 %v697_v5, 16  ;;  %v368_v55 = vadd.f32 %v6986_v33, %v349_v31 }
  0xb8   : > { %909 = vst [vmem:[#allocation2 + $0xac] sm:$0xf] %v810_v6  ;;  %v730_v24 = vrot.slane %v728_v7, 7 }
  0xb9   : > { %v939_v54 = vld [vmem:[#allocation2 + $0x48] sm:$0xf]  ;;  %v738_v32 = vrot.slane %v736_v11, 7  ;;  %v384_v11 = vmax.f32 %v368_v55, 0.0 }
  0xba   : > { %v940_v23 = vld [vmem:[#allocation2 + $0x4c] sm:$0xf]  ;;  %959 = vst [vmem:[#allocation3 + $0x1b0] sm:$0xf] %v939_v54  ;;  %v733_v37 = vor.u32 %v731_v8, %v730_v24  ;;  %v734_v48 = vrot.slane %v730_v24, 4 }
  0xbb   : > { %960 = vst [vmem:[#allocation3 + $0x1d4] sm:$0xf] %v940_v23  ;;  %v741_v3 = vor.u32 %v739_v13, %v738_v32  ;;  %v743_v15 = vrot.slane %v738_v32, 4  ;;  %v1001_v63 = vld [vmem:[#allocation2 + $0x18] sm:$0xf]  ;;  %v385_v13 = vmax.f32 %v7407_v56, 0.0  ;;  %v7424_v56 = vpack.c.bf16 %v384_v11, %v384_v11 }
  0xbc   : > { %973 = vst [vmem:[#allocation3 + $0x174] sm:$0xf] %v939_v54  ;;  %v879_v28 = vsel %vm7039_vm9, %v733_v37, %v878_v34  ;;  %v1002_v39 = vld [vmem:[#allocation2 + $0x1c] sm:$0xf]  ;;  %v931_v26 = vld [vmem:[#allocation2 + $0x18] sm:$0xf] }
  0xbd   : > { %974 = vst [vmem:[#allocation3 + $0x198] sm:$0xf] %v940_v23  ;;  %v742_v19 = vsel %vm7033_vm8, %v734_v48, %v741_v3  ;;  %v1003_v42 = vld [vmem:[#allocation2 + $0x20] sm:$0x1]  ;;  %v932_v43 = vld [vmem:[#allocation2 + $0x1c] sm:$0xf]  ;;  %v883_v37 = vsel %vm7051_vm10, %v743_v15, %v882_v62 }
  0xbe   : > { %987 = vst [vmem:[#allocation3 + $0x138] sm:$0xf] %v939_v54  ;;  %v7399_v27 = vld [vmem:[#allocation2 + $0xa8] sm:$0xf]  ;;  %v1077_v45 = vshrl.u32 %v1001_v63, 16  ;;  %v1080_v18 = vshll.u32 %v1001_v63, 16 }
  0xbf   : > { %8736 = vst [vmem:[#allocation6_spill] sm:$0xff] %v7399_v27  ;;  %v7403_v40 = vld [vmem:[#allocation2 + $0xac] sm:$0xf]  ;;  %v1086_v52 = vshll.u32 %v1002_v39, 16  ;;  %v1090_v53 = vshrl.u32 %v1002_v39, 16  ;;  %v1096_v5 = vshll.u32 %v1003_v42, 16 }
  0xc0   : > { %988 = vst [vmem:[#allocation3 + $0x15c] sm:$0xf] %v940_v23  ;;  %v1079_v51 = vrot.slane %v1077_v45, 4  ;;  %v1082_v60 = vrot.slane %v1080_v18, 5  ;;  %v1013_v7 = vld [vmem:[#allocation2 + $0x48] sm:$0xf] }
  0xc1   : > { %8737 = vst [vmem:[#allocation7_spill] sm:$0xff] %v7403_v40  ;;  %v5578_v49 = vld [vmem:[#allocation3 + $0x1b0] sm:$0xf]  ;;  %v1088_v57 = vrot.slane %v1086_v52, 5  ;;  %v1092_v4 = vrot.slane %v1090_v53, 4  ;;  %v1098_v54 = vrot.slane %v1096_v5, 5 }
  0xc2   : > { %880 = vst [vmem:[#allocation2 + $0x78] sm:$0xf] %v879_v28  ;;  %v6601_v61 = vld [vmem:[#allocation3 + $0x1d0] sm:$0xf0]  ;;  %v1083_v6 = vor.u32 %v1082_v60, %v1079_v51  ;;  %v1173_v24 = vshrl.u32 %v1013_v7, 16  ;;  %v1176_v30 = vshll.u32 %v1013_v7, 16 }
  0xc3   : > { %881 = vst [vmem:[#allocation2 + $0x7c] sm:$0xf] %v742_v19  ;;  %v5579_v0 = vor.u32 %v6601_v61, %v5578_v49  ;;  %v1014_v8 = vld [vmem:[#allocation2 + $0x4c] sm:$0xf]  ;;  %v1093_v9 = vor.u32 %v1092_v4, %v1088_v57  ;;  %v612_v5 = vld [vmem:[#allocation2 + $0x50] sm:$0x1] }
  0xc4   : > { %3115 = vst [vmem:[#allocation3 + $0x1b0] sm:$0xf] %v7399_v27  ;;  %v1084_v23 = vrot.slane %v1083_v6, 4  ;;  %v1182_v32 = vshll.u32 %v1014_v8, 16  ;;  %v1186_v31 = vshrl.u32 %v1014_v8, 16  ;;  %v1175_v18 = vrot.slane %v1173_v24, 4 }
  0xc5   : > { %3116 = vst [vmem:[#allocation3 + $0x1d4] sm:$0xf] %v7403_v40  ;;  %2599 = vmatmul.bf16.gmra.mxu2 %v5579_v0  ;;  %v1094_v48 = vrot.slane %v1093_v9, 4  ;;  %v1178_v49 = vrot.slane %v1176_v30, 5  ;;  %v6642_v0 = vld [vmem:[%s8709_s4 + $0xd8] sm:$0xff]  ;;  %v6651_v8 = vld [vmem:[%s8709_s4 + $0x120] sm:$0xff] }
  0xc6   : > { %951 = vst [vmem:[#allocation3 + $0x90] sm:$0xf] %v931_v26  ;;  %v7420_v38 = vsel %vm7024_vm7, %v1084_v23, %v1088_v57  ;;  %v322_v57 = vld [vmem:[%s6923_s27 + $0x20] sm:$0xff]  ;;  %v910_v6 = vld [vmem:[#allocation2 + $0xb0] sm:$0x1]  ;;  %v323_v9 = vld [vmem:[%s6923_s27 + $0x28] sm:$0xff]  ;;  %2712 = vmatpush.bf16.msrb.mxu3 %v6642_v0  ;;  %2760 = vmatpush.bf16.msrb.mxu0 %v6651_v8 }
  0xc7   : > { %952 = vst [vmem:[#allocation3 + $0xb4] sm:$0xf] %v932_v43  ;;  %v1099_v51 = vsel %vm7024_vm7, %v1094_v48, %v1098_v54  ;;  %v1179_v7 = vor.u32 %v1178_v49, %v1175_v18  ;;  %v3169_v23 = vld [vmem:[#allocation2 + $0xa8] sm:$0xf]  ;;  %v6659_v24 = vld [vmem:[%s8709_s4 + $0x160] sm:$0xff]  ;;  %v7446_v30 = vrot.slane %v1182_v32, 5  ;;  %v401_v48 = vpack.c.bf16 %v385_v13, %v385_v13 }
  0xc8   : > { %979 = vst [vmem:[#allocation3 + $0x18] sm:$0xf] %v931_v26  ;;  %2809 = vmatpush.bf16.msrb.mxu1 %v6659_v24  ;;  %v342_v13 = vmul.f32 %v6966_v17, %v323_v9  ;;  %v5346_v0 = vld [vmem:[%s6923_s27 + $0xe0] sm:$0xff]  ;;  %v5347_v9 = vld [vmem:[%s6923_s27 + $0xe8] sm:$0xff] }
  0xc9   : > { %980 = vst [vmem:[#allocation3 + $0x3c] sm:$0xf] %v932_v43  ;;  %v7412_v34 = vld [vmem:[#allocation2 + $0x78] sm:$0xf]  ;;  %v1180_v18 = vrot.slane %v1179_v7, 4  ;;  %v518_v25 = vshrl.u32 %v401_v48, 16 }
  0xca   : > { %v7416_v3 = vld [vmem:[#allocation2 + $0x7c] sm:$0xf]  ;;  %965 = vst [vmem:[#allocation3 + $0x54] sm:$0xf] %v931_v26  ;;  %v3157_v28 = vld [vmem:[#allocation2 + $0x78] sm:$0xf] }
  0xcb   : > { %966 = vst [vmem:[#allocation3 + $0x78] sm:$0xf] %v932_v43  ;;  %v3158_v63 = vld [vmem:[#allocation2 + $0x7c] sm:$0xf]  ;;  %v3230_v39 = vshrl.u32 %v3157_v28, 16  ;;  %v3233_v19 = vshll.u32 %v3157_v28, 16  ;;  %v1185_v24 = vsel %vm7024_vm7, %v1180_v18, %v7446_v30 }
  0xcc   : > { %884 = vst [vmem:[#allocation2 + $0x80] sm:$0x1] %v883_v37  ;;  %v3239_v42 = vshll.u32 %v3158_v63, 16  ;;  %v3243_v45 = vshrl.u32 %v3158_v63, 16  ;;  %v7448_v37 = vrot.slane %v1186_v31, 4  ;;  %v510_v28 = vshrl.u32 %v7424_v56, 16 }
  0xcd   : > { %v5434_v15 = vld [vmem:[#allocation3 + $0x90] sm:$0xf]  ;;  %1240 = vst [vmem:[#allocation3 + $0x94] sm:$0xf] %v7420_v38  ;;  %v3232_v52 = vrot.slane %v3230_v39, 4  ;;  %v3235_v26 = vrot.slane %v3233_v19, 5 }
  0xce   : > { %v6565_v53 = vld [vmem:[#allocation3 + $0xb0] sm:$0xf0]  ;;  %3107 = vst [vmem:[#allocation3 + $0x90] sm:$0xf] %v7412_v34  ;;  %v3241_v55 = vrot.slane %v3239_v42, 5  ;;  %v3245_v43 = vrot.slane %v3243_v45, 4  ;;  %v341_v42 = vmul.f32 %v6966_v17, %v322_v57 }
  0xcf   : > { %v7426_v61 = vld [vmem:[#allocation3 + $0x18] sm:$0xf]  ;;  %v5435_v62 = vor.u32 %v6565_v53, %v5434_v15  ;;  %3108 = vst [vmem:[#allocation3 + $0xb4] sm:$0xf] %v7416_v3  ;;  %v3236_v60 = vor.u32 %v3235_v26, %v3232_v52  ;;  %v3326_v39 = vshrl.u32 %v3169_v23, 16  ;;  %v3329_v19 = vshll.u32 %v3169_v23, 16 }
  0xd0   : > { %v7435_v4 = vld [vmem:[#allocation3 + $0x38] sm:$0xf0]  ;;  %3135 = vst [vmem:[#allocation3 + $0x18] sm:$0xf] %v7412_v34  ;;  %v3246_v11 = vor.u32 %v3245_v43, %v3241_v55  ;;  %v613_v15 = vsel %vm7051_vm10, %v508_v35, %v612_v5  ;;  %v911_v52 = vsel %vm7051_vm10, %v811_v14, %v910_v6  ;;  %v3170_v26 = vld [vmem:[#allocation2 + $0xac] sm:$0xf]  ;;  %v360_v6 = vadd.f32 %v6986_v33, %v341_v42 }
  0xd1   : > { %2579 = vmatmul.bf16.gmra.mxu0 %v5435_v62  ;;  %3136 = vst [vmem:[#allocation3 + $0x3c] sm:$0xf] %v7416_v3  ;;  %v3237_v54 = vrot.slane %v3236_v60, 4  ;;  %v6633_v53 = vld [vmem:[%s8709_s4 + $0x90] sm:$0xff]  ;;  %v512_v43 = vrot.slane %v510_v28, 7  ;;  %v513_v62 = vshll.u32 %v7424_v56, 16 }
  0xd2   : > { %1241 = vst [vmem:[#allocation3 + $0xb8] sm:$0xf] %v1099_v51  ;;  %v3247_v49 = vrot.slane %v3246_v11, 4  ;;  %v3328_v60 = vrot.slane %v3326_v39, 4  ;;  %v3331_v35 = vrot.slane %v3329_v19, 5  ;;  %2664 = vmatpush.bf16.msrb.mxu2 %v6633_v53  ;;  %v521_v46 = vshll.u32 %v401_v48, 16 }
  0xd3   : > { %1320 = vst [vmem:[#allocation3 + $0x1c] sm:$0xf] %v7420_v38  ;;  %v3159_v63 = vld [vmem:[#allocation2 + $0x80] sm:$0x1]  ;;  %v7455_v32 = vsel %vm7024_vm7, %v3237_v54, %v3241_v55  ;;  %v3335_v14 = vshll.u32 %v3170_v26, 16  ;;  %v7473_v57 = vrot.slane %v518_v25, 7  ;;  %v515_v8 = vor.u32 %v513_v62, %v512_v43 }
  0xd4   : > { %1321 = vst [vmem:[#allocation3 + $0x40] sm:$0xf] %v1099_v51  ;;  %v6561_v45 = vld [vmem:[#allocation3 + $0x94] sm:$0xf]  ;;  %v3249_v31 = vshll.u32 %v3159_v63, 16  ;;  %v658_v54 = vmul.f32 %v5346_v0, %v6966_v17  ;;  %v516_v48 = vrot.slane %v512_v43, 4  ;;  %v659_v19 = vmul.f32 %v5347_v9, %v6966_v17 }
  0xd5   : > { %3393 = vst [vmem:[#allocation3 + $0x94] sm:$0xf] %v7455_v32  ;;  %v615_v5 = vld [vmem:[#allocation2 + $0x54] sm:$0xf]  ;;  %v523_v28 = vor.u32 %v521_v46, %v7473_v57  ;;  %v3332_v18 = vor.u32 %v3331_v35, %v3328_v60  ;;  %v3337_v53 = vrot.slane %v3335_v14, 5  ;;  %v5339_v0 = vld [vmem:[%s6923_s27 + $0xa8] sm:$0xff] }
  0xd6   : > { %v3251_v55 = vrot.slane %v3249_v31, 5  ;;  %1280 = vst [vmem:[#allocation3 + $0x58] sm:$0xf] %v7420_v38  ;;  %v361_v38 = vadd.f32 %v6986_v33, %v342_v13  ;;  %v6641_v63 = vld [vmem:[%s8709_s4 + $0xd0] sm:$0xff]  ;;  %v674_v42 = vadd.f32 %v658_v54, %v6986_v33  ;;  %v1189_v31 = vor.u32 %v7448_v37, %v7446_v30  ;;  %v6658_v13 = vld [vmem:[%s8709_s4 + $0x158] sm:$0xff]  ;;  %v5338_v37 = vld [vmem:[%s6923_s27 + $0xa0] sm:$0xff] }
  0xd7   : > { %1281 = vst [vmem:[#allocation3 + $0x7c] sm:$0xf] %v1099_v51  ;;  %v3339_v51 = vshrl.u32 %v3170_v26, 16  ;;  %2713 = vmatpush.bf16.msrb.mxu3 %v6641_v63  ;;  %v376_v30 = vmax.f32 %v360_v6, 0.0  ;;  %v524_v43 = vsel %vm7033_vm8, %v516_v48, %v523_v28  ;;  %2810 = vmatpush.bf16.msrb.mxu1 %v6658_v13  ;;  %v650_v14 = vmul.f32 %v5338_v37, %v6966_v17 }
  0xd8   : > { %614 = vst [vmem:[#allocation2 + $0x50] sm:$0x1] %v613_v15  ;;  %v7479_v56 = vsel %vm7024_vm7, %v3247_v49, %v3251_v55  ;;  %v6632_v49 = vld [vmem:[%s8709_s4 + $0x88] sm:$0xff]  ;;  %v616_v15 = vsel %vm7039_vm9, %v515_v8, %v615_v5  ;;  %v690_v26 = vmax.f32 %v674_v42, 0.0  ;;  %v377_v62 = vmax.f32 %v361_v38, 0.0 }
  0xd9   : > { %v5436_v7 = vld [vmem:[#allocation3 + $0xb4] sm:$0xf0]  ;;  %912 = vst [vmem:[#allocation2 + $0xb0] sm:$0x1] %v911_v52  ;;  %v675_v52 = vadd.f32 %v659_v19, %v6986_v33  ;;  %v3341_v55 = vrot.slane %v3339_v51, 4  ;;  %2665 = vmatpush.bf16.msrb.mxu2 %v6632_v49  ;;  %v392_v46 = vpack.c.bf16 %v376_v30, %v376_v30  ;;  %v1190_v5 = vrot.slane %v1189_v31, 4 }
  0xda   : > { %v7483_v11 = vld [vmem:[#allocation3 + $0x1c] sm:$0xf]  ;;  %v5439_v23 = vor.u32 %v6561_v45, %v5436_v7  ;;  %3394 = vst [vmem:[#allocation3 + $0xb8] sm:$0xf] %v7479_v56  ;;  %v6650_v45 = vld [vmem:[%s8709_s4 + $0x118] sm:$0xff]  ;;  %v706_v35 = vpack.c.bf16 %v690_v26, %v690_v26  ;;  %v3333_v8 = vrot.slane %v3332_v18, 4  ;;  %v393_v38 = vpack.c.bf16 %v377_v62, %v377_v62 }
  0xdb   : > { %8738 = vst [vmem:[#allocation8_spill] sm:$0xff] %v7483_v11  ;;  %v7493_v39 = vld [vmem:[#allocation3 + $0x3c] sm:$0xf0]  ;;  %2761 = vmatpush.bf16.msrb.mxu0 %v6650_v45  ;;  %v691_v60 = vmax.f32 %v675_v52, 0.0  ;;  %v3342_v48 = vor.u32 %v3341_v55, %v3337_v53  ;;  %v442_v42 = vshrl.u32 %v392_v46, 16  ;;  %v666_v13 = vadd.f32 %v650_v14, %v6986_v33 }
  0xdc   : > { %3473 = vst [vmem:[#allocation3 + $0x1c] sm:$0xf] %v7455_v32  ;;  %2628 = vmatmul.bf16.gmra.mxu1 %v5439_v23  ;;  %v813_v9 = vshrl.u32 %v706_v35, 16  ;;  %v816_v54 = vshll.u32 %v706_v35, 16  ;;  %v913_v18 = vld [vmem:[#allocation2 + $0xb4] sm:$0xf] }
  0xdd   : > { %3474 = vst [vmem:[#allocation3 + $0x40] sm:$0xf] %v7479_v56  ;;  %v707_v51 = vpack.c.bf16 %v691_v60, %v691_v60  ;;  %v3343_v37 = vrot.slane %v3342_v48, 4  ;;  %v445_v55 = vshll.u32 %v392_v46, 16  ;;  %v444_v60 = vrot.slane %v442_v42, 7 }
  0xde   : > { %1248 = vst [vmem:[#allocation3 + $0x1b4] sm:$0xf] %v1185_v24  ;;  %v815_v28 = vrot.slane %v813_v9, 7 }
  0xdf   : > { %1288 = vst [vmem:[#allocation3 + $0x178] sm:$0xf] %v1185_v24  ;;  %v1015_v25 = vld [vmem:[#allocation2 + $0x50] sm:$0x1]  ;;  %v821_v63 = vshrl.u32 %v707_v51, 16  ;;  %v824_v19 = vshll.u32 %v707_v51, 16  ;;  %v447_v9 = vor.u32 %v445_v55, %v444_v60 }
  0xe0   : > { %1328 = vst [vmem:[#allocation3 + $0x13c] sm:$0xf] %v1185_v24  ;;  %v1192_v7 = vshll.u32 %v1015_v25, 16  ;;  %v3171_v6 = vld [vmem:[#allocation2 + $0xb0] sm:$0x1]  ;;  %v651_v24 = vmul.f32 %v5339_v0, %v6966_v17  ;;  %v818_v52 = vor.u32 %v816_v54, %v815_v28  ;;  %v819_v26 = vrot.slane %v815_v28, 4 }
  0xe1   : > { %617 = vst [vmem:[#allocation2 + $0x54] sm:$0xf] %v616_v15  ;;  %v3345_v31 = vshll.u32 %v3171_v6, 16  ;;  %v7524_v15 = vsel %vm7024_vm7, %v3333_v8, %v3337_v53  ;;  %v7526_v30 = vrot.slane %v821_v63, 7  ;;  %v453_v6 = vshll.u32 %v393_v38, 16 }
  0xe2   : > { %618 = vst [vmem:[#allocation2 + $0x58] sm:$0xf] %v524_v43  ;;  %v1194_v23 = vrot.slane %v1192_v7, 5  ;;  %v450_v43 = vshrl.u32 %v393_v38, 16  ;;  %v914_v25 = vsel %vm7039_vm9, %v818_v52, %v913_v18  ;;  %v667_v35 = vadd.f32 %v651_v24, %v6986_v33  ;;  %v587_v54 = vld [vmem:[#allocation2 + $0x24] sm:$0xf] }
  0xe3   : > { %8739 = vst [vmem:[#allocation9_spill] sm:$0xff] %v7524_v15  ;;  %v826_v62 = vor.u32 %v824_v19, %v7526_v30  ;;  %v3347_v53 = vrot.slane %v3345_v31, 5  ;;  %v448_v38 = vrot.slane %v444_v60, 4 }
  0xe4   : > { %v1195_v45 = vsel %vm7024_vm7, %v1190_v5, %v1194_v23  ;;  %v682_v5 = vmax.f32 %v666_v13, 0.0  ;;  %915 = vst [vmem:[#allocation2 + $0xb4] sm:$0xf] %v914_v25  ;;  %v683_v46 = vmax.f32 %v667_v35, 0.0  ;;  %v452_v14 = vrot.slane %v450_v43, 7 }
  0xe5   : > { %1249 = vst [vmem:[#allocation3 + $0x1d8] sm:$0xf] %v1195_v45  ;;  %v6597_v49 = vld [vmem:[#allocation3 + $0x1b4] sm:$0xf]  ;;  %v827_v7 = vsel %vm7033_vm8, %v819_v26, %v826_v62  ;;  %v7537_v24 = vsel %vm7024_vm7, %v3343_v37, %v3347_v53  ;;  %v588_v13 = vsel %vm7039_vm9, %v447_v9, %v587_v54  ;;  %v885_v26 = vld [vmem:[#allocation2 + $0x84] sm:$0xf] }
  0xe6   : > { %3401 = vst [vmem:[#allocation3 + $0x1b4] sm:$0xf] %v7524_v15  ;;  %v698_v51 = vpack.c.bf16 %v682_v5, %v682_v5  ;;  %v699_v23 = vpack.c.bf16 %v683_v46, %v683_v46  ;;  %v455_v31 = vor.u32 %v453_v6, %v452_v14  ;;  %v591_v43 = vld [vmem:[#allocation2 + $0x2c] sm:$0x1]  ;;  %v457_v25 = vrot.slane %v452_v14, 4 }
  0xe7   : > { %1289 = vst [vmem:[#allocation3 + $0x19c] sm:$0xf] %v1195_v45  ;;  %v889_v46 = vld [vmem:[#allocation2 + $0x8c] sm:$0x1] }
  0xe8   : > { %1329 = vst [vmem:[#allocation3 + $0x160] sm:$0xf] %v1195_v45  ;;  %v941_v0 = vld [vmem:[#allocation2 + $0x54] sm:$0xf]  ;;  %v745_v28 = vshrl.u32 %v698_v51, 16  ;;  %v748_v63 = vshll.u32 %v698_v51, 16  ;;  %v456_v53 = vsel %vm7033_vm8, %v448_v38, %v455_v31  ;;  %v592_v9 = vsel %vm7051_vm10, %v457_v25, %v591_v43 }
  0xe9   : > { %v942_v8 = vld [vmem:[#allocation2 + $0x58] sm:$0xf]  ;;  %916 = vst [vmem:[#allocation2 + $0xb8] sm:$0xf] %v827_v7  ;;  %v753_v42 = vshrl.u32 %v699_v23, 16  ;;  %v756_v45 = vshll.u32 %v699_v23, 16 }
  0xea   : > { %961 = vst [vmem:[#allocation3 + $0x1f8] sm:$0xf] %v941_v0  ;;  %v747_v18 = vrot.slane %v745_v28, 7  ;;  %v1016_v14 = vld [vmem:[#allocation2 + $0x54] sm:$0xf] }
  0xeb   : > { %8740 = vst [vmem:[#allocation10_spill] sm:$0xff] %v7537_v24  ;;  %v755_v52 = vrot.slane %v753_v42, 7  ;;  %v7542_v37 = vld [vmem:[#allocation2 + $0xb4] sm:$0xf]  ;;  %v1017_v51 = vld [vmem:[#allocation2 + $0x58] sm:$0xf] }
  0xec   : > { %v5580_v48 = vld [vmem:[#allocation3 + $0x1d4] sm:$0xf0]  ;;  %962 = vst [vmem:[#allocation3 + $0x21c] sm:$0xf] %v942_v8  ;;  %v750_v55 = vor.u32 %v748_v63, %v747_v18  ;;  %v1197_v23 = vshrl.u32 %v1016_v14, 16  ;;  %v1206_v28 = vshll.u32 %v1017_v51, 16 }
  0xed   : > { %v5583_v19 = vor.u32 %v6597_v49, %v5580_v48  ;;  %3402 = vst [vmem:[#allocation3 + $0x1d8] sm:$0xf] %v7537_v24  ;;  %v751_v49 = vrot.slane %v747_v18, 4  ;;  %v758_v60 = vor.u32 %v756_v45, %v755_v52  ;;  %v760_v5 = vrot.slane %v755_v52, 4  ;;  %v619_v18 = vld [vmem:[#allocation2 + $0x5c] sm:$0x1] }
  0xee   : > { %975 = vst [vmem:[#allocation3 + $0x1bc] sm:$0xf] %v941_v0  ;;  %v1200_v48 = vshll.u32 %v1016_v14, 16  ;;  %v525_v63 = vrot.slane %v7473_v57, 4 }
  0xef   : > { %2648 = vmatmul.bf16.gmra.mxu3 %v5583_v19  ;;  %976 = vst [vmem:[#allocation3 + $0x1e0] sm:$0xf] %v942_v8  ;;  %v890_v54 = vsel %vm7051_vm10, %v760_v5, %v889_v46  ;;  %v1210_v19 = vshrl.u32 %v1017_v51, 16 }
  0xf0   : > { %8741 = vst [vmem:[#allocation11_spill] sm:$0xff] %v7542_v37  ;;  %v7544_v62 = vld [vmem:[#allocation2 + $0xb8] sm:$0xf]  ;;  %v620_v14 = vsel %vm7051_vm10, %v525_v63, %v619_v18 }
  0xf1   : > { %989 = vst [vmem:[#allocation3 + $0x180] sm:$0xf] %v941_v0  ;;  %v5614_v35 = vld [vmem:[#allocation3 + $0x1f8] sm:$0xf]  ;;  %v886_v0 = vsel %vm7039_vm9, %v750_v55, %v885_v26  ;;  %v7562_v26 = vrot.slane %v1197_v23, 4  ;;  %v1202_v55 = vrot.slane %v1200_v48, 5 }
  0xf2   : > { %8742 = vst [vmem:[#allocation12_spill] sm:$0xff] %v7544_v62 }
  0xf3   : > { %990 = vst [vmem:[#allocation3 + $0x1a4] sm:$0xf] %v942_v8  ;;  %v6610_v7 = vld [vmem:[#allocation3 + $0x218] sm:$0xf0]  ;;  %v759_v8 = vsel %vm7033_vm8, %v751_v49, %v758_v60  ;;  %v7564_v49 = vrot.slane %v1206_v28, 5 }
  0xf4   : > { %589 = vst [vmem:[#allocation2 + $0x24] sm:$0xf] %v588_v13  ;;  %v5615_v6 = vor.u32 %v6610_v7, %v5614_v35  ;;  %v7559_v13 = vld [vmem:[#allocation2 + $0xb4] sm:$0xf]  ;;  %v7566_v35 = vrot.slane %v1210_v19, 4 }
  0xf5   : > { %3117 = vst [vmem:[#allocation3 + $0x1f8] sm:$0xf] %v7542_v37 }
  0xf6   : > { %3118 = vst [vmem:[#allocation3 + $0x21c] sm:$0xf] %v7544_v62  ;;  %2604 = vmatmul.bf16.gmra.mxu2 %v5615_v6  ;;  %v1213_v52 = vor.u32 %v7566_v35, %v7564_v49 }
  0xf7   : > { %590 = vst [vmem:[#allocation2 + $0x28] sm:$0xf] %v456_v53  ;;  %v3350_v53 = vshrl.u32 %v7559_v13, 16 }
  0xf8   : > { %887 = vst [vmem:[#allocation2 + $0x84] sm:$0xf] %v886_v0 }
  0xf9   : > { %888 = vst [vmem:[#allocation2 + $0x88] sm:$0xf] %v759_v8 }
  0xfa   : > { %593 = vst [vmem:[#allocation2 + $0x2c] sm:$0x1] %v592_v9 }
  0xfb   : > { %v933_v42 = vld [vmem:[#allocation2 + $0x24] sm:$0xf]  ;;  %891 = vst [vmem:[#allocation2 + $0x8c] sm:$0x1] %v890_v54 }
  0xfc   : > { %v1004_v45 = vld [vmem:[#allocation2 + $0x24] sm:$0xf]  ;;  %953 = vst [vmem:[#allocation3 + $0xd8] sm:$0xf] %v933_v42 }
  0xfd   : > { %v1101_v38 = vshrl.u32 %v1004_v45, 16  ;;  %v1104_v31 = vshll.u32 %v1004_v45, 16  ;;  %967 = vst [vmem:[#allocation3 + $0x9c] sm:$0xf] %v933_v42 }
  0xfe   : > { %v934_v57 = vld [vmem:[#allocation2 + $0x28] sm:$0xf]  ;;  %981 = vst [vmem:[#allocation3 + $0x60] sm:$0xf] %v933_v42 }
  0xff   : > { %v1005_v43 = vld [vmem:[#allocation2 + $0x28] sm:$0xf]  ;;  %954 = vst [vmem:[#allocation3 + $0xfc] sm:$0xf] %v934_v57  ;;  %v1103_v25 = vrot.slane %v1101_v38, 4  ;;  %v1106_v60 = vrot.slane %v1104_v31, 5  ;;  %v1203_v31 = vor.u32 %v1202_v55, %v7562_v26 }
 0x100   : > { %v7569_v5 = vld [vmem:[#allocation2 + $0x84] sm:$0xf]  ;;  %968 = vst [vmem:[#allocation3 + $0xc0] sm:$0xf] %v934_v57  ;;  %v1110_v7 = vshll.u32 %v1005_v43, 16  ;;  %v1114_v0 = vshrl.u32 %v1005_v43, 16 }
 0x101   : > { %982 = vst [vmem:[#allocation3 + $0x84] sm:$0xf] %v934_v57  ;;  %v1006_v46 = vld [vmem:[#allocation2 + $0x2c] sm:$0x1]  ;;  %v1107_v6 = vor.u32 %v1106_v60, %v1103_v25  ;;  %v3160_v8 = vld [vmem:[#allocation2 + $0x84] sm:$0xf] }
 0x102   : > { %v7573_v51 = vld [vmem:[#allocation2 + $0x88] sm:$0xf]  ;;  %v1112_v9 = vrot.slane %v1110_v7, 5  ;;  %v1116_v54 = vrot.slane %v1114_v0, 4  ;;  %v1120_v23 = vshll.u32 %v1006_v46, 16  ;;  %v3254_v28 = vshrl.u32 %v3160_v8, 16 }
 0x103   : > { %v3161_v48 = vld [vmem:[#allocation2 + $0x88] sm:$0xf]  ;;  %v5470_v19 = vld [vmem:[#allocation3 + $0xd8] sm:$0xf]  ;;  %v1108_v42 = vrot.slane %v1107_v6, 4  ;;  %v3257_v38 = vshll.u32 %v3160_v8, 16 }
 0x104   : > { %v3162_v45 = vld [vmem:[#allocation2 + $0x8c] sm:$0x1]  ;;  %v7576_v57 = vld [vmem:[#allocation2 + $0xb8] sm:$0xf]  ;;  %3109 = vst [vmem:[#allocation3 + $0xd8] sm:$0xf] %v7569_v5  ;;  %v1117_v43 = vor.u32 %v1116_v54, %v1112_v9 }
 0x105   : > { %v1122_v25 = vrot.slane %v1120_v23, 5  ;;  %v3256_v63 = vrot.slane %v3254_v28, 4  ;;  %v3263_v18 = vshll.u32 %v3161_v48, 16  ;;  %v6640_v60 = vld [vmem:[%s8709_s4 + $0xc8] sm:$0xff]  ;;  %v1113_v7 = vsel %vm7024_vm7, %v1108_v42, %v1112_v9  ;;  %621 = vst [vmem:[#allocation2 + $0x5c] sm:$0x1] %v620_v14 }
 0x106   : > { %v3259_v0 = vrot.slane %v3257_v38, 5  ;;  %v3267_v46 = vshrl.u32 %v3161_v48, 16  ;;  %v917_v6 = vld [vmem:[#allocation2 + $0xbc] sm:$0x1]  ;;  %v3353_v26 = vshll.u32 %v7559_v13, 16  ;;  %v6649_v55 = vld [vmem:[%s8709_s4 + $0x110] sm:$0xff]  ;;  %2714 = vmatpush.bf16.msrb.mxu3 %v6640_v60 }
 0x107   : > { %v7588_v8 = vld [vmem:[#allocation2 + $0x4] sm:$0xf]  ;;  %v6574_v54 = vld [vmem:[#allocation3 + $0xf8] sm:$0xf0]  ;;  %v1118_v23 = vrot.slane %v1117_v43, 4  ;;  %v3265_v28 = vrot.slane %v3263_v18, 5  ;;  %2762 = vmatpush.bf16.msrb.mxu0 %v6649_v55 }
 0x108   : > { %1242 = vst [vmem:[#allocation3 + $0xdc] sm:$0xf] %v1113_v7  ;;  %v7592_v9 = vld [vmem:[#allocation2] sm:$0xe]  ;;  %v5471_v14 = vor.u32 %v6574_v54, %v5470_v19  ;;  %v3260_v13 = vor.u32 %v3259_v0, %v3256_v63  ;;  %v3269_v48 = vrot.slane %v3267_v46, 4  ;;  %v3273_v42 = vshll.u32 %v3162_v45, 16 }
 0x109   : > { %3110 = vst [vmem:[#allocation3 + $0xfc] sm:$0xf] %v7573_v51  ;;  %v6657_v38 = vld [vmem:[%s8709_s4 + $0x150] sm:$0xff]  ;;  %v6631_v43 = vld [vmem:[%s8709_s4 + $0x80] sm:$0xff]  ;;  %v1123_v35 = vsel %vm7024_vm7, %v1118_v23, %v1122_v25  ;;  %v1204_v18 = vrot.slane %v1203_v31, 4  ;;  %v3352_v19 = vrot.slane %v3350_v53, 4 }
 0x10a   : > { %1282 = vst [vmem:[#allocation3 + $0xa0] sm:$0xf] %v1113_v7  ;;  %v3359_v60 = vshll.u32 %v7576_v57, 16  ;;  %v6639_v45 = vld [vmem:[%s8709_s4 + $0xc0] sm:$0xff]  ;;  %2584 = vmatmul.bf16.gmra.mxu0 %v5471_v14  ;;  %v3261_v63 = vrot.slane %v3260_v13, 4  ;;  %v3270_v0 = vor.u32 %v3269_v48, %v3265_v28  ;;  %v3355_v46 = vrot.slane %v3353_v26, 5  ;;  %2811 = vmatpush.bf16.msrb.mxu1 %v6657_v38 }
 0x10b   : > { %1243 = vst [vmem:[#allocation3 + $0x100] sm:$0xf] %v1123_v35  ;;  %v3363_v55 = vshrl.u32 %v7576_v57, 16  ;;  %v8743_v25 = vrot.slane %v7526_v30, 4  ;;  %v1214_v31 = vrot.slane %v1213_v52, 4  ;;  %2666 = vmatpush.bf16.msrb.mxu2 %v6631_v43  ;;  %v1395_v23 = vrot.slane %v7588_v8, 5  ;;  %2715 = vmatpush.bf16.msrb.mxu3 %v6639_v45 }
 0x10c   : > { %1283 = vst [vmem:[#allocation3 + $0xc4] sm:$0xf] %v1123_v35  ;;  %v7612_v54 = vld [vmem:[#allocation2 + $0x8] sm:$0x1]  ;;  %v3275_v14 = vrot.slane %v3273_v42, 5  ;;  %v5350_v57 = vrot.slane %v7592_v9, 9  ;;  %v1209_v30 = vsel %vm7024_vm7, %v1204_v18, %v7564_v49  ;;  %v7621_v48 = vsel %vm7024_vm7, %v3261_v63, %v3265_v28 }
 0x10d   : > { %v918_v53 = vsel %vm7051_vm10, %v8743_v25, %v917_v6  ;;  %1322 = vst [vmem:[#allocation3 + $0x64] sm:$0xf] %v1113_v7  ;;  %v3271_v26 = vrot.slane %v3270_v0, 4  ;;  %v1018_v13 = vld [vmem:[#allocation2 + $0x5c] sm:$0x1]  ;;  %v3361_v52 = vrot.slane %v3359_v60, 5  ;;  %v3356_v7 = vor.u32 %v3355_v46, %v3352_v19 }
 0x10e   : > { %1323 = vst [vmem:[#allocation3 + $0x88] sm:$0xf] %v1123_v35  ;;  %v1216_v8 = vshll.u32 %v1018_v13, 16  ;;  %v3365_v42 = vrot.slane %v3363_v55, 4  ;;  %v1397_v9 = vrot.slane %v1395_v23, 4  ;;  %v1398_v38 = vrot.slane %v7612_v54, 5 }
 0x10f   : > { %v6570_v6 = vld [vmem:[#allocation3 + $0xdc] sm:$0xf]  ;;  %919 = vst [vmem:[#allocation2 + $0xbc] sm:$0x1] %v918_v53  ;;  %v6648_v43 = vld [vmem:[%s8709_s4 + $0x108] sm:$0xff]  ;;  %v6670_v19 = vld [vmem:[%s8709_s4 + $0x1b8] sm:$0xff]  ;;  %v7644_v45 = vsel %vm7024_vm7, %v3271_v26, %v3275_v14 }
 0x110   : > { %3395 = vst [vmem:[#allocation3 + $0xdc] sm:$0xf] %v7621_v48  ;;  %v6656_v49 = vld [vmem:[%s8709_s4 + $0x148] sm:$0xff]  ;;  %v1218_v35 = vrot.slane %v1216_v8, 5  ;;  %v7637_v18 = vld [vmem:[#allocation2 + $0x64] sm:$0xf]  ;;  %2763 = vmatpush.bf16.msrb.mxu0 %v6648_v43  ;;  %v3366_v53 = vor.u32 %v3365_v42, %v3361_v52  ;;  %2855 = vmatpush.bf16.msra.mxu2 %v6670_v19  ;;  %v1399_v19 = vsel %vm7633_vm13, %v1397_v9, %v1398_v38 }
 0x111   : > { %1250 = vst [vmem:[#allocation3 + $0x1fc] sm:$0xf] %v1209_v30  ;;  %2812 = vmatpush.bf16.msrb.mxu1 %v6656_v49  ;;  %v6647_v63 = vld [vmem:[%s8709_s4 + $0x100] sm:$0xff]  ;;  %v3357_v25 = vrot.slane %v3356_v7, 4  ;;  %v5378_v54 = vld [vmem:[#allocation3 + $0x10] sm:$0xf] }
 0x112   : > { %v5472_v60 = vld [vmem:[#allocation3 + $0xfc] sm:$0xf0]  ;;  %1290 = vst [vmem:[#allocation3 + $0x1c0] sm:$0xf] %v1209_v30  ;;  %v6655_v0 = vld [vmem:[%s8709_s4 + $0x140] sm:$0xff]  ;;  %v1219_v55 = vsel %vm7024_vm7, %v1214_v31, %v1218_v35  ;;  %v1396_v31 = vsel %vm7633_vm13, %v5350_v57, %v1395_v23  ;;  %v3545_v43 = vrot.slane %v7637_v18, 5 }
 0x113   : > { %v5475_v46 = vor.u32 %v6570_v6, %v5472_v60  ;;  %3396 = vst [vmem:[#allocation3 + $0x100] sm:$0xf] %v7644_v45  ;;  %v3489_v14 = vld [vmem:[#allocation2 + $0x60] sm:$0xe]  ;;  %v6549_v26 = vld [vmem:[#allocation3 + $0x30] sm:$0xf0]  ;;  %v7668_v23 = vsel %vm7024_vm7, %v3357_v25, %v3361_v52 }
 0x114   : > { %1251 = vst [vmem:[#allocation3 + $0x220] sm:$0xf] %v1219_v55  ;;  %v6678_v13 = vld [vmem:[%s8709_s4 + $0x1f8] sm:$0xff]  ;;  %v3491_v8 = vld [vmem:[#allocation2 + $0x68] sm:$0x1]  ;;  %2764 = vmatpush.bf16.msrb.mxu0 %v6647_v63  ;;  %v3367_v49 = vrot.slane %v3366_v53, 4  ;;  %v5379_v60 = vor.u32 %v6549_v26, %v5378_v54 }
 0x115   : > { %v6686_v6 = vld [vmem:[%s8709_s4 + $0x238] sm:$0xff]  ;;  %2633 = vmatmul.bf16.gmra.mxu1 %v5475_v46  ;;  %1291 = vst [vmem:[#allocation3 + $0x1e4] sm:$0xf] %v1219_v55  ;;  %v1340_v7 = vld [vmem:[#allocation2 + $0x10] sm:$0xf]  ;;  %2904 = vmatpush.bf16.msra.mxu3 %v6678_v13  ;;  %v5936_v63 = vrot.slane %v3489_v14, 9 }
 0x116   : > { %v3174_v42 = vld [vmem:[#allocation2 + $0xbc] sm:$0x1]  ;;  %1330 = vst [vmem:[#allocation3 + $0x184] sm:$0xf] %v1209_v30  ;;  %2813 = vmatpush.bf16.msrb.mxu1 %v6655_v0  ;;  %v1339_v46 = vld [vmem:[#allocation2 + $0xc] sm:$0xe] }
 0x117   : > { %v3369_v35 = vshll.u32 %v3174_v42, 16  ;;  %1331 = vst [vmem:[#allocation3 + $0x1a8] sm:$0xf] %v1219_v55  ;;  %v7670_v57 = vld [vmem:[#allocation3 + $0xc] sm:$0xf]  ;;  %v1402_v30 = vrot.slane %v1340_v7, 5 }
 0x118   : > { %2953 = vmatpush.bf16.msra.mxu0 %v6686_v6  ;;  %v6606_v11 = vld [vmem:[#allocation3 + $0x1fc] sm:$0xf]  ;;  %8746 = vst [vmem:[#allocation13_spill] sm:$0xff] %v7668_v23  ;;  %v3548_v9 = vrot.slane %v3491_v8, 5  ;;  %v7673_v38 = vld [vmem:[#allocation3 + $0x2c] sm:$0xf0] }
 0x119   : > { %1465 = vst [vmem:[#allocation3 + $0x8] sm:$0xf] %v1396_v31  ;;  %v3371_v18 = vrot.slane %v3369_v35, 5  ;;  %v1341_v0 = vld [vmem:[#allocation2 + $0x14] sm:$0x1]  ;;  %v5351_v55 = vrot.slane %v1339_v46, 9  ;;  %v3546_v31 = vsel %vm7633_vm13, %v5936_v63, %v3545_v43 }
 0x11a   : > { %3403 = vst [vmem:[#allocation3 + $0x1fc] sm:$0xf] %v7668_v23  ;;  %v3547_v52 = vrot.slane %v3545_v43, 4  ;;  %2765 = vmatmul.bf16.vlgmr.msrb.gmra.mxu0 %v5379_v60  ;;  %v6766_v25 = vld [vmem:[%s8709_s4 + $0x38] sm:$0xff]  ;;  %v1404_v26 = vrot.slane %v1402_v30, 4  ;;  %v1405_v13 = vrot.slane %v1341_v0, 5 }
 0x11b   : > { %1466 = vst [vmem:[#allocation3 + $0x2c] sm:$0xf] %v1399_v19  ;;  %v5616_v53 = vld [vmem:[#allocation3 + $0x21c] sm:$0xf0]  ;;  %v7677_v54 = vsel %vm7024_vm7, %v3367_v49, %v3371_v18  ;;  %v6669_v6 = vld [vmem:[%s8709_s4 + $0x1b0] sm:$0xff]  ;;  %4711 = vmatpush.bf16.msra.mxu1 %v6766_v25  ;;  %v6791_v28 = vld [vmem:[%s8709_s4 + $0x100] sm:$0xff] }
 0x11c   : > { %8747 = vst [vmem:[#allocation14_spill] sm:$0xff] %v7677_v54  ;;  %v5619_v14 = vor.u32 %v6606_v11, %v5616_v53  ;;  %v3492_v11 = vld [vmem:[#allocation2 + $0x6c] sm:$0xe]  ;;  %2856 = vmatpush.bf16.msra.mxu2 %v6669_v6  ;;  %v6677_v8 = vld [vmem:[%s8709_s4 + $0x1f0] sm:$0xff]  ;;  %v3549_v42 = vsel %vm7633_vm13, %v3547_v52, %v3548_v9  ;;  %v1343_v49 = vld [vmem:[#allocation2 + $0x1c] sm:$0xf] }
 0x11d   : > { %3119 = vst [vmem:[#allocation3 + $0xc] sm:$0xf] %v7270_v20  ;;  %v1403_v20 = vsel %vm7633_vm13, %v5351_v55, %v1402_v30  ;;  %2905 = vmatpush.bf16.msra.mxu3 %v6677_v8  ;;  %v3494_v19 = vld [vmem:[#allocation2 + $0x74] sm:$0x1]  ;;  %v5937_v60 = vrot.slane %v3492_v11, 9  ;;  %v1409_v0 = vrot.slane %v1343_v49, 5 }
 0x11e   : > { %3404 = vst [vmem:[#allocation3 + $0x220] sm:$0xf] %v7677_v54  ;;  %2653 = vmatmul.bf16.gmra.mxu3 %v5619_v14  ;;  %v7701_v30 = vld [vmem:[#allocation3 + $0x54] sm:$0xf]  ;;  %v5414_v18 = vld [vmem:[#allocation3 + $0x58] sm:$0xf] }
 0x11f   : > { %3120 = vst [vmem:[#allocation3 + $0x30] sm:$0xf] %v7277_v29  ;;  %v3493_v29 = vld [vmem:[#allocation2 + $0x70] sm:$0xf]  ;;  %v6558_v63 = vld [vmem:[#allocation3 + $0x78] sm:$0xf0] }
 0x120   : > { %3431 = vst [vmem:[#allocation3 + $0x10] sm:$0xf] %v7323_v50  ;;  %v5370_v7 = vld [vmem:[#allocation3 + $0x8] sm:$0xf]  ;;  %v1406_v50 = vsel %vm7633_vm13, %v1404_v26, %v1405_v13  ;;  %v3552_v46 = vrot.slane %v3493_v29, 5  ;;  %v6685_v9 = vld [vmem:[%s8709_s4 + $0x230] sm:$0xff]  ;;  %v5415_v13 = vor.u32 %v6558_v63, %v5414_v18 }
 0x121   : > { %3432 = vst [vmem:[#allocation3 + $0x34] sm:$0xf] %v7340_v47  ;;  %v1342_v47 = vld [vmem:[#allocation2 + $0x18] sm:$0xe]  ;;  %v1344_v55 = vld [vmem:[#allocation2 + $0x20] sm:$0x1]  ;;  %2954 = vmatpush.bf16.msra.mxu0 %v6685_v9 }
 0x122   : > { %3615 = vst [vmem:[#allocation3 + $0x8] sm:$0xf] %v3546_v31  ;;  %v6548_v43 = vld [vmem:[#allocation3 + $0x28] sm:$0xf0]  ;;  %v6765_v53 = vld [vmem:[%s8709_s4 + $0x30] sm:$0xff]  ;;  %v6668_v52 = vld [vmem:[%s8709_s4 + $0x1a8] sm:$0xff] }
 0x123   : > { %1493 = vst [vmem:[#allocation3 + $0x14] sm:$0xf] %v1403_v20  ;;  %v5371_v35 = vor.u32 %v6548_v43, %v5370_v7  ;;  %v3554_v25 = vrot.slane %v3552_v46, 4  ;;  %v3555_v14 = vrot.slane %v3494_v19, 5  ;;  %v7712_v26 = vld [vmem:[#allocation3 + $0x74] sm:$0xf0]  ;;  %4712 = vmatpush.bf16.msra.mxu1 %v6765_v53  ;;  %2857 = vmatpush.bf16.msra.mxu2 %v6668_v52 }
 0x124   : > { %3616 = vst [vmem:[#allocation3 + $0x2c] sm:$0xf] %v3549_v42  ;;  %v5352_v6 = vrot.slane %v1342_v47, 9  ;;  %v1411_v11 = vrot.slane %v1409_v0, 4  ;;  %v1412_v8 = vrot.slane %v1344_v55, 5 }
 0x125   : > { %1494 = vst [vmem:[#allocation3 + $0x38] sm:$0xf] %v1406_v50  ;;  %2667 = vmatmul.bf16.vlgmr.msrb.gmra.mxu2 %v5371_v35  ;;  %v3496_v7 = vld [vmem:[#allocation2 + $0x7c] sm:$0xf]  ;;  %v7731_v63 = vld [vmem:[#allocation3 + $0x9c] sm:$0xf] }
 0x126   : > { %1467 = vst [vmem:[#allocation3 + $0x50] sm:$0xf] %v1403_v20  ;;  %v3553_v20 = vsel %vm7633_vm13, %v5937_v60, %v3552_v46  ;;  %v1413_v49 = vsel %vm7633_vm13, %v1411_v11, %v1412_v8  ;;  %v3559_v35 = vrot.slane %v3496_v7, 5  ;;  %v1346_v47 = vld [vmem:[#allocation2 + $0x28] sm:$0xf] }
 0x127   : > { %1468 = vst [vmem:[#allocation3 + $0x74] sm:$0xf] %v1406_v50  ;;  %v1345_v9 = vld [vmem:[#allocation2 + $0x24] sm:$0xe]  ;;  %v5450_v55 = vld [vmem:[#allocation3 + $0xa0] sm:$0xf] }
 0x128   : > { %3121 = vst [vmem:[#allocation3 + $0x54] sm:$0xf] %v7412_v34  ;;  %v5375_v34 = vor.u32 %v7670_v57, %v7673_v38  ;;  %v3495_v57 = vld [vmem:[#allocation2 + $0x78] sm:$0xe]  ;;  %v3497_v38 = vld [vmem:[#allocation2 + $0x80] sm:$0x1] }
 0x129   : > { %3122 = vst [vmem:[#allocation3 + $0x78] sm:$0xf] %v7416_v3  ;;  %v3556_v3 = vsel %vm7633_vm13, %v3554_v25, %v3555_v14  ;;  %v5938_v60 = vrot.slane %v3495_v57, 9  ;;  %v3561_v46 = vrot.slane %v3559_v35, 4  ;;  %v3562_v18 = vrot.slane %v3497_v38, 5  ;;  %v6684_v25 = vld [vmem:[%s8709_s4 + $0x228] sm:$0xff] }
 0x12a   : > { %v6545_v31 = vld [vmem:[#allocation3 + $0x14] sm:$0xf]  ;;  %3433 = vst [vmem:[#allocation3 + $0x58] sm:$0xf] %v7455_v32  ;;  %2770 = vmatmul.bf16.gmra.mxu0 %v5415_v13  ;;  %v1410_v32 = vsel %vm7633_vm13, %v5352_v6, %v1409_v0  ;;  %v7733_v0 = vld [vmem:[#allocation3 + $0xbc] sm:$0xf0] }
 0x12b   : > { %3643 = vst [vmem:[#allocation3 + $0x14] sm:$0xf] %v3553_v20  ;;  %v6567_v53 = vld [vmem:[#allocation3 + $0xc0] sm:$0xf0]  ;;  %v1416_v52 = vrot.slane %v1346_v47, 5  ;;  %v6764_v14 = vld [vmem:[%s8709_s4 + $0x28] sm:$0xff]  ;;  %v3563_v8 = vsel %vm7633_vm13, %v3561_v46, %v3562_v18  ;;  %2955 = vmatpush.bf16.msra.mxu0 %v6684_v25 }
 0x12c   : > { %v5380_v42 = vld [vmem:[#allocation3 + $0x34] sm:$0xf0]  ;;  %3434 = vst [vmem:[#allocation3 + $0x7c] sm:$0xf] %v7479_v56  ;;  %v6676_v56 = vld [vmem:[%s8709_s4 + $0x1e8] sm:$0xff]  ;;  %v6667_v13 = vld [vmem:[%s8709_s4 + $0x1a0] sm:$0xff]  ;;  %4713 = vmatpush.bf16.msra.mxu1 %v6764_v14 }
 0x12d   : > { %v5383_v29 = vor.u32 %v6545_v31, %v5380_v42  ;;  %v5406_v50 = vld [vmem:[#allocation3 + $0x50] sm:$0xf]  ;;  %3644 = vst [vmem:[#allocation3 + $0x38] sm:$0xf] %v3556_v3  ;;  %2906 = vmatpush.bf16.msra.mxu3 %v6676_v56  ;;  %v3560_v31 = vsel %vm7633_vm13, %v5938_v60, %v3559_v35  ;;  %v5353_v42 = vrot.slane %v1345_v9, 9  ;;  %2858 = vmatpush.bf16.msra.mxu2 %v6667_v13 }
 0x12e   : > { %v6557_v43 = vld [vmem:[#allocation3 + $0x70] sm:$0xf0]  ;;  %3617 = vst [vmem:[#allocation3 + $0x50] sm:$0xf] %v3553_v20  ;;  %2716 = vmatmul.bf16.vlgmr.msrb.gmra.mxu3 %v5375_v34  ;;  %v5451_v34 = vor.u32 %v6567_v53, %v5450_v55  ;;  %v3499_v57 = vld [vmem:[#allocation2 + $0x88] sm:$0xf] }
 0x12f   : > { %2814 = vmatmul.bf16.vlgmr.msrb.gmra.mxu1 %v5383_v29  ;;  %3618 = vst [vmem:[#allocation3 + $0x74] sm:$0xf] %v3556_v3  ;;  %v5407_v19 = vor.u32 %v6557_v43, %v5406_v50  ;;  %v1347_v20 = vld [vmem:[#allocation2 + $0x2c] sm:$0x1]  ;;  %v1418_v29 = vrot.slane %v1416_v52, 4  ;;  %v1417_v38 = vsel %vm7633_vm13, %v5353_v42, %v1416_v52  ;;  %v3566_v46 = vrot.slane %v3499_v57, 5 }
 0x130   : > { %1495 = vst [vmem:[#allocation3 + $0x5c] sm:$0xf] %v1410_v32  ;;  %v1419_v50 = vrot.slane %v1347_v20, 5  ;;  %v3500_v60 = vld [vmem:[#allocation2 + $0x8c] sm:$0x1]  ;;  %v6683_v20 = vld [vmem:[%s8709_s4 + $0x220] sm:$0xff] }
 0x131   : > { %1496 = vst [vmem:[#allocation3 + $0x80] sm:$0xf] %v1413_v49  ;;  %v3569_v9 = vrot.slane %v3500_v60, 5  ;;  %v1348_v55 = vld [vmem:[#allocation2 + $0x30] sm:$0xe]  ;;  %v3568_v53 = vrot.slane %v3566_v46, 4  ;;  %2956 = vmatpush.bf16.msra.mxu0 %v6683_v20 }
 0x132   : > { %1521 = vst [vmem:[#allocation3 + $0x20] sm:$0xf] %v1410_v32  ;;  %v1420_v56 = vsel %vm7633_vm13, %v1418_v29, %v1419_v50  ;;  %v1350_v52 = vld [vmem:[#allocation2 + $0x38] sm:$0x1]  ;;  %v7765_v14 = vld [vmem:[#allocation3 + $0xe4] sm:$0xf]  ;;  %v2570_v50 = vpop.f32.mrf.mxu0 }
 0x133   : > { %1522 = vst [vmem:[#allocation3 + $0x44] sm:$0xf] %v1413_v49  ;;  %v7767_v13 = vld [vmem:[#allocation3 + $0x104] sm:$0xf0]  ;;  %v5354_v29 = vrot.slane %v1348_v55, 9  ;;  %v1426_v57 = vrot.slane %v1350_v52, 5 }
 0x134   : > { %1469 = vst [vmem:[#allocation3 + $0x98] sm:$0xf] %v1410_v32  ;;  %v1352_v55 = vld [vmem:[#allocation2 + $0x40] sm:$0xf] }
 0x135   : > { %1470 = vst [vmem:[#allocation3 + $0xbc] sm:$0xf] %v1413_v49  ;;  %2672 = vmatmul.bf16.gmra.mxu2 %v5407_v19  ;;  %v5411_v49 = vor.u32 %v7701_v30, %v7712_v26  ;;  %v3498_v19 = vld [vmem:[#allocation2 + $0x84] sm:$0xe]  ;;  %v1349_v26 = vld [vmem:[#allocation2 + $0x34] sm:$0xf] }
 0x136   : > { %3123 = vst [vmem:[#allocation3 + $0x9c] sm:$0xf] %v7569_v5  ;;  %v6675_v30 = vld [vmem:[%s8709_s4 + $0x1e0] sm:$0xff]  ;;  %v5939_v47 = vrot.slane %v3498_v19, 9  ;;  %v1423_v25 = vrot.slane %v1349_v26, 5 }
 0x137   : > { %v6554_v6 = vld [vmem:[#allocation3 + $0x5c] sm:$0xf]  ;;  %3124 = vst [vmem:[#allocation3 + $0xc0] sm:$0xf] %v7573_v51  ;;  %2907 = vmatpush.bf16.msra.mxu3 %v6675_v30 }
 0x138   : > { %v5416_v11 = vld [vmem:[#allocation3 + $0x7c] sm:$0xf0]  ;;  %3645 = vst [vmem:[#allocation3 + $0x5c] sm:$0xf] %v3560_v31  ;;  %v7781_v42 = vsel %vm7633_vm13, %v5939_v47, %v3566_v46  ;;  %v1424_v30 = vsel %vm7633_vm13, %v5354_v29, %v1423_v25  ;;  %v3502_v26 = vld [vmem:[#allocation2 + $0x94] sm:$0xf] }
 0x139   : > { %v7750_v7 = vld [vmem:[#allocation3 + $0x20] sm:$0xf]  ;;  %3646 = vst [vmem:[#allocation3 + $0x80] sm:$0xf] %v3563_v8  ;;  %v5419_v32 = vor.u32 %v6554_v6, %v5416_v11  ;;  %v5486_v6 = vld [vmem:[#allocation3 + $0xe8] sm:$0xf] }
 0x13a   : > { %v7752_v3 = vld [vmem:[#allocation3 + $0x40] sm:$0xf0]  ;;  %3671 = vst [vmem:[#allocation3 + $0x20] sm:$0xf] %v3560_v31  ;;  %2775 = vmatmul.bf16.gmra.mxu0 %v5451_v34  ;;  %v6763_v11 = vld [vmem:[%s8709_s4 + $0x20] sm:$0xff]  ;;  %v3573_v52 = vrot.slane %v3502_v26, 5 }
 0x13b   : > { %3672 = vst [vmem:[#allocation3 + $0x44] sm:$0xf] %v3563_v8  ;;  %v5442_v43 = vld [vmem:[#allocation3 + $0x98] sm:$0xf]  ;;  %4714 = vmatpush.bf16.msra.mxu1 %v6763_v11  ;;  %v1353_v11 = vld [vmem:[#allocation2 + $0x44] sm:$0x1] }
 0x13c   : > { %v6566_v35 = vld [vmem:[#allocation3 + $0xb8] sm:$0xf0]  ;;  %3619 = vst [vmem:[#allocation3 + $0x98] sm:$0xf] %v3560_v31  ;;  %v6576_v31 = vld [vmem:[#allocation3 + $0x108] sm:$0xf0] }
 0x13d   : > { %3620 = vst [vmem:[#allocation3 + $0xbc] sm:$0xf] %v3563_v8  ;;  %v5443_v18 = vor.u32 %v6566_v35, %v5442_v43  ;;  %v6666_v8 = vld [vmem:[%s8709_s4 + $0x198] sm:$0xff]  ;;  %v1425_v35 = vrot.slane %v1423_v25, 4  ;;  %v5487_v19 = vor.u32 %v6576_v31, %v5486_v6  ;;  %v2639_v31 = vpop.f32.mrf.mxu3 }
 0x13e   : > { %3435 = vst [vmem:[#allocation3 + $0xa0] sm:$0xf] %v7621_v48  ;;  %2721 = vmatmul.bf16.gmra.mxu3 %v5411_v49  ;;  %v7786_v49 = vsel %vm7633_vm13, %v3568_v53, %v3569_v9  ;;  %2859 = vmatpush.bf16.msra.mxu2 %v6666_v8  ;;  %v2590_v9 = vpop.f32.mrf.mxu2  ;;  %v3501_v53 = vld [vmem:[#allocation2 + $0x90] sm:$0xe]  ;;  %v3503_v25 = vld [vmem:[#allocation2 + $0x98] sm:$0x1] }
 0x13f   : > { %2819 = vmatmul.bf16.gmra.mxu1 %v5419_v32  ;;  %3436 = vst [vmem:[#allocation3 + $0xc4] sm:$0xf] %v7644_v45  ;;  %v2619_v32 = vpop.f32.mrf.mxu1  ;;  %v1427_v47 = vsel %vm7633_vm13, %v1425_v35, %v1426_v57  ;;  %v1351_v6 = vld [vmem:[#allocation2 + $0x3c] sm:$0xe]  ;;  %v5940_v20 = vrot.slane %v3501_v53, 9  ;;  %v7805_v8 = vadd.f32 %v2639_v31, %v2590_v9 }
 0x140   : > { %1497 = vst [vmem:[#allocation3 + $0xa4] sm:$0xf] %v1417_v38  ;;  %v5355_v35 = vrot.slane %v1351_v6, 9  ;;  %v7811_v57 = vld [vmem:[#allocation3 + $0x12c] sm:$0xf]  ;;  %v6682_v53 = vld [vmem:[%s8709_s4 + $0x218] sm:$0xff] }
 0x141   : > { %1498 = vst [vmem:[#allocation3 + $0xc8] sm:$0xf] %v1420_v56  ;;  %v6665_v6 = vld [vmem:[%s8709_s4 + $0x190] sm:$0xff]  ;;  %2957 = vmatpush.bf16.msra.mxu0 %v6682_v53 }
 0x142   : > { %1471 = vst [vmem:[#allocation3 + $0xe0] sm:$0xf] %v1417_v38  ;;  %2860 = vmatpush.bf16.msra.mxu2 %v6665_v6 }
 0x143   : > { %1472 = vst [vmem:[#allocation3 + $0x104] sm:$0xf] %v1420_v56 }
 0x144   : > { %1523 = vst [vmem:[#allocation3 + $0x68] sm:$0xf] %v1417_v38  ;;  %v7789_v38 = vadd.f32 %v2619_v32, %v2570_v50  ;;  %v3575_v32 = vrot.slane %v3573_v52, 4 }
 0x145   : > { %1524 = vst [vmem:[#allocation3 + $0x8c] sm:$0xf] %v1420_v56  ;;  %2677 = vmatmul.bf16.gmra.mxu2 %v5443_v18  ;;  %v5447_v18 = vor.u32 %v7731_v63, %v7733_v0  ;;  %v6674_v63 = vld [vmem:[%s8709_s4 + $0x1d8] sm:$0xff]  ;;  %v1430_v0 = vrot.slane %v1352_v55, 5  ;;  %v7818_v55 = vsel %vm7633_vm13, %v5940_v20, %v3573_v52  ;;  %v7841_v31 = vpop.f32.mrf.mxu3 }
 0x146   : > { %3125 = vst [vmem:[#allocation3 + $0xe4] sm:$0xf] %v7104_v36  ;;  %2908 = vmatpush.bf16.msra.mxu3 %v6674_v63  ;;  %v6762_v52 = vld [vmem:[%s8709_s4 + $0x18] sm:$0xff] }
 0x147   : > { %v6563_v34 = vld [vmem:[#allocation3 + $0xa4] sm:$0xf]  ;;  %3126 = vst [vmem:[#allocation3 + $0x108] sm:$0xf] %v7109_v44  ;;  %v7809_v29 = vpop.f32.mrf.mxu1  ;;  %v1432_v26 = vrot.slane %v1430_v0, 4  ;;  %4715 = vmatpush.bf16.msra.mxu1 %v6762_v52 }
 0x148   : > { %v5452_v43 = vld [vmem:[#allocation3 + $0xc4] sm:$0xf0]  ;;  %3647 = vst [vmem:[#allocation3 + $0xa4] sm:$0xf] %v7781_v42  ;;  %v3504_v52 = vld [vmem:[#allocation2 + $0x9c] sm:$0xe] }
 0x149   : > { %3648 = vst [vmem:[#allocation3 + $0xc8] sm:$0xf] %v7786_v49  ;;  %v5478_v56 = vld [vmem:[#allocation3 + $0xe0] sm:$0xf]  ;;  %v5455_v46 = vor.u32 %v6563_v34, %v5452_v43  ;;  %v7807_v34 = vpop.f32.mrf.mxu0  ;;  %v3576_v43 = vrot.slane %v3503_v25, 5 }
 0x14a   : > { %v6575_v60 = vld [vmem:[#allocation3 + $0x100] sm:$0xf0]  ;;  %3621 = vst [vmem:[#allocation3 + $0xe0] sm:$0xf] %v7781_v42  ;;  %2780 = vmatmul.bf16.gmra.mxu0 %v5487_v19  ;;  %v7813_v19 = vld [vmem:[#allocation3 + $0x14c] sm:$0xf0] }
 0x14b   : > { %3622 = vst [vmem:[#allocation3 + $0x104] sm:$0xf] %v7786_v49  ;;  %v5479_v50 = vor.u32 %v6575_v60, %v5478_v56  ;;  %v6585_v56 = vld [vmem:[#allocation3 + $0x150] sm:$0xf0] }
 0x14c   : > { %3437 = vst [vmem:[#allocation3 + $0xe8] sm:$0xf] %v7171_v1 }
 0x14d   : > { %3438 = vst [vmem:[#allocation3 + $0x10c] sm:$0xf] %v7175_v2 }
 0x14e   : > { %1499 = vst [vmem:[#allocation3 + $0xec] sm:$0xf] %v1424_v30  ;;  %2726 = vmatmul.bf16.gmra.mxu3 %v5447_v18  ;;  %v1433_v18 = vrot.slane %v1353_v11, 5  ;;  %v1431_v11 = vsel %vm7633_vm13, %v5355_v35, %v1430_v0  ;;  %v1355_v35 = vld [vmem:[#allocation2 + $0x4c] sm:$0xf] }
 0x14f   : > { %2824 = vmatmul.bf16.gmra.mxu1 %v5455_v46  ;;  %1500 = vst [vmem:[#allocation3 + $0x110] sm:$0xf] %v1427_v47  ;;  %v5522_v46 = vld [vmem:[#allocation3 + $0x130] sm:$0xf] }
 0x150   : > { %1473 = vst [vmem:[#allocation3 + $0x128] sm:$0xf] %v1424_v30  ;;  %v5523_v20 = vor.u32 %v6585_v56, %v5522_v46  ;;  %v5483_v46 = vor.u32 %v7765_v14, %v7767_v13  ;;  %v5941_v56 = vrot.slane %v3504_v52, 9  ;;  %v6673_v14 = vld [vmem:[%s8709_s4 + $0x1d0] sm:$0xff] }
 0x151   : > { %1474 = vst [vmem:[#allocation3 + $0x14c] sm:$0xf] %v1427_v47  ;;  %v1356_v13 = vld [vmem:[#allocation2 + $0x50] sm:$0x1]  ;;  %2909 = vmatpush.bf16.msra.mxu3 %v6673_v14  ;;  %v3508_v14 = vld [vmem:[#allocation2 + $0xac] sm:$0xf] }
 0x152   : > { %8748 = vst [vmem:[#allocation15_spill] sm:$0xff] %v7805_v8  ;;  %v7866_v52 = vld [vmem:[#allocation3 + $0x194] sm:$0xf0] }
 0x153   : > { %8749 = vst [vmem:[#allocation16_spill] sm:$0xff] %v7809_v29 }
 0x154   : > { %1525 = vst [vmem:[#allocation3 + $0xb0] sm:$0xf] %v1424_v30  ;;  %v7823_v30 = vsel %vm7633_vm13, %v3575_v32, %v3576_v43  ;;  %v2575_v32 = vpop.f32.mrf.mxu0  ;;  %v2624_v43 = vpop.f32.mrf.mxu1 }
 0x155   : > { %1526 = vst [vmem:[#allocation3 + $0xd4] sm:$0xf] %v1427_v47  ;;  %v6572_v9 = vld [vmem:[#allocation3 + $0xec] sm:$0xf]  ;;  %2682 = vmatmul.bf16.gmra.mxu2 %v5479_v50  ;;  %v7826_v47 = vpop.f32.mrf.mxu2  ;;  %v3505_v50 = vld [vmem:[#allocation2 + $0xa0] sm:$0xf]  ;;  %v7849_v8 = vadd.f32 %v2624_v43, %v2575_v32 }
 0x156   : > { %3127 = vst [vmem:[#allocation3 + $0x12c] sm:$0xf] %v7221_v21  ;;  %v5488_v60 = vld [vmem:[#allocation3 + $0x10c] sm:$0xf0]  ;;  %v3580_v0 = vrot.slane %v3505_v50, 5  ;;  %v2644_v50 = vpop.f32.mrf.mxu3 }
 0x157   : > { %3128 = vst [vmem:[#allocation3 + $0x150] sm:$0xf] %v7229_v12  ;;  %v7835_v25 = vld [vmem:[#allocation3 + $0x128] sm:$0xf]  ;;  %v5491_v53 = vor.u32 %v6572_v9, %v5488_v60 }
 0x158   : > { %3649 = vst [vmem:[#allocation3 + $0xec] sm:$0xf] %v7818_v55  ;;  %v6584_v63 = vld [vmem:[#allocation3 + $0x148] sm:$0xf0]  ;;  %v3582_v9 = vrot.slane %v3580_v0, 4 }
 0x159   : > { %8750 = vst [vmem:[#allocation17_spill] sm:$0xff] %v7826_v47  ;;  %v1434_v47 = vsel %vm7633_vm13, %v1432_v26, %v1433_v18  ;;  %v1354_v26 = vld [vmem:[#allocation2 + $0x48] sm:$0xe]  ;;  %v1437_v18 = vrot.slane %v1355_v35, 5 }
 0x15a   : > { %3650 = vst [vmem:[#allocation3 + $0x110] sm:$0xf] %v7823_v30  ;;  %2785 = vmatmul.bf16.gmra.mxu0 %v5523_v20  ;;  %v7857_v20 = vld [vmem:[#allocation3 + $0x174] sm:$0xf] }
 0x15b   : > { %3623 = vst [vmem:[#allocation3 + $0x128] sm:$0xf] %v7818_v55  ;;  %v1439_v35 = vrot.slane %v1437_v18, 4 }
 0x15c   : > { %8751 = vst [vmem:[#allocation18_spill] sm:$0xff] %v7841_v31  ;;  %v3506_v31 = vld [vmem:[#allocation2 + $0xa4] sm:$0x1]  ;;  %v7861_v43 = vpop.f32.mrf.mxu0 }
 0x15d   : > { %3624 = vst [vmem:[#allocation3 + $0x14c] sm:$0xf] %v7823_v30  ;;  %v3583_v6 = vrot.slane %v3506_v31, 5  ;;  %v2595_v60 = vpop.f32.mrf.mxu2  ;;  %v7863_v31 = vpop.f32.mrf.mxu1 }
 0x15e   : > { %3439 = vst [vmem:[#allocation3 + $0x130] sm:$0xf] %v7352_v58  ;;  %2731 = vmatmul.bf16.gmra.mxu3 %v5483_v46  ;;  %v7859_v32 = vadd.f32 %v2644_v50, %v2595_v60  ;;  %v1440_v60 = vrot.slane %v1356_v13, 5  ;;  %v6664_v13 = vld [vmem:[%s8709_s4 + $0x188] sm:$0xff] }
 0x15f   : > { %8752 = vst [vmem:[#allocation19_spill] sm:$0xff] %v7849_v8  ;;  %2829 = vmatmul.bf16.gmra.mxu1 %v5491_v53  ;;  %v5515_v53 = vor.u32 %v6584_v63, %v7835_v25  ;;  %v5558_v25 = vld [vmem:[#allocation3 + $0x178] sm:$0xf]  ;;  %v6594_v63 = vld [vmem:[#allocation3 + $0x198] sm:$0xf0]  ;;  %2861 = vmatpush.bf16.msra.mxu2 %v6664_v13  ;;  %v7907_v13 = vpop.f32.mrf.mxu3 }
 0x160   : > { %3440 = vst [vmem:[#allocation3 + $0x154] sm:$0xf] %v7368_v59 }
 0x161   : > { %1501 = vst [vmem:[#allocation3 + $0x134] sm:$0xf] %v1431_v11 }
 0x162   : > { %1502 = vst [vmem:[#allocation3 + $0x158] sm:$0xf] %v1434_v47 }
 0x163   : > { %1475 = vst [vmem:[#allocation3 + $0x170] sm:$0xf] %v1431_v11 }
 0x164   : > { %1476 = vst [vmem:[#allocation3 + $0x194] sm:$0xf] %v1434_v47 }
 0x165   : > { %1527 = vst [vmem:[#allocation3 + $0xf8] sm:$0xf] %v1431_v11  ;;  %v5356_v11 = vrot.slane %v1354_v26, 9  ;;  %2687 = vmatmul.bf16.gmra.mxu2 %v5515_v53  ;;  %v1441_v53 = vsel %vm7633_vm13, %v1439_v35, %v1440_v60  ;;  %v5519_v35 = vor.u32 %v7811_v57, %v7813_v19  ;;  %v6672_v19 = vld [vmem:[%s8709_s4 + $0x1c8] sm:$0xff] }
 0x166   : > { %1528 = vst [vmem:[#allocation3 + $0x11c] sm:$0xf] %v1434_v47  ;;  %v7871_v47 = vsel %vm7633_vm13, %v5941_v56, %v3580_v0  ;;  %v6681_v56 = vld [vmem:[%s8709_s4 + $0x210] sm:$0xff]  ;;  %2910 = vmatpush.bf16.msra.mxu3 %v6672_v19 }
 0x167   : > { %8753 = vst [vmem:[#allocation20_spill] sm:$0xff] %v7859_v32  ;;  %v7876_v32 = vsel %vm7633_vm13, %v3582_v9, %v3583_v6  ;;  %v6761_v6 = vld [vmem:[%s8709_s4 + $0x10] sm:$0xff]  ;;  %v1438_v9 = vsel %vm7633_vm13, %v5356_v11, %v1437_v18  ;;  %2958 = vmatpush.bf16.msra.mxu0 %v6681_v56 }
 0x168   : > { %8754 = vst [vmem:[#allocation21_spill] sm:$0xff] %v7861_v43  ;;  %v6581_v46 = vld [vmem:[#allocation3 + $0x134] sm:$0xf]  ;;  %4716 = vmatpush.bf16.msra.mxu1 %v6761_v6  ;;  %v5559_v43 = vor.u32 %v6594_v63, %v5558_v25  ;;  %v3509_v18 = vld [vmem:[#allocation2 + $0xb0] sm:$0x1]  ;;  %v7905_v6 = vpop.f32.mrf.mxu2 }
 0x169   : > { %8755 = vst [vmem:[#allocation22_spill] sm:$0xff] %v7863_v31  ;;  %v5524_v50 = vld [vmem:[#allocation3 + $0x154] sm:$0xf0]  ;;  %v1358_v31 = vld [vmem:[#allocation2 + $0x58] sm:$0xf]  ;;  %v3590_v56 = vrot.slane %v3509_v18, 5 }
 0x16a   : > { %3129 = vst [vmem:[#allocation3 + $0x174] sm:$0xf] %v7399_v27  ;;  %v7880_v26 = vld [vmem:[#allocation3 + $0x170] sm:$0xf]  ;;  %v3587_v27 = vrot.slane %v3508_v14, 5  ;;  %v5527_v59 = vor.u32 %v6581_v46, %v5524_v50  ;;  %2790 = vmatmul.bf16.gmra.mxu0 %v5559_v43 }
 0x16b   : > { %8756 = vst [vmem:[#allocation23_spill] sm:$0xff] %v7871_v47  ;;  %v7882_v0 = vld [vmem:[#allocation3 + $0x190] sm:$0xf0]  ;;  %v1357_v25 = vld [vmem:[#allocation2 + $0x54] sm:$0xe] }
 0x16c   : > { %3130 = vst [vmem:[#allocation3 + $0x198] sm:$0xf] %v7403_v40  ;;  %v3507_v40 = vld [vmem:[#allocation2 + $0xa8] sm:$0xe]  ;;  %v3589_v63 = vrot.slane %v3587_v27, 4  ;;  %v5551_v18 = vor.u32 %v7882_v0, %v7880_v26 }
 0x16d   : > { %8757 = vst [vmem:[#allocation24_spill] sm:$0xff] %v7876_v32  ;;  %v5942_v60 = vrot.slane %v3507_v40, 9  ;;  %v1359_v14 = vld [vmem:[#allocation2 + $0x5c] sm:$0x1]  ;;  %v1019_v46 = vld [vmem:[#allocation2 + $0x60] sm:$0xf] }
 0x16e   : > { %3651 = vst [vmem:[#allocation3 + $0x134] sm:$0xf] %v7871_v47  ;;  %v5357_v40 = vrot.slane %v1357_v25, 9  ;;  %2736 = vmatmul.bf16.gmra.mxu3 %v5519_v35  ;;  %v1447_v43 = vrot.slane %v1359_v14, 5  ;;  %v7930_v25 = vsel %vm7633_vm13, %v3589_v63, %v3590_v56  ;;  %v7933_v14 = vld [vmem:[#allocation2 + $0xb8] sm:$0xf] }
 0x16f   : > { %3652 = vst [vmem:[#allocation3 + $0x158] sm:$0xf] %v7876_v32  ;;  %2834 = vmatmul.bf16.gmra.mxu1 %v5527_v59  ;;  %v1253_v59 = vshrl.u32 %v1019_v46, 16  ;;  %v6603_v26 = vld [vmem:[#allocation3 + $0x1e0] sm:$0xf0]  ;;  %v3594_v19 = vrot.slane %v7933_v14, 5 }
 0x170   : > { %3625 = vst [vmem:[#allocation3 + $0x170] sm:$0xf] %v7871_v47  ;;  %v2629_v47 = vpop.f32.mrf.mxu1  ;;  %v3510_v0 = vld [vmem:[#allocation2 + $0xb4] sm:$0xe]  ;;  %v3512_v56 = vld [vmem:[#allocation2 + $0xbc] sm:$0x1] }
 0x171   : > { %3626 = vst [vmem:[#allocation3 + $0x194] sm:$0xf] %v7876_v32  ;;  %v2580_v32 = vpop.f32.mrf.mxu0 }
 0x172   : > { %3441 = vst [vmem:[#allocation3 + $0x178] sm:$0xf] %v7524_v15  ;;  %v7901_v11 = vadd.f32 %v2629_v47, %v2580_v32  ;;  %v1444_v15 = vrot.slane %v1358_v31, 5  ;;  %v7909_v32 = vld [vmem:[#allocation3 + $0x1bc] sm:$0xf] }
 0x173   : > { %3442 = vst [vmem:[#allocation3 + $0x19c] sm:$0xf] %v7537_v24  ;;  %v7911_v31 = vld [vmem:[#allocation3 + $0x1dc] sm:$0xf0]  ;;  %v1020_v47 = vld [vmem:[#allocation2 + $0x64] sm:$0xf] }
 0x174   : > { %1503 = vst [vmem:[#allocation3 + $0x17c] sm:$0xf] %v1438_v9  ;;  %v1446_v57 = vrot.slane %v1444_v15, 4  ;;  %v1445_v63 = vsel %vm7633_vm13, %v5357_v40, %v1444_v15  ;;  %v6663_v15 = vld [vmem:[%s8709_s4 + $0x180] sm:$0xff] }
 0x175   : > { %8758 = vst [vmem:[#allocation25_spill] sm:$0xff] %v7901_v11  ;;  %2692 = vmatmul.bf16.gmra.mxu2 %v5551_v18  ;;  %v5349_v18 = vld [vmem:[%s6923_s27 + $0xf8] sm:$0xff]  ;;  %v1021_v11 = vld [vmem:[#allocation2 + $0x68] sm:$0x1] }
 0x176   : > { %1504 = vst [vmem:[#allocation3 + $0x1a0] sm:$0xf] %v1441_v53  ;;  %v661_v24 = vmul.f32 %v5349_v18, %v6966_v17  ;;  %2862 = vmatpush.bf16.msra.mxu2 %v6663_v15  ;;  %v944_v15 = vld [vmem:[#allocation2 + $0x64] sm:$0xf]  ;;  %v920_v18 = vld [vmem:[#allocation2 + $0xc0] sm:$0xf] }
 0x177   : > { %1477 = vst [vmem:[#allocation3 + $0x1b8] sm:$0xf] %v1438_v9 }
 0x178   : > { %1478 = vst [vmem:[#allocation3 + $0x1dc] sm:$0xf] %v1441_v53  ;;  %v8014_v22 = vpop.f32.mrf.mxu1 }
 0x179   : > { %8759 = vst [vmem:[#allocation26_spill] sm:$0xff] %v7905_v6 }
 0x17a   : > { %1529 = vst [vmem:[#allocation3 + $0x140] sm:$0xf] %v1438_v9  ;;  %v7921_v9 = vsel %vm7633_vm13, %v5942_v60, %v3587_v27  ;;  %v5594_v60 = vld [vmem:[#allocation3 + $0x1c0] sm:$0xf] }
 0x17b   : > { %8760 = vst [vmem:[#allocation27_spill] sm:$0xff] %v7907_v13  ;;  %v7917_v50 = vld [vmem:[#allocation3 + $0x17c] sm:$0xf]  ;;  %v1266_v13 = vshrl.u32 %v1020_v47, 16  ;;  %v5595_v58 = vor.u32 %v6603_v26, %v5594_v60  ;;  %v1272_v26 = vshll.u32 %v1021_v11, 16 }
 0x17c   : > { %1530 = vst [vmem:[#allocation3 + $0x164] sm:$0xf] %v1441_v53  ;;  %v1256_v53 = vshll.u32 %v1019_v46, 16  ;;  %v1262_v46 = vshll.u32 %v1020_v47, 16  ;;  %v1448_v47 = vsel %vm7633_vm13, %v1446_v57, %v1447_v43  ;;  %v2600_v43 = vpop.f32.mrf.mxu2 }
 0x17d   : > { %3131 = vst [vmem:[#allocation3 + $0x1bc] sm:$0xf] %v7542_v37  ;;  %v7926_v35 = vld [vmem:[#allocation3 + $0x19c] sm:$0xf0]  ;;  %v6680_v37 = vld [vmem:[%s8709_s4 + $0x208] sm:$0xff]  ;;  %v1268_v57 = vrot.slane %v1266_v13, 4  ;;  %2795 = vmatmul.bf16.gmra.mxu0 %v5595_v58 }
 0x17e   : > { %8761 = vst [vmem:[#allocation28_spill] sm:$0xff] %v7921_v9  ;;  %v7936_v27 = vld [vmem:[#allocation3 + $0x1b8] sm:$0xf]  ;;  %v1258_v40 = vrot.slane %v1256_v53, 5  ;;  %v7960_v14 = vrot.slane %v1262_v46, 5  ;;  %2959 = vmatpush.bf16.msra.mxu0 %v6680_v37  ;;  %v5943_v53 = vrot.slane %v3510_v0, 9  ;;  %v677_v46 = vadd.f32 %v661_v24, %v6986_v33 }
 0x17f   : > { %3132 = vst [vmem:[#allocation3 + $0x1e0] sm:$0xf] %v7544_v62  ;;  %v7938_v6 = vld [vmem:[#allocation3 + $0x1d8] sm:$0xf0]  ;;  %v1255_v62 = vrot.slane %v1253_v59, 4  ;;  %v5563_v37 = vor.u32 %v7917_v50, %v7926_v35 }
 0x180   : > { %8762 = vst [vmem:[#allocation29_spill] sm:$0xff] %v7930_v25  ;;  %v5348_v59 = vld [vmem:[%s6923_s27 + $0xf0] sm:$0xff]  ;;  %v1269_v60 = vor.u32 %v1268_v57, %v7960_v14  ;;  %v1361_v50 = vld [vmem:[#allocation2 + $0x64] sm:$0xf]  ;;  %v7977_v11 = vsel %vm7633_vm13, %v5943_v53, %v3594_v19  ;;  %v1360_v57 = vld [vmem:[#allocation2 + $0x60] sm:$0xe] }
 0x181   : > { %3653 = vst [vmem:[#allocation3 + $0x17c] sm:$0xf] %v7921_v9  ;;  %v1259_v29 = vor.u32 %v1258_v40, %v1255_v62  ;;  %2839 = vmatmul.bf16.gmra.mxu1 %v5563_v37 }
 0x182   : > { %3654 = vst [vmem:[#allocation3 + $0x1a0] sm:$0xf] %v7930_v25 }
 0x183   : > { %3627 = vst [vmem:[#allocation3 + $0x1b8] sm:$0xf] %v7921_v9  ;;  %v660_v9 = vmul.f32 %v5348_v59, %v6966_v17  ;;  %v943_v17 = vld [vmem:[#allocation2 + $0x60] sm:$0xf]  ;;  %v1260_v62 = vrot.slane %v1259_v29, 4  ;;  %v7986_v29 = vpop.f32.mrf.mxu0 }
 0x184   : > { %3628 = vst [vmem:[#allocation3 + $0x1dc] sm:$0xf] %v7930_v25  ;;  %v6760_v25 = vld [vmem:[%s8709_s4 + $0x8] sm:$0xff]  ;;  %v8021_v41 = vpop.f32.mrf.mxu2 }
 0x185   : > { %3443 = vst [vmem:[#allocation3 + $0x1c0] sm:$0xf] %v7668_v23  ;;  %v2649_v23 = vpop.f32.mrf.mxu3  ;;  %4717 = vmatpush.bf16.msra.mxu1 %v6760_v25  ;;  %v676_v13 = vadd.f32 %v660_v9, %v6986_v33  ;;  %v3596_v25 = vrot.slane %v3594_v19, 4  ;;  %v1265_v37 = vsel %vm7024_vm7, %v1260_v62, %v7960_v14  ;;  %v6679_v14 = vld [vmem:[%s8709_s4 + $0x200] sm:$0xff] }
 0x186   : > { %3444 = vst [vmem:[#allocation3 + $0x1e4] sm:$0xf] %v7677_v54  ;;  %v7964_v8 = vadd.f32 %v2649_v23, %v2600_v43  ;;  %v3597_v54 = vrot.slane %v3512_v56, 5  ;;  %v5555_v23 = vor.u32 %v7857_v20, %v7866_v52  ;;  %v693_v56 = vmax.f32 %v677_v46, 0.0  ;;  %2960 = vmatpush.bf16.msra.mxu0 %v6679_v14 }
 0x187   : > { %1505 = vst [vmem:[#allocation3 + $0x1c4] sm:$0xf] %v1445_v63  ;;  %v692_v0 = vmax.f32 %v676_v13, 0.0  ;;  %v1270_v20 = vrot.slane %v1269_v60, 4  ;;  %v1274_v52 = vrot.slane %v1272_v26, 5  ;;  %v5587_v43 = vor.u32 %v7938_v6, %v7936_v27  ;;  %v6671_v13 = vld [vmem:[%s8709_s4 + $0x1c0] sm:$0xff] }
 0x188   : > { %1506 = vst [vmem:[#allocation3 + $0x1e8] sm:$0xf] %v1448_v47  ;;  %v709_v24 = vpack.c.bf16 %v693_v56, %v693_v56  ;;  %2741 = vmatmul.bf16.gmra.mxu3 %v5555_v23  ;;  %v7983_v58 = vsel %vm7633_vm13, %v3596_v25, %v3597_v54  ;;  %v1362_v25 = vld [vmem:[#allocation2 + $0x68] sm:$0x1]  ;;  %v1486_v60 = vrot.slane %v1361_v50, 5 }
 0x189   : > { %1479 = vst [vmem:[#allocation3 + $0x200] sm:$0xf] %v1445_v63  ;;  %v708_v33 = vpack.c.bf16 %v692_v0, %v692_v0  ;;  %v924_v27 = vld [vmem:[#allocation2 + $0xc8] sm:$0x1]  ;;  %2911 = vmatpush.bf16.msra.mxu3 %v6671_v13  ;;  %2697 = vmatmul.bf16.gmra.mxu2 %v5587_v43 }
 0x18a   : > { %1480 = vst [vmem:[#allocation3 + $0x224] sm:$0xf] %v1448_v47  ;;  %v838_v40 = vshrl.u32 %v709_v24, 16  ;;  %v841_v59 = vshll.u32 %v709_v24, 16  ;;  %v1489_v24 = vrot.slane %v1362_v25, 5  ;;  %v1488_v50 = vrot.slane %v1486_v60, 4  ;;  %4718 = vmatpush.bf16.msra.mxu1 %v6759_v16 }
 0x18b   : > { %1531 = vst [vmem:[#allocation3 + $0x188] sm:$0xf] %v1445_v63  ;;  %v830_v63 = vshrl.u32 %v708_v33, 16 }
 0x18c   : > { %1532 = vst [vmem:[#allocation3 + $0x1ac] sm:$0xf] %v1448_v47  ;;  %v833_v47 = vshll.u32 %v708_v33, 16  ;;  %v840_v46 = vrot.slane %v838_v40, 7  ;;  %v5358_v33 = vrot.slane %v1360_v57, 9  ;;  %v5591_v40 = vor.u32 %v7909_v32, %v7911_v31 }
 0x18d   : > { %977 = vst [vmem:[#allocation3 + $0x204] sm:$0xf] %v943_v17  ;;  %v832_v54 = vrot.slane %v830_v63, 7  ;;  %v2585_v63 = vpop.f32.mrf.mxu0 }
 0x18e   : > { %v7973_v9 = vld [vmem:[#allocation3 + $0x1c4] sm:$0xf]  ;;  %978 = vst [vmem:[#allocation3 + $0x228] sm:$0xf] %v944_v15  ;;  %v843_v23 = vor.u32 %v841_v59, %v840_v46  ;;  %v845_v0 = vrot.slane %v840_v46, 4 }
 0x18f   : > { %v7979_v35 = vld [vmem:[#allocation3 + $0x1e4] sm:$0xf0]  ;;  %3655 = vst [vmem:[#allocation3 + $0x1c4] sm:$0xf] %v7977_v11  ;;  %v835_v26 = vor.u32 %v833_v47, %v832_v54  ;;  %v836_v6 = vrot.slane %v832_v54, 4  ;;  %v1487_v47 = vsel %vm7633_vm13, %v5358_v33, %v1486_v60 }
 0x190   : > { %3656 = vst [vmem:[#allocation3 + $0x1e8] sm:$0xf] %v7983_v58  ;;  %v7989_v19 = vld [vmem:[#allocation3 + $0x200] sm:$0xf] }
 0x191   : > { %v7993_v53 = vld [vmem:[#allocation3 + $0x220] sm:$0xf0]  ;;  %3629 = vst [vmem:[#allocation3 + $0x200] sm:$0xf] %v7977_v11  ;;  %v921_v56 = vsel %vm7039_vm9, %v835_v26, %v920_v18  ;;  %v844_v62 = vsel %vm7033_vm8, %v836_v6, %v843_v23 }
 0x192   : > { %3630 = vst [vmem:[#allocation3 + $0x224] sm:$0xf] %v7983_v58  ;;  %v6774_v18 = vld [vmem:[%s8709_s4 + $0x78] sm:$0xff] }
 0x193   : > { %991 = vst [vmem:[#allocation3 + $0x1c8] sm:$0xf] %v943_v17  ;;  %v925_v17 = vsel %vm7051_vm10, %v845_v0, %v924_v27  ;;  %4760 = vmatpush.bf16.msrb.mxu2 %v6774_v18  ;;  %v6782_v6 = vld [vmem:[%s8709_s4 + $0xb8] sm:$0xff]  ;;  %v5623_v27 = vor.u32 %v7993_v53, %v7989_v19 }
 0x194   : > { %992 = vst [vmem:[#allocation3 + $0x1ec] sm:$0xf] %v944_v15  ;;  %v1275_v15 = vsel %vm7024_vm7, %v1270_v20, %v1274_v52  ;;  %v5599_v20 = vor.u32 %v7973_v9, %v7979_v35  ;;  %v1490_v52 = vsel %vm7633_vm13, %v1488_v50, %v1489_v24  ;;  %v8029_v59 = vld [vmem:[#allocation3 + $0x204] sm:$0xf]  ;;  %4809 = vmatpush.bf16.msrb.mxu3 %v6782_v6 }
 0x195   : > { %1292 = vst [vmem:[#allocation3 + $0x208] sm:$0xf] %v1265_v37  ;;  %v8034_v57 = vld [vmem:[#allocation3 + $0x224] sm:$0xf0]  ;;  %v8047_v24 = vpop.f32.mrf.mxu0 }
 0x196   : > { %922 = vst [vmem:[#allocation2 + $0xc0] sm:$0xf] %v921_v56  ;;  %2844 = vmatmul.bf16.gmra.mxu1 %v5599_v20 }
 0x197   : > { %923 = vst [vmem:[#allocation2 + $0xc4] sm:$0xf] %v844_v62 }
 0x198   : > { %926 = vst [vmem:[#allocation2 + $0xc8] sm:$0x1] %v925_v17  ;;  %2746 = vmatmul.bf16.gmra.mxu3 %v5591_v40  ;;  %v2605_v40 = vpop.f32.mrf.mxu2 }
 0x199   : > { %1293 = vst [vmem:[#allocation3 + $0x22c] sm:$0xf] %v1275_v15  ;;  %2702 = vmatmul.bf16.gmra.mxu2 %v5623_v27  ;;  %v6798_v27 = vld [vmem:[%s8709_s4 + $0x138] sm:$0xff] }
 0x19a   : > { %1332 = vst [vmem:[#allocation3 + $0x1cc] sm:$0xf] %v1265_v37  ;;  %4907 = vmatpush.bf16.msrb.mxu1 %v6798_v27  ;;  %v6569_v27 = vld [vmem:[#allocation3 + $0xd0] sm:$0xf0] }
 0x19b   : > { %1333 = vst [vmem:[#allocation3 + $0x1f0] sm:$0xf] %v1275_v15  ;;  %v2634_v15 = vpop.f32.mrf.mxu1 }
 0x19c   : > { %v5630_v43 = vld [vmem:[#allocation3 + $0x208] sm:$0xf]  ;;  %1507 = vst [vmem:[#allocation3 + $0x20c] sm:$0xf] %v1487_v47  ;;  %v8049_v18 = vadd.f32 %v2634_v15, %v2585_v63 }
 0x19d   : > { %v8036_v9 = vld [vmem:[#allocation2 + $0xc0] sm:$0xf]  ;;  %1508 = vst [vmem:[#allocation3 + $0x230] sm:$0xf] %v1490_v52  ;;  %v8078_v6 = vpop.f32.mrf.mxu0 }
 0x19e   : > { %v3175_v35 = vld [vmem:[#allocation2 + $0xc0] sm:$0xf]  ;;  %v8038_v54 = vld [vmem:[#allocation2 + $0xc4] sm:$0xf]  ;;  %3133 = vst [vmem:[#allocation3 + $0x204] sm:$0xf] %v8036_v9 }
 0x19f   : > { %v3176_v32 = vld [vmem:[#allocation2 + $0xc4] sm:$0xf]  ;;  %3134 = vst [vmem:[#allocation3 + $0x228] sm:$0xf] %v8038_v54  ;;  %v3177_v31 = vld [vmem:[#allocation2 + $0xc8] sm:$0x1] }
 0x1a0   : > { %v3406_v13 = vshrl.u32 %v3175_v35, 16  ;;  %v3409_v46 = vshll.u32 %v3175_v35, 16  ;;  %v6612_v37 = vld [vmem:[#allocation3 + $0x228] sm:$0xf0]  ;;  %v3415_v25 = vshll.u32 %v3176_v32, 16  ;;  %v3419_v60 = vshrl.u32 %v3176_v32, 16 }
 0x1a1   : > { %v3425_v26 = vshll.u32 %v3177_v31, 16  ;;  %v5631_v23 = vor.u32 %v6612_v37, %v5630_v43  ;;  %1533 = vst [vmem:[#allocation3 + $0x1d0] sm:$0xf] %v1487_v47  ;;  %v3513_v33 = vld [vmem:[#allocation2 + $0xc0] sm:$0xe] }
 0x1a2   : > { %v3408_v0 = vrot.slane %v3406_v13, 4  ;;  %v3411_v56 = vrot.slane %v3409_v46, 5  ;;  %v3417_v14 = vrot.slane %v3415_v25, 5  ;;  %v3421_v62 = vrot.slane %v3419_v60, 4  ;;  %1534 = vst [vmem:[#allocation3 + $0x1f4] sm:$0xf] %v1490_v52  ;;  %v8066_v60 = vpop.f32.mrf.mxu3 }
 0x1a3   : > { %v5944_v17 = vrot.slane %v3513_v33, 9  ;;  %2800 = vmatmul.bf16.gmra.mxu0 %v5631_v23  ;;  %v3514_v16 = vld [vmem:[#allocation2 + $0xc4] sm:$0xf]  ;;  %v3515_v20 = vld [vmem:[#allocation2 + $0xc8] sm:$0x1]  ;;  %v3427_v53 = vrot.slane %v3425_v26, 5 }
 0x1a4   : > { %v3412_v50 = vor.u32 %v3411_v56, %v3408_v0  ;;  %v3422_v19 = vor.u32 %v3421_v62, %v3417_v14  ;;  %v3636_v43 = vrot.slane %v3514_v16, 5  ;;  %v3639_v35 = vrot.slane %v3515_v20, 5  ;;  %v8051_v32 = vld [vmem:[#allocation3 + $0x60] sm:$0xf]  ;;  %v6608_v13 = vld [vmem:[#allocation3 + $0x20c] sm:$0xf] }
 0x1a5   : > { %v6790_v52 = vld [vmem:[%s8709_s4 + $0xf8] sm:$0xff]  ;;  %3137 = vst [vmem:[#allocation3 + $0x60] sm:$0xf] %v7569_v5  ;;  %v5632_v25 = vld [vmem:[#allocation3 + $0x22c] sm:$0xf0]  ;;  %v5627_v56 = vor.u32 %v8029_v59, %v8034_v57  ;;  %v6781_v57 = vld [vmem:[%s8709_s4 + $0xb0] sm:$0xff] }
 0x1a6   : > { %v3413_v47 = vrot.slane %v3412_v50, 4  ;;  %v3423_v31 = vrot.slane %v3422_v19, 4  ;;  %v8058_v46 = vsel %vm7633_vm13, %v5944_v17, %v3636_v43  ;;  %v3638_v63 = vrot.slane %v3636_v43, 4  ;;  %4858 = vmatpush.bf16.msrb.mxu0 %v6790_v52  ;;  %v8084_v0 = vld [vmem:[#allocation3 + $0x80] sm:$0xf0]  ;;  %v2607_v17 = vpop.f32.mrf.mxu2  ;;  %v8107_v50 = vpop.f32.mrf.mxu0  ;;  %4810 = vmatpush.bf16.msrb.mxu3 %v6781_v57 }
 0x1a7   : > { %3657 = vst [vmem:[#allocation3 + $0x20c] sm:$0xf] %v8058_v46  ;;  %v5635_v23 = vor.u32 %v6608_v13, %v5632_v25  ;;  %v8089_v33 = vld [vmem:[#allocation3 + $0x64] sm:$0xf]  ;;  %v8094_v62 = vld [vmem:[#allocation3 + $0x84] sm:$0xf0] }
 0x1a8   : > { %v8063_v37 = vsel %vm7024_vm7, %v3413_v47, %v3417_v14  ;;  %v8070_v26 = vsel %vm7024_vm7, %v3423_v31, %v3427_v53  ;;  %v8076_v5 = vsel %vm7633_vm13, %v3638_v63, %v3639_v35  ;;  %3138 = vst [vmem:[#allocation3 + $0x84] sm:$0xf] %v7573_v51  ;;  %v6773_v14 = vld [vmem:[%s8709_s4 + $0x70] sm:$0xff]  ;;  %v5430_v15 = vld [vmem:[#allocation3 + $0x68] sm:$0xf]  ;;  %2751 = vmatmul.bf16.gmra.mxu3 %v5627_v56  ;;  %v8763_v35 = vld [vmem:[#allocation8_spill] sm:$0xff] }
 0x1a9   : > { %3445 = vst [vmem:[#allocation3 + $0x208] sm:$0xf] %v8063_v37  ;;  %2849 = vmatmul.bf16.gmra.mxu1 %v5635_v23  ;;  %v5395_v51 = vor.u32 %v7752_v3, %v7750_v7  ;;  %4761 = vmatpush.bf16.msrb.mxu2 %v6773_v14  ;;  %v6560_v59 = vld [vmem:[#allocation3 + $0x88] sm:$0xf0]  ;;  %v8111_v7 = vpop.f32.mrf.mxu1  ;;  %v8113_v3 = vld [vmem:[#allocation3 + $0xa8] sm:$0xf]  ;;  %v5391_v52 = vor.u32 %v8763_v35, %v7493_v39 }
 0x1aa   : > { %3446 = vst [vmem:[#allocation3 + $0x22c] sm:$0xf] %v8070_v26  ;;  %v6797_v53 = vld [vmem:[%s8709_s4 + $0x130] sm:$0xff]  ;;  %v8132_v31 = vld [vmem:[#allocation3 + $0xac] sm:$0xf]  ;;  %v5431_v25 = vor.u32 %v6560_v59, %v5430_v15  ;;  %v6780_v39 = vld [vmem:[%s8709_s4 + $0xa8] sm:$0xff] }
 0x1ab   : > { %3658 = vst [vmem:[#allocation3 + $0x230] sm:$0xf] %v8076_v5  ;;  %4908 = vmatpush.bf16.msrb.mxu1 %v6797_v53  ;;  %v8137_v13 = vld [vmem:[#allocation3 + $0xcc] sm:$0xf0]  ;;  %4811 = vmatpush.bf16.msrb.mxu3 %v6780_v39  ;;  %v5984_v59 = vld [vmem:[#allocation3 + $0x48] sm:$0xf] }
 0x1ac   : > { %3475 = vst [vmem:[#allocation3 + $0x64] sm:$0xf] %v7621_v48  ;;  %v5387_v48 = vor.u32 %v7435_v4, %v7426_v61  ;;  %v6789_v61 = vld [vmem:[%s8709_s4 + $0xf0] sm:$0xff]  ;;  %v5948_v4 = vld [vmem:[#allocation3] sm:$0xf] }
 0x1ad   : > { %3476 = vst [vmem:[#allocation3 + $0x88] sm:$0xf] %v7644_v45  ;;  %v2654_v45 = vpop.f32.mrf.mxu3  ;;  %4859 = vmatpush.bf16.msrb.mxu0 %v6789_v61  ;;  %v5466_v63 = vld [vmem:[#allocation3 + $0xb0] sm:$0xf]  ;;  %v6700_v57 = vld [vmem:[#allocation3 + $0x68] sm:$0xf0] }
 0x1ae   : > { %3673 = vst [vmem:[#allocation3 + $0x68] sm:$0xf] %v7781_v42  ;;  %v8109_v16 = vadd.f32 %v2654_v45, %v2605_v40  ;;  %v8115_v42 = vld [vmem:[#allocation3 + $0xc8] sm:$0xf0]  ;;  %2863 = vmatmul.bf16.vlgmr.msra.gmra.mxu2 %v5387_v48  ;;  %v2668_v20 = vpop.f32.mrf.mxu2  ;;  %v8123_v19 = vpop.f32.mrf.mxu0  ;;  %v8150_v15 = vld [vmem:[#allocation3 + $0xf0] sm:$0xf] }
 0x1af   : > { %3674 = vst [vmem:[#allocation3 + $0x8c] sm:$0xf] %v7786_v49  ;;  %v6691_v49 = vld [vmem:[#allocation3 + $0x20] sm:$0xf0]  ;;  %v2669_v40 = vadd.f32 %v2668_v20, %v7789_v38  ;;  %v6772_v38 = vld [vmem:[%s8709_s4 + $0x68] sm:$0xff]  ;;  %v5985_v20 = vor.u32 %v6700_v57, %v5984_v59  ;;  %v8768_v39 = vld [vmem:[#allocation23_spill] sm:$0xff] }
 0x1b0   : > { %3139 = vst [vmem:[#allocation3 + $0xa8] sm:$0xf] %v7104_v36  ;;  %v5949_v43 = vor.u32 %v6691_v49, %v5948_v4  ;;  %4762 = vmatpush.bf16.msrb.mxu2 %v6772_v38  ;;  %v8178_v35 = vld [vmem:[#allocation3 + $0x114] sm:$0xf0]  ;;  %v8767_v38 = vld [vmem:[#allocation5_spill] sm:$0xff]  ;;  %v8770_v59 = vld [vmem:[#allocation6_spill] sm:$0xff] }
 0x1b1   : > { %3140 = vst [vmem:[#allocation3 + $0xcc] sm:$0xf] %v7109_v44  ;;  %v2815_v44 = vpop.f32.mrf.mxu1  ;;  %v8771_v57 = vld [vmem:[#allocation7_spill] sm:$0xff] }
 0x1b2   : > { %3477 = vst [vmem:[#allocation3 + $0xac] sm:$0xf] %v7171_v1  ;;  %v5423_v1 = vor.u32 %v8084_v0, %v8051_v32  ;;  %v8764_v32 = vld [vmem:[#allocation16_spill] sm:$0xff] }
 0x1b3   : > { %2961 = vmatmul.bf16.vlgmr.msra.gmra.mxu0 %v5395_v51  ;;  %3478 = vst [vmem:[#allocation3 + $0xd0] sm:$0xf] %v7175_v2  ;;  %v2622_v0 = vadd.f32 %v8764_v32, %v7807_v34  ;;  %v5427_v34 = vor.u32 %v8089_v33, %v8094_v62  ;;  %v5467_v33 = vor.u32 %v6569_v27, %v5466_v63  ;;  %v6578_v62 = vld [vmem:[#allocation3 + $0x118] sm:$0xf0]  ;;  %v8195_v32 = vld [vmem:[#allocation3 + $0x138] sm:$0xf] }
 0x1b4   : > { %3675 = vst [vmem:[#allocation3 + $0xb0] sm:$0xf] %v7818_v55  ;;  %v8152_v55 = vld [vmem:[#allocation3 + $0x110] sm:$0xf0] }
 0x1b5   : > { %v2656_v36 = vpop.f32.mrf.mxu3  ;;  %3676 = vst [vmem:[#allocation3 + $0xd4] sm:$0xf] %v7823_v30  ;;  %v6788_v30 = vld [vmem:[%s8709_s4 + $0xe8] sm:$0xff] }
 0x1b6   : > { %v8128_v47 = vadd.f32 %v2656_v36, %v2607_v17  ;;  %v2670_v23 = vpop.f32.mrf.mxu2  ;;  %v8148_v56 = vpop.f32.mrf.mxu0  ;;  %3141 = vst [vmem:[#allocation3 + $0xf0] sm:$0xf] %v7221_v21  ;;  %4860 = vmatpush.bf16.msrb.mxu0 %v6788_v30  ;;  %v8765_v21 = vld [vmem:[#allocation19_spill] sm:$0xff]  ;;  %v8172_v36 = vld [vmem:[#allocation3 + $0xf4] sm:$0xf] }
 0x1b7   : > { %3142 = vst [vmem:[#allocation3 + $0x114] sm:$0xf] %v7229_v12  ;;  %v2671_v61 = vadd.f32 %v2670_v23, %v2622_v0  ;;  %v6796_v12 = vld [vmem:[%s8709_s4 + $0x128] sm:$0xff]  ;;  %v8197_v0 = vld [vmem:[#allocation3 + $0x158] sm:$0xf0] }
 0x1b8   : > { %2912 = vmatmul.bf16.vlgmr.msra.gmra.mxu3 %v5391_v52  ;;  %4909 = vmatpush.bf16.msrb.mxu1 %v6796_v12  ;;  %v8766_v52 = vld [vmem:[#allocation4_spill] sm:$0xff]  ;;  %3480 = vst [vmem:[#allocation3 + $0x118] sm:$0xf] %v8767_v38 }
 0x1b9   : > { %4719 = vmatmul.bf16.vlgmr.msra.gmra.mxu1 %v5949_v43  ;;  %v2817_v17 = vpop.f32.mrf.mxu1  ;;  %3479 = vst [vmem:[#allocation3 + $0xf4] sm:$0xf] %v8766_v52 }
 0x1ba   : > { %3143 = vst [vmem:[#allocation3 + $0x138] sm:$0xf] %v8770_v59  ;;  %v8777_v59 = vld [vmem:[#allocation28_spill] sm:$0xff] }
 0x1bb   : > { %3144 = vst [vmem:[#allocation3 + $0x15c] sm:$0xf] %v8771_v57 }
 0x1bd   : > { %v2717_v2 = vpop.f32.mrf.mxu3 }
 0x1be   : > { %v2718_v14 = vadd.f32 %v2717_v2, %v2669_v40  ;;  %2868 = vmatmul.bf16.gmra.mxu2 %v5423_v1  ;;  %v2673_v45 = vpop.f32.mrf.mxu2  ;;  %v8769_v2 = vld [vmem:[#allocation24_spill] sm:$0xff] }
 0x1bf   : > { %v2674_v4 = vadd.f32 %v2673_v45, %v8765_v21  ;;  %3678 = vst [vmem:[#allocation3 + $0x11c] sm:$0xf] %v8769_v2  ;;  %v8773_v45 = vld [vmem:[#allocation22_spill] sm:$0xff]  ;;  %v8223_v2 = vld [vmem:[#allocation3 + $0x15c] sm:$0xf0] }
 0x1c0   : > { %v2767_v51 = vadd.f32 %v8078_v6, %v2718_v14  ;;  %v8165_v6 = vpop.f32.mrf.mxu0  ;;  %v5459_v14 = vor.u32 %v8115_v42, %v8113_v3  ;;  %v6787_v3 = vld [vmem:[%s8709_s4 + $0xe0] sm:$0xff]  ;;  %v6020_v21 = vld [vmem:[#allocation3 + $0x90] sm:$0xf] }
 0x1c1   : > { %v2820_v53 = vpop.f32.mrf.mxu1  ;;  %v8772_v42 = vld [vmem:[#allocation21_spill] sm:$0xff]  ;;  %4861 = vmatpush.bf16.msrb.mxu0 %v6787_v3 }
 0x1c2   : > { %v8162_v48 = vadd.f32 %v2815_v44, %v2767_v51  ;;  %v6771_v44 = vld [vmem:[%s8709_s4 + $0x60] sm:$0xff] }
 0x1c3   : > { %2966 = vmatmul.bf16.gmra.mxu0 %v5431_v25  ;;  %v8182_v25 = vld [vmem:[#allocation3 + $0xf8] sm:$0xf]  ;;  %4763 = vmatpush.bf16.msrb.mxu2 %v6771_v44  ;;  %v8778_v3 = vld [vmem:[#allocation29_spill] sm:$0xff] }
 0x1c4   : > { %3677 = vst [vmem:[#allocation3 + $0xf8] sm:$0xf] %v8768_v39  ;;  %v5463_v39 = vor.u32 %v8132_v31, %v8137_v13  ;;  %v5503_v31 = vor.u32 %v6578_v62, %v8182_v25  ;;  %v6587_v13 = vld [vmem:[#allocation3 + $0x160] sm:$0xf0] }
 0x1c5   : > { %v2719_v49 = vpop.f32.mrf.mxu3  ;;  %3680 = vst [vmem:[#allocation3 + $0x164] sm:$0xf] %v8778_v3  ;;  %v6777_v3 = vld [vmem:[%s8709_s4 + $0x90] sm:$0xff] }
 0x1c6   : > { %v2720_v40 = vadd.f32 %v2719_v49, %v2671_v61  ;;  %v2675_v1 = vpop.f32.mrf.mxu2  ;;  %v2627_v61 = vadd.f32 %v8773_v45, %v8772_v42  ;;  %v5495_v42 = vor.u32 %v8152_v55, %v8150_v15  ;;  %v6786_v15 = vld [vmem:[%s8709_s4 + $0xd8] sm:$0xff]  ;;  %v2632_v55 = vadd.f32 %v8014_v22, %v7986_v29 }
 0x1c7   : > { %4862 = vmatpush.bf16.msrb.mxu0 %v6786_v15  ;;  %v5499_v29 = vor.u32 %v8172_v36, %v8178_v35  ;;  %v8263_v22 = vld [vmem:[#allocation3 + $0x184] sm:$0xf]  ;;  %v2637_v36 = vadd.f32 %v8111_v7, %v8047_v24  ;;  %v5531_v24 = vor.u32 %v8197_v0, %v8195_v32  ;;  %v6092_v32 = vld [vmem:[#allocation3 + $0x120] sm:$0xf] }
 0x1c8   : > { %v2769_v43 = vadd.f32 %v8107_v50, %v2720_v40  ;;  %2917 = vmatmul.bf16.gmra.mxu3 %v5427_v34  ;;  %v6779_v50 = vld [vmem:[%s8709_s4 + $0xa0] sm:$0xff]  ;;  %v8193_v51 = vpop.f32.mrf.mxu0  ;;  %v6727_v0 = vld [vmem:[#allocation3 + $0x140] sm:$0xf0] }
 0x1c9   : > { %4724 = vmatmul.bf16.gmra.mxu1 %v5985_v20  ;;  %4812 = vmatpush.bf16.msrb.mxu3 %v6779_v50  ;;  %v2822_v30 = vpop.f32.mrf.mxu1  ;;  %v2676_v20 = vadd.f32 %v2675_v1, %v2627_v61  ;;  %v8774_v40 = vld [vmem:[#allocation25_spill] sm:$0xff]  ;;  %v6770_v1 = vld [vmem:[%s8709_s4 + $0x58] sm:$0xff] }
 0x1ca   : > { %v8188_v23 = vadd.f32 %v2817_v17, %v2769_v43  ;;  %v6795_v43 = vld [vmem:[%s8709_s4 + $0x120] sm:$0xff]  ;;  %4764 = vmatpush.bf16.msrb.mxu2 %v6770_v1 }
 0x1cb   : > { %4910 = vmatpush.bf16.msrb.mxu1 %v6795_v43 }
 0x1cd   : > { %v2722_v63 = vpop.f32.mrf.mxu3 }
 0x1ce   : > { %v2723_v27 = vadd.f32 %v2722_v63, %v2674_v4  ;;  %2873 = vmatmul.bf16.gmra.mxu2 %v5459_v14  ;;  %v6709_v4 = vld [vmem:[#allocation3 + $0xb0] sm:$0xf0]  ;;  %v2678_v49 = vpop.f32.mrf.mxu2  ;;  %v8775_v14 = vld [vmem:[#allocation9_spill] sm:$0xff] }
 0x1cf   : > { %v2679_v34 = vadd.f32 %v2678_v49, %v8774_v40  ;;  %v6021_v52 = vor.u32 %v6709_v4, %v6020_v21  ;;  %v8776_v63 = vld [vmem:[#allocation10_spill] sm:$0xff]  ;;  %v8241_v21 = vld [vmem:[#allocation3 + $0x180] sm:$0xf]  ;;  %v8243_v4 = vld [vmem:[#allocation3 + $0x1a0] sm:$0xf0] }
 0x1d0   : > { %v2772_v17 = vadd.f32 %v8123_v19, %v2723_v27  ;;  %v8210_v19 = vpop.f32.mrf.mxu0  ;;  %3482 = vst [vmem:[#allocation3 + $0x160] sm:$0xf] %v8776_v63  ;;  %v8227_v27 = vld [vmem:[#allocation3 + $0x140] sm:$0xf]  ;;  %v8779_v49 = vld [vmem:[#allocation11_spill] sm:$0xff] }
 0x1d1   : > { %3679 = vst [vmem:[#allocation3 + $0x140] sm:$0xf] %v8777_v59  ;;  %v6056_v40 = vld [vmem:[#allocation3 + $0xd8] sm:$0xf]  ;;  %v8781_v59 = vld [vmem:[#allocation13_spill] sm:$0xff]  ;;  %v5539_v35 = vor.u32 %v6587_v13, %v8227_v27 }
 0x1d2   : > { %v8207_v12 = vadd.f32 %v2820_v53, %v2772_v17  ;;  %v8217_v53 = vld [vmem:[#allocation3 + $0x13c] sm:$0xf]  ;;  %3145 = vst [vmem:[#allocation3 + $0x180] sm:$0xf] %v8779_v49 }
 0x1d3   : > { %2971 = vmatmul.bf16.gmra.mxu0 %v5467_v33  ;;  %v2825_v33 = vpop.f32.mrf.mxu1  ;;  %3481 = vst [vmem:[#allocation3 + $0x13c] sm:$0xf] %v8775_v14 }
 0x1d4   : > { %3483 = vst [vmem:[#allocation3 + $0x184] sm:$0xf] %v8781_v59  ;;  %v1023_v59 = vld [vmem:[#allocation2 + $0x70] sm:$0xf] }
 0x1d5   : > { %v2724_v44 = vpop.f32.mrf.mxu3 }
 0x1d6   : > { %v2725_v38 = vadd.f32 %v2724_v44, %v2676_v20  ;;  %v2680_v57 = vpop.f32.mrf.mxu2  ;;  %v8780_v20 = vld [vmem:[#allocation12_spill] sm:$0xff] }
 0x1d7   : > { %3146 = vst [vmem:[#allocation3 + $0x1a4] sm:$0xf] %v8780_v20 }
 0x1d8   : > { %v2774_v50 = vadd.f32 %v8148_v56, %v2725_v38  ;;  %2922 = vmatmul.bf16.gmra.mxu3 %v5463_v39  ;;  %v6778_v56 = vld [vmem:[%s8709_s4 + $0x98] sm:$0xff]  ;;  %v8239_v45 = vpop.f32.mrf.mxu0 }
 0x1d9   : > { %4729 = vmatmul.bf16.gmra.mxu1 %v6021_v52  ;;  %4813 = vmatpush.bf16.msrb.mxu3 %v6778_v56  ;;  %v2681_v52 = vadd.f32 %v2680_v57, %v2632_v55  ;;  %v6794_v39 = vld [vmem:[%s8709_s4 + $0x118] sm:$0xff]  ;;  %v8782_v56 = vld [vmem:[#allocation14_spill] sm:$0xff]  ;;  %v8273_v57 = vld [vmem:[#allocation3 + $0x188] sm:$0xf] }
 0x1da   : > { %v8234_v17 = vadd.f32 %v2822_v30, %v2774_v50  ;;  %4911 = vmatpush.bf16.msrb.mxu1 %v6794_v39  ;;  %3681 = vst [vmem:[#allocation3 + $0x188] sm:$0xf] %v7977_v11  ;;  %v8291_v11 = vld [vmem:[#allocation3 + $0x1c8] sm:$0xf]  ;;  %v8783_v55 = vld [vmem:[#allocation15_spill] sm:$0xff] }
 0x1db   : > { %v2827_v61 = vpop.f32.mrf.mxu1  ;;  %3147 = vst [vmem:[#allocation3 + $0x1c8] sm:$0xf] %v8036_v9  ;;  %v6793_v9 = vld [vmem:[%s8709_s4 + $0x110] sm:$0xff]  ;;  %v1022_v39 = vld [vmem:[#allocation2 + $0x6c] sm:$0xf] }
 0x1dd   : > { %v2727_v25 = vpop.f32.mrf.mxu3  ;;  %4814 = vmatpush.bf16.msrb.mxu3 %v6777_v3  ;;  %v1298_v3 = vshll.u32 %v1022_v39, 16 }
 0x1de   : > { %v2728_v62 = vadd.f32 %v2727_v25, %v2679_v34  ;;  %2878 = vmatmul.bf16.gmra.mxu2 %v5495_v42  ;;  %v6718_v34 = vld [vmem:[#allocation3 + $0xf8] sm:$0xf0]  ;;  %v2683_v44 = vpop.f32.mrf.mxu2  ;;  %4912 = vmatpush.bf16.msrb.mxu1 %v6793_v9  ;;  %v6128_v9 = vld [vmem:[#allocation3 + $0x168] sm:$0xf] }
 0x1df   : > { %v2684_v38 = vadd.f32 %v2683_v44, %v8049_v18  ;;  %v6057_v1 = vor.u32 %v6718_v34, %v6056_v40  ;;  %v6769_v18 = vld [vmem:[%s8709_s4 + $0x50] sm:$0xff] }
 0x1e0   : > { %v2777_v30 = vadd.f32 %v8165_v6, %v2728_v62  ;;  %v8256_v6 = vpop.f32.mrf.mxu0  ;;  %4765 = vmatpush.bf16.msrb.mxu2 %v6769_v18  ;;  %v1295_v18 = vshrl.u32 %v1022_v39, 16  ;;  %v3101_v39 = vld [vmem:[#allocation2 + $0xcc] sm:$0xf] }
 0x1e2   : > { %v8253_v43 = vadd.f32 %v2825_v33, %v2777_v30  ;;  %v8293_v30 = vld [vmem:[#allocation3 + $0x1e8] sm:$0xf0] }
 0x1e3   : > { %2976 = vmatmul.bf16.gmra.mxu0 %v5503_v31  ;;  %v2830_v63 = vpop.f32.mrf.mxu1  ;;  %v8269_v31 = vld [vmem:[#allocation3 + $0x1a4] sm:$0xf0]  ;;  %3148 = vst [vmem:[#allocation3 + $0x1ec] sm:$0xf] %v8038_v54  ;;  %v6093_v54 = vor.u32 %v6727_v0, %v6092_v32  ;;  %v1365_v0 = vld [vmem:[#allocation2 + $0x74] sm:$0x1] }
 0x1e4   : > { %3484 = vst [vmem:[#allocation3 + $0x1a8] sm:$0xf] %v8782_v56  ;;  %v1297_v56 = vrot.slane %v1295_v18, 4  ;;  %v8785_v18 = vld [vmem:[#allocation18_spill] sm:$0xff] }
 0x1e5   : > { %v2729_v50 = vpop.f32.mrf.mxu3 }
 0x1e6   : > { %v2730_v14 = vadd.f32 %v2729_v50, %v2681_v52  ;;  %v2685_v25 = vpop.f32.mrf.mxu2  ;;  %v8313_v50 = vld [vmem:[#allocation3 + $0x1cc] sm:$0xf] }
 0x1e7   : > { %v2686_v62 = vadd.f32 %v2685_v25, %v2637_v36  ;;  %3485 = vst [vmem:[#allocation3 + $0x1cc] sm:$0xf] %v8063_v37  ;;  %v6776_v37 = vld [vmem:[%s8709_s4 + $0x88] sm:$0xff]  ;;  %v1304_v25 = vshll.u32 %v1023_v59, 16 }
 0x1e8   : > { %v2779_v33 = vadd.f32 %v8193_v51, %v2730_v14  ;;  %2927 = vmatmul.bf16.gmra.mxu3 %v5499_v29  ;;  %v8278_v51 = vld [vmem:[#allocation3 + $0x1a8] sm:$0xf0]  ;;  %v8289_v7 = vpop.f32.mrf.mxu0  ;;  %v8319_v29 = vld [vmem:[#allocation3 + $0x1ec] sm:$0xf0] }
 0x1e9   : > { %4734 = vmatmul.bf16.gmra.mxu1 %v6057_v1  ;;  %3682 = vst [vmem:[#allocation3 + $0x1ac] sm:$0xf] %v7983_v58  ;;  %v6785_v58 = vld [vmem:[%s8709_s4 + $0xd0] sm:$0xff]  ;;  %v945_v1 = vld [vmem:[#allocation2 + $0x6c] sm:$0xf]  ;;  %4815 = vmatpush.bf16.msrb.mxu3 %v6776_v37 }
 0x1ea   : > { %v8284_v42 = vadd.f32 %v2827_v61, %v2779_v33  ;;  %4863 = vmatpush.bf16.msrb.mxu0 %v6785_v58  ;;  %v946_v33 = vld [vmem:[#allocation2 + $0x70] sm:$0xf]  ;;  %3486 = vst [vmem:[#allocation3 + $0x1f0] sm:$0xf] %v8070_v26 }
 0x1eb   : > { %v2832_v49 = vpop.f32.mrf.mxu1  ;;  %993 = vst [vmem:[#allocation3 + $0x210] sm:$0xf] %v945_v1 }
 0x1ec   : > { %994 = vst [vmem:[#allocation3 + $0x234] sm:$0xf] %v946_v33  ;;  %v8784_v33 = vld [vmem:[#allocation17_spill] sm:$0xff] }
 0x1ed   : > { %v2732_v27 = vpop.f32.mrf.mxu3 }
 0x1ee   : > { %v2733_v13 = vadd.f32 %v2732_v27, %v2684_v38  ;;  %2883 = vmatmul.bf16.gmra.mxu2 %v5531_v24  ;;  %v2688_v15 = vpop.f32.mrf.mxu2  ;;  %v5535_v38 = vor.u32 %v8217_v53, %v8223_v2  ;;  %v8323_v53 = vld [vmem:[#allocation3 + $0x1d0] sm:$0xf]  ;;  %v8325_v2 = vld [vmem:[#allocation3 + $0x1f0] sm:$0xf0] }
 0x1ef   : > { %v2689_v40 = vadd.f32 %v2688_v15, %v8783_v55  ;;  %3683 = vst [vmem:[#allocation3 + $0x1d0] sm:$0xf] %v8058_v46  ;;  %v1308_v46 = vshrl.u32 %v1023_v59, 16 }
 0x1f0   : > { %v2782_v61 = vadd.f32 %v8210_v19, %v2733_v13  ;;  %v8304_v34 = vpop.f32.mrf.mxu0  ;;  %3684 = vst [vmem:[#allocation3 + $0x1f4] sm:$0xf] %v8076_v5  ;;  %v1300_v13 = vrot.slane %v1298_v3, 5 }
 0x1f1   : > { %v1310_v32 = vrot.slane %v1308_v46, 4 }
 0x1f2   : > { %v8301_v20 = vadd.f32 %v2830_v63, %v2782_v61  ;;  %v6768_v63 = vld [vmem:[%s8709_s4 + $0x48] sm:$0xff]  ;;  %v1364_v61 = vld [vmem:[#allocation2 + $0x70] sm:$0xf]  ;;  %v1301_v55 = vor.u32 %v1300_v13, %v1297_v56 }
 0x1f3   : > { %2981 = vmatmul.bf16.gmra.mxu0 %v5539_v35  ;;  %v8309_v52 = vpop.f32.mrf.mxu1  ;;  %4766 = vmatpush.bf16.msrb.mxu2 %v6768_v63  ;;  %v1024_v35 = vld [vmem:[#allocation2 + $0x74] sm:$0x1]  ;;  %v1517_v63 = vrot.slane %v1365_v0, 5 }
 0x1f5   : > { %v2734_v19 = vpop.f32.mrf.mxu3 }
 0x1f6   : > { %v2735_v44 = vadd.f32 %v2734_v19, %v2686_v62  ;;  %v2690_v26 = vpop.f32.mrf.mxu2  ;;  %v1363_v62 = vld [vmem:[#allocation2 + $0x6c] sm:$0xe]  ;;  %v6736_v19 = vld [vmem:[#allocation3 + $0x188] sm:$0xf0] }
 0x1f7   : > { %v5359_v15 = vrot.slane %v1363_v62, 9  ;;  %v6792_v62 = vld [vmem:[%s8709_s4 + $0x108] sm:$0xff]  ;;  %v6129_v13 = vor.u32 %v6736_v19, %v6128_v9 }
 0x1f8   : > { %v2784_v14 = vadd.f32 %v8239_v45, %v2735_v44  ;;  %2932 = vmatmul.bf16.gmra.mxu3 %v5535_v38  ;;  %v5575_v45 = vor.u32 %v8278_v51, %v8273_v57  ;;  %v5567_v57 = vor.u32 %v8243_v4, %v8241_v21  ;;  %v1314_v51 = vshll.u32 %v1024_v35, 16  ;;  %v8338_v27 = vpop.f32.mrf.mxu0  ;;  %v8351_v35 = vld [vmem:[#allocation3 + $0x210] sm:$0xf]  ;;  %4913 = vmatpush.bf16.msrb.mxu1 %v6792_v62 }
 0x1f9   : > { %4739 = vmatmul.bf16.gmra.mxu1 %v6093_v54  ;;  %v1514_v21 = vrot.slane %v1364_v61, 5  ;;  %v6784_v54 = vld [vmem:[%s8709_s4 + $0xc8] sm:$0xff]  ;;  %3149 = vst [vmem:[#allocation3 + $0x210] sm:$0xf] %v3101_v39  ;;  %v5603_v39 = vor.u32 %v8293_v30, %v8291_v11 }
 0x1fa   : > { %v8333_v36 = vadd.f32 %v2832_v49, %v2784_v14  ;;  %v1306_v49 = vrot.slane %v1304_v25, 5  ;;  %v1316_v38 = vrot.slane %v1314_v51, 5  ;;  %4864 = vmatpush.bf16.msrb.mxu0 %v6784_v54  ;;  %v8356_v51 = vld [vmem:[#allocation3 + $0x230] sm:$0xf0] }
 0x1fb   : > { %v2837_v5 = vpop.f32.mrf.mxu1  ;;  %v1515_v1 = vsel %vm7633_vm13, %v5359_v15, %v1514_v21  ;;  %v1516_v14 = vrot.slane %v1514_v21, 4  ;;  %v6767_v15 = vld [vmem:[%s8709_s4 + $0x40] sm:$0xff]  ;;  %v3178_v21 = vld [vmem:[#allocation2 + $0xcc] sm:$0xf] }
 0x1fc   : > { %v1311_v44 = vor.u32 %v1310_v32, %v1306_v49  ;;  %1535 = vst [vmem:[#allocation3 + $0x218] sm:$0xf] %v1515_v1  ;;  %4767 = vmatpush.bf16.msrb.mxu2 %v6767_v15  ;;  %v3448_v19 = vshrl.u32 %v3178_v21, 16  ;;  %v3451_v54 = vshll.u32 %v3178_v21, 16  ;;  %v3517_v1 = vld [vmem:[#allocation2 + $0xd0] sm:$0xf]  ;;  %4914 = vmatpush.bf16.msrb.mxu1 %v6791_v28 }
 0x1fd   : > { %v2737_v24 = vpop.f32.mrf.mxu3  ;;  %v1518_v61 = vsel %vm7633_vm13, %v1516_v14, %v1517_v63  ;;  %v3518_v14 = vld [vmem:[#allocation2 + $0xd4] sm:$0x1] }
 0x1fe   : > { %v2738_v58 = vadd.f32 %v2737_v24, %v2689_v40  ;;  %2888 = vmatmul.bf16.gmra.mxu2 %v5567_v57  ;;  %v1302_v40 = vrot.slane %v1301_v55, 4  ;;  %v1312_v37 = vrot.slane %v1311_v44, 4  ;;  %v2693_v56 = vpop.f32.mrf.mxu2  ;;  %v8786_v57 = vld [vmem:[#allocation20_spill] sm:$0xff]  ;;  %1536 = vst [vmem:[#allocation3 + $0x23c] sm:$0xf] %v1518_v61  ;;  %v5611_v55 = vor.u32 %v8325_v2, %v8323_v53 }
 0x1ff   : > { %v2694_v46 = vadd.f32 %v2693_v56, %v8786_v57  ;;  %v3450_v2 = vrot.slane %v3448_v19, 4  ;;  %v3667_v56 = vrot.slane %v3518_v14, 5 }
 0x200   : > { %v2787_v4 = vadd.f32 %v8256_v6, %v2738_v58  ;;  %v3102_v6 = vld [vmem:[#allocation2 + $0xd0] sm:$0xf]  ;;  %v1307_v3 = vsel %vm7024_vm7, %v1302_v40, %v1306_v49  ;;  %v5571_v58 = vor.u32 %v8263_v22, %v8269_v31  ;;  %v8367_v32 = vpop.f32.mrf.mxu0  ;;  %v3180_v31 = vld [vmem:[#allocation2 + $0xd4] sm:$0x1] }
 0x201   : > { %3150 = vst [vmem:[#allocation3 + $0x234] sm:$0xf] %v3102_v6  ;;  %v3179_v22 = vld [vmem:[#allocation2 + $0xd0] sm:$0xf]  ;;  %v3467_v40 = vshll.u32 %v3180_v31, 16 }
 0x202   : > { %v8349_v59 = vadd.f32 %v8309_v52, %v2787_v4  ;;  %v1317_v52 = vsel %vm7024_vm7, %v1312_v37, %v1316_v38  ;;  %1334 = vst [vmem:[#allocation3 + $0x214] sm:$0xf] %v1307_v3  ;;  %v3461_v44 = vshrl.u32 %v3179_v22, 16  ;;  %v3516_v38 = vld [vmem:[#allocation2 + $0xcc] sm:$0xe]  ;;  %v3664_v37 = vrot.slane %v3517_v1, 5 }
 0x203   : > { %2986 = vmatmul.bf16.gmra.mxu0 %v5575_v45  ;;  %v2642_v45 = vadd.f32 %v8785_v18, %v8784_v33  ;;  %1335 = vst [vmem:[#allocation3 + $0x238] sm:$0xf] %v1317_v52  ;;  %v5945_v63 = vrot.slane %v3516_v38, 9  ;;  %v3453_v33 = vrot.slane %v3451_v54, 5  ;;  %v6775_v3 = vld [vmem:[%s8709_s4 + $0x80] sm:$0xff]  ;;  %v3469_v30 = vrot.slane %v3467_v40, 5 }
 0x204   : > { %v5646_v62 = vld [vmem:[#allocation3 + $0x218] sm:$0xf]  ;;  %4816 = vmatpush.bf16.msrb.mxu3 %v6775_v3 }
 0x205   : > { %v2691_v25 = vadd.f32 %v2690_v26, %v2642_v45  ;;  %v2739_v24 = vpop.f32.mrf.mxu3  ;;  %v2840_v26 = vpop.f32.mrf.mxu1  ;;  %v3463_v45 = vrot.slane %v3461_v44, 4  ;;  %v3665_v52 = vsel %vm7633_vm13, %v5945_v63, %v3664_v37  ;;  %v6614_v21 = vld [vmem:[#allocation3 + $0x238] sm:$0xf0]  ;;  %v6200_v3 = vld [vmem:[#allocation3 + $0x1f8] sm:$0xf] }
 0x206   : > { %v2695_v9 = vpop.f32.mrf.mxu2  ;;  %3685 = vst [vmem:[#allocation3 + $0x218] sm:$0xf] %v3665_v52 }
 0x207   : > { %v2740_v49 = vadd.f32 %v2739_v24, %v2691_v25  ;;  %v3454_v25 = vor.u32 %v3453_v33, %v3450_v2  ;;  %v3666_v24 = vrot.slane %v3664_v37, 4  ;;  %v6814_v2 = vld [vmem:[%s8709_s4 + $0x1b8] sm:$0xff] }
 0x208   : > { %2937 = vmatmul.bf16.gmra.mxu3 %v5571_v58  ;;  %v8787_v58 = vld [vmem:[#allocation26_spill] sm:$0xff] }
 0x209   : > { %v2789_v0 = vadd.f32 %v8289_v7, %v2740_v49  ;;  %4744 = vmatmul.bf16.gmra.mxu1 %v6129_v13  ;;  %v3457_v7 = vshll.u32 %v3179_v22, 16  ;;  %v8388_v13 = vpop.f32.mrf.mxu0  ;;  %v3455_v61 = vrot.slane %v3454_v25, 4  ;;  %v3668_v22 = vsel %vm7633_vm13, %v3666_v24, %v3667_v56  ;;  %v6609_v54 = vld [vmem:[#allocation3 + $0x214] sm:$0xf]  ;;  %5005 = vmatpush.bf16.msra.mxu3 %v6814_v2  ;;  %v6754_v25 = vld [vmem:[#allocation3 + $0x218] sm:$0xf0] }
 0x20a   : > { %3686 = vst [vmem:[#allocation3 + $0x23c] sm:$0xf] %v3668_v22  ;;  %v5640_v40 = vld [vmem:[#allocation3 + $0x234] sm:$0xf0]  ;;  %v2652_v56 = vadd.f32 %v8066_v60, %v8021_v41  ;;  %v6201_v41 = vor.u32 %v6754_v25, %v6200_v3 }
 0x20b   : > { %v8375_v4 = vadd.f32 %v2837_v5, %v2789_v0  ;;  %v3459_v18 = vrot.slane %v3457_v7, 5  ;;  %v8788_v0 = vld [vmem:[#allocation27_spill] sm:$0xff]  ;;  %v5643_v24 = vor.u32 %v6609_v54, %v5640_v40  ;;  %v6693_v40 = vld [vmem:[#allocation3 + $0x30] sm:$0xf0] }
 0x20c   : > { %v2647_v15 = vadd.f32 %v8788_v0, %v8787_v58  ;;  %v6687_v58 = vld [vmem:[#allocation3 + $0x4] sm:$0xf]  ;;  %v5950_v0 = vld [vmem:[#allocation3 + $0x24] sm:$0xf0] }
 0x20d   : > { %v2742_v53 = vpop.f32.mrf.mxu3  ;;  %v2842_v6 = vpop.f32.mrf.mxu1  ;;  %v3464_v11 = vor.u32 %v3463_v45, %v3459_v18  ;;  %v3460_v7 = vsel %vm7024_vm7, %v3455_v61, %v3459_v18  ;;  %v5958_v61 = vld [vmem:[#allocation3 + $0x2c] sm:$0xf0]  ;;  %v5953_v22 = vor.u32 %v6687_v58, %v5950_v0 }
 0x20e   : > { %v2743_v5 = vadd.f32 %v2742_v53, %v2694_v46  ;;  %2893 = vmatmul.bf16.gmra.mxu2 %v5603_v39  ;;  %v6783_v46 = vld [vmem:[%s8709_s4 + $0xc0] sm:$0xff]  ;;  %v2698_v19 = vpop.f32.mrf.mxu2  ;;  %v2696_v38 = vadd.f32 %v2695_v9, %v2647_v15  ;;  %3487 = vst [vmem:[#allocation3 + $0x214] sm:$0xf] %v3460_v7  ;;  %v5607_v53 = vor.u32 %v8313_v50, %v8319_v29  ;;  %v6820_v58 = vld [vmem:[%s8709_s4 + $0x1e8] sm:$0xff] }
 0x20f   : > { %v3465_v49 = vrot.slane %v3464_v11, 4  ;;  %4865 = vmatpush.bf16.msrb.mxu0 %v6783_v46  ;;  %v2699_v39 = vadd.f32 %v2698_v19, %v7964_v8  ;;  %v6806_v8 = vld [vmem:[%s8709_s4 + $0x178] sm:$0xff]  ;;  %v5647_v9 = vor.u32 %v6614_v21, %v5646_v62  ;;  %v5639_v50 = vor.u32 %v8356_v51, %v8351_v35  ;;  %v6688_v46 = vld [vmem:[#allocation3 + $0xc] sm:$0xf]  ;;  %v6805_v19 = vld [vmem:[%s8709_s4 + $0x170] sm:$0xff] }
 0x210   : > { %v2792_v57 = vadd.f32 %v8304_v34, %v2743_v5  ;;  %v6164_v34 = vld [vmem:[#allocation3 + $0x1b0] sm:$0xf]  ;;  %4956 = vmatpush.bf16.msra.mxu2 %v6806_v8 }
 0x211   : > { %v3470_v44 = vsel %vm7024_vm7, %v3465_v49, %v3469_v30  ;;  %v6828_v0 = vld [vmem:[%s8709_s4 + $0x228] sm:$0xff] }
 0x212   : > { %v8394_v31 = vadd.f32 %v2840_v26, %v2792_v57  ;;  %3488 = vst [vmem:[#allocation3 + $0x238] sm:$0xf] %v3470_v44 }
 0x213   : > { %2991 = vmatmul.bf16.gmra.mxu0 %v5611_v55  ;;  %v6745_v55 = vld [vmem:[#allocation3 + $0x1d0] sm:$0xf0] }
 0x214   : > { %v6165_v1 = vor.u32 %v6745_v55, %v6164_v34  ;;  %4957 = vmatpush.bf16.msra.mxu2 %v6805_v19  ;;  %v6706_v19 = vld [vmem:[#allocation3 + $0x9c] sm:$0xf] }
 0x215   : > { %v2744_v26 = vpop.f32.mrf.mxu3  ;;  %v2845_v63 = vpop.f32.mrf.mxu1 }
 0x216   : > { %v2745_v14 = vadd.f32 %v2744_v26, %v2696_v38  ;;  %v2700_v18 = vpop.f32.mrf.mxu2  ;;  %v5956_v26 = vld [vmem:[#allocation3 + $0x8] sm:$0xf] }
 0x217   : > { %v2701_v30 = vadd.f32 %v2700_v18, %v2652_v56 }
 0x218   : > { %v2794_v10 = vadd.f32 %v8338_v27, %v2745_v14  ;;  %2942 = vmatmul.bf16.gmra.mxu3 %v5607_v53  ;;  %v6829_v53 = vld [vmem:[%s8709_s4 + $0x230] sm:$0xff] }
 0x219   : > { %4749 = vmatmul.bf16.gmra.mxu1 %v6165_v1  ;;  %v6692_v1 = vld [vmem:[#allocation3 + $0x28] sm:$0xf0] }
 0x21a   : > { %v8413_v33 = vadd.f32 %v2842_v6, %v2794_v10  ;;  %v6822_v6 = vld [vmem:[%s8709_s4 + $0x1f8] sm:$0xff]  ;;  %v5957_v18 = vor.u32 %v6692_v1, %v5956_v26 }
 0x21b   : > { %5054 = vmatpush.bf16.msra.mxu0 %v6822_v6 }
 0x21d   : > { %v2747_v29 = vpop.f32.mrf.mxu3  ;;  %v2847_v5 = vpop.f32.mrf.mxu1 }
 0x21e   : > { %v2748_v27 = vadd.f32 %v2747_v29, %v2699_v39  ;;  %2898 = vmatmul.bf16.gmra.mxu2 %v5639_v50  ;;  %v2703_v35 = vpop.f32.mrf.mxu2  ;;  %v5964_v39 = vld [vmem:[#allocation3 + $0x10] sm:$0xf]  ;;  %v5994_v50 = vld [vmem:[#allocation3 + $0x74] sm:$0xf0] }
 0x21f   : > { %v2704_v57 = vadd.f32 %v2703_v35, %v8109_v16  ;;  %v5961_v16 = vor.u32 %v6688_v46, %v5958_v61  ;;  %v5965_v8 = vor.u32 %v6693_v40, %v5964_v39  ;;  %v6701_v46 = vld [vmem:[#allocation3 + $0x70] sm:$0xf0] }
 0x220   : > { %v2801_v45 = vpop.f32.mrf.mxu0  ;;  %v2797_v37 = vadd.f32 %v8367_v32, %v2748_v27  ;;  %v6830_v32 = vld [vmem:[%s8709_s4 + $0x238] sm:$0xff]  ;;  %v6696_v27 = vld [vmem:[#allocation3 + $0x4c] sm:$0xf] }
 0x221   : > { %5103 = vmatpush.bf16.msra.mxu1 %v6830_v32 }
 0x222   : > { %v8423_v11 = vadd.f32 %v2845_v63, %v2797_v37  ;;  %v6821_v63 = vld [vmem:[%s8709_s4 + $0x1f0] sm:$0xff] }
 0x223   : > { %2996 = vmatmul.bf16.gmra.mxu0 %v5647_v9 }
 0x224   : > { %5055 = vmatpush.bf16.msra.mxu0 %v6821_v63 }
 0x225   : > { %v2749_v62 = vpop.f32.mrf.mxu3  ;;  %5104 = vmatpush.bf16.msra.mxu1 %v6829_v53 }
 0x226   : > { %v2750_v60 = vadd.f32 %v2749_v62, %v2701_v30  ;;  %v2850_v52 = vpop.f32.mrf.mxu1  ;;  %v2705_v34 = vpop.f32.mrf.mxu2  ;;  %v6804_v30 = vld [vmem:[%s8709_s4 + $0x168] sm:$0xff] }
 0x227   : > { %v2706_v21 = vadd.f32 %v2705_v34, %v8128_v47  ;;  %4958 = vmatpush.bf16.msra.mxu2 %v6804_v30 }
 0x228   : > { %v2803_v51 = vpop.f32.mrf.mxu0  ;;  %v2799_v49 = vadd.f32 %v8388_v13, %v2750_v60  ;;  %2947 = vmatmul.bf16.gmra.mxu3 %v5643_v24  ;;  %v6813_v13 = vld [vmem:[%s8709_s4 + $0x1b0] sm:$0xff]  ;;  %v5992_v24 = vld [vmem:[#allocation3 + $0x50] sm:$0xf]  ;;  %5056 = vmatpush.bf16.msra.mxu0 %v6820_v58 }
 0x229   : > { %4754 = vmatmul.bf16.gmra.mxu1 %v6201_v41  ;;  %5006 = vmatpush.bf16.msra.mxu3 %v6813_v13  ;;  %v6702_v60 = vld [vmem:[#allocation3 + $0x78] sm:$0xf0]  ;;  %v6030_v13 = vld [vmem:[#allocation3 + $0xbc] sm:$0xf0] }
 0x22a   : > { %v8430_v15 = vadd.f32 %v2847_v5, %v2799_v49  ;;  %v5986_v5 = vld [vmem:[#allocation3 + $0x6c] sm:$0xf0]  ;;  %5105 = vmatpush.bf16.msra.mxu1 %v6828_v0 }
 0x22b   : > { %v5989_v35 = vor.u32 %v6696_v27, %v5986_v5  ;;  %v6711_v27 = vld [vmem:[#allocation3 + $0xc0] sm:$0xf0] }
 0x22d   : > { %v2752_v54 = vpop.f32.mrf.mxu3 }
 0x22e   : > { %v2753_v7 = vadd.f32 %v2752_v54, %v2704_v57  ;;  %v2852_v44 = vpop.f32.mrf.mxu1  ;;  %4768 = vmatmul.bf16.vlgmr.msrb.gmra.mxu2 %v5953_v22  ;;  %v5993_v22 = vor.u32 %v6701_v46, %v5992_v24  ;;  %v6705_v54 = vld [vmem:[#allocation3 + $0x94] sm:$0xf]  ;;  %v6714_v46 = vld [vmem:[#allocation3 + $0xdc] sm:$0xf] }
 0x230   : > { %v2962_v55 = vpop.f32.mrf.mxu0  ;;  %v2802_v38 = vadd.f32 %v2801_v45, %v2753_v7  ;;  %v6697_v45 = vld [vmem:[#allocation3 + $0x54] sm:$0xf]  ;;  %v6022_v7 = vld [vmem:[#allocation3 + $0xb4] sm:$0xf0] }
 0x231   : > { %v2864_v28 = vpop.f32.mrf.mxu2  ;;  %v5997_v37 = vor.u32 %v6697_v45, %v5994_v50  ;;  %v6025_v53 = vor.u32 %v6705_v54, %v6022_v7 }
 0x232   : > { %v8439_v47 = vadd.f32 %v2850_v52, %v2802_v38  ;;  %v2865_v6 = vadd.f32 %v2864_v28, %v8162_v48  ;;  %v6000_v48 = vld [vmem:[#allocation3 + $0x58] sm:$0xf] }
 0x233   : > { %4866 = vmatmul.bf16.vlgmr.msrb.gmra.mxu0 %v5961_v16  ;;  %v6001_v34 = vor.u32 %v6702_v60, %v6000_v48 }
 0x235   : > { %v2754_v10 = vpop.f32.mrf.mxu3 }
 0x236   : > { %v2755_v9 = vadd.f32 %v2754_v10, %v2706_v21  ;;  %v8447_v2 = vpop.f32.mrf.mxu1  ;;  %v6811_v10 = vld [vmem:[%s8709_s4 + $0x1a0] sm:$0xff] }
 0x238   : > { %v2964_v14 = vpop.f32.mrf.mxu0  ;;  %v2804_v29 = vadd.f32 %v2803_v51, %v2755_v9  ;;  %4817 = vmatmul.bf16.vlgmr.msrb.gmra.mxu3 %v5957_v18  ;;  %v6812_v51 = vld [vmem:[%s8709_s4 + $0x1a8] sm:$0xff] }
 0x239   : > { %4915 = vmatmul.bf16.vlgmr.msrb.gmra.mxu1 %v5965_v8  ;;  %v2866_v3 = vpop.f32.mrf.mxu2  ;;  %5007 = vmatpush.bf16.msra.mxu3 %v6812_v51  ;;  %v6819_v51 = vld [vmem:[%s8709_s4 + $0x1e0] sm:$0xff] }
 0x23a   : > { %v8449_v56 = vadd.f32 %v2852_v44, %v2804_v29  ;;  %v2867_v49 = vadd.f32 %v2866_v3, %v8188_v23  ;;  %v6033_v44 = vor.u32 %v6706_v19, %v6030_v13  ;;  %v6036_v29 = vld [vmem:[#allocation3 + $0xa0] sm:$0xf]  ;;  %v6710_v3 = vld [vmem:[#allocation3 + $0xb8] sm:$0xf0]  ;;  %5057 = vmatpush.bf16.msra.mxu0 %v6819_v51 }
 0x23d   : > { %v2913_v57 = vpop.f32.mrf.mxu3  ;;  %5008 = vmatpush.bf16.msra.mxu3 %v6811_v10 }
 0x23e   : > { %v2914_v32 = vadd.f32 %v2913_v57, %v2865_v6  ;;  %v8458_v62 = vpop.f32.mrf.mxu1  ;;  %4773 = vmatmul.bf16.gmra.mxu2 %v5989_v35 }
 0x240   : > { %v2967_v25 = vpop.f32.mrf.mxu0  ;;  %v2963_v41 = vadd.f32 %v2962_v55, %v2914_v32  ;;  %v6037_v32 = vor.u32 %v6711_v27, %v6036_v29 }
 0x241   : > { %v2869_v52 = vpop.f32.mrf.mxu2 }
 0x242   : > { %3002 = vst [vmem:[%s6928_s30] sm:$0xff] %v2963_v41  ;;  %v3043_v38 = vmul.f32 %v2963_v41, %v2963_v41  ;;  %v2870_v1 = vadd.f32 %v2869_v52, %v8207_v12  ;;  %v6715_v52 = vld [vmem:[#allocation3 + $0xe4] sm:$0xf] }
 0x243   : > { %4871 = vmatmul.bf16.gmra.mxu0 %v5997_v37  ;;  %v6028_v37 = vld [vmem:[#allocation3 + $0x98] sm:$0xf] }
 0x244   : > { %v6029_v60 = vor.u32 %v6710_v3, %v6028_v37  ;;  %v6723_v3 = vld [vmem:[#allocation3 + $0x124] sm:$0xf] }
 0x245   : > { %v2915_v16 = vpop.f32.mrf.mxu3 }
 0x246   : > { %v2916_v55 = vadd.f32 %v2915_v16, %v2867_v49  ;;  %v8468_v21 = vpop.f32.mrf.mxu1  ;;  %v6058_v49 = vld [vmem:[#allocation3 + $0xfc] sm:$0xf0] }
 0x247   : > { %v6061_v13 = vor.u32 %v6714_v46, %v6058_v49 }
 0x248   : > { %v2969_v61 = vpop.f32.mrf.mxu0  ;;  %v2965_v23 = vadd.f32 %v2964_v14, %v2916_v55  ;;  %4822 = vmatmul.bf16.gmra.mxu3 %v5993_v22  ;;  %v6803_v14 = vld [vmem:[%s8709_s4 + $0x160] sm:$0xff] }
 0x249   : > { %4920 = vmatmul.bf16.gmra.mxu1 %v6001_v34  ;;  %v2871_v28 = vpop.f32.mrf.mxu2  ;;  %4959 = vmatpush.bf16.msra.mxu2 %v6803_v14 }
 0x24a   : > { %3003 = vst [vmem:[%s6928_s30 + $0x8] sm:$0xff] %v2965_v23  ;;  %v3019_v39 = vadd.f32 %v2965_v23, %v2963_v41  ;;  %v3044_v40 = vmul.f32 %v2965_v23, %v2965_v23  ;;  %v2872_v35 = vadd.f32 %v2871_v28, %v8234_v17  ;;  %v6066_v17 = vld [vmem:[#allocation3 + $0x104] sm:$0xf0]  ;;  %v6802_v23 = vld [vmem:[%s8709_s4 + $0x158] sm:$0xff]  ;;  %v6720_v28 = vld [vmem:[#allocation3 + $0x108] sm:$0xf0] }
 0x24b   : > { %v6069_v16 = vor.u32 %v6715_v52, %v6066_v17  ;;  %v6801_v17 = vld [vmem:[%s8709_s4 + $0x150] sm:$0xff] }
 0x24c   : > { %v3059_v63 = vadd.f32 %v3044_v40, %v3043_v38  ;;  %v6072_v40 = vld [vmem:[#allocation3 + $0xe8] sm:$0xf] }
 0x24d   : > { %v2918_v8 = vpop.f32.mrf.mxu3  ;;  %4960 = vmatpush.bf16.msra.mxu2 %v6802_v23 }
 0x24e   : > { %v2919_v9 = vadd.f32 %v2918_v8, %v2870_v1  ;;  %v8478_v18 = vpop.f32.mrf.mxu1  ;;  %4778 = vmatmul.bf16.gmra.mxu2 %v6025_v53  ;;  %v6719_v53 = vld [vmem:[#allocation3 + $0x100] sm:$0xf0] }
 0x250   : > { %v2972_v26 = vpop.f32.mrf.mxu0  ;;  %v2968_v45 = vadd.f32 %v2967_v25, %v2919_v9  ;;  %v6827_v25 = vld [vmem:[%s8709_s4 + $0x220] sm:$0xff]  ;;  %v6818_v9 = vld [vmem:[%s8709_s4 + $0x1d8] sm:$0xff] }
 0x251   : > { %v2874_v5 = vpop.f32.mrf.mxu2  ;;  %5106 = vmatpush.bf16.msra.mxu1 %v6827_v25  ;;  %5058 = vmatpush.bf16.msra.mxu0 %v6818_v9 }
 0x252   : > { %3004 = vst [vmem:[%s6928_s30 + $0x10] sm:$0xff] %v2968_v45  ;;  %v3020_v12 = vadd.f32 %v3019_v39, %v2968_v45  ;;  %v3045_v50 = vmul.f32 %v2968_v45, %v2968_v45  ;;  %v2875_v22 = vadd.f32 %v2874_v5, %v8253_v43  ;;  %v6724_v5 = vld [vmem:[#allocation3 + $0x12c] sm:$0xf]  ;;  %4961 = vmatpush.bf16.msra.mxu2 %v6801_v17 }
 0x253   : > { %4876 = vmatmul.bf16.gmra.mxu0 %v6033_v44 }
 0x254   : > { %v3060_v30 = vadd.f32 %v3059_v63, %v3045_v50  ;;  %v6064_v63 = vld [vmem:[#allocation3 + $0xe0] sm:$0xf] }
 0x255   : > { %v2920_v57 = vpop.f32.mrf.mxu3  ;;  %v6065_v27 = vor.u32 %v6719_v53, %v6064_v63  ;;  %v6732_v53 = vld [vmem:[#allocation3 + $0x16c] sm:$0xf] }
 0x256   : > { %v2921_v41 = vadd.f32 %v2920_v57, %v2872_v35  ;;  %v8488_v48 = vpop.f32.mrf.mxu1  ;;  %v6094_v35 = vld [vmem:[#allocation3 + $0x144] sm:$0xf0] }
 0x257   : > { %v6097_v52 = vor.u32 %v6723_v3, %v6094_v35 }
 0x258   : > { %v2974_v6 = vpop.f32.mrf.mxu0  ;;  %v2970_v24 = vadd.f32 %v2969_v61, %v2921_v41  ;;  %4827 = vmatmul.bf16.gmra.mxu3 %v6029_v60  ;;  %v6810_v61 = vld [vmem:[%s8709_s4 + $0x198] sm:$0xff] }
 0x259   : > { %4925 = vmatmul.bf16.gmra.mxu1 %v6037_v32  ;;  %v2876_v34 = vpop.f32.mrf.mxu2  ;;  %5009 = vmatpush.bf16.msra.mxu3 %v6810_v61 }
 0x25a   : > { %3005 = vst [vmem:[%s6928_s30 + $0x18] sm:$0xff] %v2970_v24  ;;  %v3021_v58 = vadd.f32 %v3020_v12, %v2970_v24  ;;  %v3046_v0 = vmul.f32 %v2970_v24, %v2970_v24  ;;  %v2877_v10 = vadd.f32 %v2876_v34, %v8284_v42  ;;  %v6073_v12 = vor.u32 %v6720_v28, %v6072_v40  ;;  %v6102_v42 = vld [vmem:[#allocation3 + $0x14c] sm:$0xf0]  ;;  %v6729_v34 = vld [vmem:[#allocation3 + $0x150] sm:$0xf0] }
 0x25b   : > { %v6105_v25 = vor.u32 %v6724_v5, %v6102_v42  ;;  %v6800_v42 = vld [vmem:[%s8709_s4 + $0x148] sm:$0xff] }
 0x25c   : > { %v3061_v19 = vadd.f32 %v3060_v30, %v3046_v0  ;;  %4962 = vmatpush.bf16.msra.mxu2 %v6800_v42 }
 0x25d   : > { %v2923_v54 = vpop.f32.mrf.mxu3 }
 0x25e   : > { %v2924_v7 = vadd.f32 %v2923_v54, %v2875_v22  ;;  %v8498_v44 = vpop.f32.mrf.mxu1  ;;  %4783 = vmatmul.bf16.gmra.mxu2 %v6061_v13  ;;  %v6728_v13 = vld [vmem:[#allocation3 + $0x148] sm:$0xf0] }
 0x260   : > { %v2977_v55 = vpop.f32.mrf.mxu0  ;;  %v2973_v38 = vadd.f32 %v2972_v26, %v2924_v7  ;;  %v6826_v26 = vld [vmem:[%s8709_s4 + $0x218] sm:$0xff]  ;;  %v6817_v7 = vld [vmem:[%s8709_s4 + $0x1d0] sm:$0xff] }
 0x261   : > { %v2879_v1 = vpop.f32.mrf.mxu2  ;;  %5107 = vmatpush.bf16.msra.mxu1 %v6826_v26  ;;  %5059 = vmatpush.bf16.msra.mxu0 %v6817_v7 }
 0x262   : > { %3006 = vst [vmem:[%s6928_s30 + $0x20] sm:$0xff] %v2973_v38  ;;  %v3022_v43 = vadd.f32 %v3021_v58, %v2973_v38  ;;  %v3047_v39 = vmul.f32 %v2973_v38, %v2973_v38  ;;  %v2880_v41 = vadd.f32 %v2879_v1, %v8301_v20  ;;  %v6733_v1 = vld [vmem:[#allocation3 + $0x174] sm:$0xf] }
 0x263   : > { %4881 = vmatmul.bf16.gmra.mxu0 %v6069_v16  ;;  %v6108_v16 = vld [vmem:[#allocation3 + $0x130] sm:$0xf] }
 0x264   : > { %v3062_v8 = vadd.f32 %v3061_v19, %v3047_v39  ;;  %v6100_v19 = vld [vmem:[#allocation3 + $0x128] sm:$0xf] }
 0x265   : > { %v2925_v45 = vpop.f32.mrf.mxu3  ;;  %v6101_v28 = vor.u32 %v6728_v13, %v6100_v19  ;;  %v6741_v13 = vld [vmem:[#allocation3 + $0x1b4] sm:$0xf] }
 0x266   : > { %v2926_v50 = vadd.f32 %v2925_v45, %v2877_v10  ;;  %v8508_v29 = vpop.f32.mrf.mxu1  ;;  %v6130_v10 = vld [vmem:[#allocation3 + $0x18c] sm:$0xf0] }
 0x267   : > { %v6133_v5 = vor.u32 %v6732_v53, %v6130_v10 }
 0x268   : > { %v2979_v14 = vpop.f32.mrf.mxu0  ;;  %v2975_v37 = vadd.f32 %v2974_v6, %v2926_v50  ;;  %4832 = vmatmul.bf16.gmra.mxu3 %v6065_v27  ;;  %v6809_v6 = vld [vmem:[%s8709_s4 + $0x190] sm:$0xff] }
 0x269   : > { %4930 = vmatmul.bf16.gmra.mxu1 %v6073_v12  ;;  %v2881_v57 = vpop.f32.mrf.mxu2  ;;  %5010 = vmatpush.bf16.msra.mxu3 %v6809_v6 }
 0x26a   : > { %3007 = vst [vmem:[%s6928_s30 + $0x28] sm:$0xff] %v2975_v37  ;;  %v3023_v30 = vadd.f32 %v3022_v43, %v2975_v37  ;;  %v3048_v51 = vmul.f32 %v2975_v37, %v2975_v37  ;;  %v2882_v61 = vadd.f32 %v2881_v57, %v8333_v36  ;;  %v6109_v43 = vor.u32 %v6729_v34, %v6108_v16  ;;  %v6138_v36 = vld [vmem:[#allocation3 + $0x194] sm:$0xf0]  ;;  %v6738_v57 = vld [vmem:[#allocation3 + $0x198] sm:$0xf0] }
 0x26b   : > { %v6141_v26 = vor.u32 %v6733_v1, %v6138_v36  ;;  %v6799_v36 = vld [vmem:[%s8709_s4 + $0x140] sm:$0xff] }
 0x26c   : > { %v3063_v60 = vadd.f32 %v3062_v8, %v3048_v51  ;;  %4963 = vmatpush.bf16.msra.mxu2 %v6799_v36 }
 0x26d   : > { %v2928_v24 = vpop.f32.mrf.mxu3 }
 0x26e   : > { %v2929_v46 = vadd.f32 %v2928_v24, %v2880_v41  ;;  %v8518_v49 = vpop.f32.mrf.mxu1  ;;  %4788 = vmatmul.bf16.gmra.mxu2 %v6097_v52  ;;  %v6737_v52 = vld [vmem:[#allocation3 + $0x190] sm:$0xf0] }
 0x270   : > { %v2982_v32 = vpop.f32.mrf.mxu0  ;;  %v2978_v58 = vadd.f32 %v2977_v55, %v2929_v46  ;;  %v6825_v55 = vld [vmem:[%s8709_s4 + $0x210] sm:$0xff]  ;;  %v6816_v46 = vld [vmem:[%s8709_s4 + $0x1c8] sm:$0xff] }
 0x271   : > { %v2884_v22 = vpop.f32.mrf.mxu2  ;;  %5108 = vmatpush.bf16.msra.mxu1 %v6825_v55  ;;  %5060 = vmatpush.bf16.msra.mxu0 %v6816_v46 }
 0x272   : > { %3008 = vst [vmem:[%s6928_s30 + $0x30] sm:$0xff] %v2978_v58  ;;  %v3024_v20 = vadd.f32 %v3023_v30, %v2978_v58  ;;  %v3049_v0 = vmul.f32 %v2978_v58, %v2978_v58  ;;  %v2885_v50 = vadd.f32 %v2884_v22, %v8349_v59  ;;  %v6742_v22 = vld [vmem:[#allocation3 + $0x1bc] sm:$0xf] }
 0x273   : > { %4886 = vmatmul.bf16.gmra.mxu0 %v6105_v25  ;;  %v6144_v25 = vld [vmem:[#allocation3 + $0x178] sm:$0xf] }
 0x274   : > { %v3064_v54 = vadd.f32 %v3063_v60, %v3049_v0  ;;  %v6136_v60 = vld [vmem:[#allocation3 + $0x170] sm:$0xf] }
 0x275   : > { %v2930_v38 = vpop.f32.mrf.mxu3  ;;  %v6137_v34 = vor.u32 %v6737_v52, %v6136_v60  ;;  %v6750_v52 = vld [vmem:[#allocation3 + $0x1fc] sm:$0xf] }
 0x276   : > { %v2931_v39 = vadd.f32 %v2930_v38, %v2882_v61  ;;  %v8528_v40 = vpop.f32.mrf.mxu1  ;;  %v6166_v61 = vld [vmem:[#allocation3 + $0x1d4] sm:$0xf0] }
 0x277   : > { %v6169_v1 = vor.u32 %v6741_v13, %v6166_v61 }
 0x278   : > { %v2984_v23 = vpop.f32.mrf.mxu0  ;;  %v2980_v63 = vadd.f32 %v2979_v14, %v2931_v39  ;;  %4837 = vmatmul.bf16.gmra.mxu3 %v6101_v28  ;;  %v6808_v14 = vld [vmem:[%s8709_s4 + $0x188] sm:$0xff] }
 0x279   : > { %4935 = vmatmul.bf16.gmra.mxu1 %v6109_v43  ;;  %v2886_v45 = vpop.f32.mrf.mxu2  ;;  %5011 = vmatpush.bf16.msra.mxu3 %v6808_v14 }
 0x27a   : > { %3009 = vst [vmem:[%s6928_s30 + $0x38] sm:$0xff] %v2980_v63  ;;  %v3025_v8 = vadd.f32 %v3024_v20, %v2980_v63  ;;  %v3050_v9 = vmul.f32 %v2980_v63, %v2980_v63  ;;  %v2887_v6 = vadd.f32 %v2886_v45, %v8375_v4  ;;  %v6145_v20 = vor.u32 %v6738_v57, %v6144_v25  ;;  %v6174_v4 = vld [vmem:[#allocation3 + $0x1dc] sm:$0xf0]  ;;  %v6747_v45 = vld [vmem:[#allocation3 + $0x1e0] sm:$0xf0] }
 0x27b   : > { %v6177_v55 = vor.u32 %v6742_v22, %v6174_v4 }
 0x27c   : > { %v3065_v27 = vadd.f32 %v3064_v54, %v3050_v9 }
 0x27d   : > { %v2933_v37 = vpop.f32.mrf.mxu3 }
 0x27e   : > { %v2934_v3 = vadd.f32 %v2933_v37, %v2885_v50  ;;  %v8538_v35 = vpop.f32.mrf.mxu1  ;;  %4793 = vmatmul.bf16.gmra.mxu2 %v6133_v5  ;;  %v6746_v5 = vld [vmem:[#allocation3 + $0x1d8] sm:$0xf0] }
 0x280   : > { %v2987_v12 = vpop.f32.mrf.mxu0  ;;  %v2983_v30 = vadd.f32 %v2982_v32, %v2934_v3  ;;  %v6824_v32 = vld [vmem:[%s8709_s4 + $0x208] sm:$0xff]  ;;  %v6815_v3 = vld [vmem:[%s8709_s4 + $0x1c0] sm:$0xff] }
 0x281   : > { %v2889_v41 = vpop.f32.mrf.mxu2  ;;  %5109 = vmatpush.bf16.msra.mxu1 %v6824_v32  ;;  %5061 = vmatpush.bf16.msra.mxu0 %v6815_v3 }
 0x282   : > { %3010 = vst [vmem:[%s6928_s30 + $0x40] sm:$0xff] %v2983_v30  ;;  %v3026_v59 = vadd.f32 %v3025_v8, %v2983_v30  ;;  %v3051_v51 = vmul.f32 %v2983_v30, %v2983_v30  ;;  %v2890_v39 = vadd.f32 %v2889_v41, %v8394_v31  ;;  %v6751_v41 = vld [vmem:[#allocation3 + $0x204] sm:$0xf] }
 0x283   : > { %4891 = vmatmul.bf16.gmra.mxu0 %v6141_v26  ;;  %v6180_v26 = vld [vmem:[#allocation3 + $0x1c0] sm:$0xf] }
 0x284   : > { %v3066_v24 = vadd.f32 %v3065_v27, %v3051_v51  ;;  %v6172_v27 = vld [vmem:[#allocation3 + $0x1b8] sm:$0xf] }
 0x285   : > { %v2935_v58 = vpop.f32.mrf.mxu3  ;;  %v6173_v57 = vor.u32 %v6746_v5, %v6172_v27 }
 0x286   : > { %v2936_v0 = vadd.f32 %v2935_v58, %v2887_v6  ;;  %v8548_v16 = vpop.f32.mrf.mxu1  ;;  %v6202_v6 = vld [vmem:[#allocation3 + $0x21c] sm:$0xf0] }
 0x287   : > { %v6205_v22 = vor.u32 %v6750_v52, %v6202_v6  ;;  %v6695_v52 = vld [vmem:[#allocation3 + $0x40] sm:$0xf0] }
 0x288   : > { %v2989_v17 = vpop.f32.mrf.mxu0  ;;  %v2985_v19 = vadd.f32 %v2984_v23, %v2936_v0  ;;  %4842 = vmatmul.bf16.gmra.mxu3 %v6137_v34  ;;  %v6807_v23 = vld [vmem:[%s8709_s4 + $0x180] sm:$0xff] }
 0x289   : > { %4940 = vmatmul.bf16.gmra.mxu1 %v6145_v20  ;;  %v2891_v38 = vpop.f32.mrf.mxu2  ;;  %5012 = vmatpush.bf16.msra.mxu3 %v6807_v23 }
 0x28a   : > { %3011 = vst [vmem:[%s6928_s30 + $0x48] sm:$0xff] %v2985_v19  ;;  %v3027_v54 = vadd.f32 %v3026_v59, %v2985_v19  ;;  %v3052_v7 = vmul.f32 %v2985_v19, %v2985_v19  ;;  %v2892_v14 = vadd.f32 %v2891_v38, %v8413_v33  ;;  %v6181_v59 = vor.u32 %v6747_v45, %v6180_v26  ;;  %v6210_v33 = vld [vmem:[#allocation3 + $0x224] sm:$0xf0]  ;;  %v6689_v45 = vld [vmem:[#allocation3 + $0x14] sm:$0xf] }
 0x28b   : > { %v6213_v32 = vor.u32 %v6751_v41, %v6210_v33 }
 0x28c   : > { %v3067_v28 = vadd.f32 %v3066_v24, %v3052_v7  ;;  %v6216_v7 = vld [vmem:[#allocation3 + $0x208] sm:$0xf] }
 0x28d   : > { %v2938_v63 = vpop.f32.mrf.mxu3 }
 0x28e   : > { %v2939_v53 = vadd.f32 %v2938_v63, %v2890_v39  ;;  %v8558_v10 = vpop.f32.mrf.mxu1  ;;  %4798 = vmatmul.bf16.gmra.mxu2 %v6169_v1  ;;  %v6208_v39 = vld [vmem:[#allocation3 + $0x200] sm:$0xf] }
 0x290   : > { %v2992_v43 = vpop.f32.mrf.mxu0  ;;  %v2988_v8 = vadd.f32 %v2987_v12, %v2939_v53  ;;  %v6823_v12 = vld [vmem:[%s8709_s4 + $0x200] sm:$0xff] }
 0x291   : > { %v2894_v50 = vpop.f32.mrf.mxu2  ;;  %5110 = vmatpush.bf16.msra.mxu1 %v6823_v12 }
 0x292   : > { %3012 = vst [vmem:[%s6928_s30 + $0x50] sm:$0xff] %v2988_v8  ;;  %v3028_v31 = vadd.f32 %v3027_v54, %v2988_v8  ;;  %v3053_v9 = vmul.f32 %v2988_v8, %v2988_v8  ;;  %v2895_v0 = vadd.f32 %v2894_v50, %v8423_v11  ;;  %v5966_v50 = vld [vmem:[#allocation3 + $0x34] sm:$0xf0] }
 0x293   : > { %4896 = vmatmul.bf16.gmra.mxu0 %v6177_v55  ;;  %v6756_v55 = vld [vmem:[#allocation3 + $0x228] sm:$0xf0] }
 0x294   : > { %v3068_v37 = vadd.f32 %v3067_v28, %v3053_v9  ;;  %v6755_v28 = vld [vmem:[#allocation3 + $0x220] sm:$0xf0]  ;;  %v6217_v63 = vor.u32 %v6756_v55, %v6216_v7  ;;  %v5974_v9 = vld [vmem:[#allocation3 + $0x3c] sm:$0xf0] }
 0x295   : > { %v2940_v30 = vpop.f32.mrf.mxu3  ;;  %v6002_v7 = vld [vmem:[#allocation3 + $0x7c] sm:$0xf0] }
 0x296   : > { %v2941_v51 = vadd.f32 %v2940_v30, %v2892_v14  ;;  %v8568_v25 = vpop.f32.mrf.mxu1  ;;  %v5969_v30 = vor.u32 %v6689_v45, %v5966_v50 }
 0x298   : > { %v2994_v42 = vpop.f32.mrf.mxu0  ;;  %v2990_v60 = vadd.f32 %v2989_v17, %v2941_v51  ;;  %4847 = vmatmul.bf16.gmra.mxu3 %v6173_v57 }
 0x299   : > { %4945 = vmatmul.bf16.gmra.mxu1 %v6181_v59  ;;  %v2896_v58 = vpop.f32.mrf.mxu2 }
 0x29a   : > { %3013 = vst [vmem:[%s6928_s30 + $0x58] sm:$0xff] %v2990_v60  ;;  %v3029_v24 = vadd.f32 %v3028_v31, %v2990_v60  ;;  %v3054_v46 = vmul.f32 %v2990_v60, %v2990_v60  ;;  %v2897_v11 = vadd.f32 %v2896_v58, %v8430_v15  ;;  %v6690_v31 = vld [vmem:[#allocation3 + $0x1c] sm:$0xf]  ;;  %v5980_v60 = vld [vmem:[#allocation3 + $0x20] sm:$0xf] }
 0x29b   : > { %v5977_v14 = vor.u32 %v6690_v31, %v5974_v9 }
 0x29c   : > { %v3069_v34 = vadd.f32 %v3068_v37, %v3054_v46  ;;  %v6694_v46 = vld [vmem:[#allocation3 + $0x38] sm:$0xf0] }
 0x29d   : > { %v2943_v4 = vpop.f32.mrf.mxu3 }
 0x29e   : > { %v2944_v19 = vadd.f32 %v2943_v4, %v2895_v0  ;;  %v8572_v13 = vpop.f32.mrf.mxu1  ;;  %4803 = vmatmul.bf16.gmra.mxu2 %v6205_v22 }
 0x2a0   : > { %v2997_v20 = vpop.f32.mrf.mxu0  ;;  %v2993_v17 = vadd.f32 %v2992_v43, %v2944_v19  ;;  %v6209_v43 = vor.u32 %v6755_v28, %v6208_v39 }
 0x2a1   : > { %v2899_v38 = vpop.f32.mrf.mxu2 }
 0x2a2   : > { %3014 = vst [vmem:[%s6928_s30 + $0x60] sm:$0xff] %v2993_v17  ;;  %v3030_v61 = vadd.f32 %v3029_v24, %v2993_v17  ;;  %v3055_v54 = vmul.f32 %v2993_v17, %v2993_v17  ;;  %v2900_v3 = vadd.f32 %v2899_v38, %v8439_v47  ;;  %v5972_v24 = vld [vmem:[#allocation3 + $0x18] sm:$0xf]  ;;  %v6010_v17 = vld [vmem:[#allocation3 + $0x84] sm:$0xf0] }
 0x2a3   : > { %4901 = vmatmul.bf16.gmra.mxu0 %v6213_v32  ;;  %v5973_v19 = vor.u32 %v6694_v46, %v5972_v24 }
 0x2a4   : > { %v3070_v36 = vadd.f32 %v3069_v34, %v3055_v54  ;;  %v5981_v34 = vor.u32 %v6695_v52, %v5980_v60  ;;  %v6698_v54 = vld [vmem:[#allocation3 + $0x5c] sm:$0xf] }
 0x2a5   : > { %v2945_v23 = vpop.f32.mrf.mxu3 }
 0x2a6   : > { %v2946_v53 = vadd.f32 %v2945_v23, %v2897_v11  ;;  %v8576_v8 = vpop.f32.mrf.mxu1 }
 0x2a8   : > { %v2999_v1 = vpop.f32.mrf.mxu0  ;;  %v2995_v26 = vadd.f32 %v2994_v42, %v2946_v53  ;;  %4852 = vmatmul.bf16.gmra.mxu3 %v6209_v43 }
 0x2a9   : > { %4950 = vmatmul.bf16.gmra.mxu1 %v6217_v63  ;;  %v2901_v15 = vpop.f32.mrf.mxu2  ;;  %v6005_v63 = vor.u32 %v6698_v54, %v6002_v7 }
 0x2aa   : > { %3015 = vst [vmem:[%s6928_s30 + $0x68] sm:$0xff] %v2995_v26  ;;  %v3031_v27 = vadd.f32 %v3030_v61, %v2995_v26  ;;  %v3056_v5 = vmul.f32 %v2995_v26, %v2995_v26  ;;  %v2902_v47 = vadd.f32 %v2901_v15, %v8449_v56  ;;  %v6704_v15 = vld [vmem:[#allocation3 + $0x88] sm:$0xf0] }
 0x2ac   : > { %v3071_v12 = vadd.f32 %v3070_v36, %v3056_v5 }
 0x2ad   : > { %v2948_v59 = vpop.f32.mrf.mxu3 }
 0x2ae   : > { %v2949_v51 = vadd.f32 %v2948_v59, %v2900_v3  ;;  %v8580_v57 = vpop.f32.mrf.mxu1  ;;  %4964 = vmatmul.bf16.vlgmr.msra.gmra.mxu2 %v5969_v30  ;;  %v6703_v30 = vld [vmem:[#allocation3 + $0x80] sm:$0xf0] }
 0x2b0   : > { %v4867_v37 = vpop.f32.mrf.mxu0  ;;  %v2998_v42 = vadd.f32 %v2997_v20, %v2949_v51  ;;  %v6699_v20 = vld [vmem:[#allocation3 + $0x64] sm:$0xf] }
 0x2b1   : > { %v4769_v6 = vpop.f32.mrf.mxu2  ;;  %v6013_v39 = vor.u32 %v6699_v20, %v6010_v17  ;;  %v6038_v20 = vld [vmem:[#allocation3 + $0xc4] sm:$0xf0] }
 0x2b2   : > { %3016 = vst [vmem:[%s6928_s30 + $0x70] sm:$0xff] %v2998_v42  ;;  %v3032_v41 = vadd.f32 %v3031_v27, %v2998_v42  ;;  %v3057_v33 = vmul.f32 %v2998_v42, %v2998_v42  ;;  %v4770_v56 = vadd.f32 %v4769_v6, %v8447_v2 }
 0x2b3   : > { %5062 = vmatmul.bf16.vlgmr.msra.gmra.mxu0 %v5977_v14  ;;  %v6016_v14 = vld [vmem:[#allocation3 + $0x68] sm:$0xf] }
 0x2b4   : > { %v3072_v58 = vadd.f32 %v3071_v12, %v3057_v33  ;;  %v6008_v12 = vld [vmem:[#allocation3 + $0x60] sm:$0xf]  ;;  %v3018_v33 = vld [vmem:[%s8711_s6] sm:$0x1]  ;;  %v6017_v60 = vor.u32 %v6704_v15, %v6016_v14  ;;  %v6717_v14 = vld [vmem:[#allocation3 + $0xf4] sm:$0xf] }
 0x2b5   : > { %v2950_v0 = vpop.f32.mrf.mxu3  ;;  %v6082_v15 = vld [vmem:[#allocation3 + $0x114] sm:$0xf0] }
 0x2b6   : > { %v2951_v22 = vadd.f32 %v2950_v0, %v2902_v47  ;;  %v4916_v4 = vpop.f32.mrf.mxu1  ;;  %v6009_v47 = vor.u32 %v6703_v30, %v6008_v12  ;;  %v6708_v0 = vld [vmem:[#allocation3 + $0xac] sm:$0xf]  ;;  %v6074_v12 = vld [vmem:[#allocation3 + $0x10c] sm:$0xf0]  ;;  %v6085_v30 = vor.u32 %v6717_v14, %v6082_v15 }
 0x2b8   : > { %v4869_v32 = vpop.f32.mrf.mxu0  ;;  %v3000_v61 = vadd.f32 %v2999_v1, %v2951_v22  ;;  %5013 = vmatmul.bf16.vlgmr.msra.gmra.mxu3 %v5973_v19  ;;  %v6707_v19 = vld [vmem:[#allocation3 + $0xa4] sm:$0xf] }
 0x2b9   : > { %5111 = vmatmul.bf16.vlgmr.msra.gmra.mxu1 %v5981_v34  ;;  %v4771_v28 = vpop.f32.mrf.mxu2  ;;  %v6046_v34 = vld [vmem:[#allocation3 + $0xcc] sm:$0xf0] }
 0x2ba   : > { %3017 = vst [vmem:[%s6928_s30 + $0x78] sm:$0xff] %v3000_v61  ;;  %v3033_v55 = vadd.f32 %v3032_v41, %v3000_v61  ;;  %v3058_v38 = vmul.f32 %v3000_v61, %v3000_v61  ;;  %v4772_v41 = vadd.f32 %v4771_v28, %v8458_v62  ;;  %v6049_v61 = vor.u32 %v6708_v0, %v6046_v34  ;;  %v6721_v0 = vld [vmem:[#allocation3 + $0x110] sm:$0xf0] }
 0x2bc   : > { %v3034_v36 = vrot.slane %v3033_v55, 4  ;;  %v3073_v23 = vadd.f32 %v3072_v58, %v3058_v38  ;;  %v3042_v58 = vld [vmem:[%s8711_s6 + $0x1] sm:$0x1]  ;;  %v6041_v38 = vor.u32 %v6707_v19, %v6038_v20 }
 0x2bd   : > { %v4818_v53 = vpop.f32.mrf.mxu3 }
 0x2be   : > { %v3035_v43 = vadd.f32 %v3034_v36, %v3033_v55  ;;  %v3074_v31 = vrot.slane %v3073_v23, 4  ;;  %v4819_v9 = vadd.f32 %v4818_v53, %v4770_v56  ;;  %v4918_v1 = vpop.f32.mrf.mxu1  ;;  %4969 = vmatmul.bf16.gmra.mxu2 %v6005_v63  ;;  %v6713_v63 = vld [vmem:[#allocation3 + $0xd0] sm:$0xf0] }
 0x2c0   : > { %v4872_v11 = vpop.f32.mrf.mxu0  ;;  %v3036_v26 = vrot.slane %v3035_v43, 2  ;;  %v3075_v45 = vadd.f32 %v3074_v31, %v3073_v23  ;;  %v4868_v50 = vadd.f32 %v4867_v37, %v4819_v9  ;;  %v6052_v23 = vld [vmem:[#allocation3 + $0xb0] sm:$0xf]  ;;  %v6044_v31 = vld [vmem:[#allocation3 + $0xa8] sm:$0xf] }
 0x2c1   : > { %v4774_v2 = vpop.f32.mrf.mxu2  ;;  %v6712_v9 = vld [vmem:[#allocation3 + $0xc8] sm:$0xf0] }
 0x2c2   : > { %v3037_v27 = vadd.f32 %v3036_v26, %v3035_v43  ;;  %v3076_v5 = vrot.slane %v3075_v45, 2  ;;  %v8586_v3 = vadd.f32 %v4916_v4, %v4868_v50  ;;  %v6053_v50 = vor.u32 %v6713_v63, %v6052_v23 }
 0x2c3   : > { %5067 = vmatmul.bf16.gmra.mxu0 %v6013_v39 }
 0x2c4   : > { %v3038_v51 = vrot.slane %v3037_v27, 1  ;;  %v3077_v42 = vadd.f32 %v3076_v5, %v3075_v45  ;;  %v6045_v5 = vor.u32 %v6712_v9, %v6044_v31  ;;  %v6124_v9 = vld [vmem:[#allocation3 + $0x140] sm:$0xf] }
 0x2c5   : > { %v4820_v37 = vpop.f32.mrf.mxu3 }
 0x2c6   : > { %v3039_v52 = vadd.f32 %v3038_v51, %v3037_v27  ;;  %v3078_v6 = vrot.slane %v3077_v42, 1  ;;  %v4821_v24 = vadd.f32 %v4820_v37, %v4772_v41  ;;  %v4921_v46 = vpop.f32.mrf.mxu1 }
 0x2c8   : > { %v4874_v59 = vpop.f32.mrf.mxu0  ;;  %v3040_v22 = vadd.f32 %v3039_v52, %v3018_v33  ;;  %v3079_v4 = vadd.f32 %v3078_v6, %v3077_v42  ;;  %v4870_v62 = vadd.f32 %v4869_v32, %v4821_v24  ;;  %5018 = vmatmul.bf16.gmra.mxu3 %v6009_v47  ;;  %v4775_v32 = vadd.f32 %v4774_v2, %v8468_v21  ;;  %v6088_v24 = vld [vmem:[#allocation3 + $0xf8] sm:$0xf] }
 0x2c9   : > { %5116 = vmatmul.bf16.gmra.mxu1 %v6017_v60  ;;  %v4776_v7 = vpop.f32.mrf.mxu2 }
 0x2ca   : > { %3041 = vst [vmem:[%s8711_s6] sm:$0x1] %v3040_v22  ;;  %v3080_v17 = vadd.f32 %v3079_v4, %v3042_v58  ;;  %v8598_v54 = vadd.f32 %v4918_v1, %v4870_v62  ;;  %v4777_v26 = vadd.f32 %v4776_v7, %v8478_v18  ;;  %v6080_v58 = vld [vmem:[#allocation3 + $0xf0] sm:$0xf] }
 0x2cb   : > { %v6081_v20 = vor.u32 %v6721_v0, %v6080_v58  ;;  %v6160_v0 = vld [vmem:[#allocation3 + $0x188] sm:$0xf] }
 0x2cc   : > { %3081 = vst [vmem:[%s8711_s6 + $0x1] sm:$0x1] %v3080_v17  ;;  %v6726_v17 = vld [vmem:[#allocation3 + $0x13c] sm:$0xf] }
 0x2cd   : > { %v4823_v39 = vpop.f32.mrf.mxu3 }
 0x2ce   : > { %v4824_v28 = vadd.f32 %v4823_v39, %v4775_v32  ;;  %v4923_v56 = vpop.f32.mrf.mxu1  ;;  %4974 = vmatmul.bf16.gmra.mxu2 %v6041_v38  ;;  %v6110_v32 = vld [vmem:[#allocation3 + $0x154] sm:$0xf0] }
 0x2d0   : > { %v4877_v55 = vpop.f32.mrf.mxu0  ;;  %v4873_v36 = vadd.f32 %v4872_v11, %v4824_v28  ;;  %v6716_v11 = vld [vmem:[#allocation3 + $0xec] sm:$0xf] }
 0x2d1   : > { %v4779_v43 = vpop.f32.mrf.mxu2  ;;  %v6077_v18 = vor.u32 %v6716_v11, %v6074_v12  ;;  %v6735_v12 = vld [vmem:[#allocation3 + $0x184] sm:$0xf] }
 0x2d2   : > { %v8604_v53 = vadd.f32 %v4921_v46, %v4873_v36  ;;  %v4780_v33 = vadd.f32 %v4779_v43, %v8488_v48 }
 0x2d3   : > { %5072 = vmatmul.bf16.gmra.mxu0 %v6049_v61  ;;  %v6118_v61 = vld [vmem:[#allocation3 + $0x15c] sm:$0xf0] }
 0x2d4   : > { %v6121_v38 = vor.u32 %v6726_v17, %v6118_v61 }
 0x2d5   : > { %v4825_v45 = vpop.f32.mrf.mxu3 }
 0x2d6   : > { %v4826_v21 = vadd.f32 %v4825_v45, %v4777_v26  ;;  %v4926_v27 = vpop.f32.mrf.mxu1 }
 0x2d8   : > { %v4879_v1 = vpop.f32.mrf.mxu0  ;;  %v4875_v2 = vadd.f32 %v4874_v59, %v4826_v21  ;;  %5023 = vmatmul.bf16.gmra.mxu3 %v6045_v5  ;;  %v6722_v59 = vld [vmem:[#allocation3 + $0x118] sm:$0xf0] }
 0x2d9   : > { %5121 = vmatmul.bf16.gmra.mxu1 %v6053_v50  ;;  %v4781_v42 = vpop.f32.mrf.mxu2  ;;  %v6089_v62 = vor.u32 %v6722_v59, %v6088_v24  ;;  %v6116_v50 = vld [vmem:[#allocation3 + $0x138] sm:$0xf]  ;;  %v6730_v21 = vld [vmem:[#allocation3 + $0x158] sm:$0xf0] }
 0x2da   : > { %v8607_v51 = vadd.f32 %v4923_v56, %v4875_v2  ;;  %v4782_v22 = vadd.f32 %v4781_v42, %v8498_v44  ;;  %v6117_v11 = vor.u32 %v6730_v21, %v6116_v50  ;;  %v6196_v21 = vld [vmem:[#allocation3 + $0x1d0] sm:$0xf] }
 0x2dd   : > { %v4828_v37 = vpop.f32.mrf.mxu3 }
 0x2de   : > { %v4829_v60 = vadd.f32 %v4828_v37, %v4780_v33  ;;  %v4928_v52 = vpop.f32.mrf.mxu1  ;;  %4979 = vmatmul.bf16.gmra.mxu2 %v6077_v18  ;;  %v6146_v33 = vld [vmem:[#allocation3 + $0x19c] sm:$0xf0] }
 0x2e0   : > { %v4882_v41 = vpop.f32.mrf.mxu0  ;;  %v4878_v6 = vadd.f32 %v4877_v55, %v4829_v60  ;;  %v6725_v55 = vld [vmem:[#allocation3 + $0x134] sm:$0xf] }
 0x2e1   : > { %v4784_v47 = vpop.f32.mrf.mxu2  ;;  %v6113_v44 = vor.u32 %v6725_v55, %v6110_v32  ;;  %v6744_v32 = vld [vmem:[#allocation3 + $0x1cc] sm:$0xf] }
 0x2e2   : > { %v8610_v46 = vadd.f32 %v4926_v27, %v4878_v6  ;;  %v4785_v36 = vadd.f32 %v4784_v47, %v8508_v29 }
 0x2e3   : > { %5077 = vmatmul.bf16.gmra.mxu0 %v6085_v30  ;;  %v6154_v30 = vld [vmem:[#allocation3 + $0x1a4] sm:$0xf0] }
 0x2e4   : > { %v6157_v18 = vor.u32 %v6735_v12, %v6154_v30 }
 0x2e5   : > { %v4830_v4 = vpop.f32.mrf.mxu3 }
 0x2e6   : > { %v4831_v48 = vadd.f32 %v4830_v4, %v4782_v22  ;;  %v4931_v19 = vpop.f32.mrf.mxu1 }
 0x2e8   : > { %v4884_v34 = vpop.f32.mrf.mxu0  ;;  %v4880_v7 = vadd.f32 %v4879_v1, %v4831_v48  ;;  %5028 = vmatmul.bf16.gmra.mxu3 %v6081_v20  ;;  %v6731_v1 = vld [vmem:[#allocation3 + $0x160] sm:$0xf0] }
 0x2e9   : > { %5126 = vmatmul.bf16.gmra.mxu1 %v6089_v62  ;;  %v4786_v28 = vpop.f32.mrf.mxu2  ;;  %v6125_v15 = vor.u32 %v6731_v1, %v6124_v9  ;;  %v6152_v62 = vld [vmem:[#allocation3 + $0x180] sm:$0xf]  ;;  %v6739_v48 = vld [vmem:[#allocation3 + $0x1a0] sm:$0xf0] }
 0x2ea   : > { %v8613_v39 = vadd.f32 %v4928_v52, %v4880_v7  ;;  %v4787_v5 = vadd.f32 %v4786_v28, %v8518_v49  ;;  %v6153_v55 = vor.u32 %v6739_v48, %v6152_v62  ;;  %v6232_v48 = vld [vmem:[#allocation3 + $0x218] sm:$0xf] }
 0x2ed   : > { %v4833_v23 = vpop.f32.mrf.mxu3 }
 0x2ee   : > { %v4834_v63 = vadd.f32 %v4833_v23, %v4785_v36  ;;  %v4933_v43 = vpop.f32.mrf.mxu1  ;;  %4984 = vmatmul.bf16.gmra.mxu2 %v6113_v44  ;;  %v6182_v36 = vld [vmem:[#allocation3 + $0x1e4] sm:$0xf0] }
 0x2f0   : > { %v4887_v56 = vpop.f32.mrf.mxu0  ;;  %v4883_v31 = vadd.f32 %v4882_v41, %v4834_v63  ;;  %v6734_v41 = vld [vmem:[#allocation3 + $0x17c] sm:$0xf] }
 0x2f1   : > { %v4789_v45 = vpop.f32.mrf.mxu2  ;;  %v6149_v49 = vor.u32 %v6734_v41, %v6146_v33  ;;  %v6753_v33 = vld [vmem:[#allocation3 + $0x214] sm:$0xf] }
 0x2f2   : > { %v8616_v26 = vadd.f32 %v4931_v19, %v4883_v31  ;;  %v4790_v6 = vadd.f32 %v4789_v45, %v8528_v40 }
 0x2f3   : > { %5082 = vmatmul.bf16.gmra.mxu0 %v6121_v38  ;;  %v6190_v38 = vld [vmem:[#allocation3 + $0x1ec] sm:$0xf0] }
 0x2f4   : > { %v6193_v44 = vor.u32 %v6744_v32, %v6190_v38 }
 0x2f5   : > { %v4835_v14 = vpop.f32.mrf.mxu3 }
 0x2f6   : > { %v4836_v29 = vadd.f32 %v4835_v14, %v4787_v5  ;;  %v4936_v2 = vpop.f32.mrf.mxu1 }
 0x2f8   : > { %v4889_v27 = vpop.f32.mrf.mxu0  ;;  %v4885_v42 = vadd.f32 %v4884_v34, %v4836_v29  ;;  %5033 = vmatmul.bf16.gmra.mxu3 %v6117_v11  ;;  %v6740_v34 = vld [vmem:[#allocation3 + $0x1a8] sm:$0xf0] }
 0x2f9   : > { %5131 = vmatmul.bf16.gmra.mxu1 %v6125_v15  ;;  %v4791_v60 = vpop.f32.mrf.mxu2  ;;  %v6161_v61 = vor.u32 %v6740_v34, %v6160_v0  ;;  %v6188_v15 = vld [vmem:[#allocation3 + $0x1c8] sm:$0xf]  ;;  %v6748_v29 = vld [vmem:[#allocation3 + $0x1e8] sm:$0xf0] }
 0x2fa   : > { %v8619_v37 = vadd.f32 %v4933_v43, %v4885_v42  ;;  %v4792_v20 = vadd.f32 %v4791_v60, %v8538_v35  ;;  %v6189_v41 = vor.u32 %v6748_v29, %v6188_v15 }
 0x2fd   : > { %v4838_v24 = vpop.f32.mrf.mxu3 }
 0x2fe   : > { %v4839_v59 = vadd.f32 %v4838_v24, %v4790_v6  ;;  %v4938_v47 = vpop.f32.mrf.mxu1  ;;  %4989 = vmatmul.bf16.gmra.mxu2 %v6149_v49  ;;  %v6218_v6 = vld [vmem:[#allocation3 + $0x22c] sm:$0xf0] }
 0x300   : > { %v4892_v52 = vpop.f32.mrf.mxu0  ;;  %v4888_v58 = vadd.f32 %v4887_v56, %v4839_v59  ;;  %v6743_v56 = vld [vmem:[#allocation3 + $0x1c4] sm:$0xf] }
 0x301   : > { %v4794_v4 = vpop.f32.mrf.mxu2  ;;  %v6185_v35 = vor.u32 %v6743_v56, %v6182_v36 }
 0x302   : > { %v8622_v22 = vadd.f32 %v4936_v2, %v4888_v58  ;;  %v4795_v31 = vadd.f32 %v4794_v4, %v8548_v16 }
 0x303   : > { %5087 = vmatmul.bf16.gmra.mxu0 %v6157_v18  ;;  %v6226_v18 = vld [vmem:[#allocation3 + $0x234] sm:$0xf0] }
 0x304   : > { %v6229_v49 = vor.u32 %v6753_v33, %v6226_v18 }
 0x305   : > { %v4840_v17 = vpop.f32.mrf.mxu3 }
 0x306   : > { %v4841_v40 = vadd.f32 %v4840_v17, %v4792_v20  ;;  %v4941_v7 = vpop.f32.mrf.mxu1 }
 0x308   : > { %v4894_v19 = vpop.f32.mrf.mxu0  ;;  %v4890_v28 = vadd.f32 %v4889_v27, %v4841_v40  ;;  %5038 = vmatmul.bf16.gmra.mxu3 %v6153_v55  ;;  %v6749_v27 = vld [vmem:[#allocation3 + $0x1f0] sm:$0xf0] }
 0x309   : > { %5136 = vmatmul.bf16.gmra.mxu1 %v6161_v61  ;;  %v4796_v63 = vpop.f32.mrf.mxu2  ;;  %v6197_v30 = vor.u32 %v6749_v27, %v6196_v21  ;;  %v6224_v61 = vld [vmem:[#allocation3 + $0x210] sm:$0xf]  ;;  %v6757_v40 = vld [vmem:[#allocation3 + $0x230] sm:$0xf0] }
 0x30a   : > { %v8625_v23 = vadd.f32 %v4938_v47, %v4890_v28  ;;  %v4797_v11 = vadd.f32 %v4796_v63, %v8558_v10  ;;  %v6225_v56 = vor.u32 %v6757_v40, %v6224_v61 }
 0x30d   : > { %v4843_v9 = vpop.f32.mrf.mxu3 }
 0x30e   : > { %v4844_v1 = vadd.f32 %v4843_v9, %v4795_v31  ;;  %v4943_v45 = vpop.f32.mrf.mxu1  ;;  %4994 = vmatmul.bf16.gmra.mxu2 %v6185_v35 }
 0x310   : > { %v4897_v43 = vpop.f32.mrf.mxu0  ;;  %v4893_v50 = vadd.f32 %v4892_v52, %v4844_v1  ;;  %v6752_v52 = vld [vmem:[#allocation3 + $0x20c] sm:$0xf] }
 0x311   : > { %v4799_v14 = vpop.f32.mrf.mxu2  ;;  %v6221_v10 = vor.u32 %v6752_v52, %v6218_v6 }
 0x312   : > { %v8628_v5 = vadd.f32 %v4941_v7, %v4893_v50  ;;  %v4800_v58 = vadd.f32 %v4799_v14, %v8568_v25 }
 0x313   : > { %5092 = vmatmul.bf16.gmra.mxu0 %v6193_v44 }
 0x315   : > { %v4845_v12 = vpop.f32.mrf.mxu3 }
 0x316   : > { %v4846_v16 = vadd.f32 %v4845_v12, %v4797_v11  ;;  %v4946_v42 = vpop.f32.mrf.mxu1 }
 0x318   : > { %v4899_v2 = vpop.f32.mrf.mxu0  ;;  %v4895_v60 = vadd.f32 %v4894_v19, %v4846_v16  ;;  %5043 = vmatmul.bf16.gmra.mxu3 %v6189_v41  ;;  %v6758_v19 = vld [vmem:[#allocation3 + $0x238] sm:$0xf0] }
 0x319   : > { %5141 = vmatmul.bf16.gmra.mxu1 %v6197_v30  ;;  %v4801_v59 = vpop.f32.mrf.mxu2  ;;  %v6233_v38 = vor.u32 %v6758_v19, %v6232_v48 }
 0x31a   : > { %v8631_v24 = vadd.f32 %v4943_v45, %v4895_v60  ;;  %v4802_v55 = vadd.f32 %v4801_v59, %v8572_v13 }
 0x31d   : > { %v4848_v0 = vpop.f32.mrf.mxu3 }
 0x31e   : > { %v4849_v34 = vadd.f32 %v4848_v0, %v4800_v58  ;;  %v4948_v4 = vpop.f32.mrf.mxu1  ;;  %4999 = vmatmul.bf16.gmra.mxu2 %v6221_v10 }
 0x320   : > { %v4902_v47 = vpop.f32.mrf.mxu0  ;;  %v4898_v62 = vadd.f32 %v4897_v43, %v4849_v34 }
 0x321   : > { %v4804_v17 = vpop.f32.mrf.mxu2 }
 0x322   : > { %v8634_v20 = vadd.f32 %v4946_v42, %v4898_v62  ;;  %v4805_v31 = vadd.f32 %v4804_v17, %v8576_v8 }
 0x323   : > { %5097 = vmatmul.bf16.gmra.mxu0 %v6229_v49 }
 0x325   : > { %v4850_v32 = vpop.f32.mrf.mxu3 }
 0x326   : > { %v4851_v25 = vadd.f32 %v4850_v32, %v4802_v55  ;;  %v4951_v28 = vpop.f32.mrf.mxu1 }
 0x328   : > { %v4904_v7 = vpop.f32.mrf.mxu0  ;;  %v4900_v36 = vadd.f32 %v4899_v2, %v4851_v25  ;;  %5048 = vmatmul.bf16.gmra.mxu3 %v6225_v56 }
 0x329   : > { %5146 = vmatmul.bf16.gmra.mxu1 %v6233_v38  ;;  %v4806_v63 = vpop.f32.mrf.mxu2 }
 0x32a   : > { %v8637_v44 = vadd.f32 %v4948_v4, %v4900_v36  ;;  %v4807_v27 = vadd.f32 %v4806_v63, %v8580_v57 }
 0x32d   : > { %v4853_v35 = vpop.f32.mrf.mxu3 }
 0x32e   : > { %v4854_v9 = vadd.f32 %v4853_v35, %v4805_v31  ;;  %v4953_v1 = vpop.f32.mrf.mxu1 }
 0x330   : > { %v5063_v43 = vpop.f32.mrf.mxu0  ;;  %v4903_v45 = vadd.f32 %v4902_v47, %v4854_v9 }
 0x331   : > { %v4965_v13 = vpop.f32.mrf.mxu2 }
 0x332   : > { %v8640_v50 = vadd.f32 %v4951_v28, %v4903_v45  ;;  %v4966_v8 = vadd.f32 %v4965_v13, %v8586_v3 }
 0x335   : > { %v4855_v14 = vpop.f32.mrf.mxu3 }
 0x336   : > { %v4856_v15 = vadd.f32 %v4855_v14, %v4807_v27  ;;  %v5112_v29 = vpop.f32.mrf.mxu1 }
 0x338   : > { %v5065_v21 = vpop.f32.mrf.mxu0  ;;  %v4905_v2 = vadd.f32 %v4904_v7, %v4856_v15 }
 0x339   : > { %v4967_v12 = vpop.f32.mrf.mxu2 }
 0x33a   : > { %v8643_v11 = vadd.f32 %v4953_v1, %v4905_v2  ;;  %v4968_v57 = vadd.f32 %v4967_v12, %v8598_v54 }
 0x33d   : > { %v5014_v16 = vpop.f32.mrf.mxu3 }
 0x33e   : > { %v5015_v42 = vadd.f32 %v5014_v16, %v4966_v8  ;;  %v5114_v41 = vpop.f32.mrf.mxu1 }
 0x340   : > { %v5068_v30 = vpop.f32.mrf.mxu0  ;;  %v5064_v33 = vadd.f32 %v5063_v43, %v5015_v42 }
 0x341   : > { %v4970_v60 = vpop.f32.mrf.mxu2 }
 0x342   : > { %v5113_v18 = vadd.f32 %v5112_v29, %v5064_v33  ;;  %v4971_v34 = vadd.f32 %v4970_v60, %v8604_v53 }
 0x344   : > { %6522 = vst [vmem:[%s6928_s30 + $0x80] sm:$0xff] %v5113_v18  ;;  %v5194_v3 = vmul.f32 %v5113_v18, %v5113_v18 }
 0x345   : > { %v5016_v6 = vpop.f32.mrf.mxu3 }
 0x346   : > { %v5017_v49 = vadd.f32 %v5016_v6, %v4968_v57  ;;  %v5117_v59 = vpop.f32.mrf.mxu1 }
 0x348   : > { %v5070_v52 = vpop.f32.mrf.mxu0  ;;  %v5066_v47 = vadd.f32 %v5065_v21, %v5017_v49 }
 0x349   : > { %v4972_v10 = vpop.f32.mrf.mxu2 }
 0x34a   : > { %v5115_v58 = vadd.f32 %v5114_v41, %v5066_v47  ;;  %v4973_v32 = vadd.f32 %v4972_v10, %v8607_v51 }
 0x34c   : > { %6523 = vst [vmem:[%s6928_s30 + $0x88] sm:$0xff] %v5115_v58  ;;  %v5170_v4 = vadd.f32 %v5115_v58, %v5113_v18  ;;  %v5195_v62 = vmul.f32 %v5115_v58, %v5115_v58 }
 0x34d   : > { %v5019_v48 = vpop.f32.mrf.mxu3 }
 0x34e   : > { %v5210_v19 = vadd.f32 %v5195_v62, %v5194_v3  ;;  %v5020_v17 = vadd.f32 %v5019_v48, %v4971_v34  ;;  %v5119_v61 = vpop.f32.mrf.mxu1 }
 0x350   : > { %v5073_v0 = vpop.f32.mrf.mxu0  ;;  %v5069_v54 = vadd.f32 %v5068_v30, %v5020_v17 }
 0x351   : > { %v4975_v7 = vpop.f32.mrf.mxu2 }
 0x352   : > { %v5118_v40 = vadd.f32 %v5117_v59, %v5069_v54  ;;  %v4976_v35 = vadd.f32 %v4975_v7, %v8610_v46 }
 0x354   : > { %6524 = vst [vmem:[%s6928_s30 + $0x90] sm:$0xff] %v5118_v40  ;;  %v5171_v38 = vadd.f32 %v5170_v4, %v5118_v40  ;;  %v5196_v25 = vmul.f32 %v5118_v40, %v5118_v40 }
 0x355   : > { %v5021_v28 = vpop.f32.mrf.mxu3 }
 0x356   : > { %v5211_v56 = vadd.f32 %v5210_v19, %v5196_v25  ;;  %v5022_v53 = vadd.f32 %v5021_v28, %v4973_v32  ;;  %v5122_v36 = vpop.f32.mrf.mxu1 }
 0x358   : > { %v5075_v55 = vpop.f32.mrf.mxu0  ;;  %v5071_v63 = vadd.f32 %v5070_v52, %v5022_v53 }
 0x359   : > { %v4977_v31 = vpop.f32.mrf.mxu2 }
 0x35a   : > { %v5120_v43 = vadd.f32 %v5119_v61, %v5071_v63  ;;  %v4978_v2 = vadd.f32 %v4977_v31, %v8613_v39 }
 0x35c   : > { %6525 = vst [vmem:[%s6928_s30 + $0x98] sm:$0xff] %v5120_v43  ;;  %v5172_v9 = vadd.f32 %v5171_v38, %v5120_v43  ;;  %v5197_v1 = vmul.f32 %v5120_v43, %v5120_v43 }
 0x35d   : > { %v5024_v45 = vpop.f32.mrf.mxu3 }
 0x35e   : > { %v5212_v21 = vadd.f32 %v5211_v56, %v5197_v1  ;;  %v5025_v51 = vadd.f32 %v5024_v45, %v4976_v35  ;;  %v5124_v27 = vpop.f32.mrf.mxu1 }
 0x360   : > { %v5078_v13 = vpop.f32.mrf.mxu0  ;;  %v5074_v14 = vadd.f32 %v5073_v0, %v5025_v51 }
 0x361   : > { %v4980_v29 = vpop.f32.mrf.mxu2 }
 0x362   : > { %v5123_v15 = vadd.f32 %v5122_v36, %v5074_v14  ;;  %v4981_v52 = vadd.f32 %v4980_v29, %v8616_v26 }
 0x364   : > { %6526 = vst [vmem:[%s6928_s30 + $0xa0] sm:$0xff] %v5123_v15  ;;  %v5173_v12 = vadd.f32 %v5172_v9, %v5123_v15  ;;  %v5198_v30 = vmul.f32 %v5123_v15, %v5123_v15 }
 0x365   : > { %v5026_v8 = vpop.f32.mrf.mxu3 }
 0x366   : > { %v5213_v16 = vadd.f32 %v5212_v21, %v5198_v30  ;;  %v5027_v46 = vadd.f32 %v5026_v8, %v4978_v2  ;;  %v5127_v42 = vpop.f32.mrf.mxu1 }
 0x368   : > { %v5080_v41 = vpop.f32.mrf.mxu0  ;;  %v5076_v33 = vadd.f32 %v5075_v55, %v5027_v46 }
 0x369   : > { %v4982_v60 = vpop.f32.mrf.mxu2 }
 0x36a   : > { %v5125_v18 = vadd.f32 %v5124_v27, %v5076_v33  ;;  %v4983_v34 = vadd.f32 %v4982_v60, %v8619_v37 }
 0x36c   : > { %6527 = vst [vmem:[%s6928_s30 + $0xa8] sm:$0xff] %v5125_v18  ;;  %v5174_v57 = vadd.f32 %v5173_v12, %v5125_v18  ;;  %v5199_v6 = vmul.f32 %v5125_v18, %v5125_v18 }
 0x36d   : > { %v5029_v49 = vpop.f32.mrf.mxu3 }
 0x36e   : > { %v5214_v59 = vadd.f32 %v5213_v16, %v5199_v6  ;;  %v5030_v39 = vadd.f32 %v5029_v49, %v4981_v52  ;;  %v5129_v47 = vpop.f32.mrf.mxu1 }
 0x370   : > { %v5079_v58 = vadd.f32 %v5078_v13, %v5030_v39  ;;  %v5083_v10 = vpop.f32.mrf.mxu0 }
 0x371   : > { %v4985_v3 = vpop.f32.mrf.mxu2 }
 0x372   : > { %v5128_v0 = vadd.f32 %v5127_v42, %v5079_v58  ;;  %v4986_v55 = vadd.f32 %v4985_v3, %v8622_v22 }
 0x374   : > { %6528 = vst [vmem:[%s6928_s30 + $0xb0] sm:$0xff] %v5128_v0  ;;  %v5175_v4 = vadd.f32 %v5174_v57, %v5128_v0  ;;  %v5200_v62 = vmul.f32 %v5128_v0, %v5128_v0 }
 0x375   : > { %v5031_v48 = vpop.f32.mrf.mxu3 }
 0x376   : > { %v5215_v19 = vadd.f32 %v5214_v59, %v5200_v62  ;;  %v5032_v26 = vadd.f32 %v5031_v48, %v4983_v34  ;;  %v5132_v17 = vpop.f32.mrf.mxu1 }
 0x378   : > { %v5081_v61 = vadd.f32 %v5080_v41, %v5032_v26  ;;  %v5085_v7 = vpop.f32.mrf.mxu0 }
 0x379   : > { %v4987_v40 = vpop.f32.mrf.mxu2 }
 0x37a   : > { %v5130_v54 = vadd.f32 %v5129_v47, %v5081_v61  ;;  %v4988_v43 = vadd.f32 %v4987_v40, %v8625_v23 }
 0x37c   : > { %6529 = vst [vmem:[%s6928_s30 + $0xb8] sm:$0xff] %v5130_v54  ;;  %v5176_v32 = vadd.f32 %v5175_v4, %v5130_v54  ;;  %v5201_v38 = vmul.f32 %v5130_v54, %v5130_v54 }
 0x37d   : > { %v5034_v25 = vpop.f32.mrf.mxu3 }
 0x37e   : > { %v5216_v28 = vadd.f32 %v5215_v19, %v5201_v38  ;;  %v5035_v37 = vadd.f32 %v5034_v25, %v4986_v55  ;;  %v5134_v56 = vpop.f32.mrf.mxu1 }
 0x380   : > { %v5084_v53 = vadd.f32 %v5083_v10, %v5035_v37  ;;  %v5088_v1 = vpop.f32.mrf.mxu0 }
 0x381   : > { %v4990_v63 = vpop.f32.mrf.mxu2 }
 0x382   : > { %v5133_v36 = vadd.f32 %v5132_v17, %v5084_v53  ;;  %v4991_v14 = vadd.f32 %v4990_v63, %v8628_v5 }
 0x384   : > { %6530 = vst [vmem:[%s6928_s30 + $0xc0] sm:$0xff] %v5133_v36  ;;  %v5177_v31 = vadd.f32 %v5176_v32, %v5133_v36  ;;  %v5202_v35 = vmul.f32 %v5133_v36, %v5133_v36 }
 0x385   : > { %v5036_v9 = vpop.f32.mrf.mxu3 }
 0x386   : > { %v5217_v45 = vadd.f32 %v5216_v28, %v5202_v35  ;;  %v5037_v22 = vadd.f32 %v5036_v9, %v4988_v43  ;;  %v5137_v13 = vpop.f32.mrf.mxu1 }
 0x388   : > { %v5086_v21 = vadd.f32 %v5085_v7, %v5037_v22  ;;  %v5090_v30 = vpop.f32.mrf.mxu0 }
 0x389   : > { %v4992_v27 = vpop.f32.mrf.mxu2 }
 0x38a   : > { %v5135_v51 = vadd.f32 %v5134_v56, %v5086_v21  ;;  %v4993_v41 = vadd.f32 %v4992_v27, %v8631_v24 }
 0x38c   : > { %6531 = vst [vmem:[%s6928_s30 + $0xc8] sm:$0xff] %v5135_v51  ;;  %v5178_v15 = vadd.f32 %v5177_v31, %v5135_v51  ;;  %v5203_v29 = vmul.f32 %v5135_v51, %v5135_v51 }
 0x38d   : > { %v5039_v2 = vpop.f32.mrf.mxu3 }
 0x38e   : > { %v5218_v12 = vadd.f32 %v5217_v45, %v5203_v29  ;;  %v5040_v23 = vadd.f32 %v5039_v2, %v4991_v14  ;;  %v5139_v16 = vpop.f32.mrf.mxu1 }
 0x390   : > { %v5089_v8 = vadd.f32 %v5088_v1, %v5040_v23  ;;  %v5093_v6 = vpop.f32.mrf.mxu0 }
 0x391   : > { %v4995_v42 = vpop.f32.mrf.mxu2 }
 0x392   : > { %v5138_v46 = vadd.f32 %v5137_v13, %v5089_v8  ;;  %v4996_v39 = vadd.f32 %v4995_v42, %v8634_v20 }
 0x394   : > { %6532 = vst [vmem:[%s6928_s30 + $0xd0] sm:$0xff] %v5138_v46  ;;  %v5179_v33 = vadd.f32 %v5178_v15, %v5138_v46  ;;  %v5204_v18 = vmul.f32 %v5138_v46, %v5138_v46 }
 0x395   : > { %v5041_v60 = vpop.f32.mrf.mxu3 }
 0x396   : > { %v5219_v52 = vadd.f32 %v5218_v12, %v5204_v18  ;;  %v5042_v5 = vadd.f32 %v5041_v60, %v4993_v41  ;;  %v5142_v59 = vpop.f32.mrf.mxu1 }
 0x398   : > { %v5091_v57 = vadd.f32 %v5090_v30, %v5042_v5  ;;  %v5095_v62 = vpop.f32.mrf.mxu0 }
 0x399   : > { %v4997_v10 = vpop.f32.mrf.mxu2 }
 0x39a   : > { %v5140_v49 = vadd.f32 %v5139_v16, %v5091_v57  ;;  %v4998_v48 = vadd.f32 %v4997_v10, %v8637_v44 }
 0x39c   : > { %6533 = vst [vmem:[%s6928_s30 + $0xd8] sm:$0xff] %v5140_v49  ;;  %v5180_v47 = vadd.f32 %v5179_v33, %v5140_v49  ;;  %v5205_v58 = vmul.f32 %v5140_v49, %v5140_v49  ;;  %v5169_v33 = vld [vmem:[%s8711_s6] sm:$0x1] }
 0x39d   : > { %v5044_v0 = vpop.f32.mrf.mxu3 }
 0x39e   : > { %v5220_v3 = vadd.f32 %v5219_v52, %v5205_v58  ;;  %v5045_v24 = vadd.f32 %v5044_v0, %v4996_v39  ;;  %v5144_v17 = vpop.f32.mrf.mxu1  ;;  %v5193_v52 = vld [vmem:[%s8711_s6 + $0x1] sm:$0x1] }
 0x3a0   : > { %v5094_v34 = vadd.f32 %v5093_v6, %v5045_v24  ;;  %v5098_v28 = vpop.f32.mrf.mxu0 }
 0x3a1   : > { %v5000_v40 = vpop.f32.mrf.mxu2 }
 0x3a2   : > { %v5143_v4 = vadd.f32 %v5142_v59, %v5094_v34  ;;  %v5001_v32 = vadd.f32 %v5000_v40, %v8640_v50 }
 0x3a4   : > { %6534 = vst [vmem:[%s6928_s30 + $0xe0] sm:$0xff] %v5143_v4  ;;  %v5181_v19 = vadd.f32 %v5180_v47, %v5143_v4  ;;  %v5206_v26 = vmul.f32 %v5143_v4, %v5143_v4 }
 0x3a5   : > { %v5046_v61 = vpop.f32.mrf.mxu3 }
 0x3a6   : > { %v5221_v54 = vadd.f32 %v5220_v3, %v5206_v26  ;;  %v5047_v20 = vadd.f32 %v5046_v61, %v4998_v48  ;;  %v5147_v53 = vpop.f32.mrf.mxu1 }
 0x3a8   : > { %v5096_v7 = vadd.f32 %v5095_v62, %v5047_v20  ;;  %v5100_v22 = vpop.f32.mrf.mxu0 }
 0x3a9   : > { %v5002_v63 = vpop.f32.mrf.mxu2 }
 0x3aa   : > { %v5145_v55 = vadd.f32 %v5144_v17, %v5096_v7  ;;  %v5003_v31 = vadd.f32 %v5002_v63, %v8643_v11 }
 0x3ac   : > { %6535 = vst [vmem:[%s6928_s30 + $0xe8] sm:$0xff] %v5145_v55  ;;  %v5182_v38 = vadd.f32 %v5181_v19, %v5145_v55  ;;  %v5207_v25 = vmul.f32 %v5145_v55, %v5145_v55 }
 0x3ad   : > { %v5049_v37 = vpop.f32.mrf.mxu3 }
 0x3ae   : > { %v5222_v56 = vadd.f32 %v5221_v54, %v5207_v25  ;;  %v5050_v44 = vadd.f32 %v5049_v37, %v5001_v32  ;;  %v5149_v21 = vpop.f32.mrf.mxu1 }
 0x3b0   : > { %v5099_v36 = vadd.f32 %v5098_v28, %v5050_v44 }
 0x3b2   : > { %v5148_v43 = vadd.f32 %v5147_v53, %v5099_v36 }
 0x3b4   : > { %6536 = vst [vmem:[%s6928_s30 + $0xf0] sm:$0xff] %v5148_v43  ;;  %v5183_v35 = vadd.f32 %v5182_v38, %v5148_v43  ;;  %v5208_v9 = vmul.f32 %v5148_v43, %v5148_v43 }
 0x3b5   : > { %v5051_v1 = vpop.f32.mrf.mxu3 }
 0x3b6   : > { %v5223_v45 = vadd.f32 %v5222_v56, %v5208_v9  ;;  %v5052_v50 = vadd.f32 %v5051_v1, %v5003_v31 }
 0x3b8   : > { %v5101_v13 = vadd.f32 %v5100_v22, %v5052_v50 }
 0x3ba   : > { %v5150_v51 = vadd.f32 %v5149_v21, %v5101_v13 }
 0x3bc   : > { %6537 = vst [vmem:[%s6928_s30 + $0xf8] sm:$0xff] %v5150_v51  ;;  %v5184_v27 = vadd.f32 %v5183_v35, %v5150_v51  ;;  %v5209_v14 = vmul.f32 %v5150_v51, %v5150_v51 }
 0x3be   : > { %v5185_v15 = vrot.slane %v5184_v27, 4  ;;  %v5224_v29 = vadd.f32 %v5223_v45, %v5209_v14 }
 0x3c0   : > { %v5186_v2 = vadd.f32 %v5185_v15, %v5184_v27  ;;  %v5225_v12 = vrot.slane %v5224_v29, 4 }
 0x3c2   : > { %v5187_v23 = vrot.slane %v5186_v2, 2  ;;  %v5226_v30 = vadd.f32 %v5225_v12, %v5224_v29 }
 0x3c4   : > { %v5188_v11 = vadd.f32 %v5187_v23, %v5186_v2  ;;  %v5227_v8 = vrot.slane %v5226_v30, 2 }
 0x3c6   : > { %v5189_v16 = vrot.slane %v5188_v11, 1  ;;  %v5228_v46 = vadd.f32 %v5227_v8, %v5226_v30 }
 0x3c8   : > { %v5190_v42 = vadd.f32 %v5189_v16, %v5188_v11  ;;  %v5229_v41 = vrot.slane %v5228_v46, 1 }
 0x3ca   : > { %v5191_v18 = vadd.f32 %v5190_v42, %v5169_v33  ;;  %v5230_v60 = vadd.f32 %v5229_v41, %v5228_v46  ;;  %5236 = sbr.rel (%p6538_p5) target bundleno = 1019 (0x3fb), region = 48 }
 0x3cc   : > { %5192 = vst [vmem:[%s8711_s6] sm:$0x1] %v5191_v18  ;;  %v5231_v5 = vadd.f32 %v5230_v60, %v5193_v52 }
 0x3ce   : > { %5232 = vst [vmem:[%s8711_s6 + $0x1] sm:$0x1] %v5231_v5 }
 0x3cf   : > { %v6872_v57 = vmov 512.0  }
 0x3d0   : > { %6858 = vrcp.f32 %v6872_v57 }
 0x3d3   : > { %v5237_v47 = vld [vmem:[%s8711_s6] sm:$0x1] }
 0x3d5   : > { %v5246_v10 = vld [vmem:[%s8711_s6 + $0x1] sm:$0x1] }
 0x3d6   : > { %v6859_v6 = vpop.eup %6858 }
 0x3d7   : > { %v5239_v49 = vmul.f32 512.0, %v6859_v6  ;;  %vm5243_vm14 = vweird.f32 %v6859_v6 }
 0x3d9   : > { %v5240_v59 = vsub.f32 1.0, %v5239_v49 }
 0x3db   : > { %v5241_v39 = vmul.f32 %v6859_v6, %v5240_v59 }
 0x3dd   : > { %v5242_v58 = vadd.f32 %v6859_v6, %v5241_v39 }
 0x3df   : > { %v5244_v0 = vsel %vm5243_vm14, %v6859_v6, %v5242_v58 }
 0x3e0   : > { %v5245_v3 = vmul.f32 %v5244_v0, %v5237_v47  ;;  %v5247_v24 = vmul.f32 %v5246_v10, %v5244_v0 }
 0x3e2   : > { %v5248_v34 = vmul.f32 %v5245_v3, %v5245_v3  ;;  %5250 = vst [vmem:[%s8711_s6] sm:$0x1] %v5245_v3 }
 0x3e4   : > { %v5249_v4 = vsub.f32 %v5247_v24, %v5248_v34 }
 0x3e6   : > { %v5251_v62 = vadd.f32 1e-05, %v5249_v4 }
 0x3e8   : > { %6860 = vrsqrt.f32 %v5251_v62  ;;  %vm5258_vm15 = vweird.f32 %v5251_v62 }
 0x3ee   : > { %v6861_v48 = vpop.eup %6860 }
 0x3ef   : > { %v5253_v19 = vmul.f32 %v6861_v48, %v5251_v62  ;;  %vm5259_vm0 = vweird.f32 %v6861_v48 }
 0x3f0   : > { %vm5260_vm1 = vmor %vm5258_vm15, %vm5259_vm0 }
 0x3f1   : > { %v5254_v26 = vmul.f32 %v6861_v48, %v5253_v19 }
 0x3f3   : > { %v5255_v17 = vmul.f32 0.5, %v5254_v26 }
 0x3f5   : > { %v5256_v61 = vsub.f32 1.5, %v5255_v17 }
 0x3f7   : > { %v5257_v54 = vmul.f32 %v6861_v48, %v5256_v61 }
 0x3f9   : > { %v5261_v20 = vsel %vm5260_vm1, %v6861_v48, %v5257_v54 }
 0x3fa   : > { %5262 = vst [vmem:[%s8711_s6 + $0x1] sm:$0x1] %v5261_v20 }
 0x3fb PF: > { %s17_s21 = sadd.s32 1, %s6868_s21  }
 0x3fc   : > { %p14_p6 = scmp.ge.s32.totalorder %s17_s21, 4  }
 0x3fe   :  { %16 = sbr.rel (!%p14_p6) target bundleno = 1 (0x1), region = 91 }

</bundles_post_ra>
